<compile_context>
chip_gen: v5e
topology: v5e:2x2
jax: 0.10.0
libtpu: 0.0.40
codegen_flags: <defaults>
</compile_context>

<pallas_src>
import functools

import jax
import jax.numpy as jnp
from jax.experimental import pallas as pl
from jax.experimental.pallas import tpu as pltpu

BN_EPS = 1e-5
LANE = 128


def _round_up(v, m):
  return -(-v // m) * m


def _pad_to(a, shape):
  pads = [(0, s - d) for d, s in zip(a.shape, shape)]
  return jnp.pad(a, pads)


# ---------------------------------------------------------------------------
# Fused bottleneck kernel: one (batch, row-tile) grid step per invocation.
# ---------------------------------------------------------------------------
def _bottleneck_fused_kernel(
    xc_ref,            # (1, TH, W, Cp)   bf16  centre rows (also the residual)
    xt_ref,            # (1, p,  W, Cp)   bf16  top-halo rows (prev tile)
    xb_ref,            # (1, p,  W, Cp)   bf16  bottom-halo rows (next tile)
    w1_ref,            # (Cp, P)          bf16
    w2_ref,            # (3, 3, P, P)     bf16  (HWIO)
    w3_ref,            # (P, Cp)          bf16
    s1_ref, b1_ref,    # (1, P)           f32   folded BN1
    s2_ref, b2_ref,    # (1, P)           f32   folded BN2
    s3_ref, b3_ref,    # (1, Cp)          f32   folded BN3
    o_ref,             # (1, TH, W, Cp)   bf16
    h1_ref,            # VMEM scratch (TH+2p, W+2*pad_w, P) bf16
    acc_ref,           # VMEM scratch (TH*W, P) f32
    *, TH, W, P, dil, pad_w):
  p = dil
  i = pl.program_id(1)
  nblk = pl.num_programs(1)
  rows = TH + 2 * p

  w1 = w1_ref[...]
  s1 = s1_ref[...]
  b1 = b1_ref[...]

  def conv1_bn_relu(x_block, nrows):
    # 1x1 conv == channel matmul; f32 accumulate + f32 BN/ReLU epilogue.
    x2d = x_block.reshape(nrows * W, x_block.shape[-1])
    y = jnp.dot(x2d, w1, preferred_element_type=jnp.float32)
    y = jnp.maximum(y * s1 + b1, 0.0)
    return y.reshape(nrows, W, P).astype(h1_ref.dtype)

  # --- conv2 zero padding (minimal stores; review item #1) -------------------
  # Left/right column borders are never written by any stage: zeroing them at
  # i == 0 keeps them zero for every later step on this core.
  @pl.when(i == 0)
  def _():
    zcol = jnp.zeros((rows, pad_w, P), h1_ref.dtype)
    h1_ref[0:rows, 0:pad_w, :] = zcol
    h1_ref[0:rows, pad_w + W:pad_w + W + pad_w, :] = zcol
    # top zero padding of the image (stale data from the previous image otherwise)
    h1_ref[0:p, pad_w:pad_w + W, :] = jnp.zeros((p, W, P), h1_ref.dtype)

  @pl.when(i == nblk - 1)
  def _():  # bottom zero padding of the image
    h1_ref[TH + p:rows, pad_w:pad_w + W, :] = jnp.zeros((p, W, P), h1_ref.dtype)

  # --- stage 1: conv1 + bn1 + relu (centre rows + needed halo strips) --------
  xc = xc_ref[...]                                        # (1, TH, W, Cp)
  h1_ref[p:p + TH, pad_w:pad_w + W, :] = conv1_bn_relu(xc, TH)

  @pl.when(i > 0)
  def _():  # top halo = last p rows of the previous tile
    h1_ref[0:p, pad_w:pad_w + W, :] = conv1_bn_relu(xt_ref[...], p)

  @pl.when(i < nblk - 1)
  def _():  # bottom halo = first p rows of the next tile
    h1_ref[TH + p:rows, pad_w:pad_w + W, :] = conv1_bn_relu(xb_ref[...], p)

  # --- stage 2: 3x3 dilated conv = 9 shifted matmuls, f32 VMEM accumulator ---
  for ky in range(3):
    for kx in range(3):
      c0 = pad_w + (kx - 1) * dil
      patch = h1_ref[ky * dil:ky * dil + TH, c0:c0 + W, :]
      contrib = jnp.dot(patch.reshape(TH * W, P), w2_ref[ky, kx],
                        preferred_element_type=jnp.float32)
      if ky == 0 and kx == 0:
        acc_ref[...] = contrib
      else:
        acc_ref[...] += contrib
  h2 = jnp.maximum(acc_ref[...] * s2_ref[...] + b2_ref[...], 0.0)
  h2 = h2.astype(xc.dtype)                                # bf16 for the MXU

  # --- stage 3: conv3 + bn3 + residual + relu ---------------------------------
  y = jnp.dot(h2, w3_ref[...], preferred_element_type=jnp.float32)
  residual = xc.reshape(TH * W, xc.shape[-1]).astype(jnp.float32)
  y = jnp.maximum(y * s3_ref[...] + b3_ref[...] + residual, 0.0)
  o_ref[...] = y.reshape(o_ref.shape).astype(o_ref.dtype)


# ---------------------------------------------------------------------------
# Parameters (deterministic init, InPlaceABNSync folded to scale/bias)
# ---------------------------------------------------------------------------
def _fold_bn(gamma, beta, mean, var, eps=BN_EPS):
  scale = gamma / jnp.sqrt(var + eps)
  bias = beta - mean * scale
  return scale, bias


def init_bottleneck_params(key, inplanes, planes):
  expansion = 4
  ks = jax.random.split(key, 6)
  p = {}
  # PyTorch conv weights are (Cout, Cin, kh, kw); stored here in kernel layout.
  p["w1"] = 0.1 * jax.random.normal(ks[0], (inplanes, planes), jnp.float32)       # (Cin, Cout)
  p["w2"] = 0.1 * jax.random.normal(ks[1], (3, 3, planes, planes), jnp.float32)   # HWIO
  p["w3"] = 0.1 * jax.random.normal(ks[2], (planes, planes * expansion), jnp.float32)

  def bn(k, c):
    kg, kb, km, kv = jax.random.split(k, 4)
    gamma = 1.0 + 0.1 * jax.random.normal(kg, (c,), jnp.float32)
    beta = 0.1 * jax.random.normal(kb, (c,), jnp.float32)
    mean = 0.1 * jax.random.normal(km, (c,), jnp.float32)
    var = jnp.abs(jax.random.normal(kv, (c,), jnp.float32)) + 0.5
    return gamma, beta, mean, var

  p["bn1"] = bn(ks[3], planes)
  p["bn2"] = bn(ks[4], planes)
  p["bn3"] = bn(ks[5], planes * expansion)
  return p


# ---------------------------------------------------------------------------
# Forward pass (fused Pallas kernel)
# ---------------------------------------------------------------------------
def _pick_row_tile(H, W, p):
  # Largest divisor of H that is a multiple of p with TH*W <= 4096 (review #9).
  cands = [t for t in range(p, H + 1, p) if H % t == 0]
  good = [t for t in cands if t * W <= 4096]
  return good[-1] if good else cands[0]


def bottleneck_forward(x_nchw, params, dilation=1, multi_grid=1, row_tile=None):
  # stride=1, downsample=None, deform_conv=False (module defaults)
  x = jnp.transpose(x_nchw, (0, 2, 3, 1))                 # NCHW -> NHWC
  N, H, W, Cin = x.shape
  planes = params["w1"].shape[1]
  Cout = params["w3"].shape[1]
  assert Cin == Cout, "downsample=None requires inplanes == planes * expansion"
  assert W % 8 == 0, "W must be a multiple of 8 (sublane alignment)"
  dil = dilation * multi_grid
  p = dil
  assert H % p == 0, "H must be a multiple of dilation*multi_grid"

  # MXU / lane alignment (review #4, #10): pad channel axes to multiples of 128.
  Cp = _round_up(Cin, LANE)
  P = _round_up(planes, LANE)
  pad_w = _round_up(dil, 8)                               # aligned scratch W border

  TH = _pick_row_tile(H, W, p) if row_tile is None else min(row_tile, H)
  assert H % TH == 0, "row tile must divide H"
  assert TH % p == 0, "row tile must be a multiple of dilation*multi_grid"
  nblk = H // TH
  th_over_p = TH // p
  halo_last = H // p - 1

  s1, b1 = _fold_bn(*params["bn1"])
  s2, b2 = _fold_bn(*params["bn2"])
  s3, b3 = _fold_bn(*params["bn3"])

  # bf16 operands for the MXU; accumulation & epilogue stay f32 in-kernel.
  xb = _pad_to(x, (N, H, W, Cp)).astype(jnp.bfloat16)
  w1 = _pad_to(params["w1"], (Cp, P)).astype(jnp.bfloat16)
  w2 = _pad_to(params["w2"], (3, 3, P, P)).astype(jnp.bfloat16)
  w3 = _pad_to(params["w3"], (P, Cp)).astype(jnp.bfloat16)
  s1p, b1p = _pad_to(s1, (P,)).reshape(1, P), _pad_to(b1, (P,)).reshape(1, P)
  s2p, b2p = _pad_to(s2, (P,)).reshape(1, P), _pad_to(b2, (P,)).reshape(1, P)
  s3p, b3p = _pad_to(s3, (Cp,)).reshape(1, Cp), _pad_to(b3, (Cp,)).reshape(1, Cp)

  # --- BlockSpecs -------------------------------------------------------------
  xc_spec = pl.BlockSpec((1, TH, W, Cp), lambda n, i: (n, i, 0, 0))
  xt_spec = pl.BlockSpec(
      (1, p, W, Cp),
      lambda n, i: (n, jnp.maximum(i * th_over_p - 1, 0), 0, 0))
  xb_spec = pl.BlockSpec(
      (1, p, W, Cp),
      lambda n, i: (n, jnp.minimum((i + 1) * th_over_p, halo_last), 0, 0))
  w1_spec = pl.BlockSpec((Cp, P), lambda n, i: (0, 0))
  w2_spec = pl.BlockSpec((3, 3, P, P), lambda n, i: (0, 0, 0, 0))
  w3_spec = pl.BlockSpec((P, Cp), lambda n, i: (0, 0))

  def bn_spec(c):
    return pl.BlockSpec((1, c), lambda n, i: (0, 0))

  out_spec = pl.BlockSpec((1, TH, W, Cp), lambda n, i: (n, i, 0, 0))

  # --- VMEM budget derived from actual block sizes (review #3) -----------------
  bpe16, bpe32 = 2, 4
  blk_bytes = (TH * W * Cp * bpe16                      # centre input
               + 2 * p * W * Cp * bpe16                 # halo strips
               + TH * W * Cp * bpe16                    # bf16 output
               + (Cp * P + 9 * P * P + P * Cp) * bpe16  # weights
               + (4 * P + 2 * Cp) * bpe32)              # folded BN vectors
  scratch_bytes = ((TH + 2 * p) * (W + 2 * pad_w) * P * bpe16
                   + TH * W * P * bpe32)
  vmem_limit = int(min(2 * blk_bytes + scratch_bytes + (16 << 20), 64 << 20))

  kern = functools.partial(_bottleneck_fused_kernel,
                           TH=TH, W=W, P=P, dil=dil, pad_w=pad_w)

  out = pl.pallas_call(
      kern,
      out_shape=jax.ShapeDtypeStruct((N, H, W, Cp), jnp.bfloat16),
      grid_spec=pltpu.PrefetchScalarGridSpec(
          num_scalar_prefetch=0,
          grid=(N, nblk),
          in_specs=[xc_spec, xt_spec, xb_spec,
                    w1_spec, w2_spec, w3_spec,
                    bn_spec(P), bn_spec(P),
                    bn_spec(P), bn_spec(P),
                    bn_spec(Cp), bn_spec(Cp)],
          out_specs=out_spec,
          scratch_shapes=[
              pltpu.VMEM((TH + 2 * p, W + 2 * pad_w, P), jnp.bfloat16),
              pltpu.VMEM((TH * W, P), jnp.float32)]),
      # Row axis "arbitrary": it is never split across cores, so i==0 is the
      # first step every core executes (required by the once-per-image border
      # zeroing); batch axis stays "parallel" for megacore sharding.
      compiler_params=pltpu.CompilerParams(
          dimension_semantics=("parallel", "arbitrary"),
          vmem_limit_bytes=vmem_limit),
  )(xb, xb, xb, w1, w2, w3, s1p, b1p, s2p, b2p, s3p, b3p)

  out = out[..., :Cout]                                   # drop padded channels
  return jnp.transpose(out, (0, 3, 1, 2)).astype(jnp.float32)   # NHWC -> NCHW


# ---------------------------------------------------------------------------
# Pure-JAX reference (same bf16-in / f32-accumulate numerics)
# ---------------------------------------------------------------------------
def bottleneck_reference(x_nchw, params, dilation=1, multi_grid=1):
  x = jnp.transpose(x_nchw, (0, 2, 3, 1)).astype(jnp.bfloat16)
  dil = dilation * multi_grid
  s1, b1 = _fold_bn(*params["bn1"])
  s2, b2 = _fold_bn(*params["bn2"])
  s3, b3 = _fold_bn(*params["bn3"])

  def conv(inp, w_hwio, pad=0, d=1):
    return jax.lax.conv_general_dilated(
        inp, w_hwio, window_strides=(1, 1),
        padding=[(pad, pad), (pad, pad)], rhs_dilation=(d, d),
        dimension_numbers=("NHWC", "HWIO", "NHWC"),
        preferred_element_type=jnp.float32)

  w1 = params["w1"].astype(jnp.bfloat16).reshape(1, 1, *params["w1"].shape)
  w2 = params["w2"].astype(jnp.bfloat16)
  w3 = params["w3"].astype(jnp.bfloat16).reshape(1, 1, *params["w3"].shape)

  h1 = jnp.maximum(conv(x, w1) * s1 + b1, 0.0).astype(jnp.bfloat16)
  h2 = jnp.maximum(conv(h1, w2, pad=dil, d=dil) * s2 + b2, 0.0).astype(jnp.bfloat16)
  y = jnp.maximum(conv(h2, w3) * s3 + b3 + x.astype(jnp.float32), 0.0)
  return jnp.transpose(y, (0, 3, 1, 2))


if __name__ == "__main__":
  key = jax.random.PRNGKey(0)
  k_x, k_p = jax.random.split(key)

  # downsample is None -> inplanes must equal planes * expansion
  N, planes = 2, 8
  inplanes = planes * 4            # 32
  H = W = 16

  params = init_bottleneck_params(k_p, inplanes, planes)
  x = jax.random.normal(k_x, (N, inplanes, H, W), jnp.float32)

  # Config 1: dilation=1, auto row tile (single tile, exercises channel padding).
  out1 = jax.block_until_ready(bottleneck_forward(x, params, dilation=1, multi_grid=1))
  ref1 = bottleneck_reference(x, params, dilation=1, multi_grid=1)
  assert out1.shape == (N, inplanes, H, W)
  assert jnp.allclose(out1, ref1, atol=3e-2, rtol=3e-2), "mismatch vs reference (dil=1)"

  # Config 2: dilated 3x3 + multiple row tiles (exercises the halo path).
  out2 = jax.block_until_ready(
      bottleneck_forward(x, params, dilation=2, multi_grid=1, row_tile=8))
  ref2 = bottleneck_reference(x, params, dilation=2, multi_grid=1)
  assert jnp.allclose(out2, ref2, atol=3e-2, rtol=3e-2), "mismatch vs reference (dil=2)"

  print("KERNEL_OK")
</pallas_src>

<mosaic_0001>
module attributes {stable_mosaic.version = 11 : i64} {
  func.func @_bottleneck_fused_kernel(%arg0: i32, %arg1: i32, %arg2: memref<1x16x16x128xbf16, #tpu.memory_space<vmem>>, %arg3: memref<1x1x16x128xbf16, #tpu.memory_space<vmem>>, %arg4: memref<1x1x16x128xbf16, #tpu.memory_space<vmem>>, %arg5: memref<128x128xbf16, #tpu.memory_space<vmem>>, %arg6: memref<3x3x128x128xbf16, #tpu.memory_space<vmem>>, %arg7: memref<128x128xbf16, #tpu.memory_space<vmem>>, %arg8: memref<1x128xf32, #tpu.memory_space<vmem>>, %arg9: memref<1x128xf32, #tpu.memory_space<vmem>>, %arg10: memref<1x128xf32, #tpu.memory_space<vmem>>, %arg11: memref<1x128xf32, #tpu.memory_space<vmem>>, %arg12: memref<1x128xf32, #tpu.memory_space<vmem>>, %arg13: memref<1x128xf32, #tpu.memory_space<vmem>>, %arg14: memref<1x16x16x128xbf16, #tpu.memory_space<vmem>>, %arg15: memref<18x32x128xbf16, #tpu.memory_space<vmem>>, %arg16: memref<256x128xf32, #tpu.memory_space<vmem>>) attributes {dimension_semantics = [#tpu.dimension_semantics<parallel>, #tpu.dimension_semantics<arbitrary>], iteration_bounds = array<i64: 2, 1>, scalar_prefetch = 0 : i64, scratch_operands = 2 : i64, tpu.core_type = #tpu.core_type<tc>, window_params = [{transform_indices = @transform_0, window_bounds = array<i64: 1, 16, 16, 128>}, {transform_indices = @transform_1, window_bounds = array<i64: 1, 1, 16, 128>}, {transform_indices = @transform_2, window_bounds = array<i64: 1, 1, 16, 128>}, {pipeline_mode = #tpu.pipeline_mode<synchronous>, transform_indices = @transform_3, window_bounds = array<i64: 128, 128>}, {pipeline_mode = #tpu.pipeline_mode<synchronous>, transform_indices = @transform_4, window_bounds = array<i64: 3, 3, 128, 128>}, {pipeline_mode = #tpu.pipeline_mode<synchronous>, transform_indices = @transform_5, window_bounds = array<i64: 128, 128>}, {pipeline_mode = #tpu.pipeline_mode<synchronous>, transform_indices = @transform_6, window_bounds = array<i64: 1, 128>}, {pipeline_mode = #tpu.pipeline_mode<synchronous>, transform_indices = @transform_7, window_bounds = array<i64: 1, 128>}, {pipeline_mode = #tpu.pipeline_mode<synchronous>, transform_indices = @transform_8, window_bounds = array<i64: 1, 128>}, {pipeline_mode = #tpu.pipeline_mode<synchronous>, transform_indices = @transform_9, window_bounds = array<i64: 1, 128>}, {pipeline_mode = #tpu.pipeline_mode<synchronous>, transform_indices = @transform_10, window_bounds = array<i64: 1, 128>}, {pipeline_mode = #tpu.pipeline_mode<synchronous>, transform_indices = @transform_11, window_bounds = array<i64: 1, 128>}, {transform_indices = @transform_12, window_bounds = array<i64: 1, 16, 16, 128>}]} {
    %c0 = arith.constant 0 : index
    %c0_0 = arith.constant 0 : index
    %0 = vector.load %arg5[%c0, %c0_0] : memref<128x128xbf16, #tpu.memory_space<vmem>>, vector<128x128xbf16>
    %c0_1 = arith.constant 0 : index
    %c0_2 = arith.constant 0 : index
    %1 = vector.load %arg8[%c0_1, %c0_2] : memref<1x128xf32, #tpu.memory_space<vmem>>, vector<1x128xf32>
    %c0_3 = arith.constant 0 : index
    %c0_4 = arith.constant 0 : index
    %2 = vector.load %arg9[%c0_3, %c0_4] : memref<1x128xf32, #tpu.memory_space<vmem>>, vector<1x128xf32>
    %c0_i32 = arith.constant 0 : i32
    %3 = arith.cmpi eq, %arg1, %c0_i32 : i32
    %4 = arith.extui %3 : i1 to i32
    %c0_i32_5 = arith.constant 0 : i32
    %5 = arith.cmpi ne, %4, %c0_i32_5 : i32
    scf.if %5 {
      %cst_140 = arith.constant 0.000000e+00 : bf16
      %123 = vector.broadcast %cst_140 : bf16 to vector<18x8x128xbf16>
      %c0_141 = arith.constant 0 : index
      %c0_142 = arith.constant 0 : index
      %c0_143 = arith.constant 0 : index
      %124 = vector.load %arg15[%c0_141, %c0_142, %c0_143] : memref<18x32x128xbf16, #tpu.memory_space<vmem>>, vector<18x8x128xbf16>
      tpu.vector_store %arg15[%c0_141, %c0_142, %c0_143], %123 {strides = array<i32>} : memref<18x32x128xbf16, #tpu.memory_space<vmem>>, vector<18x8x128xbf16>,
      %c0_144 = arith.constant 0 : index
      %c24 = arith.constant 24 : index
      %c0_145 = arith.constant 0 : index
      %125 = vector.load %arg15[%c0_144, %c24, %c0_145] : memref<18x32x128xbf16, #tpu.memory_space<vmem>>, vector<18x8x128xbf16>
      tpu.vector_store %arg15[%c0_144, %c24, %c0_145], %123 {strides = array<i32>} : memref<18x32x128xbf16, #tpu.memory_space<vmem>>, vector<18x8x128xbf16>,
      %cst_146 = arith.constant 0.000000e+00 : bf16
      %126 = vector.broadcast %cst_146 : bf16 to vector<1x16x128xbf16>
      %c0_147 = arith.constant 0 : index
      %c8_148 = arith.constant 8 : index
      %c0_149 = arith.constant 0 : index
      %127 = vector.load %arg15[%c0_147, %c8_148, %c0_149] : memref<18x32x128xbf16, #tpu.memory_space<vmem>>, vector<1x16x128xbf16>
      tpu.vector_store %arg15[%c0_147, %c8_148, %c0_149], %126 {strides = array<i32>} : memref<18x32x128xbf16, #tpu.memory_space<vmem>>, vector<1x16x128xbf16>,
    } else {
    }
    %c0_i32_6 = arith.constant 0 : i32
    %6 = arith.cmpi eq, %arg1, %c0_i32_6 : i32
    %7 = arith.extui %6 : i1 to i32
    %c0_i32_7 = arith.constant 0 : i32
    %8 = arith.cmpi ne, %7, %c0_i32_7 : i32
    scf.if %8 {
      %cst_140 = arith.constant 0.000000e+00 : bf16
      %123 = vector.broadcast %cst_140 : bf16 to vector<1x16x128xbf16>
      %c17 = arith.constant 17 : index
      %c8_141 = arith.constant 8 : index
      %c0_142 = arith.constant 0 : index
      %124 = vector.load %arg15[%c17, %c8_141, %c0_142] : memref<18x32x128xbf16, #tpu.memory_space<vmem>>, vector<1x16x128xbf16>
      tpu.vector_store %arg15[%c17, %c8_141, %c0_142], %123 {strides = array<i32>} : memref<18x32x128xbf16, #tpu.memory_space<vmem>>, vector<1x16x128xbf16>,
    } else {
    }
    %c0_8 = arith.constant 0 : index
    %c0_9 = arith.constant 0 : index
    %c0_10 = arith.constant 0 : index
    %c0_11 = arith.constant 0 : index
    %9 = vector.load %arg2[%c0_8, %c0_9, %c0_10, %c0_11] : memref<1x16x16x128xbf16, #tpu.memory_space<vmem>>, vector<1x16x16x128xbf16>
    %10 = vector.shape_cast %9 : vector<1x16x16x128xbf16> to vector<256x128xbf16>
    %cst = arith.constant dense<0.000000e+00> : vector<256x128xf32>
    %11 = tpu.matmul %10, %0, %cst {dimension_numbers = #tpu.dot_dimension_numbers<[1], [0], [0], [1], [0, 0, 1, 1], [], []>} : vector<256x128xbf16>, vector<128x128xbf16>, vector<256x128xf32> -> vector<256x128xf32>
    %12 = vector.broadcast %1 : vector<1x128xf32> to vector<256x128xf32>
    %13 = arith.mulf %11, %12 : vector<256x128xf32>
    %14 = vector.broadcast %2 : vector<1x128xf32> to vector<256x128xf32>
    %15 = arith.addf %13, %14 : vector<256x128xf32>
    %cst_12 = arith.constant 0.000000e+00 : f32
    %16 = vector.broadcast %cst_12 : f32 to vector<256x128xf32>
    %17 = arith.maximumf %15, %16 : vector<256x128xf32>
    %18 = vector.shape_cast %17 : vector<256x128xf32> to vector<16x16x128xf32>
    %19 = arith.truncf %18 : vector<16x16x128xf32> to vector<16x16x128xbf16>
    %c1 = arith.constant 1 : index
    %c8 = arith.constant 8 : index
    %c0_13 = arith.constant 0 : index
    %20 = vector.load %arg15[%c1, %c8, %c0_13] : memref<18x32x128xbf16, #tpu.memory_space<vmem>>, vector<16x16x128xbf16>
    tpu.vector_store %arg15[%c1, %c8, %c0_13], %19 {strides = array<i32>} : memref<18x32x128xbf16, #tpu.memory_space<vmem>>, vector<16x16x128xbf16>,
    %c0_i32_14 = arith.constant 0 : i32
    %21 = arith.cmpi sgt, %arg1, %c0_i32_14 : i32
    %22 = arith.extui %21 : i1 to i32
    %c0_i32_15 = arith.constant 0 : i32
    %23 = arith.cmpi ne, %22, %c0_i32_15 : i32
    scf.if %23 {
      %c0_140 = arith.constant 0 : index
      %c0_141 = arith.constant 0 : index
      %c0_142 = arith.constant 0 : index
      %c0_143 = arith.constant 0 : index
      %123 = vector.load %arg3[%c0_140, %c0_141, %c0_142, %c0_143] : memref<1x1x16x128xbf16, #tpu.memory_space<vmem>>, vector<1x1x16x128xbf16>
      %124 = vector.shape_cast %123 : vector<1x1x16x128xbf16> to vector<16x128xbf16>
      %cst_144 = arith.constant dense<0.000000e+00> : vector<16x128xf32>
      %125 = tpu.matmul %124, %0, %cst_144 {dimension_numbers = #tpu.dot_dimension_numbers<[1], [0], [0], [1], [0, 0, 1, 1], [], []>} : vector<16x128xbf16>, vector<128x128xbf16>, vector<16x128xf32> -> vector<16x128xf32>
      %126 = vector.broadcast %1 : vector<1x128xf32> to vector<16x128xf32>
      %127 = arith.mulf %125, %126 : vector<16x128xf32>
      %128 = vector.broadcast %2 : vector<1x128xf32> to vector<16x128xf32>
      %129 = arith.addf %127, %128 : vector<16x128xf32>
      %cst_145 = arith.constant 0.000000e+00 : f32
      %130 = vector.broadcast %cst_145 : f32 to vector<16x128xf32>
      %131 = arith.maximumf %129, %130 : vector<16x128xf32>
      %132 = vector.shape_cast %131 : vector<16x128xf32> to vector<1x16x128xf32>
      %133 = arith.truncf %132 : vector<1x16x128xf32> to vector<1x16x128xbf16>
      %c0_146 = arith.constant 0 : index
      %c8_147 = arith.constant 8 : index
      %c0_148 = arith.constant 0 : index
      %134 = vector.load %arg15[%c0_146, %c8_147, %c0_148] : memref<18x32x128xbf16, #tpu.memory_space<vmem>>, vector<1x16x128xbf16>
      tpu.vector_store %arg15[%c0_146, %c8_147, %c0_148], %133 {strides = array<i32>} : memref<18x32x128xbf16, #tpu.memory_space<vmem>>, vector<1x16x128xbf16>,
    } else {
    }
    %c0_i32_16 = arith.constant 0 : i32
    %24 = arith.cmpi slt, %arg1, %c0_i32_16 : i32
    %25 = arith.extui %24 : i1 to i32
    %c0_i32_17 = arith.constant 0 : i32
    %26 = arith.cmpi ne, %25, %c0_i32_17 : i32
    scf.if %26 {
      %c0_140 = arith.constant 0 : index
      %c0_141 = arith.constant 0 : index
      %c0_142 = arith.constant 0 : index
      %c0_143 = arith.constant 0 : index
      %123 = vector.load %arg4[%c0_140, %c0_141, %c0_142, %c0_143] : memref<1x1x16x128xbf16, #tpu.memory_space<vmem>>, vector<1x1x16x128xbf16>
      %124 = vector.shape_cast %123 : vector<1x1x16x128xbf16> to vector<16x128xbf16>
      %cst_144 = arith.constant dense<0.000000e+00> : vector<16x128xf32>
      %125 = tpu.matmul %124, %0, %cst_144 {dimension_numbers = #tpu.dot_dimension_numbers<[1], [0], [0], [1], [0, 0, 1, 1], [], []>} : vector<16x128xbf16>, vector<128x128xbf16>, vector<16x128xf32> -> vector<16x128xf32>
      %126 = vector.broadcast %1 : vector<1x128xf32> to vector<16x128xf32>
      %127 = arith.mulf %125, %126 : vector<16x128xf32>
      %128 = vector.broadcast %2 : vector<1x128xf32> to vector<16x128xf32>
      %129 = arith.addf %127, %128 : vector<16x128xf32>
      %cst_145 = arith.constant 0.000000e+00 : f32
      %130 = vector.broadcast %cst_145 : f32 to vector<16x128xf32>
      %131 = arith.maximumf %129, %130 : vector<16x128xf32>
      %132 = vector.shape_cast %131 : vector<16x128xf32> to vector<1x16x128xf32>
      %133 = arith.truncf %132 : vector<1x16x128xf32> to vector<1x16x128xbf16>
      %c17 = arith.constant 17 : index
      %c8_146 = arith.constant 8 : index
      %c0_147 = arith.constant 0 : index
      %134 = vector.load %arg15[%c17, %c8_146, %c0_147] : memref<18x32x128xbf16, #tpu.memory_space<vmem>>, vector<1x16x128xbf16>
      tpu.vector_store %arg15[%c17, %c8_146, %c0_147], %133 {strides = array<i32>} : memref<18x32x128xbf16, #tpu.memory_space<vmem>>, vector<1x16x128xbf16>,
    } else {
    }
    %c0_18 = arith.constant 0 : index
    %c7 = arith.constant 7 : index
    %c0_19 = arith.constant 0 : index
    %27 = vector.load %arg15[%c0_18, %c7, %c0_19] : memref<18x32x128xbf16, #tpu.memory_space<vmem>>, vector<16x16x128xbf16>
    %28 = vector.shape_cast %27 : vector<16x16x128xbf16> to vector<256x128xbf16>
    %c0_20 = arith.constant 0 : index
    %c0_21 = arith.constant 0 : index
    %c0_22 = arith.constant 0 : index
    %c0_23 = arith.constant 0 : index
    %29 = vector.load %arg6[%c0_20, %c0_21, %c0_22, %c0_23] : memref<3x3x128x128xbf16, #tpu.memory_space<vmem>>, vector<1x1x128x128xbf16>
    %30 = vector.shape_cast %29 : vector<1x1x128x128xbf16> to vector<128x128xbf16>
    %cst_24 = arith.constant dense<0.000000e+00> : vector<256x128xf32>
    %31 = tpu.matmul %28, %30, %cst_24 {dimension_numbers = #tpu.dot_dimension_numbers<[1], [0], [0], [1], [0, 0, 1, 1], [], []>} : vector<256x128xbf16>, vector<128x128xbf16>, vector<256x128xf32> -> vector<256x128xf32>
    %c0_25 = arith.constant 0 : index
    %c0_26 = arith.constant 0 : index
    %32 = vector.load %arg16[%c0_25, %c0_26] : memref<256x128xf32, #tpu.memory_space<vmem>>, vector<256x128xf32>
    tpu.vector_store %arg16[%c0_25, %c0_26], %31 {strides = array<i32>} : memref<256x128xf32, #tpu.memory_space<vmem>>, vector<256x128xf32>,
    %c0_27 = arith.constant 0 : index
    %c8_28 = arith.constant 8 : index
    %c0_29 = arith.constant 0 : index
    %33 = vector.load %arg15[%c0_27, %c8_28, %c0_29] : memref<18x32x128xbf16, #tpu.memory_space<vmem>>, vector<16x16x128xbf16>
    %34 = vector.shape_cast %33 : vector<16x16x128xbf16> to vector<256x128xbf16>
    %c0_30 = arith.constant 0 : index
    %c1_31 = arith.constant 1 : index
    %c0_32 = arith.constant 0 : index
    %c0_33 = arith.constant 0 : index
    %35 = vector.load %arg6[%c0_30, %c1_31, %c0_32, %c0_33] : memref<3x3x128x128xbf16, #tpu.memory_space<vmem>>, vector<1x1x128x128xbf16>
    %36 = vector.shape_cast %35 : vector<1x1x128x128xbf16> to vector<128x128xbf16>
    %cst_34 = arith.constant dense<0.000000e+00> : vector<256x128xf32>
    %37 = tpu.matmul %34, %36, %cst_34 {dimension_numbers = #tpu.dot_dimension_numbers<[1], [0], [0], [1], [0, 0, 1, 1], [], []>} : vector<256x128xbf16>, vector<128x128xbf16>, vector<256x128xf32> -> vector<256x128xf32>
    %c0_35 = arith.constant 0 : index
    %c0_36 = arith.constant 0 : index
    %38 = vector.load %arg16[%c0_35, %c0_36] : memref<256x128xf32, #tpu.memory_space<vmem>>, vector<256x128xf32>
    %39 = arith.addf %38, %37 : vector<256x128xf32>
    %c0_37 = arith.constant 0 : index
    %c0_38 = arith.constant 0 : index
    %40 = vector.load %arg16[%c0_37, %c0_38] : memref<256x128xf32, #tpu.memory_space<vmem>>, vector<256x128xf32>
    tpu.vector_store %arg16[%c0_37, %c0_38], %39 {strides = array<i32>} : memref<256x128xf32, #tpu.memory_space<vmem>>, vector<256x128xf32>,
    %c0_39 = arith.constant 0 : index
    %c9 = arith.constant 9 : index
    %c0_40 = arith.constant 0 : index
    %41 = vector.load %arg15[%c0_39, %c9, %c0_40] : memref<18x32x128xbf16, #tpu.memory_space<vmem>>, vector<16x16x128xbf16>
    %42 = vector.shape_cast %41 : vector<16x16x128xbf16> to vector<256x128xbf16>
    %c0_41 = arith.constant 0 : index
    %c2 = arith.constant 2 : index
    %c0_42 = arith.constant 0 : index
    %c0_43 = arith.constant 0 : index
    %43 = vector.load %arg6[%c0_41, %c2, %c0_42, %c0_43] : memref<3x3x128x128xbf16, #tpu.memory_space<vmem>>, vector<1x1x128x128xbf16>
    %44 = vector.shape_cast %43 : vector<1x1x128x128xbf16> to vector<128x128xbf16>
    %cst_44 = arith.constant dense<0.000000e+00> : vector<256x128xf32>
    %45 = tpu.matmul %42, %44, %cst_44 {dimension_numbers = #tpu.dot_dimension_numbers<[1], [0], [0], [1], [0, 0, 1, 1], [], []>} : vector<256x128xbf16>, vector<128x128xbf16>, vector<256x128xf32> -> vector<256x128xf32>
    %c0_45 = arith.constant 0 : index
    %c0_46 = arith.constant 0 : index
    %46 = vector.load %arg16[%c0_45, %c0_46] : memref<256x128xf32, #tpu.memory_space<vmem>>, vector<256x128xf32>
    %47 = arith.addf %46, %45 : vector<256x128xf32>
    %c0_47 = arith.constant 0 : index
    %c0_48 = arith.constant 0 : index
    %48 = vector.load %arg16[%c0_47, %c0_48] : memref<256x128xf32, #tpu.memory_space<vmem>>, vector<256x128xf32>
    tpu.vector_store %arg16[%c0_47, %c0_48], %47 {strides = array<i32>} : memref<256x128xf32, #tpu.memory_space<vmem>>, vector<256x128xf32>,
    %c1_49 = arith.constant 1 : index
    %c7_50 = arith.constant 7 : index
    %c0_51 = arith.constant 0 : index
    %49 = vector.load %arg15[%c1_49, %c7_50, %c0_51] : memref<18x32x128xbf16, #tpu.memory_space<vmem>>, vector<16x16x128xbf16>
    %50 = vector.shape_cast %49 : vector<16x16x128xbf16> to vector<256x128xbf16>
    %c1_52 = arith.constant 1 : index
    %c0_53 = arith.constant 0 : index
    %c0_54 = arith.constant 0 : index
    %c0_55 = arith.constant 0 : index
    %51 = vector.load %arg6[%c1_52, %c0_53, %c0_54, %c0_55] : memref<3x3x128x128xbf16, #tpu.memory_space<vmem>>, vector<1x1x128x128xbf16>
    %52 = vector.shape_cast %51 : vector<1x1x128x128xbf16> to vector<128x128xbf16>
    %cst_56 = arith.constant dense<0.000000e+00> : vector<256x128xf32>
    %53 = tpu.matmul %50, %52, %cst_56 {dimension_numbers = #tpu.dot_dimension_numbers<[1], [0], [0], [1], [0, 0, 1, 1], [], []>} : vector<256x128xbf16>, vector<128x128xbf16>, vector<256x128xf32> -> vector<256x128xf32>
    %c0_57 = arith.constant 0 : index
    %c0_58 = arith.constant 0 : index
    %54 = vector.load %arg16[%c0_57, %c0_58] : memref<256x128xf32, #tpu.memory_space<vmem>>, vector<256x128xf32>
    %55 = arith.addf %54, %53 : vector<256x128xf32>
    %c0_59 = arith.constant 0 : index
    %c0_60 = arith.constant 0 : index
    %56 = vector.load %arg16[%c0_59, %c0_60] : memref<256x128xf32, #tpu.memory_space<vmem>>, vector<256x128xf32>
    tpu.vector_store %arg16[%c0_59, %c0_60], %55 {strides = array<i32>} : memref<256x128xf32, #tpu.memory_space<vmem>>, vector<256x128xf32>,
    %c1_61 = arith.constant 1 : index
    %c8_62 = arith.constant 8 : index
    %c0_63 = arith.constant 0 : index
    %57 = vector.load %arg15[%c1_61, %c8_62, %c0_63] : memref<18x32x128xbf16, #tpu.memory_space<vmem>>, vector<16x16x128xbf16>
    %58 = vector.shape_cast %57 : vector<16x16x128xbf16> to vector<256x128xbf16>
    %c1_64 = arith.constant 1 : index
    %c1_65 = arith.constant 1 : index
    %c0_66 = arith.constant 0 : index
    %c0_67 = arith.constant 0 : index
    %59 = vector.load %arg6[%c1_64, %c1_65, %c0_66, %c0_67] : memref<3x3x128x128xbf16, #tpu.memory_space<vmem>>, vector<1x1x128x128xbf16>
    %60 = vector.shape_cast %59 : vector<1x1x128x128xbf16> to vector<128x128xbf16>
    %cst_68 = arith.constant dense<0.000000e+00> : vector<256x128xf32>
    %61 = tpu.matmul %58, %60, %cst_68 {dimension_numbers = #tpu.dot_dimension_numbers<[1], [0], [0], [1], [0, 0, 1, 1], [], []>} : vector<256x128xbf16>, vector<128x128xbf16>, vector<256x128xf32> -> vector<256x128xf32>
    %c0_69 = arith.constant 0 : index
    %c0_70 = arith.constant 0 : index
    %62 = vector.load %arg16[%c0_69, %c0_70] : memref<256x128xf32, #tpu.memory_space<vmem>>, vector<256x128xf32>
    %63 = arith.addf %62, %61 : vector<256x128xf32>
    %c0_71 = arith.constant 0 : index
    %c0_72 = arith.constant 0 : index
    %64 = vector.load %arg16[%c0_71, %c0_72] : memref<256x128xf32, #tpu.memory_space<vmem>>, vector<256x128xf32>
    tpu.vector_store %arg16[%c0_71, %c0_72], %63 {strides = array<i32>} : memref<256x128xf32, #tpu.memory_space<vmem>>, vector<256x128xf32>,
    %c1_73 = arith.constant 1 : index
    %c9_74 = arith.constant 9 : index
    %c0_75 = arith.constant 0 : index
    %65 = vector.load %arg15[%c1_73, %c9_74, %c0_75] : memref<18x32x128xbf16, #tpu.memory_space<vmem>>, vector<16x16x128xbf16>
    %66 = vector.shape_cast %65 : vector<16x16x128xbf16> to vector<256x128xbf16>
    %c1_76 = arith.constant 1 : index
    %c2_77 = arith.constant 2 : index
    %c0_78 = arith.constant 0 : index
    %c0_79 = arith.constant 0 : index
    %67 = vector.load %arg6[%c1_76, %c2_77, %c0_78, %c0_79] : memref<3x3x128x128xbf16, #tpu.memory_space<vmem>>, vector<1x1x128x128xbf16>
    %68 = vector.shape_cast %67 : vector<1x1x128x128xbf16> to vector<128x128xbf16>
    %cst_80 = arith.constant dense<0.000000e+00> : vector<256x128xf32>
    %69 = tpu.matmul %66, %68, %cst_80 {dimension_numbers = #tpu.dot_dimension_numbers<[1], [0], [0], [1], [0, 0, 1, 1], [], []>} : vector<256x128xbf16>, vector<128x128xbf16>, vector<256x128xf32> -> vector<256x128xf32>
    %c0_81 = arith.constant 0 : index
    %c0_82 = arith.constant 0 : index
    %70 = vector.load %arg16[%c0_81, %c0_82] : memref<256x128xf32, #tpu.memory_space<vmem>>, vector<256x128xf32>
    %71 = arith.addf %70, %69 : vector<256x128xf32>
    %c0_83 = arith.constant 0 : index
    %c0_84 = arith.constant 0 : index
    %72 = vector.load %arg16[%c0_83, %c0_84] : memref<256x128xf32, #tpu.memory_space<vmem>>, vector<256x128xf32>
    tpu.vector_store %arg16[%c0_83, %c0_84], %71 {strides = array<i32>} : memref<256x128xf32, #tpu.memory_space<vmem>>, vector<256x128xf32>,
    %c2_85 = arith.constant 2 : index
    %c7_86 = arith.constant 7 : index
    %c0_87 = arith.constant 0 : index
    %73 = vector.load %arg15[%c2_85, %c7_86, %c0_87] : memref<18x32x128xbf16, #tpu.memory_space<vmem>>, vector<16x16x128xbf16>
    %74 = vector.shape_cast %73 : vector<16x16x128xbf16> to vector<256x128xbf16>
    %c2_88 = arith.constant 2 : index
    %c0_89 = arith.constant 0 : index
    %c0_90 = arith.constant 0 : index
    %c0_91 = arith.constant 0 : index
    %75 = vector.load %arg6[%c2_88, %c0_89, %c0_90, %c0_91] : memref<3x3x128x128xbf16, #tpu.memory_space<vmem>>, vector<1x1x128x128xbf16>
    %76 = vector.shape_cast %75 : vector<1x1x128x128xbf16> to vector<128x128xbf16>
    %cst_92 = arith.constant dense<0.000000e+00> : vector<256x128xf32>
    %77 = tpu.matmul %74, %76, %cst_92 {dimension_numbers = #tpu.dot_dimension_numbers<[1], [0], [0], [1], [0, 0, 1, 1], [], []>} : vector<256x128xbf16>, vector<128x128xbf16>, vector<256x128xf32> -> vector<256x128xf32>
    %c0_93 = arith.constant 0 : index
    %c0_94 = arith.constant 0 : index
    %78 = vector.load %arg16[%c0_93, %c0_94] : memref<256x128xf32, #tpu.memory_space<vmem>>, vector<256x128xf32>
    %79 = arith.addf %78, %77 : vector<256x128xf32>
    %c0_95 = arith.constant 0 : index
    %c0_96 = arith.constant 0 : index
    %80 = vector.load %arg16[%c0_95, %c0_96] : memref<256x128xf32, #tpu.memory_space<vmem>>, vector<256x128xf32>
    tpu.vector_store %arg16[%c0_95, %c0_96], %79 {strides = array<i32>} : memref<256x128xf32, #tpu.memory_space<vmem>>, vector<256x128xf32>,
    %c2_97 = arith.constant 2 : index
    %c8_98 = arith.constant 8 : index
    %c0_99 = arith.constant 0 : index
    %81 = vector.load %arg15[%c2_97, %c8_98, %c0_99] : memref<18x32x128xbf16, #tpu.memory_space<vmem>>, vector<16x16x128xbf16>
    %82 = vector.shape_cast %81 : vector<16x16x128xbf16> to vector<256x128xbf16>
    %c2_100 = arith.constant 2 : index
    %c1_101 = arith.constant 1 : index
    %c0_102 = arith.constant 0 : index
    %c0_103 = arith.constant 0 : index
    %83 = vector.load %arg6[%c2_100, %c1_101, %c0_102, %c0_103] : memref<3x3x128x128xbf16, #tpu.memory_space<vmem>>, vector<1x1x128x128xbf16>
    %84 = vector.shape_cast %83 : vector<1x1x128x128xbf16> to vector<128x128xbf16>
    %cst_104 = arith.constant dense<0.000000e+00> : vector<256x128xf32>
    %85 = tpu.matmul %82, %84, %cst_104 {dimension_numbers = #tpu.dot_dimension_numbers<[1], [0], [0], [1], [0, 0, 1, 1], [], []>} : vector<256x128xbf16>, vector<128x128xbf16>, vector<256x128xf32> -> vector<256x128xf32>
    %c0_105 = arith.constant 0 : index
    %c0_106 = arith.constant 0 : index
    %86 = vector.load %arg16[%c0_105, %c0_106] : memref<256x128xf32, #tpu.memory_space<vmem>>, vector<256x128xf32>
    %87 = arith.addf %86, %85 : vector<256x128xf32>
    %c0_107 = arith.constant 0 : index
    %c0_108 = arith.constant 0 : index
    %88 = vector.load %arg16[%c0_107, %c0_108] : memref<256x128xf32, #tpu.memory_space<vmem>>, vector<256x128xf32>
    tpu.vector_store %arg16[%c0_107, %c0_108], %87 {strides = array<i32>} : memref<256x128xf32, #tpu.memory_space<vmem>>, vector<256x128xf32>,
    %c2_109 = arith.constant 2 : index
    %c9_110 = arith.constant 9 : index
    %c0_111 = arith.constant 0 : index
    %89 = vector.load %arg15[%c2_109, %c9_110, %c0_111] : memref<18x32x128xbf16, #tpu.memory_space<vmem>>, vector<16x16x128xbf16>
    %90 = vector.shape_cast %89 : vector<16x16x128xbf16> to vector<256x128xbf16>
    %c2_112 = arith.constant 2 : index
    %c2_113 = arith.constant 2 : index
    %c0_114 = arith.constant 0 : index
    %c0_115 = arith.constant 0 : index
    %91 = vector.load %arg6[%c2_112, %c2_113, %c0_114, %c0_115] : memref<3x3x128x128xbf16, #tpu.memory_space<vmem>>, vector<1x1x128x128xbf16>
    %92 = vector.shape_cast %91 : vector<1x1x128x128xbf16> to vector<128x128xbf16>
    %cst_116 = arith.constant dense<0.000000e+00> : vector<256x128xf32>
    %93 = tpu.matmul %90, %92, %cst_116 {dimension_numbers = #tpu.dot_dimension_numbers<[1], [0], [0], [1], [0, 0, 1, 1], [], []>} : vector<256x128xbf16>, vector<128x128xbf16>, vector<256x128xf32> -> vector<256x128xf32>
    %c0_117 = arith.constant 0 : index
    %c0_118 = arith.constant 0 : index
    %94 = vector.load %arg16[%c0_117, %c0_118] : memref<256x128xf32, #tpu.memory_space<vmem>>, vector<256x128xf32>
    %95 = arith.addf %94, %93 : vector<256x128xf32>
    %c0_119 = arith.constant 0 : index
    %c0_120 = arith.constant 0 : index
    %96 = vector.load %arg16[%c0_119, %c0_120] : memref<256x128xf32, #tpu.memory_space<vmem>>, vector<256x128xf32>
    tpu.vector_store %arg16[%c0_119, %c0_120], %95 {strides = array<i32>} : memref<256x128xf32, #tpu.memory_space<vmem>>, vector<256x128xf32>,
    %c0_121 = arith.constant 0 : index
    %c0_122 = arith.constant 0 : index
    %97 = vector.load %arg16[%c0_121, %c0_122] : memref<256x128xf32, #tpu.memory_space<vmem>>, vector<256x128xf32>
    %c0_123 = arith.constant 0 : index
    %c0_124 = arith.constant 0 : index
    %98 = vector.load %arg10[%c0_123, %c0_124] : memref<1x128xf32, #tpu.memory_space<vmem>>, vector<1x128xf32>
    %99 = vector.broadcast %98 : vector<1x128xf32> to vector<256x128xf32>
    %100 = arith.mulf %97, %99 : vector<256x128xf32>
    %c0_125 = arith.constant 0 : index
    %c0_126 = arith.constant 0 : index
    %101 = vector.load %arg11[%c0_125, %c0_126] : memref<1x128xf32, #tpu.memory_space<vmem>>, vector<1x128xf32>
    %102 = vector.broadcast %101 : vector<1x128xf32> to vector<256x128xf32>
    %103 = arith.addf %100, %102 : vector<256x128xf32>
    %cst_127 = arith.constant 0.000000e+00 : f32
    %104 = vector.broadcast %cst_127 : f32 to vector<256x128xf32>
    %105 = arith.maximumf %103, %104 : vector<256x128xf32>
    %106 = arith.truncf %105 : vector<256x128xf32> to vector<256x128xbf16>
    %c0_128 = arith.constant 0 : index
    %c0_129 = arith.constant 0 : index
    %107 = vector.load %arg7[%c0_128, %c0_129] : memref<128x128xbf16, #tpu.memory_space<vmem>>, vector<128x128xbf16>
    %cst_130 = arith.constant dense<0.000000e+00> : vector<256x128xf32>
    %108 = tpu.matmul %106, %107, %cst_130 {dimension_numbers = #tpu.dot_dimension_numbers<[1], [0], [0], [1], [0, 0, 1, 1], [], []>} : vector<256x128xbf16>, vector<128x128xbf16>, vector<256x128xf32> -> vector<256x128xf32>
    %109 = vector.shape_cast %9 : vector<1x16x16x128xbf16> to vector<256x128xbf16>
    %110 = arith.extf %109 : vector<256x128xbf16> to vector<256x128xf32>
    %c0_131 = arith.constant 0 : index
    %c0_132 = arith.constant 0 : index
    %111 = vector.load %arg12[%c0_131, %c0_132] : memref<1x128xf32, #tpu.memory_space<vmem>>, vector<1x128xf32>
    %112 = vector.broadcast %111 : vector<1x128xf32> to vector<256x128xf32>
    %113 = arith.mulf %108, %112 : vector<256x128xf32>
    %c0_133 = arith.constant 0 : index
    %c0_134 = arith.constant 0 : index
    %114 = vector.load %arg13[%c0_133, %c0_134] : memref<1x128xf32, #tpu.memory_space<vmem>>, vector<1x128xf32>
    %115 = vector.broadcast %114 : vector<1x128xf32> to vector<256x128xf32>
    %116 = arith.addf %113, %115 : vector<256x128xf32>
    %117 = arith.addf %116, %110 : vector<256x128xf32>
    %cst_135 = arith.constant 0.000000e+00 : f32
    %118 = vector.broadcast %cst_135 : f32 to vector<256x128xf32>
    %119 = arith.maximumf %117, %118 : vector<256x128xf32>
    %120 = vector.shape_cast %119 : vector<256x128xf32> to vector<1x16x16x128xf32>
    %121 = arith.truncf %120 : vector<1x16x16x128xf32> to vector<1x16x16x128xbf16>
    %c0_136 = arith.constant 0 : index
    %c0_137 = arith.constant 0 : index
    %c0_138 = arith.constant 0 : index
    %c0_139 = arith.constant 0 : index
    %122 = vector.load %arg14[%c0_136, %c0_137, %c0_138, %c0_139] : memref<1x16x16x128xbf16, #tpu.memory_space<vmem>>, vector<1x16x16x128xbf16>
    tpu.vector_store %arg14[%c0_136, %c0_137, %c0_138, %c0_139], %121 {strides = array<i32>} : memref<1x16x16x128xbf16, #tpu.memory_space<vmem>>, vector<1x16x16x128xbf16>,
    return
  }
  func.func @transform_0(%arg0: i32, %arg1: i32) -> (i32, i32, i32, i32) {
    %c0_i32 = arith.constant 0 : i32
    %c0_i32_0 = arith.constant 0 : i32
    %c0_i32_1 = arith.constant 0 : i32
    return %arg0, %arg1, %c0_i32, %c0_i32_0 : i32, i32, i32, i32
  }
  func.func @transform_1(%arg0: i32, %arg1: i32) -> (i32, i32, i32, i32) {
    %c16_i32 = arith.constant 16 : i32
    %0 = arith.muli %arg1, %c16_i32 : i32
    %c1_i32 = arith.constant 1 : i32
    %1 = arith.subi %0, %c1_i32 : i32
    %c0_i32 = arith.constant 0 : i32
    %2 = arith.maxsi %1, %c0_i32 : i32
    %c0_i32_0 = arith.constant 0 : i32
    %c0_i32_1 = arith.constant 0 : i32
    %c0_i32_2 = arith.constant 0 : i32
    return %arg0, %2, %c0_i32_0, %c0_i32_1 : i32, i32, i32, i32
  }
  func.func @transform_2(%arg0: i32, %arg1: i32) -> (i32, i32, i32, i32) {
    %c1_i32 = arith.constant 1 : i32
    %0 = arith.addi %arg1, %c1_i32 : i32
    %c16_i32 = arith.constant 16 : i32
    %1 = arith.muli %0, %c16_i32 : i32
    %c15_i32 = arith.constant 15 : i32
    %2 = arith.minsi %1, %c15_i32 : i32
    %c0_i32 = arith.constant 0 : i32
    %c0_i32_0 = arith.constant 0 : i32
    %c0_i32_1 = arith.constant 0 : i32
    return %arg0, %2, %c0_i32, %c0_i32_0 : i32, i32, i32, i32
  }
  func.func @transform_3(%arg0: i32, %arg1: i32) -> (i32, i32) {
    %c0_i32 = arith.constant 0 : i32
    %c0_i32_0 = arith.constant 0 : i32
    %c0_i32_1 = arith.constant 0 : i32
    return %c0_i32, %c0_i32_0 : i32, i32
  }
  func.func @transform_4(%arg0: i32, %arg1: i32) -> (i32, i32, i32, i32) {
    %c0_i32 = arith.constant 0 : i32
    %c0_i32_0 = arith.constant 0 : i32
    %c0_i32_1 = arith.constant 0 : i32
    %c0_i32_2 = arith.constant 0 : i32
    %c0_i32_3 = arith.constant 0 : i32
    return %c0_i32, %c0_i32_0, %c0_i32_1, %c0_i32_2 : i32, i32, i32, i32
  }
  func.func @transform_5(%arg0: i32, %arg1: i32) -> (i32, i32) {
    %c0_i32 = arith.constant 0 : i32
    %c0_i32_0 = arith.constant 0 : i32
    %c0_i32_1 = arith.constant 0 : i32
    return %c0_i32, %c0_i32_0 : i32, i32
  }
  func.func @transform_6(%arg0: i32, %arg1: i32) -> (i32, i32) {
    %c0_i32 = arith.constant 0 : i32
    %c0_i32_0 = arith.constant 0 : i32
    %c0_i32_1 = arith.constant 0 : i32
    return %c0_i32, %c0_i32_0 : i32, i32
  }
  func.func @transform_7(%arg0: i32, %arg1: i32) -> (i32, i32) {
    %c0_i32 = arith.constant 0 : i32
    %c0_i32_0 = arith.constant 0 : i32
    %c0_i32_1 = arith.constant 0 : i32
    return %c0_i32, %c0_i32_0 : i32, i32
  }
  func.func @transform_8(%arg0: i32, %arg1: i32) -> (i32, i32) {
    %c0_i32 = arith.constant 0 : i32
    %c0_i32_0 = arith.constant 0 : i32
    %c0_i32_1 = arith.constant 0 : i32
    return %c0_i32, %c0_i32_0 : i32, i32
  }
  func.func @transform_9(%arg0: i32, %arg1: i32) -> (i32, i32) {
    %c0_i32 = arith.constant 0 : i32
    %c0_i32_0 = arith.constant 0 : i32
    %c0_i32_1 = arith.constant 0 : i32
    return %c0_i32, %c0_i32_0 : i32, i32
  }
  func.func @transform_10(%arg0: i32, %arg1: i32) -> (i32, i32) {
    %c0_i32 = arith.constant 0 : i32
    %c0_i32_0 = arith.constant 0 : i32
    %c0_i32_1 = arith.constant 0 : i32
    return %c0_i32, %c0_i32_0 : i32, i32
  }
  func.func @transform_11(%arg0: i32, %arg1: i32) -> (i32, i32) {
    %c0_i32 = arith.constant 0 : i32
    %c0_i32_0 = arith.constant 0 : i32
    %c0_i32_1 = arith.constant 0 : i32
    return %c0_i32, %c0_i32_0 : i32, i32
  }
  func.func @transform_12(%arg0: i32, %arg1: i32) -> (i32, i32, i32, i32) {
    %c0_i32 = arith.constant 0 : i32
    %c0_i32_0 = arith.constant 0 : i32
    %c0_i32_1 = arith.constant 0 : i32
    return %arg0, %arg1, %c0_i32, %c0_i32_0 : i32, i32, i32, i32
  }
}

</mosaic_0001>

<bundles_post_ra>
// kernel: tpu_custom_call.1
= control target key start
LH: loop header
LB: loop body
LE: loop exit
PB: predicated region body
PF: predicated region fallthrough
CT: control target
= control target key end

     0   :  { %s10491_s0 = inlined_call_operand.hbm [shape: bf16[2,16,16,128], index: 0, kind: input, shape index: {}]   ;;  %s10492_s1 = inlined_call_operand.hbm [shape: bf16[2,16,16,128], index: 1, kind: input, shape index: {}]   ;;  %s10493_s2 = inlined_call_operand.hbm [shape: bf16[2,16,16,128], index: 2, kind: input, shape index: {}]   ;;  %s10494_s3 = inlined_call_operand.hbm [shape: bf16[128,128], index: 3, kind: input, shape index: {}]   ;;  %s10495_s4 = inlined_call_operand.hbm [shape: bf16[3,3,128,128], index: 4, kind: input, shape index: {}]   ;;  %s10496_s5 = inlined_call_operand.hbm [shape: bf16[128,128], index: 5, kind: input, shape index: {}]   ;;  %s10497_s6 = inlined_call_operand.vmem [shape: f32[1,128], index: 6, kind: input, shape index: {}]   ;;  %s10498_s7 = inlined_call_operand.vmem [shape: f32[1,128], index: 7, kind: input, shape index: {}]   ;;  %s10499_s8 = inlined_call_operand.vmem [shape: f32[1,128], index: 8, kind: input, shape index: {}]   ;;  %s10500_s9 = inlined_call_operand.vmem [shape: f32[1,128], index: 9, kind: input, shape index: {}]   ;;  %s10501_s10 = inlined_call_operand.vmem [shape: f32[1,128], index: 10, kind: input, shape index: {}]   ;;  %s10502_s11 = inlined_call_operand.vmem [shape: f32[1,128], index: 11, kind: input, shape index: {}]   ;;  %s10503_s12 = inlined_call_operand.hbm [shape: bf16[2,16,16,128], index: 12, kind: output, shape index: {}]  }
   0x1   :  { %10519 = sst [smem:[#allocation123_spill]] %s10492_s1 }
   0x2   :  { %10520 = sst [smem:[#allocation124_spill]] %s10494_s3 }
   0x3   :  { %10521 = sst [smem:[#allocation125_spill]] %s10500_s9 }
   0x4   :  { %10522 = sst [smem:[#allocation126_spill]] %s10501_s10 }
   0x5   :  { %10523 = sst [smem:[#allocation127_spill]] %s10502_s11 }
   0x6   :  { %10524 = sst [smem:[#allocation128_spill]] %s10503_s12 }
   0x7   :  { %17 = vsyncpa [#allocation5], 0 }
   0x8   :  { %19 = vsyncpa [#allocation5 + $0x1], 0 }
   0x9   :  { %20 = vsyncpa [#allocation8], 0 }
   0xa   :  { %22 = vsyncpa [#allocation8 + $0x1], 0 }
   0xb   :  { %23 = vsyncpa [#allocation11], 0 }
   0xc   :  { %24 = vsyncpa [#allocation14], 0 }
   0xd   :  { %25 = vsyncpa [#allocation6], 0 }
   0xe   :  { %27 = vsyncpa [#allocation6 + $0x1], 0  ;;  %s8811_s21 = smov 0   ;;  %s8813_s22 = smov 0  }
   0xf   :  { %s8815_s23 = smov 0   ;;  %s8817_s24 = smov 0  }
  0x10   :  { %s8819_s25 = smov 0   ;;  %s8821_s26 = smov 0  }
  0x11 LB: > { %10525 = sst [smem:[#allocation21_spill]] %s8716_s21  ;;  %s8842_s27 = sadd.s32 4294967295, %s8736_s26   ;;  %s8736_s26 = sphi %s8821_s26, %s33_s26   ;;  %s8732_s25 = sphi %s8819_s25, %s10755_s25   ;;  %s8728_s24 = sphi %s8817_s24, %s10754_s24   ;;  %s8724_s23 = sphi %s8815_s23, %s10753_s23   ;;  %s8720_s22 = sphi %s8813_s22, %s10757_s22   ;;  %s8716_s21 = sphi %s8811_s21, %s10756_s21  }
  0x12   : > { %10526 = sst [smem:[#allocation22_spill]] %s8724_s23  ;;  %s7373_s28 = sadd.s32 4294967294, %s8736_s26  }
  0x13   : > { %10527 = sst [smem:[#allocation23_spill]] %s8728_s24  ;;  %p67_p0 = scmp.ne.s32.totalorder %s8720_s22, %s8716_s21 }
  0x14   : > { %10528 = sst [smem:[#allocation24_spill]] %s8732_s25  ;;  %p68_p1 = scmp.eq.s32.totalorder %s8842_s27, 0 }
  0x15   : > { %10529 = sst [smem:[#allocation25_spill]] %s8736_s26  ;;  %p354_p2 = scmp.eq.s32.totalorder %s8842_s27, 1 }
  0x16   : > { %p360_p3 = scmp.eq.s32.totalorder %s7373_s28, 1  ;;  %p8851_p4 = por %p68_p1, %p67_p0 }
  0x17   : > { %p7374_p5 = scmp.ge.s32.totalorder %s8736_s26, 1  ;;  %p367_p7 = scmp.lt.s32.totalorder %s8736_s26, 3 }
  0x18   : > { %p8856_p6 = por %p360_p3, %p67_p0  ;;  %s10533_s3 = sld [smem:[#allocation124_spill]] }
  0x19   : > { %p8864_p8 = pnand %p7374_p5, %p367_p7  ;;  %s8738_s17 = smov [#allocation10]  }
  0x1a   : > { %s10531_s30 = scalar_select %p8856_p6, 1, 0 }
  0x1b   : > { %p8364_p9 = pneg %p8864_p8  ;;  %s380_s18 = sshll.u32 %s8738_s17, 4  ;;  %s381_s18 = int_to_ptr.vmem [resolvable:$true] %s380_s18 }
  0x1c   : > { %10532 = sst [smem:[#allocation26_spill]] %s10531_s30  ;;  %s10505_s20 = smov 64  }
  0x1d   : > { %p8872_p10 = pnand %p8364_p9, %p68_p1  ;;  %s10507_s28 = smov 4  }
  0x1e   : > { %s378_s15 = sshll.u32 %s10533_s3, 4  ;;  %s45_s13 = sadd.s32 1, %s8732_s25  ;;  %s379_s15 = int_to_ptr.hbm [resolvable:$true] %s378_s15 }
  0x1f   : > { %8367 = dma.hbm_to_vmem [thread:$0]  (!%p8872_p10), %s379_s15, 1024, %s381_s18, [#allocation11], %s10505_s20, %s10505_s20, %s10507_s28  }
  0x20   : > { %p47_p12 = scmp.ge.s32.totalorder %s45_s13, 2  ;;  %s54_s14 = sadd.s32 1, %s8724_s23 }
  0x21   : > { %p61_p13 = scmp.ne.s32.totalorder %s8724_s23, %s8720_s22  ;;  %p62_p0 = scmp.eq.s32.totalorder %s8736_s26, 0 }
  0x22   : > { %s10759_s13 = smov (%p47_p12, %s45_s13), 0  ;;  %p8391_p7 = scmp.lt.s32.totalorder %s8736_s26, 2 }
  0x23   : > { %10536 = sst [smem:[#allocation27_spill]] %s10759_s13  ;;  %p63_p3 = por %p62_p0, %p61_p13 }
  0x24   : > { %p8891_p5 = por %p354_p2, %p61_p13  ;;  %s49_s3 = ssub.s32 %s8732_s25, %s10759_s13 }
  0x25   : > { %p52_p9 = scmp.eq.s32.totalorder %s49_s3, 0  ;;  %s8899_s30 = sand.u32 1, %s8724_s23  }
  0x26   : > { %s10537_s17 = scalar_select %p8891_p5, 1, 0 }
  0x27   : > { %s8902_s15 = sshll.u32 %s8732_s25, 7  ;;  %p8904_p11 = pnand %p8391_p7, %p63_p3 }
  0x28   : > { %10538 = sst [smem:[#allocation28_spill]] %s10537_s17  ;;  %s465_s28 = sand.u32 1, %s8736_s26  }
  0x29   : > { %s8909_s20 = scalar_select %p52_p9, %s8724_s23, %s54_s14  }
  0x2a   : > { %s7382_s21 = sshll.u32 %s8899_s30, 3  ;;  %s10541_s1 = sld [smem:[#allocation123_spill]] }
  0x2b   : > { %10540 = sst [smem:[#allocation29_spill]] %s8909_s20  ;;  %s469_s24 = scalar_lea.vmem [#allocation7], %s7382_s21 }
  0x2c   : > { %s483_s11 = sshll.u32 %s469_s24, 4  ;;  %s8917_s25 = scalar_lea.sflag [#allocation8], %s465_s28  ;;  %s484_s11 = int_to_ptr.vmem [resolvable:$true] %s483_s11 }
  0x2d   : > { %s10542_s10 = smov 4   ;;  %s10543_s9 = smov 64  }
  0x2e   : > { %s392_s12 = sshll.u32 %s10495_s4, 4  ;;  %s8741_s24 = smov [#allocation12]   ;;  %s393_s12 = int_to_ptr.hbm [resolvable:$true] %s392_s12 }
  0x2f   : > { %s406_s26 = sshll.u32 %s10496_s5, 4  ;;  %s7379_s20 = sshll.u32 %s8899_s30, 7  ;;  %s407_s26 = int_to_ptr.hbm [resolvable:$true] %s406_s26 }
  0x30   : > { %s480_s13 = scalar_lea.hbm %s10541_s1, %s8902_s15  ;;  %s394_s1 = sshll.u32 %s8741_s24, 4  ;;  %s395_s1 = int_to_ptr.vmem [resolvable:$true] %s394_s1 }
  0x31   : > { %s481_s3 = sshll.u32 %s480_s13, 4  ;;  %s497_s13 = scalar_lea.vmem [#allocation9], %s7382_s21  ;;  %s482_s3 = int_to_ptr.hbm [resolvable:$true] %s481_s3 }
  0x32   : > { %8380 = dma.hbm_to_vmem [thread:$0]  (!%p8904_p11), %s482_s3, 128, %s484_s11, %s8917_s25, %s10543_s9, %s10543_s9, %s10542_s10  }
  0x33   : > { %s511_s17 = sshll.u32 %s497_s13, 4  ;;  %s8742_s11 = smov [#allocation13]   ;;  %s512_s17 = int_to_ptr.vmem [resolvable:$true] %s511_s17 }
  0x34   : > { %8370 = dma.hbm_to_vmem [thread:$0]  (!%p8872_p10), %s393_s12, 9216, %s395_s1, [#allocation11], %s10543_s9, %s10543_s9, %s10542_s10  }
  0x35   : > { %s408_s21 = sshll.u32 %s8742_s11, 4  ;;  %s452_s14 = scalar_lea.hbm %s10491_s0, %s8902_s15  ;;  %s409_s21 = int_to_ptr.vmem [resolvable:$true] %s408_s21 }
  0x36   : > { %8373 = dma.hbm_to_vmem [thread:$0]  (!%p8872_p10), %s407_s26, 1024, %s409_s21, [#allocation14], %s10543_s9, %s10543_s9, %s10542_s10  }
  0x37   : > { %s444_s13 = scalar_lea.vmem [#allocation4], %s7379_s20  ;;  %s453_s28 = sshll.u32 %s452_s14, 4  ;;  %s454_s28 = int_to_ptr.hbm [resolvable:$true] %s453_s28 }
  0x38   : > { %s455_s24 = sshll.u32 %s444_s13, 4  ;;  %s8068_s1 = sadd.s32 120, %s8902_s15  ;;  %s456_s24 = int_to_ptr.vmem [resolvable:$true] %s455_s24 }
  0x39   : > { %s441_s12 = scalar_lea.sflag [#allocation5], %s8899_s30  ;;  %s508_s26 = scalar_lea.hbm %s10493_s2, %s8068_s1 }
  0x3a   : > { %8377 = dma.hbm_to_vmem [thread:$0]  (!%p8904_p11), %s454_s28, 2048, %s456_s24, %s441_s12, %s10543_s9, %s10543_s9, %s10542_s10  }
  0x3b   : > { %s509_s21 = sshll.u32 %s508_s26, 4  ;;  %523 = sbr.rel (%p8864_p8) target bundleno = 1376 (0x560), region = 68  ;;  %s510_s21 = int_to_ptr.hbm [resolvable:$true] %s509_s21 }
  0x3c   : > { %8383 = dma.hbm_to_vmem [thread:$0]  (!%p8904_p11), %s510_s21, 128, %s512_s17, %s8917_s25, %s10543_s9, %s10543_s9, %s10542_s10  }
  0x40   : > { %s8965_s30 = sand.u32 1, %s8720_s22  }
  0x41   : > { %s7389_s15 = sshll.u32 %s8965_s30, 7  ;;  %s526_s20 = scalar_lea.sflag [#allocation5], %s8965_s30 }
  0x42   : > { %s8971_s23 = scalar_lea.vmem [#allocation4], %s7389_s15 }
  0x43   : > { %8695 = dma.done.wait (%p8851_p4), %s526_s20, 2048  }
  0x44   : > { %8697 = vsyncadd (%p8851_p4), %s526_s20, 4294965248  ;;  %s535_s9 = sand.u32 1, %s8842_s27  }
  0x45   : > { %s536_s10 = scalar_lea.sflag [#allocation8], %s535_s9 }
  0x46   : > { %8699 = dma.done.wait (%p8851_p4), %s536_s10, 256  }
  0x47   : > { %8701 = vsyncadd (%p8851_p4), %s536_s10, 4294967040 }
  0x48   : > { %8703 = dma.done.wait (%p68_p1), [#allocation11], 10240  }
  0x49   : > { %8705 = vsyncadd (%p68_p1), [#allocation11], 4294957056 }
  0x4a   : > { %8707 = dma.done.wait (%p68_p1), [#allocation14], 1024  }
  0x4b   : > { %8709 = vsyncadd (%p68_p1), [#allocation14], 4294966272  ;;  %v8076_v0 = vld [vmem:[#allocation10 + $0x38] sm:$0xff]  ;;  %v8075_v1 = vld [vmem:[#allocation10 + $0x30] sm:$0xff]  ;;  %v8743_v26 = vmov 0   ;;  %s10651_s12 = sld [smem:[#allocation125_spill]] }
  0x4c   : > { %866 = vmatpush.bf16.msra.mxu0 %v8076_v0  ;;  %8320 = vmatpush.bf16.msra.mxu3 %v8076_v0  ;;  %v8074_v2 = vld [vmem:[#allocation10 + $0x28] sm:$0xff]  ;;  %v8073_v3 = vld [vmem:[#allocation10 + $0x20] sm:$0xff]  ;;  %v8072_v4 = vld [vmem:[#allocation10 + $0x18] sm:$0xff]  ;;  %685 = vst [vmem:[#allocation2 + $0x4] sm:$0xf] %v8743_v26  ;;  %s10706_s26 = sld [smem:[#allocation126_spill]] }
  0x4d   : > { %v8071_v5 = vld [vmem:[#allocation10 + $0x10] sm:$0xff]  ;;  %v8070_v6 = vld [vmem:[#allocation10 + $0x8] sm:$0xff]  ;;  %v8069_v7 = vld [vmem:[#allocation10] sm:$0xff]  ;;  %686 = vst [vmem:[#allocation2 + $0x8] sm:$0xf] %v8743_v26  ;;  %s10708_s9 = sld [smem:[#allocation127_spill]] }
  0x4e   : > { %v8077_v8 = vld [vmem:[%s8971_s23] sm:$0xff]  ;;  %v8078_v9 = vld [vmem:[%s8971_s23 + $0x8] sm:$0xff]  ;;  %v8079_v10 = vld [vmem:[%s8971_s23 + $0x10] sm:$0xff]  ;;  %649 = vst [vmem:[#allocation2] sm:$0xf] %v8743_v26  ;;  %s10289_s10 = scalar_lea.vmem [#allocation15], %s7389_s15 }
  0x4f   : > { %v8080_v11 = vld [vmem:[%s8971_s23 + $0x18] sm:$0xff]  ;;  %v8081_v12 = vld [vmem:[%s8971_s23 + $0x20] sm:$0xff]  ;;  %v8998_v14 = vld [vmem:[#allocation12 + $0x70] sm:$0xff]  ;;  %650 = vst [vmem:[#allocation2 + $0x10] sm:$0xf] %v8743_v26  ;;  %s10745_s16 = sld [smem:[#allocation23_spill]] }
  0x50   : > { %867 = vmatpush.bf16.msra.mxu0 %v8075_v1  ;;  %8321 = vmatpush.bf16.msra.mxu3 %v8075_v1  ;;  %v8995_v13 = vld [vmem:[#allocation12 + $0x78] sm:$0xff]  ;;  %v8082_v15 = vld [vmem:[%s8971_s23 + $0x28] sm:$0xff]  ;;  %v9005_v18 = vld [vmem:[#allocation12 + $0x60] sm:$0xff]  ;;  %651 = vst [vmem:[#allocation2 + $0x20] sm:$0xf] %v8743_v26  ;;  %s10746_s14 = sld [smem:[#allocation128_spill]] }
  0x51   : > { %2040 = vmatpush.bf16.msra.mxu2 %v8995_v13  ;;  %v9002_v16 = vld [vmem:[#allocation12 + $0x68] sm:$0xff]  ;;  %v8102_v17 = vld [vmem:[#allocation12 + $0x38] sm:$0xff]  ;;  %v8101_v19 = vld [vmem:[#allocation12 + $0x30] sm:$0xff]  ;;  %652 = vst [vmem:[#allocation2 + $0x30] sm:$0xf] %v8743_v26  ;;  %s7189_s1 = scalar_lea.sflag [#allocation6], %s8965_s30 }
  0x52   : > { %1726 = vmatpush.bf16.msra.mxu1 %v8102_v17  ;;  %v9008_v20 = vld [vmem:[#allocation12 + $0x58] sm:$0xff]  ;;  %v8100_v21 = vld [vmem:[#allocation12 + $0x28] sm:$0xff]  ;;  %v9011_v22 = vld [vmem:[#allocation12 + $0x50] sm:$0xff]  ;;  %653 = vst [vmem:[#allocation2 + $0x40] sm:$0xf] %v8743_v26 }
  0x53   : > { %v8083_v23 = vld [vmem:[%s8971_s23 + $0x30] sm:$0xff]  ;;  %v8099_v24 = vld [vmem:[#allocation12 + $0x20] sm:$0xff]  ;;  %v9015_v25 = vld [vmem:[#allocation12 + $0x48] sm:$0xff]  ;;  %654 = vst [vmem:[#allocation2 + $0x50] sm:$0xf] %v8743_v26 }
  0x54   : > { %868 = vmatpush.bf16.msra.mxu0 %v8074_v2  ;;  %8322 = vmatpush.bf16.msra.mxu3 %v8074_v2  ;;  %v8098_v27 = vld [vmem:[#allocation12 + $0x18] sm:$0xff]  ;;  %v9022_v28 = vld [vmem:[#allocation12 + $0x40] sm:$0xff]  ;;  %v8097_v29 = vld [vmem:[#allocation12 + $0x10] sm:$0xff]  ;;  %655 = vst [vmem:[#allocation2 + $0x60] sm:$0xf] %v8743_v26 }
  0x55   : > { %2041 = vmatpush.bf16.msra.mxu2 %v8998_v14  ;;  %v1196_v30 = vld [vmem:[#allocation2 + $0x4] sm:$0xf]  ;;  %v1197_v32 = vld [vmem:[#allocation2 + $0x8] sm:$0xf]  ;;  %656 = vst [vmem:[#allocation2 + $0x70] sm:$0xf] %v8743_v26 }
  0x56   : > { %1727 = vmatpush.bf16.msra.mxu1 %v8101_v19  ;;  %v8103_v31 = vld [vmem:[#allocation2 + $0x4] sm:$0xff]  ;;  %v1252_v33 = vshrl.u32 %v1196_v30, 16  ;;  %v1195_v34 = vld [vmem:[#allocation2] sm:$0x8]  ;;  %v1261_v35 = vshrl.u32 %v1197_v32, 16  ;;  %v1255_v39 = vshll.u32 %v1196_v30, 16 }
  0x57   : > { %657 = vst [vmem:[#allocation2 + $0x80] sm:$0xf] %v8743_v26  ;;  %v8096_v36 = vld [vmem:[#allocation12 + $0x8] sm:$0xff]  ;;  %v1247_v37 = vshrl.u32 %v1195_v34, 16  ;;  %v1264_v41 = vshll.u32 %v1197_v32, 16  ;;  %v8084_v47 = vld [vmem:[%s8971_s23 + $0x38] sm:$0xff] }
  0x58   : > { %869 = vmatpush.bf16.msra.mxu0 %v8073_v3  ;;  %8323 = vmatpush.bf16.msra.mxu3 %v8073_v3  ;;  %v1254_v38 = vrot.slane %v1252_v33, 7  ;;  %658 = vst [vmem:[#allocation2 + $0x90] sm:$0xf] %v8743_v26  ;;  %v1263_v40 = vrot.slane %v1261_v35, 7  ;;  %vm1243_vm0 = vsmask.f32 256 }
  0x59   : > { %2042 = vmatpush.bf16.msra.mxu2 %v9002_v16  ;;  %659 = vst [vmem:[#allocation2 + $0xa0] sm:$0xf] %v8743_v26  ;;  %vm1244_vm1 = vsmask.f32 4368  ;;  %v7500_v44 = vrot.slane %v1247_v37, 11  ;;  %v8095_v48 = vld [vmem:[#allocation12] sm:$0xff] }
  0x5a   : > { %1728 = vmatpush.bf16.msra.mxu1 %v8100_v21  ;;  %v1257_v42 = vor.u32 %v1255_v39, %v1254_v38  ;;  %660 = vst [vmem:[#allocation2 + $0xb0] sm:$0xf] %v8743_v26  ;;  %vm9035_vm2 = vmor %vm1243_vm0, %vm1244_vm1  ;;  %v1259_v45 = vrot.slane %v1254_v38, 4  ;;  %v1266_v46 = vor.u32 %v1264_v41, %v1263_v40  ;;  %v9061_v54 = vld [vmem:[%s10497_s6] ss:$0 sm:$0xff]  ;;  %v8142_v59 = vld [vmem:[#allocation12 + $0xf8] sm:$0xff] }
  0x5b   : > { %661 = vst [vmem:[#allocation2 + $0xc0] sm:$0xf] %v8743_v26  ;;  %v9068_v55 = vld [vmem:[%s10498_s7] ss:$0 sm:$0xff]  ;;  %v8141_v62 = vld [vmem:[#allocation12 + $0xf0] sm:$0xff]  ;;  %v8140_v2 = vld [vmem:[#allocation12 + $0xe8] sm:$0xff] }
  0x5c   : > { %870 = vmatpush.bf16.msra.mxu0 %v8072_v4  ;;  %8324 = vmatpush.bf16.msra.mxu3 %v8072_v4  ;;  %662 = vst [vmem:[#allocation2 + $0xd0] sm:$0xf] %v8743_v26  ;;  %v1258_v49 = vsel %vm9035_vm2, %v7500_v44, %v1257_v42  ;;  %v1267_v50 = vsel %vm9035_vm2, %v1259_v45, %v1266_v46  ;;  %v8085_v56 = vld [vmem:[%s8971_s23 + $0x40] sm:$0xff]  ;;  %v8087_v46 = vld [vmem:[%s8971_s23 + $0x50] sm:$0xff]  ;;  %vm2273_vm3 = vsmask.f32 3328 }
  0x5d   : > { %2043 = vmatpush.bf16.msra.mxu2 %v9005_v18  ;;  %663 = vst [vmem:[#allocation2 + $0xe0] sm:$0xf] %v8743_v26  ;;  %v1614_v51 = vunpack.c.l.b16 %v1258_v49  ;;  %v1615_v52 = vunpack.c.l.b16 %v1267_v50  ;;  %v8135_v44 = vld [vmem:[#allocation12 + $0xc0] sm:$0xff]  ;;  %vm2274_vm4 = vsmask.f32 7440  ;;  %s8223_s18 = sshll.u32 %s10745_s16, 7 }
  0x5e   : > { %1729 = vmatpush.bf16.msra.mxu1 %v8099_v24  ;;  %664 = vst [vmem:[#allocation2 + $0xf0] sm:$0xf] %v8743_v26  ;;  %vm9286_vm5 = vmor %vm2273_vm3, %vm2274_vm4  ;;  %s7203_s13 = scalar_lea.hbm %s10746_s14, %s8223_s18  ;;  %s8662_s20 = scalar_lea.hbm %s10746_s14, 256 }
  0x5f   : > { %665 = vst [vmem:[#allocation2 + $0x100] sm:$0xf] %v8743_v26  ;;  %v1646_v53 = vpack.c.b16 %v1615_v52, %v1614_v51  ;;  %s7206_s28 = sshll.u32 %s7203_s13, 4  ;;  %s7207_s28 = int_to_ptr.hbm [resolvable:$true] %s7206_s28 }
  0x60   : > { %871 = vmatpush.bf16.msra.mxu0 %v8071_v5  ;;  %8325 = vmatpush.bf16.msra.mxu3 %v8071_v5  ;;  %666 = vst [vmem:[#allocation2 + $0x110] sm:$0xf] %v8743_v26  ;;  %v8139_v5 = vld [vmem:[#allocation12 + $0xe0] sm:$0xff]  ;;  %s8656_s19 = sshra.s32 %s7207_s28, 4  ;;  %s8657_s19 = int_to_ptr.hbm [resolvable:$true] %s8656_s19 }
  0x61   : > { %2044 = vmatpush.bf16.msra.mxu2 %v9008_v20  ;;  %667 = vst [vmem:[#allocation2 + $0xc] sm:$0xf] %v8743_v26  ;;  %s8658_s11 = scalar_lea.hbm %s8657_s19, 128  ;;  %p8663_p8 = scmp.lt.s32.totalorder %s8657_s19, %s10746_s14 }
  0x62   : > { %1730 = vmatpush.bf16.msra.mxu1 %v8098_v27  ;;  %668 = vst [vmem:[#allocation2 + $0x1c] sm:$0xf] %v8743_v26  ;;  %p8659_p1 = scmp.ne.s32.totalorder %s8657_s19, %s8658_s11  ;;  %p8664_p10 = scmp.lt.s32.totalorder %s8662_s20, %s8658_s11 }
  0x63   : > { %669 = vst [vmem:[#allocation2 + $0x2c] sm:$0xf] %v8743_v26 }
  0x64   : > { %872 = vmatpush.bf16.msra.mxu0 %v8070_v6  ;;  %8326 = vmatpush.bf16.msra.mxu3 %v8070_v6  ;;  %670 = vst [vmem:[#allocation2 + $0x3c] sm:$0xf] %v8743_v26  ;;  %p8660_p2 = pnand %p8659_p1, %p8891_p5  ;;  %p8665_p11 = por %p8664_p10, %p8663_p8 }
  0x65   : > { %2045 = vmatpush.bf16.msra.mxu2 %v9011_v22  ;;  %671 = vst [vmem:[#allocation2 + $0x4c] sm:$0xf] %v8743_v26 }
  0x66   : > { %1731 = vmatpush.bf16.msra.mxu1 %v8097_v29  ;;  %672 = vst [vmem:[#allocation2 + $0x5c] sm:$0xf] %v8743_v26  ;;  %p8661_p4 = pneg %p8660_p2 }
  0x67   : > { %673 = vst [vmem:[#allocation2 + $0x6c] sm:$0xf] %v8743_v26 }
  0x68   : > { %873 = vmatpush.bf16.msra.mxu0 %v8069_v7  ;;  %8327 = vmatpush.bf16.msra.mxu3 %v8069_v7  ;;  %674 = vst [vmem:[#allocation2 + $0x7c] sm:$0xf] %v8743_v26  ;;  %v8086_v7 = vld [vmem:[%s8971_s23 + $0x48] sm:$0xff]  ;;  %p8666_p12 = pnand %p8665_p11, %p8661_p4 }
  0x69   : > { %2046 = vmatpush.bf16.msra.mxu2 %v9015_v25  ;;  %675 = vst [vmem:[#allocation2 + $0x8c] sm:$0xf] %v8743_v26 }
  0x6a   : > { %1732 = vmatpush.bf16.msra.mxu1 %v8096_v36  ;;  %676 = vst [vmem:[#allocation2 + $0x9c] sm:$0xf] %v8743_v26 }
  0x6b   : > { %874 = vmatmul.bf16.vlgmr.msra.gmra.mxu0 %v8077_v8  ;;  %677 = vst [vmem:[#allocation2 + $0xac] sm:$0xf] %v8743_v26  ;;  %v8089_v8 = vld [vmem:[%s8971_s23 + $0x60] sm:$0xff] }
  0x6c   : > { %8328 = vmatpush.bf16.msrb.mxu3 %v8102_v17  ;;  %678 = vst [vmem:[#allocation2 + $0xbc] sm:$0xf] %v8743_v26  ;;  %3503 = vmatpush.bf16.msrb.mxu0 %v8142_v59  ;;  %v8138_v17 = vld [vmem:[#allocation12 + $0xd8] sm:$0xff] }
  0x6d   : > { %2047 = vmatpush.bf16.msra.mxu2 %v9022_v28  ;;  %679 = vst [vmem:[#allocation2 + $0xcc] sm:$0xf] %v8743_v26  ;;  %934 = vmatmul.bf16.vlgmr.msra.gmra.mxu3 %v8089_v8 }
  0x6e   : > { %1733 = vmatpush.bf16.msra.mxu1 %v8095_v48  ;;  %680 = vst [vmem:[#allocation2 + $0xdc] sm:$0xf] %v8743_v26 }
  0x6f   : > { %681 = vst [vmem:[#allocation2 + $0xec] sm:$0xf] %v8743_v26 }
  0x70   : > { %8329 = vmatpush.bf16.msrb.mxu3 %v8101_v19  ;;  %2048 = vmatmul.bf16.vlgmr.msra.gmra.mxu2 %v8103_v31  ;;  %682 = vst [vmem:[#allocation2 + $0xfc] sm:$0xf] %v8743_v26 }
  0x71   : > { %1734 = vmatmul.bf16.vlgmr.msra.gmra.mxu1 %v1646_v53  ;;  %683 = vst [vmem:[#allocation2 + $0x10c] sm:$0xf] %v8743_v26  ;;  %3504 = vmatpush.bf16.msrb.mxu0 %v8141_v62 }
  0x72   : > { %684 = vst [vmem:[#allocation2 + $0x11c] sm:$0xf] %v8743_v26 }
  0x73   : > { %688 = vst [vmem:[#allocation2 + $0x114] sm:$0xf] %v8743_v26 }
  0x74   : > { %8330 = vmatpush.bf16.msrb.mxu3 %v8100_v21  ;;  %689 = vst [vmem:[#allocation2 + $0x118] sm:$0xf] %v8743_v26  ;;  %v8137_v26 = vld [vmem:[#allocation12 + $0xd0] sm:$0xff] }
  0x75   : > { %3505 = vmatpush.bf16.msrb.mxu0 %v8140_v2 }
  0x78   : > { %8331 = vmatpush.bf16.msrb.mxu3 %v8099_v24 }
  0x79   : > { %3506 = vmatpush.bf16.msrb.mxu0 %v8139_v5 }
  0x7b   : > { %879 = vmatmul.bf16.gmra.mxu0 %v8078_v9 }
  0x7c   : > { %8332 = vmatpush.bf16.msrb.mxu3 %v8098_v27 }
  0x7d   : > { %3507 = vmatpush.bf16.msrb.mxu0 %v8138_v17 }
  0x80   : > { %8333 = vmatpush.bf16.msrb.mxu3 %v8097_v29 }
  0x81   : > { %3508 = vmatpush.bf16.msrb.mxu0 %v8137_v26 }
  0x84   : > { %8334 = vmatpush.bf16.msrb.mxu3 %v8096_v36  ;;  %v8136_v36 = vld [vmem:[#allocation12 + $0xc8] sm:$0xff] }
  0x85   : > { %3509 = vmatpush.bf16.msrb.mxu0 %v8136_v36 }
  0x88   : > { %8335 = vmatpush.bf16.msrb.mxu3 %v8095_v48 }
  0x89   : > { %3510 = vmatpush.bf16.msrb.mxu0 %v8135_v44 }
  0x8b   : > { %884 = vmatmul.bf16.gmra.mxu0 %v8079_v10 }
  0x8c   : > { %8336 = vmatpush.bf16.msra.mxu3 %v8995_v13 }
  0x90   : > { %8337 = vmatpush.bf16.msra.mxu3 %v8998_v14 }
  0x94   : > { %8338 = vmatpush.bf16.msra.mxu3 %v9002_v16  ;;  %v8090_v16 = vld [vmem:[%s8971_s23 + $0x68] sm:$0xff] }
  0x95   : > { %939 = vmatmul.bf16.gmra.mxu3 %v8090_v16 }
  0x98   : > { %8339 = vmatpush.bf16.msra.mxu3 %v9005_v18 }
  0x9b   : > { %889 = vmatmul.bf16.gmra.mxu0 %v8080_v11 }
  0x9c   : > { %8340 = vmatpush.bf16.msra.mxu3 %v9008_v20 }
  0xa0   : > { %8341 = vmatpush.bf16.msra.mxu3 %v9011_v22 }
  0xa4   : > { %8342 = vmatpush.bf16.msra.mxu3 %v9015_v25 }
  0xa8   : > { %8343 = vmatpush.bf16.msra.mxu3 %v9022_v28 }
  0xab   : > { %894 = vmatmul.bf16.gmra.mxu0 %v8081_v12 }
  0xbb   : > { %899 = vmatmul.bf16.gmra.mxu0 %v8082_v15  ;;  %v1198_v15 = vld [vmem:[#allocation2 + $0x10] sm:$0x8] }
  0xcb   : > { %904 = vmatmul.bf16.gmra.mxu0 %v8083_v23  ;;  %v1269_v23 = vshrl.u32 %v1198_v15, 16 }
  0xcd   : > { %v7501_v13 = vrot.slane %v1269_v23, 11 }
  0xdb   : > { %909 = vmatmul.bf16.gmra.mxu0 %v8084_v47 }
  0xe8   : > { %v875_v57 = vpop.f32.mrf.mxu0 }
  0xe9   : > { %v958_v58 = vmul.f32 %v9061_v54, %v875_v57  ;;  %v1201_v57 = vld [vmem:[#allocation2 + $0x20] sm:$0x8] }
  0xea   : > { %v1291_v59 = vshrl.u32 %v1201_v57, 16 }
  0xeb   : > { %v993_v60 = vadd.f32 %v9068_v55, %v958_v58  ;;  %914 = vmatmul.bf16.gmra.mxu0 %v8085_v56 }
  0xed   : > { %v1025_v61 = vmax.f32 %v993_v60, 0.0 }
  0xef   : > { %v1057_v63 = vpack.c.bf16 %v1025_v61, %v1025_v61 }
  0xf0   : > { %v877_v0 = vpop.f32.mrf.mxu0 }
  0xf1   : > { %1090 = vst [vmem:[#allocation2 + $0x14] sm:$0xf] %v1057_v63  ;;  %v959_v1 = vmul.f32 %v9061_v54, %v877_v0 }
  0xf3   : > { %v994_v3 = vadd.f32 %v9068_v55, %v959_v1 }
  0xf5   : > { %v1026_v4 = vmax.f32 %v994_v3, 0.0  ;;  %v7502_v3 = vrot.slane %v1291_v59, 11 }
  0xf7   : > { %v1058_v6 = vpack.c.bf16 %v1026_v4, %v1026_v4 }
  0xf8   : > { %v880_v9 = vpop.f32.mrf.mxu0  ;;  %v1199_v10 = vld [vmem:[#allocation2 + $0x14] sm:$0xf] }
  0xf9   : > { %1091 = vst [vmem:[#allocation2 + $0x18] sm:$0xf] %v1058_v6  ;;  %v960_v11 = vmul.f32 %v9061_v54, %v880_v9  ;;  %v1274_v12 = vshrl.u32 %v1199_v10, 16  ;;  %v1277_v29 = vshll.u32 %v1199_v10, 16  ;;  %v2975_v8 = vld [vmem:[#allocation2 + $0x14] sm:$0xf] }
  0xfb   : > { %v995_v19 = vadd.f32 %v9068_v55, %v960_v11  ;;  %919 = vmatmul.bf16.gmra.mxu0 %v8086_v7  ;;  %v1276_v24 = vrot.slane %v1274_v12, 7 }
  0xfd   : > { %v1027_v21 = vmax.f32 %v995_v19, 0.0  ;;  %v1279_v34 = vor.u32 %v1277_v29, %v1276_v24  ;;  %v1281_v41 = vrot.slane %v1276_v24, 4  ;;  %v8088_v19 = vld [vmem:[%s8971_s23 + $0x58] sm:$0xff] }
  0xff   : > { %v1059_v27 = vpack.c.bf16 %v1027_v21, %v1027_v21  ;;  %v1280_v40 = vsel %vm9035_vm2, %v7501_v13, %v1279_v34  ;;  %v3028_v21 = vshrl.u32 %v2975_v8, 16 }
 0x100   : > { %v882_v30 = vpop.f32.mrf.mxu0  ;;  %v8104_v31 = vld [vmem:[#allocation2 + $0x14] sm:$0xff]  ;;  %v1616_v49 = vunpack.c.l.b16 %v1280_v40 }
 0x101   : > { %v1200_v32 = vld [vmem:[#allocation2 + $0x18] sm:$0xf]  ;;  %1092 = vst [vmem:[#allocation2 + $0x24] sm:$0xf] %v1059_v27  ;;  %v961_v33 = vmul.f32 %v9061_v54, %v882_v30  ;;  %2053 = vmatmul.bf16.gmra.mxu2 %v8104_v31  ;;  %v2974_v27 = vld [vmem:[#allocation2 + $0x10] sm:$0x8] }
 0x102   : > { %v1283_v35 = vshrl.u32 %v1200_v32, 16  ;;  %v1286_v38 = vshll.u32 %v1200_v32, 16  ;;  %v2976_v5 = vld [vmem:[#allocation2 + $0x18] sm:$0xf]  ;;  %v8091_v30 = vld [vmem:[%s8971_s23 + $0x70] sm:$0xff] }
 0x103   : > { %v996_v14 = vadd.f32 %v9068_v55, %v961_v33  ;;  %v3037_v9 = vshrl.u32 %v2976_v5, 16  ;;  %v1204_v33 = vld [vmem:[#allocation2 + $0x30] sm:$0x8]  ;;  %944 = vmatmul.bf16.gmra.mxu3 %v8091_v30  ;;  %v3040_v36 = vshll.u32 %v2976_v5, 16 }
 0x104   : > { %v1285_v37 = vrot.slane %v1283_v35, 7  ;;  %v3030_v35 = vrot.slane %v3028_v21, 7 }
 0x105   : > { %v1028_v39 = vmax.f32 %v996_v14, 0.0  ;;  %v3039_v32 = vrot.slane %v3037_v9, 7  ;;  %v3023_v14 = vshrl.u32 %v2974_v27, 16  ;;  %v2977_v9 = vld [vmem:[#allocation2 + $0x20] sm:$0x8] }
 0x106   : > { %v1288_v42 = vor.u32 %v1286_v38, %v1285_v37  ;;  %v1313_v37 = vshrl.u32 %v1204_v33, 16  ;;  %v3035_v44 = vrot.slane %v3030_v35, 4 }
 0x107   : > { %v1060_v45 = vpack.c.bf16 %v1028_v39, %v1028_v39  ;;  %v3042_v39 = vor.u32 %v3040_v36, %v3039_v32  ;;  %v7676_v16 = vrot.slane %v3023_v14, 11 }
 0x108   : > { %v1289_v47 = vsel %vm9035_vm2, %v1281_v41, %v1288_v42  ;;  %v885_v48 = vpop.f32.mrf.mxu0  ;;  %v1202_v51 = vld [vmem:[#allocation2 + $0x24] sm:$0xf]  ;;  %v3031_v41 = vshll.u32 %v2975_v8, 16 }
 0x109   : > { %v1617_v50 = vunpack.c.l.b16 %v1289_v47  ;;  %1093 = vst [vmem:[#allocation2 + $0x28] sm:$0xf] %v1060_v45  ;;  %v962_v52 = vmul.f32 %v9061_v54, %v885_v48  ;;  %v1296_v53 = vshrl.u32 %v1202_v51, 16  ;;  %v1299_v62 = vshll.u32 %v1202_v51, 16 }
 0x10a   : > { %v3033_v48 = vor.u32 %v3031_v41, %v3030_v35 }
 0x10b   : > { %v1647_v56 = vpack.c.b16 %v1617_v50, %v1616_v49  ;;  %v997_v18 = vadd.f32 %v9068_v55, %v962_v52  ;;  %924 = vmatmul.bf16.gmra.mxu0 %v8087_v46  ;;  %v1298_v60 = vrot.slane %v1296_v53, 7  ;;  %v7503_v50 = vrot.slane %v1313_v37, 11 }
 0x10c   : > { %v3043_v52 = vsel %vm9035_vm2, %v3035_v44, %v3042_v39 }
 0x10d   : > { %1739 = vmatmul.bf16.gmra.mxu1 %v1647_v56  ;;  %v1029_v58 = vmax.f32 %v997_v18, 0.0  ;;  %v1301_v4 = vor.u32 %v1299_v62, %v1298_v60  ;;  %v1303_v12 = vrot.slane %v1298_v60, 4  ;;  %v3034_v60 = vsel %vm9035_vm2, %v7676_v16, %v3033_v48  ;;  %v2978_v62 = vld [vmem:[#allocation2 + $0x24] sm:$0xf] }
 0x10e   : > { %v3053_v32 = vshll.u32 %v2978_v62, 16 }
 0x10f   : > { %v1061_v61 = vpack.c.bf16 %v1029_v58, %v1029_v58  ;;  %v1302_v11 = vsel %vm9035_vm2, %v7502_v3, %v1301_v4 }
 0x110   : > { %v887_v63 = vpop.f32.mrf.mxu0  ;;  %v8105_v0 = vld [vmem:[#allocation2 + $0x24] sm:$0xff]  ;;  %v1618_v24 = vunpack.c.l.b16 %v1302_v11 }
 0x111   : > { %v1203_v1 = vld [vmem:[#allocation2 + $0x28] sm:$0xf]  ;;  %1094 = vst [vmem:[#allocation2 + $0x34] sm:$0xf] %v1061_v61  ;;  %v963_v2 = vmul.f32 %v9061_v54, %v887_v63  ;;  %2058 = vmatmul.bf16.gmra.mxu2 %v8105_v0  ;;  %v3392_v61 = vunpack.c.l.b16 %v3043_v52 }
 0x112   : > { %v1305_v20 = vshrl.u32 %v1203_v1, 16  ;;  %v1308_v22 = vshll.u32 %v1203_v1, 16  ;;  %v2979_v57 = vld [vmem:[#allocation2 + $0x28] sm:$0xf] }
 0x113   : > { %v998_v6 = vadd.f32 %v9068_v55, %v963_v2  ;;  %v3059_v63 = vshrl.u32 %v2979_v57, 16 }
 0x114   : > { %v1307_v7 = vrot.slane %v1305_v20, 7  ;;  %v3391_v20 = vunpack.c.l.b16 %v3034_v60 }
 0x115   : > { %v1030_v10 = vmax.f32 %v998_v6, 0.0  ;;  %v3050_v6 = vshrl.u32 %v2978_v62, 16 }
 0x116   : > { %v1310_v15 = vor.u32 %v1308_v22, %v1307_v7 }
 0x117   : > { %v1062_v17 = vpack.c.bf16 %v1030_v10, %v1030_v10 }
 0x118   : > { %v1311_v25 = vsel %vm9035_vm2, %v1303_v12, %v1310_v15  ;;  %v890_v23 = vpop.f32.mrf.mxu0  ;;  %v1205_v29 = vld [vmem:[#allocation2 + $0x34] sm:$0xf]  ;;  %v3423_v12 = vpack.c.b16 %v3392_v61, %v3391_v20  ;;  %v3061_v15 = vrot.slane %v3059_v63, 7  ;;  %v2980_v63 = vld [vmem:[#allocation2 + $0x30] sm:$0x8] }
 0x119   : > { %v1619_v26 = vunpack.c.l.b16 %v1311_v25  ;;  %1095 = vst [vmem:[#allocation2 + $0x38] sm:$0xf] %v1062_v17  ;;  %v964_v31 = vmul.f32 %v9061_v54, %v890_v23  ;;  %v1318_v13 = vshrl.u32 %v1205_v29, 16  ;;  %v1321_v45 = vshll.u32 %v1205_v29, 16  ;;  %v1207_v17 = vld [vmem:[#allocation2 + $0x40] sm:$0x8] }
 0x11a   : > { %v3052_v23 = vrot.slane %v3050_v6, 7  ;;  %v1335_v27 = vshrl.u32 %v1207_v17, 16 }
 0x11b   : > { %v1648_v34 = vpack.c.b16 %v1619_v26, %v1618_v24  ;;  %v999_v28 = vadd.f32 %v9068_v55, %v964_v31  ;;  %929 = vmatmul.bf16.gmra.mxu0 %v8088_v19  ;;  %v1320_v40 = vrot.slane %v1318_v13, 7  ;;  %v3062_v24 = vshll.u32 %v2979_v57, 16 }
 0x11c   : > { %v3045_v26 = vshrl.u32 %v2977_v9, 16  ;;  %v3057_v13 = vrot.slane %v3052_v23, 4  ;;  %v3055_v14 = vor.u32 %v3053_v32, %v3052_v23 }
 0x11d   : > { %1744 = vmatmul.bf16.gmra.mxu1 %v1648_v34  ;;  %v1031_v38 = vmax.f32 %v999_v28, 0.0  ;;  %v1323_v53 = vor.u32 %v1321_v45, %v1320_v40  ;;  %v1325_v2 = vrot.slane %v1320_v40, 4  ;;  %v3064_v30 = vor.u32 %v3062_v24, %v3061_v15 }
 0x11e   : > { %v7677_v36 = vrot.slane %v3045_v26, 11 }
 0x11f   : > { %v1063_v42 = vpack.c.bf16 %v1031_v38, %v1031_v38  ;;  %v1324_v1 = vsel %vm9035_vm2, %v7503_v50, %v1323_v53  ;;  %v7504_v38 = vrot.slane %v1335_v27, 11  ;;  %v3065_v40 = vsel %vm9035_vm2, %v3057_v13, %v3064_v30 }
 0x120   : > { %v892_v46 = vpop.f32.mrf.mxu0  ;;  %v8106_v47 = vld [vmem:[#allocation2 + $0x34] sm:$0xff]  ;;  %v1620_v22 = vunpack.c.l.b16 %v1324_v1  ;;  %v3056_v16 = vsel %vm9035_vm2, %v7677_v36, %v3055_v14  ;;  %v3394_v48 = vunpack.c.l.b16 %v3065_v40 }
 0x121   : > { %v1206_v49 = vld [vmem:[#allocation2 + $0x38] sm:$0xf]  ;;  %1096 = vst [vmem:[#allocation2 + $0x44] sm:$0xf] %v1063_v42  ;;  %v965_v51 = vmul.f32 %v9061_v54, %v892_v46  ;;  %2063 = vmatmul.bf16.gmra.mxu2 %v8106_v47 }
 0x122   : > { %v1327_v56 = vshrl.u32 %v1206_v49, 16  ;;  %v1330_v59 = vshll.u32 %v1206_v49, 16  ;;  %v2982_v44 = vld [vmem:[#allocation2 + $0x38] sm:$0xf]  ;;  %v2981_v49 = vld [vmem:[#allocation2 + $0x34] sm:$0xf] }
 0x123   : > { %v1000_v18 = vadd.f32 %v9068_v55, %v965_v51  ;;  %v3081_v50 = vshrl.u32 %v2982_v44, 16  ;;  %v3075_v15 = vshll.u32 %v2981_v49, 16 }
 0x124   : > { %v1329_v58 = vrot.slane %v1327_v56, 7 }
 0x125   : > { %v1032_v0 = vmax.f32 %v1000_v18, 0.0  ;;  %v3393_v18 = vunpack.c.l.b16 %v3056_v16 }
 0x126   : > { %v1332_v3 = vor.u32 %v1330_v59, %v1329_v58  ;;  %v3072_v59 = vshrl.u32 %v2981_v49, 16 }
 0x127   : > { %v1064_v4 = vpack.c.bf16 %v1032_v0, %v1032_v0 }
 0x128   : > { %v1333_v5 = vsel %vm9035_vm2, %v1325_v2, %v1332_v3  ;;  %v895_v7 = vpop.f32.mrf.mxu0  ;;  %v1208_v10 = vld [vmem:[#allocation2 + $0x44] sm:$0xf]  ;;  %v3424_v2 = vpack.c.b16 %v3394_v48, %v3393_v18  ;;  %v3083_v3 = vrot.slane %v3081_v50, 7  ;;  %v2983_v50 = vld [vmem:[#allocation2 + $0x40] sm:$0x8] }
 0x129   : > { %v1621_v8 = vunpack.c.l.b16 %v1333_v5  ;;  %1097 = vst [vmem:[#allocation2 + $0x48] sm:$0xf] %v1064_v4  ;;  %v966_v11 = vmul.f32 %v9061_v54, %v895_v7  ;;  %v1340_v19 = vshrl.u32 %v1208_v10, 16  ;;  %v1343_v34 = vshll.u32 %v1208_v10, 16  ;;  %v1210_v4 = vld [vmem:[#allocation2 + $0x50] sm:$0x8] }
 0x12a   : > { %v3074_v7 = vrot.slane %v3072_v59, 7  ;;  %v1357_v9 = vshrl.u32 %v1210_v4, 16 }
 0x12b   : > { %v1649_v25 = vpack.c.b16 %v1621_v8, %v1620_v22  ;;  %v1001_v21 = vadd.f32 %v9068_v55, %v966_v11  ;;  %3511 = vmatmul.bf16.vlgmr.msrb.gmra.mxu0 %v3423_v12  ;;  %v1342_v31 = vrot.slane %v1340_v19, 7  ;;  %v3084_v22 = vshll.u32 %v2982_v44, 16 }
 0x12c   : > { %v3067_v8 = vshrl.u32 %v2980_v63, 16  ;;  %v3079_v19 = vrot.slane %v3074_v7, 4  ;;  %v3077_v26 = vor.u32 %v3075_v15, %v3074_v7 }
 0x12d   : > { %1749 = vmatmul.bf16.gmra.mxu1 %v1649_v25  ;;  %v1033_v29 = vmax.f32 %v1001_v21, 0.0  ;;  %v1345_v41 = vor.u32 %v1343_v34, %v1342_v31  ;;  %v1347_v53 = vrot.slane %v1342_v31, 4  ;;  %v3086_v11 = vor.u32 %v3084_v22, %v3083_v3 }
 0x12e   : > { %v7678_v24 = vrot.slane %v3067_v8, 11 }
 0x12f   : > { %v1065_v33 = vpack.c.bf16 %v1033_v29, %v1033_v29  ;;  %v1346_v52 = vsel %vm9035_vm2, %v7504_v38, %v1345_v41  ;;  %v7505_v29 = vrot.slane %v1357_v9, 11  ;;  %v3087_v31 = vsel %vm9035_vm2, %v3079_v19, %v3086_v11 }
 0x130   : > { %v897_v28 = vpop.f32.mrf.mxu0  ;;  %v8107_v35 = vld [vmem:[#allocation2 + $0x44] sm:$0xff]  ;;  %v1622_v61 = vunpack.c.l.b16 %v1346_v52  ;;  %v3078_v36 = vsel %vm9035_vm2, %v7678_v24, %v3077_v26  ;;  %v3396_v14 = vunpack.c.l.b16 %v3087_v31  ;;  %v8092_v26 = vld [vmem:[%s8971_s23 + $0x78] sm:$0xff] }
 0x131   : > { %v1209_v37 = vld [vmem:[#allocation2 + $0x48] sm:$0xf]  ;;  %1098 = vst [vmem:[#allocation2 + $0x54] sm:$0xf] %v1065_v33  ;;  %v967_v39 = vmul.f32 %v9061_v54, %v897_v28  ;;  %2068 = vmatmul.bf16.gmra.mxu2 %v8107_v35  ;;  %949 = vmatmul.bf16.gmra.mxu3 %v8092_v26 }
 0x132   : > { %v1349_v42 = vshrl.u32 %v1209_v37, 16  ;;  %v1352_v47 = vshll.u32 %v1209_v37, 16  ;;  %v2985_v13 = vld [vmem:[#allocation2 + $0x48] sm:$0xf]  ;;  %v2984_v37 = vld [vmem:[#allocation2 + $0x44] sm:$0xf] }
 0x133   : > { %v1002_v45 = vadd.f32 %v9068_v55, %v967_v39  ;;  %v3103_v38 = vshrl.u32 %v2985_v13, 16  ;;  %v3097_v3 = vshll.u32 %v2984_v37, 16 }
 0x134   : > { %v1351_v46 = vrot.slane %v1349_v42, 7 }
 0x135   : > { %v1034_v51 = vmax.f32 %v1002_v45, 0.0  ;;  %v3395_v45 = vunpack.c.l.b16 %v3078_v36 }
 0x136   : > { %v1354_v56 = vor.u32 %v1352_v47, %v1351_v46  ;;  %v3094_v47 = vshrl.u32 %v2984_v37, 16 }
 0x137   : > { %v1066_v57 = vpack.c.bf16 %v1034_v51, %v1034_v51 }
 0x138   : > { %v1355_v58 = vsel %vm9035_vm2, %v1347_v53, %v1354_v56  ;;  %v900_v60 = vpop.f32.mrf.mxu0  ;;  %v1211_v0 = vld [vmem:[#allocation2 + $0x54] sm:$0xf]  ;;  %v3425_v53 = vpack.c.b16 %v3396_v14, %v3395_v45  ;;  %v3105_v56 = vrot.slane %v3103_v38, 7  ;;  %v1216_v45 = vld [vmem:[#allocation2 + $0x70] sm:$0x8] }
 0x139   : > { %v1623_v62 = vunpack.c.l.b16 %v1355_v58  ;;  %1099 = vst [vmem:[#allocation2 + $0x58] sm:$0xf] %v1066_v57  ;;  %v968_v1 = vmul.f32 %v9061_v54, %v900_v60  ;;  %v1362_v20 = vshrl.u32 %v1211_v0, 16  ;;  %v1365_v25 = vshll.u32 %v1211_v0, 16  ;;  %v1213_v57 = vld [vmem:[#allocation2 + $0x60] sm:$0x8] }
 0x13a   : > { %v3096_v60 = vrot.slane %v3094_v47, 7  ;;  %v1379_v63 = vshrl.u32 %v1213_v57, 16  ;;  %v2987_v24 = vld [vmem:[#allocation2 + $0x54] sm:$0xf] }
 0x13b   : > { %v1650_v5 = vpack.c.b16 %v1623_v62, %v1622_v61  ;;  %v1003_v6 = vadd.f32 %v9068_v55, %v968_v1  ;;  %3516 = vmatmul.bf16.gmra.mxu0 %v3424_v2  ;;  %v1364_v12 = vrot.slane %v1362_v20, 7  ;;  %v3106_v61 = vshll.u32 %v2985_v13, 16 }
 0x13c   : > { %v3089_v62 = vshrl.u32 %v2983_v50, 16  ;;  %v3101_v20 = vrot.slane %v3096_v60, 4  ;;  %v3099_v8 = vor.u32 %v3097_v3, %v3096_v60  ;;  %v3119_v57 = vshll.u32 %v2987_v24, 16  ;;  %v2049_v60 = vpop.f32.mrf.mxu2 }
 0x13d   : > { %1754 = vmatmul.bf16.gmra.mxu1 %v1650_v5  ;;  %v1035_v10 = vmax.f32 %v1003_v6, 0.0  ;;  %v1367_v32 = vor.u32 %v1365_v25, %v1364_v12  ;;  %v1369_v41 = vrot.slane %v1364_v12, 4  ;;  %v3108_v1 = vor.u32 %v3106_v61, %v3105_v56 }
 0x13e   : > { %v7679_v22 = vrot.slane %v3089_v62, 11 }
 0x13f   : > { %v1067_v17 = vpack.c.bf16 %v1035_v10, %v1035_v10  ;;  %v1368_v40 = vsel %vm9035_vm2, %v7505_v29, %v1367_v32  ;;  %v7506_v10 = vrot.slane %v1379_v63, 11  ;;  %v3109_v12 = vsel %vm9035_vm2, %v3101_v20, %v3108_v1 }
 0x140   : > { %v902_v21 = vpop.f32.mrf.mxu0  ;;  %v8108_v23 = vld [vmem:[#allocation2 + $0x54] sm:$0xff]  ;;  %v1624_v48 = vunpack.c.l.b16 %v1368_v40  ;;  %v3398_v29 = vunpack.c.l.b16 %v3109_v12 }
 0x141   : > { %v1212_v27 = vld [vmem:[#allocation2 + $0x58] sm:$0xf]  ;;  %1100 = vst [vmem:[#allocation2 + $0x64] sm:$0xf] %v1067_v17  ;;  %v969_v30 = vmul.f32 %v9061_v54, %v902_v21  ;;  %2073 = vmatmul.bf16.gmra.mxu2 %v8108_v23 }
 0x142   : > { %v1371_v33 = vshrl.u32 %v1212_v27, 16  ;;  %v1374_v35 = vshll.u32 %v1212_v27, 16  ;;  %v2988_v19 = vld [vmem:[#allocation2 + $0x58] sm:$0xf]  ;;  %v3100_v27 = vsel %vm9035_vm2, %v7679_v22, %v3099_v8 }
 0x143   : > { %v1004_v34 = vadd.f32 %v9068_v55, %v969_v30  ;;  %v3125_v30 = vshrl.u32 %v2988_v19, 16 }
 0x144   : > { %v1373_v28 = vrot.slane %v1371_v33, 7 }
 0x145   : > { %v1036_v39 = vmax.f32 %v1004_v34, 0.0  ;;  %v3116_v34 = vshrl.u32 %v2987_v24, 16  ;;  %v3127_v40 = vrot.slane %v3125_v30, 7 }
 0x146   : > { %v1376_v42 = vor.u32 %v1374_v35, %v1373_v28  ;;  %v3397_v35 = vunpack.c.l.b16 %v3100_v27 }
 0x147   : > { %v1068_v44 = vpack.c.bf16 %v1036_v39, %v1036_v39  ;;  %v2986_v39 = vld [vmem:[#allocation2 + $0x50] sm:$0x8] }
 0x148   : > { %v1377_v46 = vsel %vm9035_vm2, %v1369_v41, %v1376_v42  ;;  %v905_v16 = vpop.f32.mrf.mxu0  ;;  %v1214_v51 = vld [vmem:[#allocation2 + $0x64] sm:$0xf]  ;;  %v3111_v50 = vshrl.u32 %v2986_v39, 16 }
 0x149   : > { %v1625_v49 = vunpack.c.l.b16 %v1377_v46  ;;  %1101 = vst [vmem:[#allocation2 + $0x68] sm:$0xf] %v1068_v44  ;;  %v970_v52 = vmul.f32 %v9061_v54, %v905_v16  ;;  %v1384_v18 = vshrl.u32 %v1214_v51, 16  ;;  %v1387_v5 = vshll.u32 %v1214_v51, 16 }
 0x14a   : > { %v3426_v44 = vpack.c.b16 %v3398_v29, %v3397_v35  ;;  %v3118_v16 = vrot.slane %v3116_v34, 7  ;;  %v7680_v63 = vrot.slane %v3111_v50, 11 }
 0x14b   : > { %v1651_v58 = vpack.c.b16 %v1625_v49, %v1624_v48  ;;  %v1005_v59 = vadd.f32 %v9068_v55, %v970_v52  ;;  %3521 = vmatmul.bf16.gmra.mxu0 %v3425_v53  ;;  %v1386_v2 = vrot.slane %v1384_v18, 7  ;;  %v3128_v48 = vshll.u32 %v2988_v19, 16 }
 0x14c   : > { %v1401_v52 = vshrl.u32 %v1216_v45, 16  ;;  %v3123_v18 = vrot.slane %v3118_v16, 4 }
 0x14d   : > { %1759 = vmatmul.bf16.gmra.mxu1 %v1651_v58  ;;  %v1037_v0 = vmax.f32 %v1005_v59, 0.0  ;;  %v1389_v15 = vor.u32 %v1387_v5, %v1386_v2  ;;  %v1391_v33 = vrot.slane %v1386_v2, 4  ;;  %v3130_v51 = vor.u32 %v3128_v48, %v3127_v40 }
 0x14e   : > { %v7507_v3 = vrot.slane %v1401_v52, 11 }
 0x14f   : > { %v1069_v4 = vpack.c.bf16 %v1037_v0, %v1037_v0  ;;  %v1390_v32 = vsel %vm9035_vm2, %v7506_v10, %v1389_v15  ;;  %v3121_v0 = vor.u32 %v3119_v57, %v3118_v16  ;;  %v3131_v1 = vsel %vm9035_vm2, %v3123_v18, %v3130_v51  ;;  %v2990_v15 = vld [vmem:[#allocation2 + $0x64] sm:$0xf] }
 0x150   : > { %v907_v6 = vpop.f32.mrf.mxu0  ;;  %v8109_v7 = vld [vmem:[#allocation2 + $0x64] sm:$0xff]  ;;  %v1626_v37 = vunpack.c.l.b16 %v1390_v32  ;;  %v3400_v12 = vunpack.c.l.b16 %v3131_v1  ;;  %v3138_v29 = vshrl.u32 %v2990_v15, 16  ;;  %v3141_v16 = vshll.u32 %v2990_v15, 16 }
 0x151   : > { %v1215_v9 = vld [vmem:[#allocation2 + $0x68] sm:$0xf]  ;;  %1102 = vst [vmem:[#allocation2 + $0x74] sm:$0xf] %v1069_v4  ;;  %v971_v11 = vmul.f32 %v9061_v54, %v907_v6  ;;  %2078 = vmatmul.bf16.gmra.mxu2 %v8109_v7  ;;  %v1735_v4 = vpop.f32.mrf.mxu1 }
 0x152   : > { %v1393_v17 = vshrl.u32 %v1215_v9, 16  ;;  %v1396_v23 = vshll.u32 %v1215_v9, 16  ;;  %v9169_v7 = vadd.f32 %v2049_v60, %v1735_v4  ;;  %v2991_v22 = vld [vmem:[#allocation2 + $0x68] sm:$0xf]  ;;  %v3140_v40 = vrot.slane %v3138_v29, 7 }
 0x153   : > { %v1006_v25 = vadd.f32 %v9068_v55, %v971_v11  ;;  %v3122_v11 = vsel %vm9035_vm2, %v7680_v63, %v3121_v0 }
 0x154   : > { %v1395_v21 = vrot.slane %v1393_v17, 7  ;;  %v3147_v17 = vshrl.u32 %v2991_v22, 16  ;;  %v3399_v26 = vunpack.c.l.b16 %v3122_v11 }
 0x155   : > { %v1038_v31 = vmax.f32 %v1006_v25, 0.0 }
 0x156   : > { %v1398_v13 = vor.u32 %v1396_v23, %v1395_v21  ;;  %v3427_v35 = vpack.c.b16 %v3400_v12, %v3399_v26 }
 0x157   : > { %v1070_v28 = vpack.c.bf16 %v1038_v31, %v1038_v31 }
 0x158   : > { %v1399_v36 = vsel %vm9035_vm2, %v1391_v33, %v1398_v13  ;;  %v910_v14 = vpop.f32.mrf.mxu0  ;;  %v1217_v41 = vld [vmem:[#allocation2 + $0x74] sm:$0xf]  ;;  %v2989_v33 = vld [vmem:[#allocation2 + $0x60] sm:$0x8] }
 0x159   : > { %v1627_v38 = vunpack.c.l.b16 %v1399_v36  ;;  %1103 = vst [vmem:[#allocation2 + $0x78] sm:$0xf] %v1070_v28  ;;  %v972_v42 = vmul.f32 %v9061_v54, %v910_v14  ;;  %v1406_v46 = vshrl.u32 %v1217_v41, 16  ;;  %v1409_v59 = vshll.u32 %v1217_v41, 16  ;;  %v1219_v13 = vld [vmem:[#allocation2 + $0x80] sm:$0x8] }
 0x15a   : > { %v3149_v36 = vrot.slane %v3147_v17, 7  ;;  %v3150_v41 = vshll.u32 %v2991_v22, 16  ;;  %v2992_v17 = vld [vmem:[#allocation2 + $0x70] sm:$0x8] }
 0x15b   : > { %v1652_v47 = vpack.c.b16 %v1627_v38, %v1626_v37  ;;  %v1007_v49 = vadd.f32 %v9068_v55, %v972_v42  ;;  %3526 = vmatmul.bf16.gmra.mxu0 %v3426_v44  ;;  %v1408_v56 = vrot.slane %v1406_v46, 7  ;;  %v8166_v37 = vld [vmem:[#allocation12 + $0x138] sm:$0xff]  ;;  %v3133_v42 = vshrl.u32 %v2989_v33, 16 }
 0x15c   : > { %3881 = vmatpush.bf16.msrb.mxu1 %v8166_v37  ;;  %v1423_v44 = vshrl.u32 %v1219_v13, 16  ;;  %v3152_v46 = vor.u32 %v3150_v41, %v3149_v36  ;;  %v3155_v33 = vshrl.u32 %v2992_v17, 16  ;;  %v8172_v36 = vld [vmem:[#allocation12 + $0x168] sm:$0xff] }
 0x15d   : > { %1764 = vmatmul.bf16.gmra.mxu1 %v1652_v47  ;;  %v1039_v53 = vmax.f32 %v1007_v49, 0.0  ;;  %v1411_v5 = vor.u32 %v1409_v59, %v1408_v56  ;;  %v1413_v21 = vrot.slane %v1408_v56, 4  ;;  %v3145_v49 = vrot.slane %v3140_v40, 4 }
 0x15e   : > { %v3143_v56 = vor.u32 %v3141_v16, %v3140_v40  ;;  %v7508_v18 = vrot.slane %v1423_v44, 11  ;;  %v7682_v41 = vrot.slane %v3155_v33, 11 }
 0x15f   : > { %v1071_v58 = vpack.c.bf16 %v1039_v53, %v1039_v53  ;;  %v1412_v25 = vsel %vm9035_vm2, %v7507_v3, %v1411_v5  ;;  %v7681_v53 = vrot.slane %v3133_v42, 11  ;;  %v3153_v59 = vsel %vm9035_vm2, %v3145_v49, %v3152_v46  ;;  %v8174_v3 = vld [vmem:[#allocation12 + $0x178] sm:$0xff] }
 0x160   : > { %v912_v61 = vpop.f32.mrf.mxu0  ;;  %v8110_v62 = vld [vmem:[#allocation2 + $0x74] sm:$0xff]  ;;  %v1628_v31 = vunpack.c.l.b16 %v1412_v25  ;;  %4627 = vmatpush.bf16.msrb.mxu2 %v8174_v3 }
 0x161   : > { %v1218_v2 = vld [vmem:[#allocation2 + $0x78] sm:$0xf]  ;;  %1104 = vst [vmem:[#allocation2 + $0x84] sm:$0xf] %v1071_v58  ;;  %v973_v20 = vmul.f32 %v9061_v54, %v912_v61  ;;  %2083 = vmatmul.bf16.gmra.mxu2 %v8110_v62  ;;  %v3144_v4 = vsel %vm9035_vm2, %v7681_v53, %v3143_v56 }
 0x162   : > { %v1415_v6 = vshrl.u32 %v1218_v2, 16  ;;  %v1418_v10 = vshll.u32 %v1218_v2, 16  ;;  %v2994_v62 = vld [vmem:[#allocation2 + $0x78] sm:$0xf]  ;;  %v2993_v2 = vld [vmem:[#allocation2 + $0x74] sm:$0xf]  ;;  %v3401_v12 = vunpack.c.l.b16 %v3144_v4 }
 0x163   : > { %v1008_v8 = vadd.f32 %v9068_v55, %v973_v20  ;;  %v3402_v20 = vunpack.c.l.b16 %v3153_v59  ;;  %v3169_v5 = vshrl.u32 %v2994_v62, 16 }
 0x164   : > { %v1417_v9 = vrot.slane %v1415_v6, 7 }
 0x165   : > { %v1040_v19 = vmax.f32 %v1008_v8, 0.0  ;;  %v3428_v29 = vpack.c.b16 %v3402_v20, %v3401_v12 }
 0x166   : > { %v1420_v23 = vor.u32 %v1418_v10, %v1417_v9  ;;  %v3160_v10 = vshrl.u32 %v2993_v2, 16 }
 0x167   : > { %v1072_v24 = vpack.c.bf16 %v1040_v19, %v1040_v19  ;;  %v8173_v19 = vld [vmem:[#allocation12 + $0x170] sm:$0xff] }
 0x168   : > { %v1421_v27 = vsel %vm9035_vm2, %v1413_v21, %v1420_v23  ;;  %v915_v30 = vpop.f32.mrf.mxu0  ;;  %v1220_v34 = vld [vmem:[#allocation2 + $0x84] sm:$0xf]  ;;  %4628 = vmatpush.bf16.msrb.mxu2 %v8173_v19  ;;  %v3162_v13 = vrot.slane %v3160_v10, 7  ;;  %v8164_v10 = vld [vmem:[#allocation12 + $0x128] sm:$0xff] }
 0x169   : > { %v1629_v32 = vunpack.c.l.b16 %v1421_v27  ;;  %1105 = vst [vmem:[#allocation2 + $0x88] sm:$0xf] %v1072_v24  ;;  %v974_v28 = vmul.f32 %v9061_v54, %v915_v30  ;;  %v1428_v14 = vshrl.u32 %v1220_v34, 16  ;;  %v1431_v50 = vshll.u32 %v1220_v34, 16  ;;  %v1222_v30 = vld [vmem:[#allocation2 + $0x90] sm:$0x8] }
 0x16a   : > { %v3171_v24 = vrot.slane %v3169_v5, 7  ;;  %v3172_v34 = vshll.u32 %v2994_v62, 16  ;;  %v3167_v44 = vrot.slane %v3162_v13, 4 }
 0x16b   : > { %v1653_v38 = vpack.c.b16 %v1629_v32, %v1628_v31  ;;  %v1009_v39 = vadd.f32 %v9068_v55, %v974_v28  ;;  %3531 = vmatmul.bf16.gmra.mxu0 %v3427_v35  ;;  %v1430_v47 = vrot.slane %v1428_v14, 7  ;;  %v9192_v35 = vpop.f32.mrf.mxu2  ;;  %v3163_v14 = vshll.u32 %v2993_v2, 16  ;;  %v9210_v2 = vld [vmem:[%s10498_s7] ss:$0 sm:$0xff] }
 0x16c   : > { %10546 = vst [vmem:[#allocation30_spill] sm:$0xff] %v9192_v35  ;;  %v3174_v37 = vor.u32 %v3172_v34, %v3171_v24  ;;  %4629 = vmatpush.bf16.msrb.mxu2 %v8172_v36  ;;  %v8169_v24 = vld [vmem:[#allocation12 + $0x150] sm:$0xff] }
 0x16d   : > { %1769 = vmatmul.bf16.gmra.mxu1 %v1653_v38  ;;  %v1041_v45 = vmax.f32 %v1009_v39, 0.0  ;;  %v1433_v60 = vor.u32 %v1431_v50, %v1430_v47  ;;  %v1435_v8 = vrot.slane %v1430_v47, 4  ;;  %v1445_v38 = vshrl.u32 %v1222_v30, 16  ;;  %v9194_v47 = vpop.f32.mrf.mxu1  ;;  %v2995_v30 = vld [vmem:[#allocation2 + $0x80] sm:$0x8] }
 0x16e   : > { %v3165_v42 = vor.u32 %v3163_v14, %v3162_v13  ;;  %10547 = vst [vmem:[#allocation31_spill] sm:$0xff] %v9194_v47 }
 0x16f   : > { %v1073_v48 = vpack.c.bf16 %v1041_v45, %v1041_v45  ;;  %v1434_v22 = vsel %vm9035_vm2, %v7508_v18, %v1433_v60  ;;  %v935_v45 = vpop.f32.mrf.mxu3  ;;  %v7509_v53 = vrot.slane %v1445_v38, 11  ;;  %v8165_v60 = vld [vmem:[#allocation12 + $0x130] sm:$0xff] }
 0x170   : > { %v917_v51 = vpop.f32.mrf.mxu0  ;;  %v8111_v52 = vld [vmem:[#allocation2 + $0x84] sm:$0xff]  ;;  %v1630_v21 = vunpack.c.l.b16 %v1434_v22  ;;  %v982_v59 = vmul.f32 %v9061_v54, %v935_v45  ;;  %3882 = vmatpush.bf16.msrb.mxu1 %v8165_v60 }
 0x171   : > { %v1221_v57 = vld [vmem:[#allocation2 + $0x88] sm:$0xf]  ;;  %1106 = vst [vmem:[#allocation2 + $0x94] sm:$0xf] %v1073_v48  ;;  %v975_v58 = vmul.f32 %v9061_v54, %v917_v51  ;;  %2088 = vmatmul.bf16.gmra.mxu2 %v8111_v52  ;;  %v8171_v48 = vld [vmem:[#allocation12 + $0x160] sm:$0xff]  ;;  %v3175_v51 = vsel %vm9035_vm2, %v3167_v44, %v3174_v37 }
 0x172   : > { %v1437_v61 = vshrl.u32 %v1221_v57, 16  ;;  %v1440_v1 = vshll.u32 %v1221_v57, 16  ;;  %4630 = vmatpush.bf16.msrb.mxu2 %v8171_v48  ;;  %v1017_v3 = vadd.f32 %v9210_v2, %v982_v59  ;;  %v3404_v4 = vunpack.c.l.b16 %v3175_v51  ;;  %v8163_v37 = vld [vmem:[#allocation12 + $0x120] sm:$0xff]  ;;  %v8168_v45 = vld [vmem:[#allocation12 + $0x148] sm:$0xff]  ;;  %v8162_v51 = vld [vmem:[#allocation12 + $0x118] sm:$0xff] }
 0x173   : > { %v1010_v63 = vadd.f32 %v9068_v55, %v975_v58  ;;  %v9199_v58 = vld [vmem:[#allocation2 + $0x88] sm:$0xf]  ;;  %v3177_v48 = vshrl.u32 %v2995_v30, 16 }
 0x174   : > { %v1439_v0 = vrot.slane %v1437_v61, 7  ;;  %v3166_v61 = vsel %vm9035_vm2, %v7682_v41, %v3165_v42  ;;  %v3191_v5 = vshrl.u32 %v9199_v58, 16  ;;  %3883 = vmatpush.bf16.msrb.mxu1 %v8164_v10  ;;  %v3194_v41 = vshll.u32 %v9199_v58, 16 }
 0x175   : > { %v1042_v6 = vmax.f32 %v1010_v63, 0.0 }
 0x176   : > { %v1442_v9 = vor.u32 %v1440_v1, %v1439_v0  ;;  %v9205_v1 = vld [vmem:[#allocation2 + $0x84] sm:$0xf] }
 0x177   : > { %v1074_v11 = vpack.c.bf16 %v1042_v6, %v1042_v6  ;;  %v3182_v12 = vshrl.u32 %v9205_v1, 16 }
 0x178   : > { %v1443_v15 = vsel %vm9035_vm2, %v1435_v8, %v1442_v9  ;;  %v920_v25 = vpop.f32.mrf.mxu0  ;;  %v1223_v26 = vld [vmem:[#allocation2 + $0x94] sm:$0xf]  ;;  %v1049_v9 = vmax.f32 %v1017_v3, 0.0  ;;  %3884 = vmatpush.bf16.msrb.mxu1 %v8163_v37  ;;  %v8167_v3 = vld [vmem:[#allocation12 + $0x140] sm:$0xff] }
 0x179   : > { %v1631_v23 = vunpack.c.l.b16 %v1443_v15  ;;  %1107 = vst [vmem:[#allocation2 + $0x98] sm:$0xf] %v1074_v11  ;;  %v976_v27 = vmul.f32 %v9061_v54, %v920_v25  ;;  %v1450_v31 = vshrl.u32 %v1223_v26, 16  ;;  %v1453_v16 = vshll.u32 %v1223_v26, 16  ;;  %v937_v15 = vpop.f32.mrf.mxu3  ;;  %v9247_v30 = vld [vmem:[#allocation2 + $0x94] sm:$0xf] }
 0x17a   : > { %v3403_v11 = vunpack.c.l.b16 %v3166_v61  ;;  %v1081_v25 = vpack.c.bf16 %v1049_v9, %v1049_v9 }
 0x17b   : > { %v1654_v32 = vpack.c.b16 %v1631_v23, %v1630_v21  ;;  %v1011_v28 = vadd.f32 %v9068_v55, %v976_v27  ;;  %3536 = vmatmul.bf16.gmra.mxu0 %v3428_v29  ;;  %v1452_v40 = vrot.slane %v1450_v31, 7  ;;  %v9222_v21 = vld [vmem:[%s10497_s6] ss:$0 sm:$0xff]  ;;  %v3193_v31 = vrot.slane %v3191_v5, 7 }
 0x17c   : > { %v983_v23 = vmul.f32 %v9222_v21, %v937_v15  ;;  %v3429_v34 = vpack.c.b16 %v3404_v4, %v3403_v11  ;;  %1114 = vst [vmem:[#allocation2 + $0xd4] sm:$0xf] %v1081_v25  ;;  %3885 = vmatpush.bf16.msrb.mxu1 %v8162_v51  ;;  %v7683_v5 = vrot.slane %v3177_v48, 11 }
 0x17d   : > { %1774 = vmatmul.bf16.gmra.mxu1 %v1654_v32  ;;  %v1043_v39 = vmax.f32 %v1011_v28, 0.0  ;;  %v1455_v57 = vor.u32 %v1453_v16, %v1452_v40  ;;  %v1457_v20 = vrot.slane %v1452_v40, 4  ;;  %v1225_v28 = vld [vmem:[#allocation2 + $0xa0] sm:$0x8]  ;;  %v3184_v40 = vrot.slane %v3182_v12, 7 }
 0x17e   : > { %v1018_v14 = vadd.f32 %v9210_v2, %v983_v23  ;;  %v9233_v16 = vld [vmem:[#allocation2 + $0x1c] sm:$0x1] }
 0x17f   : > { %v1075_v46 = vpack.c.bf16 %v1043_v39, %v1043_v39  ;;  %v3189_v58 = vrot.slane %v3184_v40, 4  ;;  %v4134_v61 = vshll.u32 %v9233_v16, 16 }
 0x180   : > { %v922_v49 = vpop.f32.mrf.mxu0  ;;  %v8112_v50 = vld [vmem:[#allocation2 + $0x94] sm:$0xff]  ;;  %v1050_v44 = vmax.f32 %v1018_v14, 0.0 }
 0x181   : > { %v1224_v52 = vld [vmem:[#allocation2 + $0x98] sm:$0xf]  ;;  %1108 = vst [vmem:[#allocation2 + $0xa4] sm:$0xf] %v1075_v46  ;;  %v977_v56 = vmul.f32 %v9061_v54, %v922_v49  ;;  %2093 = vmatmul.bf16.gmra.mxu2 %v8112_v50  ;;  %v9231_v46 = vld [vmem:[#allocation2 + $0x14] sm:$0xf]  ;;  %v3196_v49 = vor.u32 %v3194_v41, %v3193_v31  ;;  %v940_v59 = vpop.f32.mrf.mxu3 }
 0x182   : > { %v1459_v18 = vshrl.u32 %v1224_v52, 16  ;;  %v1462_v0 = vshll.u32 %v1224_v52, 16  ;;  %v8170_v54 = vld [vmem:[#allocation12 + $0x158] sm:$0xff]  ;;  %v1467_v50 = vshrl.u32 %v1225_v28, 16  ;;  %v4115_v60 = vshrl.u32 %v9231_v46, 16 }
 0x183   : > { %v1012_v62 = vadd.f32 %v9068_v55, %v977_v56  ;;  %v1456_v55 = vsel %vm9035_vm2, %v7509_v53, %v1455_v57  ;;  %4631 = vmatpush.bf16.msrb.mxu2 %v8170_v54  ;;  %v1082_v57 = vpack.c.bf16 %v1050_v44, %v1050_v44  ;;  %v4067_v54 = vld [vmem:[#allocation2 + $0x18] sm:$0xf]  ;;  %v4118_v25 = vshll.u32 %v9231_v46, 16 }
 0x184   : > { %v1461_v63 = vrot.slane %v1459_v18, 7  ;;  %v2054_v22 = vpop.f32.mrf.mxu2  ;;  %v1632_v27 = vunpack.c.l.b16 %v1456_v55  ;;  %v3185_v18 = vshll.u32 %v9205_v1, 16  ;;  %v3197_v1 = vsel %vm9035_vm2, %v3189_v58, %v3196_v49  ;;  %v3000_v12 = vld [vmem:[#allocation2 + $0x98] sm:$0xf] }
 0x185   : > { %v1044_v6 = vmax.f32 %v1012_v62, 0.0  ;;  %1115 = vst [vmem:[#allocation2 + $0xd8] sm:$0xf] %v1082_v57  ;;  %v7510_v55 = vrot.slane %v1467_v50, 11  ;;  %v4124_v23 = vshll.u32 %v4067_v54, 16  ;;  %v3213_v28 = vshrl.u32 %v3000_v12, 16 }
 0x186   : > { %v1464_v8 = vor.u32 %v1462_v0, %v1461_v63  ;;  %v984_v0 = vmul.f32 %v9222_v21, %v940_v59  ;;  %v3204_v41 = vshrl.u32 %v9247_v30, 16  ;;  %v4120_v44 = vrot.slane %v4118_v25, 5  ;;  %v2998_v57 = vld [vmem:[#allocation2 + $0x90] sm:$0x8] }
 0x187   : > { %v1076_v17 = vpack.c.bf16 %v1044_v6, %v1044_v6  ;;  %4632 = vmatpush.bf16.msrb.mxu2 %v8169_v24  ;;  %v3187_v6 = vor.u32 %v3185_v18, %v3184_v40  ;;  %v4128_v24 = vshrl.u32 %v4067_v54, 16  ;;  %v3215_v18 = vrot.slane %v3213_v28, 7 }
 0x188   : > { %v1465_v19 = vsel %vm9035_vm2, %v1457_v20, %v1464_v8  ;;  %v925_v26 = vpop.f32.mrf.mxu0  ;;  %v1226_v32 = vld [vmem:[#allocation2 + $0xa4] sm:$0xf]  ;;  %v1019_v15 = vadd.f32 %v9210_v2, %v984_v0  ;;  %v1228_v0 = vld [vmem:[#allocation2 + $0xb0] sm:$0x8] }
 0x189   : > { %v1633_v29 = vunpack.c.l.b16 %v1465_v19  ;;  %1109 = vst [vmem:[#allocation2 + $0xa8] sm:$0xf] %v1076_v17  ;;  %v978_v33 = vmul.f32 %v9222_v21, %v925_v26  ;;  %v1472_v36 = vshrl.u32 %v1226_v32, 16  ;;  %v1475_v63 = vshll.u32 %v1226_v32, 16  ;;  %v8161_v17 = vld [vmem:[#allocation12 + $0x110] sm:$0xff]  ;;  %v8160_v32 = vld [vmem:[#allocation12 + $0x108] sm:$0xff]  ;;  %v942_v46 = vpop.f32.mrf.mxu3 }
 0x18a   : > { %v1740_v13 = vpop.f32.mrf.mxu1  ;;  %v1051_v31 = vmax.f32 %v1019_v15, 0.0  ;;  %3886 = vmatpush.bf16.msrb.mxu1 %v8161_v17  ;;  %v985_v51 = vmul.f32 %v9222_v21, %v942_v46  ;;  %v4130_v59 = vrot.slane %v4128_v24, 4  ;;  %v3207_v24 = vshll.u32 %v9247_v30, 16  ;;  %v4070_v46 = vld [vmem:[#allocation2 + $0x28] sm:$0xf] }
 0x18b   : > { %v9227_v38 = vadd.f32 %v2054_v22, %v1740_v13  ;;  %v1655_v39 = vpack.c.b16 %v1633_v29, %v1632_v27  ;;  %v1013_v42 = vadd.f32 %v9210_v2, %v978_v33  ;;  %3541 = vmatmul.bf16.gmra.mxu0 %v3429_v34  ;;  %v1474_v56 = vrot.slane %v1472_v36, 7  ;;  %4633 = vmatpush.bf16.msrb.mxu2 %v8168_v45 }
 0x18c   : > { %v2056_v53 = vpop.f32.mrf.mxu2  ;;  %v3188_v33 = vsel %vm9035_vm2, %v7683_v5, %v3187_v6  ;;  %v3406_v13 = vunpack.c.l.b16 %v3197_v1  ;;  %v1083_v40 = vpack.c.bf16 %v1051_v31, %v1051_v31  ;;  %v9254_v45 = vrot.slane %v4124_v23, 5  ;;  %v8159_v1 = vld [vmem:[#allocation12 + $0x100] sm:$0xff] }
 0x18d   : > { %1779 = vmatmul.bf16.gmra.mxu1 %v1655_v39  ;;  %v1045_v52 = vmax.f32 %v1013_v42, 0.0  ;;  %v1477_v10 = vor.u32 %v1475_v63, %v1474_v56  ;;  %v1479_v34 = vrot.slane %v1474_v56, 4  ;;  %v4117_v42 = vrot.slane %v4115_v60, 4 }
 0x18e   : > { %v3405_v49 = vunpack.c.l.b16 %v3188_v33  ;;  %1116 = vst [vmem:[#allocation2 + $0xe4] sm:$0xf] %v1083_v40  ;;  %3887 = vmatpush.bf16.msrb.mxu1 %v8160_v32  ;;  %v1020_v54 = vadd.f32 %v9210_v2, %v985_v51  ;;  %v3206_v5 = vrot.slane %v3204_v41, 7  ;;  %v3216_v6 = vshll.u32 %v3000_v12, 16 }
 0x18f   : > { %v1077_v62 = vpack.c.bf16 %v1045_v52, %v1045_v52  ;;  %4634 = vmatpush.bf16.msrb.mxu2 %v8167_v3  ;;  %v1478_v37 = vsel %vm9035_vm2, %v7510_v55, %v1477_v10  ;;  %v4121_v55 = vor.u32 %v4120_v44, %v4117_v42 }
 0x190   : > { %v927_v4 = vpop.f32.mrf.mxu0  ;;  %v8113_v20 = vld [vmem:[#allocation2 + $0xa4] sm:$0xff]  ;;  %v3430_v63 = vpack.c.b16 %v3406_v13, %v3405_v49  ;;  %v3218_v10 = vor.u32 %v3216_v6, %v3215_v18  ;;  %v3211_v12 = vrot.slane %v3206_v5, 4  ;;  %v3209_v30 = vor.u32 %v3207_v24, %v3206_v5 }
 0x191   : > { %v1227_v22 = vld [vmem:[#allocation2 + $0xa8] sm:$0xf]  ;;  %1110 = vst [vmem:[#allocation2 + $0xb4] sm:$0xf] %v1077_v62  ;;  %v979_v8 = vmul.f32 %v9222_v21, %v927_v4  ;;  %2098 = vmatmul.bf16.gmra.mxu2 %v8113_v20  ;;  %v9270_v33 = vrot.slane %v4121_v55, 4 }
 0x192   : > { %v1742_v9 = vpop.f32.mrf.mxu1  ;;  %v1481_v11 = vshrl.u32 %v1227_v22, 16  ;;  %v1484_v29 = vshll.u32 %v1227_v22, 16  ;;  %3888 = vmatpush.bf16.msrb.mxu1 %v8159_v1  ;;  %v3002_v5 = vld [vmem:[#allocation2 + $0xa4] sm:$0xf] }
 0x193   : > { %v9243_v19 = vadd.f32 %v2056_v53, %v1742_v9  ;;  %v1014_v26 = vadd.f32 %v9210_v2, %v979_v8  ;;  %v1634_v53 = vunpack.c.l.b16 %v1478_v37  ;;  %v1052_v8 = vmax.f32 %v1020_v54, 0.0 }
 0x194   : > { %v1483_v27 = vrot.slane %v1481_v11, 7  ;;  %v2059_v14 = vpop.f32.mrf.mxu2  ;;  %v3199_v9 = vshrl.u32 %v2998_v57, 16  ;;  %v1489_v11 = vshrl.u32 %v1228_v0, 16  ;;  %v3219_v37 = vsel %vm9035_vm2, %v3211_v12, %v3218_v10  ;;  %v3003_v57 = vld [vmem:[#allocation2 + $0xa8] sm:$0xf] }
 0x195   : > { %v1046_v36 = vmax.f32 %v1014_v26, 0.0  ;;  %v1084_v23 = vpack.c.bf16 %v1052_v8, %v1052_v8  ;;  %v4131_v26 = vor.u32 %v4130_v59, %v9254_v45  ;;  %v3408_v59 = vunpack.c.l.b16 %v3219_v37 }
 0x196   : > { %v1486_v39 = vor.u32 %v1484_v29, %v1483_v27  ;;  %v9268_v27 = vrot.slane %v4134_v61, 5  ;;  %v945_v29 = vpop.f32.mrf.mxu3  ;;  %v7511_v16 = vrot.slane %v1489_v11, 11  ;;  %v4152_v8 = vshrl.u32 %v4070_v46, 16 }
 0x197   : > { %v1078_v48 = vpack.c.bf16 %v1046_v36, %v1046_v36  ;;  %1117 = vst [vmem:[#allocation2 + $0xe8] sm:$0xf] %v1084_v23  ;;  %v986_v13 = vmul.f32 %v9222_v21, %v945_v29  ;;  %v4132_v49 = vrot.slane %v4131_v26, 4  ;;  %v3226_v12 = vshrl.u32 %v3002_v5, 16  ;;  %v4071_v29 = vld [vmem:[#allocation2 + $0x2c] sm:$0x1] }
 0x198   : > { %v1487_v50 = vsel %vm9035_vm2, %v1479_v34, %v1486_v39  ;;  %v930_v52 = vpop.f32.mrf.mxu0  ;;  %v1229_v58 = vld [vmem:[#allocation2 + $0xb4] sm:$0xf]  ;;  %v4069_v34 = vld [vmem:[#allocation2 + $0x24] sm:$0xf] }
 0x199   : > { %v1635_v56 = vunpack.c.l.b16 %v1487_v50  ;;  %1111 = vst [vmem:[#allocation2 + $0xb8] sm:$0xf] %v1078_v48  ;;  %v980_v60 = vmul.f32 %v9222_v21, %v930_v52  ;;  %v1494_v3 = vshrl.u32 %v1229_v58, 16  ;;  %v1497_v32 = vshll.u32 %v1229_v58, 16 }
 0x19a   : > { %v1745_v62 = vpop.f32.mrf.mxu1  ;;  %v1021_v44 = vadd.f32 %v9210_v2, %v986_v13  ;;  %v4139_v50 = vshrl.u32 %v4069_v34, 16  ;;  %v4142_v51 = vshll.u32 %v4069_v34, 16  ;;  %v4137_v1 = vsel %vm9286_vm5, %v4132_v49, %v9268_v27  ;;  %v3001_v13 = vld [vmem:[#allocation2 + $0xa0] sm:$0x8] }
 0x19b   : > { %v9261_v4 = vadd.f32 %v2059_v14, %v1745_v62  ;;  %v1656_v20 = vpack.c.b16 %v1635_v56, %v1634_v53  ;;  %v1015_v22 = vadd.f32 %v9210_v2, %v980_v60  ;;  %3546 = vmatmul.bf16.gmra.mxu0 %v3430_v63  ;;  %v1496_v25 = vrot.slane %v1494_v3, 7 }
 0x19c   : > { %v2061_v17 = vpop.f32.mrf.mxu2  ;;  %v7684_v14 = vrot.slane %v3199_v9, 11  ;;  %v1053_v18 = vmax.f32 %v1021_v44, 0.0  ;;  %v4148_v62 = vshll.u32 %v4070_v46, 16  ;;  %v4141_v55 = vrot.slane %v4139_v50, 4 }
 0x19d   : > { %1784 = vmatmul.bf16.gmra.mxu1 %v1656_v20  ;;  %v1047_v15 = vmax.f32 %v1015_v22, 0.0  ;;  %v1499_v41 = vor.u32 %v1497_v32, %v1496_v25  ;;  %v1501_v60 = vrot.slane %v1496_v25, 4  ;;  %v3235_v22 = vshrl.u32 %v3003_v57, 16 }
 0x19e   : > { %v3210_v58 = vsel %vm9035_vm2, %v7684_v14, %v3209_v30  ;;  %v1085_v6 = vpack.c.bf16 %v1053_v18, %v1053_v18  ;;  %v947_v9 = vpop.f32.mrf.mxu3  ;;  %v4144_v27 = vrot.slane %v4142_v51, 5  ;;  %v3221_v44 = vshrl.u32 %v3001_v13, 16 }
 0x19f   : > { %v1079_v31 = vpack.c.bf16 %v1047_v15, %v1047_v15  ;;  %v1500_v3 = vsel %vm9035_vm2, %v7511_v16, %v1499_v41  ;;  %v3407_v11 = vunpack.c.l.b16 %v3210_v58  ;;  %v3237_v37 = vrot.slane %v3235_v22, 7 }
 0x1a0   : > { %v932_v28 = vpop.f32.mrf.mxu0  ;;  %v8114_v36 = vld [vmem:[#allocation2 + $0xb4] sm:$0xff]  ;;  %1118 = vst [vmem:[#allocation2 + $0xf4] sm:$0xf] %v1085_v6  ;;  %v1636_v23 = vunpack.c.l.b16 %v1500_v3  ;;  %v4154_v16 = vrot.slane %v4152_v8, 4  ;;  %v3228_v46 = vrot.slane %v3226_v12, 7  ;;  %v3238_v49 = vshll.u32 %v3003_v57, 16 }
 0x1a1   : > { %v1230_v39 = vld [vmem:[#allocation2 + $0xb8] sm:$0xf]  ;;  %1112 = vst [vmem:[#allocation2 + $0xc4] sm:$0xf] %v1079_v31  ;;  %v981_v61 = vmul.f32 %v9222_v21, %v932_v28  ;;  %2103 = vmatmul.bf16.gmra.mxu2 %v8114_v36  ;;  %v3431_v32 = vpack.c.b16 %v3408_v59, %v3407_v11  ;;  %v4150_v28 = vrot.slane %v4148_v62, 5  ;;  %v3229_v58 = vshll.u32 %v3002_v5, 16 }
 0x1a2   : > { %v1747_v40 = vpop.f32.mrf.mxu1  ;;  %v1503_v42 = vshrl.u32 %v1230_v39, 16  ;;  %v1506_v56 = vshll.u32 %v1230_v39, 16  ;;  %v1231_v39 = vld [vmem:[#allocation2 + $0xc0] sm:$0x8]  ;;  %v3240_v59 = vor.u32 %v3238_v49, %v3237_v37  ;;  %v3233_v3 = vrot.slane %v3228_v46, 4 }
 0x1a3   : > { %v9277_v48 = vadd.f32 %v2061_v17, %v1747_v40  ;;  %v1016_v52 = vadd.f32 %v9210_v2, %v981_v61  ;;  %v987_v17 = vmul.f32 %v9222_v21, %v947_v9  ;;  %v4127_v61 = vsel %vm9286_vm5, %v9270_v33, %v9254_v45  ;;  %v4072_v12 = vld [vmem:[#allocation2 + $0x34] sm:$0xf] }
 0x1a4   : > { %v1505_v53 = vrot.slane %v1503_v42, 7  ;;  %v2064_v0 = vpop.f32.mrf.mxu2  ;;  %v4158_v40 = vshll.u32 %v4071_v29, 16  ;;  %v4516_v42 = vunpack.c.l.b16 %v4137_v1  ;;  %v1511_v51 = vshrl.u32 %v1231_v39, 16  ;;  %v1235_v29 = vld [vmem:[#allocation2 + $0xd4] sm:$0xf] }
 0x1a5   : > { %v1048_v63 = vmax.f32 %v1016_v52, 0.0  ;;  %v1022_v36 = vadd.f32 %v9210_v2, %v987_v17  ;;  %v4515_v18 = vunpack.c.l.b16 %v4127_v61  ;;  %v7685_v33 = vrot.slane %v3221_v44, 11  ;;  %v3005_v37 = vld [vmem:[#allocation2 + $0xb4] sm:$0xf] }
 0x1a6   : > { %v1508_v54 = vor.u32 %v1506_v56, %v1505_v53  ;;  %v4145_v53 = vor.u32 %v4144_v27, %v4141_v55  ;;  %v7512_v57 = vrot.slane %v1511_v51, 11  ;;  %v4073_v55 = vld [vmem:[#allocation2 + $0x38] sm:$0xf]  ;;  %v3241_v5 = vsel %vm9035_vm2, %v3233_v3, %v3240_v59  ;;  %v3004_v59 = vld [vmem:[#allocation2 + $0xb0] sm:$0x8] }
 0x1a7   : > { %v1080_v10 = vpack.c.bf16 %v1048_v63, %v1048_v63  ;;  %v1054_v41 = vmax.f32 %v1022_v36, 0.0  ;;  %v4547_v45 = vpack.c.b16 %v4516_v42, %v4515_v18  ;;  %v4160_v11 = vrot.slane %v4158_v40, 5  ;;  %v1236_v27 = vld [vmem:[#allocation2 + $0xd8] sm:$0xf]  ;;  %v1234_v42 = vld [vmem:[#allocation2 + $0xd0] sm:$0x8] }
 0x1a8   : > { %v1509_v15 = vsel %vm9035_vm2, %v1501_v60, %v1508_v54  ;;  %v9296_v25 = vpop.f32.mrf.mxu0  ;;  %v1232_v26 = vld [vmem:[#allocation2 + $0xc4] sm:$0xf]  ;;  %v4155_v60 = vor.u32 %v4154_v16, %v4150_v28  ;;  %v4146_v8 = vrot.slane %v4145_v53, 4  ;;  %v3410_v13 = vunpack.c.l.b16 %v3241_v5 }
 0x1a9   : > { %v1637_v24 = vunpack.c.l.b16 %v1509_v15  ;;  %1113 = vst [vmem:[#allocation2 + $0xc8] sm:$0xf] %v1080_v10  ;;  %v1516_v34 = vshrl.u32 %v1232_v26, 16  ;;  %v1086_v56 = vpack.c.bf16 %v1054_v41, %v1054_v41  ;;  %v1519_v62 = vshll.u32 %v1232_v26, 16 }
 0x1aa   : > { %v1750_v31 = vpop.f32.mrf.mxu1  ;;  %v4156_v10 = vrot.slane %v4155_v60, 4  ;;  %v4163_v61 = vshrl.u32 %v4072_v12, 16  ;;  %v1538_v44 = vshrl.u32 %v1235_v29, 16  ;;  %v4176_v53 = vshrl.u32 %v4073_v55, 16 }
 0x1ab   : > { %v9299_v14 = vadd.f32 %v2064_v0, %v1750_v31  ;;  %v1657_v30 = vpack.c.b16 %v1637_v24, %v1636_v23  ;;  %3551 = vmatmul.bf16.gmra.mxu0 %v3431_v32  ;;  %v1518_v52 = vrot.slane %v1516_v34, 7  ;;  %1119 = vst [vmem:[#allocation2 + $0xf8] sm:$0xf] %v1086_v56  ;;  %v3231_v0 = vor.u32 %v3229_v58, %v3228_v46  ;;  %v3006_v24 = vld [vmem:[#allocation2 + $0xb8] sm:$0xf] }
 0x1ac   : > { %v2066_v50 = vpop.f32.mrf.mxu2  ;;  %v4151_v23 = vsel %vm9286_vm5, %v4146_v8, %v4150_v28  ;;  %v4172_v31 = vshll.u32 %v4073_v55, 16  ;;  %v4161_v39 = vsel %vm9286_vm5, %v4156_v10, %v4160_v11  ;;  %v3257_v16 = vshrl.u32 %v3006_v24, 16 }
 0x1ad   : > { %1789 = vmatmul.bf16.gmra.mxu1 %v1657_v30  ;;  %v1521_v1 = vor.u32 %v1519_v62, %v1518_v52  ;;  %v3232_v26 = vsel %vm9035_vm2, %v7685_v33, %v3231_v0  ;;  %v1523_v36 = vrot.slane %v1518_v52, 4  ;;  %v4517_v28 = vunpack.c.l.b16 %v4151_v23  ;;  %v8143_v0 = vld [vmem:[#allocation2 + $0x14] sm:$0xff] }
 0x1ae   : > { %v3409_v40 = vunpack.c.l.b16 %v3232_v26  ;;  %v1547_v46 = vshrl.u32 %v1236_v27, 16  ;;  %v3248_v52 = vshrl.u32 %v3005_v37, 16  ;;  %v4518_v58 = vunpack.c.l.b16 %v4161_v39 }
 0x1af   : > { %v1522_v34 = vsel %vm9035_vm2, %v7512_v57, %v1521_v1  ;;  %v4166_v60 = vshll.u32 %v4072_v12, 16  ;;  %v9323_v62 = vrot.slane %v4172_v31, 5  ;;  %v3259_v3 = vrot.slane %v3257_v16, 7 }
 0x1b0   : > { %v9305_v63 = vpop.f32.mrf.mxu0  ;;  %v1233_v54 = vld [vmem:[#allocation2 + $0xc8] sm:$0xf]  ;;  %v3432_v18 = vpack.c.b16 %v3410_v13, %v3409_v40  ;;  %v1540_v57 = vrot.slane %v1538_v44, 7  ;;  %v1541_v1 = vshll.u32 %v1235_v29, 16  ;;  %v1550_v8 = vshll.u32 %v1236_v27, 16 }
 0x1b1   : > { %10550 = vst [vmem:[#allocation32_spill] sm:$0xff] %v9305_v63  ;;  %v1525_v22 = vshrl.u32 %v1233_v54, 16  ;;  %4635 = vmatmul.bf16.vlgmr.msrb.gmra.mxu2 %v4547_v45  ;;  %v1528_v17 = vshll.u32 %v1233_v54, 16  ;;  %v1533_v54 = vshrl.u32 %v1234_v42, 16  ;;  %v3243_v55 = vshrl.u32 %v3004_v59, 16 }
 0x1b2   : > { %v1752_v6 = vpop.f32.mrf.mxu1  ;;  %v3250_v5 = vrot.slane %v3248_v52, 7  ;;  %v3260_v10 = vshll.u32 %v3006_v24, 16  ;;  %v4178_v11 = vrot.slane %v4176_v53, 4  ;;  %v4548_v12 = vpack.c.b16 %v4518_v58, %v4517_v28 }
 0x1b3   : > { %v9307_v9 = vadd.f32 %v2066_v50, %v1752_v6  ;;  %v1527_v15 = vrot.slane %v1525_v22, 7  ;;  %v1638_v50 = vunpack.c.l.b16 %v1522_v34  ;;  %v4074_v6 = vld [vmem:[#allocation2 + $0x3c] sm:$0x1]  ;;  %v1549_v22 = vrot.slane %v1547_v46, 7 }
 0x1b4   : > { %v2069_v32 = vpop.f32.mrf.mxu2  ;;  %v4182_v23 = vshll.u32 %v4074_v6, 16  ;;  %v3251_v26 = vshll.u32 %v3005_v37, 16  ;;  %v3262_v31 = vor.u32 %v3260_v10, %v3259_v3  ;;  %v7513_v13 = vrot.slane %v1533_v54, 11 }
 0x1b5   : > { %v1530_v30 = vor.u32 %v1528_v17, %v1527_v15  ;;  %v4165_v17 = vrot.slane %v4163_v61, 4  ;;  %v1543_v34 = vor.u32 %v1541_v1, %v1540_v57  ;;  %v7686_v27 = vrot.slane %v3243_v55, 11  ;;  %v4076_v61 = vld [vmem:[#allocation2 + $0x48] sm:$0xf]  ;;  %v1237_v55 = vld [vmem:[#allocation2 + $0xe0] sm:$0x8] }
 0x1b6   : > { %v3253_v39 = vor.u32 %v3251_v26, %v3250_v5  ;;  %v3255_v16 = vrot.slane %v3250_v5, 4  ;;  %v4179_v40 = vor.u32 %v4178_v11, %v9323_v62  ;;  %v4196_v3 = vshll.u32 %v4076_v61, 16 }
 0x1b7   : > { %v1531_v41 = vsel %vm9035_vm2, %v1523_v36, %v1530_v30  ;;  %v1545_v36 = vrot.slane %v1540_v57, 4  ;;  %v1552_v30 = vor.u32 %v1550_v8, %v1549_v22  ;;  %v1544_v44 = vsel %vm9035_vm2, %v7513_v13, %v1543_v34 }
 0x1b8   : > { %v9321_v49 = vpop.f32.mrf.mxu0  ;;  %v1639_v51 = vunpack.c.l.b16 %v1531_v41  ;;  %v4075_v41 = vld [vmem:[#allocation2 + $0x44] sm:$0xf]  ;;  %v3263_v37 = vsel %vm9035_vm2, %v3255_v16, %v3262_v31  ;;  %v3254_v52 = vsel %vm9035_vm2, %v7686_v27, %v3253_v39  ;;  %v4180_v53 = vrot.slane %v4179_v40, 4 }
 0x1b9   : > { %10551 = vst [vmem:[#allocation33_spill] sm:$0xff] %v9321_v49  ;;  %v1553_v46 = vsel %vm9035_vm2, %v1545_v36, %v1552_v30  ;;  %v4187_v58 = vshrl.u32 %v4075_v41, 16  ;;  %v4200_v54 = vshrl.u32 %v4076_v61, 16  ;;  %v1640_v6 = vunpack.c.l.b16 %v1544_v44  ;;  %v8144_v39 = vld [vmem:[#allocation2 + $0x24] sm:$0xff] }
 0x1ba   : > { %v1755_v56 = vpop.f32.mrf.mxu1  ;;  %v1658_v33 = vpack.c.b16 %v1639_v51, %v1638_v50  ;;  %v4184_v50 = vrot.slane %v4182_v23, 5  ;;  %v3009_v51 = vld [vmem:[#allocation2 + $0xc8] sm:$0xf]  ;;  %v1641_v57 = vunpack.c.l.b16 %v1553_v46  ;;  %v3411_v8 = vunpack.c.l.b16 %v3254_v52 }
 0x1bb   : > { %v9325_v45 = vadd.f32 %v2069_v32, %v1755_v56  ;;  %3556 = vmatmul.bf16.gmra.mxu0 %v3432_v18  ;;  %v4168_v32 = vrot.slane %v4166_v60, 5  ;;  %v1238_v56 = vld [vmem:[#allocation2 + $0xe4] sm:$0xf]  ;;  %v1239_v18 = vld [vmem:[#allocation2 + $0xe8] sm:$0xf]  ;;  %v3412_v60 = vunpack.c.l.b16 %v3263_v37  ;;  %v3279_v22 = vshrl.u32 %v3009_v51, 16 }
 0x1bc   : > { %1794 = vmatmul.bf16.vlgmr.msrb.gmra.mxu3 %v1658_v33  ;;  %v2071_v15 = vpop.f32.mrf.mxu2  ;;  %v3008_v33 = vld [vmem:[#allocation2 + $0xc4] sm:$0xf]  ;;  %v1560_v5 = vshrl.u32 %v1238_v56, 16  ;;  %v1569_v10 = vshrl.u32 %v1239_v18, 16  ;;  %v9347_v34 = vrot.slane %v4196_v3, 5  ;;  %v4202_v36 = vrot.slane %v4200_v54, 4 }
 0x1bd   : > { %3889 = vmatmul.bf16.vlgmr.msrb.gmra.mxu1 %v8143_v0  ;;  %v4169_v28 = vor.u32 %v4168_v32, %v4165_v17  ;;  %v4190_v0 = vshll.u32 %v4075_v41, 16  ;;  %v4185_v17 = vsel %vm9286_vm5, %v4180_v53, %v4184_v50  ;;  %v3270_v23 = vshrl.u32 %v3008_v33, 16  ;;  %v3007_v32 = vld [vmem:[#allocation2 + $0xc0] sm:$0x8] }
 0x1be   : > { %v3433_v31 = vpack.c.b16 %v3412_v60, %v3411_v8  ;;  %v1659_v27 = vpack.c.b16 %v1641_v57, %v1640_v6  ;;  %v3281_v16 = vrot.slane %v3279_v22, 7  ;;  %v1555_v40 = vshrl.u32 %v1237_v55, 16 }
 0x1bf   : > { %v4170_v1 = vrot.slane %v4169_v28, 4  ;;  %v4192_v13 = vrot.slane %v4190_v0, 5  ;;  %v1563_v41 = vshll.u32 %v1238_v56, 16  ;;  %v1571_v37 = vrot.slane %v1569_v10, 7 }
 0x1c0   : > { %v9327_v29 = vpop.f32.mrf.mxu0  ;;  %v1572_v28 = vshll.u32 %v1239_v18, 16  ;;  %v4520_v61 = vunpack.c.l.b16 %v4185_v17  ;;  %v3265_v44 = vshrl.u32 %v3007_v32, 16  ;;  %v3272_v46 = vrot.slane %v3270_v23, 7  ;;  %v9354_v23 = vld [vmem:[#allocation2 + $0xd4] sm:$0xf] }
 0x1c1   : > { %10552 = vst [vmem:[#allocation34_spill] sm:$0xff] %v9327_v29  ;;  %4640 = vmatmul.bf16.gmra.mxu2 %v4548_v12  ;;  %v4189_v12 = vrot.slane %v4187_v58, 4  ;;  %v3282_v50 = vshll.u32 %v3009_v51, 16  ;;  %v4203_v53 = vor.u32 %v4202_v36, %v9347_v34  ;;  %v3273_v60 = vshll.u32 %v3008_v33, 16  ;;  %v4078_v36 = vld [vmem:[#allocation2 + $0x54] sm:$0xf] }
 0x1c2   : > { %v1757_v24 = vpop.f32.mrf.mxu1  ;;  %v7514_v54 = vrot.slane %v1555_v40, 11  ;;  %v1574_v56 = vor.u32 %v1572_v28, %v1571_v37  ;;  %v7687_v22 = vrot.slane %v3265_v44, 11  ;;  %v3277_v55 = vrot.slane %v3272_v46, 4  ;;  %v1242_v40 = vld [vmem:[#allocation2 + $0xf8] sm:$0xf] }
 0x1c3   : > { %v9330_v42 = vadd.f32 %v2071_v15, %v1757_v24  ;;  %v4175_v15 = vsel %vm9286_vm5, %v4170_v1, %v9323_v62  ;;  %v4077_v24 = vld [vmem:[#allocation2 + $0x4c] sm:$0x1]  ;;  %v1562_v62 = vrot.slane %v1560_v5, 7  ;;  %v3284_v0 = vor.u32 %v3282_v50, %v3281_v16  ;;  %v4079_v5 = vld [vmem:[#allocation2 + $0x58] sm:$0xf] }
 0x1c4   : > { %v2074_v59 = vpop.f32.mrf.mxu2  ;;  %v4206_v58 = vshll.u32 %v4077_v24, 16  ;;  %v4193_v3 = vor.u32 %v4192_v13, %v4189_v12  ;;  %v3275_v8 = vor.u32 %v3273_v60, %v3272_v46  ;;  %v4204_v10 = vrot.slane %v4203_v53, 4  ;;  %v9360_v12 = vld [vmem:[#allocation2 + $0xd8] sm:$0xf]  ;;  %v1241_v13 = vld [vmem:[#allocation2 + $0xf4] sm:$0xf] }
 0x1c5   : > { %v1565_v6 = vor.u32 %v1563_v41, %v1562_v62  ;;  %v1567_v57 = vrot.slane %v1562_v62, 4  ;;  %v3285_v33 = vsel %vm9035_vm2, %v3277_v55, %v3284_v0  ;;  %v3292_v16 = vshrl.u32 %v9354_v23, 16 }
 0x1c6   : > { %v4208_v17 = vrot.slane %v4206_v58, 5  ;;  %v4194_v32 = vrot.slane %v4193_v3, 4  ;;  %v4224_v24 = vshrl.u32 %v4079_v5, 16  ;;  %v3414_v41 = vunpack.c.l.b16 %v3285_v33 }
 0x1c7   : > { %v3301_v44 = vshrl.u32 %v9360_v12, 16  ;;  %v4211_v53 = vshrl.u32 %v4078_v36, 16  ;;  %v1591_v60 = vshrl.u32 %v1242_v40, 16  ;;  %v4214_v0 = vshll.u32 %v4078_v36, 16 }
 0x1c8   : > { %v9340_v11 = vpop.f32.mrf.mxu0  ;;  %v4199_v37 = vsel %vm9286_vm5, %v4194_v32, %v9347_v34  ;;  %v4209_v28 = vsel %vm9286_vm5, %v4204_v10, %v4208_v17  ;;  %v3294_v34 = vrot.slane %v3292_v16, 7  ;;  %v1585_v36 = vshll.u32 %v1241_v13, 16 }
 0x1c9   : > { %10553 = vst [vmem:[#allocation35_spill] sm:$0xff] %v9340_v11  ;;  %v3303_v55 = vrot.slane %v3301_v44, 7  ;;  %v4522_v16 = vunpack.c.l.b16 %v4209_v28 }
 0x1ca   : > { %v1760_v26 = vpop.f32.mrf.mxu1 }
 0x1cb   : > { %v9349_v30 = vadd.f32 %v2074_v59, %v1760_v26  ;;  %3561 = vmatmul.bf16.gmra.mxu0 %v3433_v31  ;;  %v4519_v59 = vunpack.c.l.b16 %v4175_v15  ;;  %v1566_v26 = vsel %vm9035_vm2, %v7514_v54, %v1565_v6  ;;  %v1575_v31 = vsel %vm9035_vm2, %v1567_v57, %v1574_v56 }
 0x1cc   : > { %1799 = vmatmul.bf16.gmra.mxu3 %v1659_v27  ;;  %v2076_v52 = vpop.f32.mrf.mxu2  ;;  %v4220_v27 = vshll.u32 %v4079_v5, 16  ;;  %v1642_v46 = vunpack.c.l.b16 %v1566_v26  ;;  %v1643_v50 = vunpack.c.l.b16 %v1575_v31  ;;  %v3295_v57 = vshll.u32 %v9354_v23, 16  ;;  %v8145_v26 = vld [vmem:[#allocation2 + $0x34] sm:$0xff] }
 0x1cd   : > { %3894 = vmatmul.bf16.gmra.mxu1 %v8144_v39  ;;  %v4549_v18 = vpack.c.b16 %v4520_v61, %v4519_v59  ;;  %v3276_v39 = vsel %vm9035_vm2, %v7687_v22, %v3275_v8  ;;  %v3010_v61 = vld [vmem:[#allocation2 + $0xd0] sm:$0x8]  ;;  %v4226_v56 = vrot.slane %v4224_v24, 4  ;;  %v3304_v5 = vshll.u32 %v9360_v12, 16 }
 0x1ce   : > { %v3413_v58 = vunpack.c.l.b16 %v3276_v39  ;;  %v1240_v59 = vld [vmem:[#allocation2 + $0xf0] sm:$0x8]  ;;  %v9375_v3 = vrot.slane %v4220_v27, 5  ;;  %v3287_v6 = vshrl.u32 %v3010_v61, 16  ;;  %v1660_v33 = vpack.c.b16 %v1643_v50, %v1642_v46  ;;  %v8134_v61 = vld [vmem:[#allocation12 + $0xb8] sm:$0xff] }
 0x1cf   : > { %v1577_v31 = vshrl.u32 %v1240_v59, 16  ;;  %v1593_v27 = vrot.slane %v1591_v60, 7  ;;  %v1594_v23 = vshll.u32 %v1242_v40, 16  ;;  %v4213_v24 = vrot.slane %v4211_v53, 4  ;;  %2789 = vmatpush.bf16.msrb.mxu3 %v8134_v61 }
 0x1d0   : > { %v9352_v1 = vpop.f32.mrf.mxu0  ;;  %v3434_v8 = vpack.c.b16 %v3414_v41, %v3413_v58  ;;  %v4216_v12 = vrot.slane %v4214_v0, 5  ;;  %v7688_v58 = vrot.slane %v3287_v6, 11  ;;  %v4227_v46 = vor.u32 %v4226_v56, %v9375_v3 }
 0x1d1   : > { %10554 = vst [vmem:[#allocation36_spill] sm:$0xff] %v9352_v1  ;;  %4645 = vmatmul.bf16.gmra.mxu2 %v4549_v18  ;;  %v950_v18 = vpop.f32.mrf.mxu3  ;;  %v3299_v59 = vrot.slane %v3294_v34, 4  ;;  %v7515_v60 = vrot.slane %v1577_v31, 11 }
 0x1d2   : > { %v1762_v51 = vpop.f32.mrf.mxu1  ;;  %v988_v10 = vmul.f32 %v9222_v21, %v950_v18  ;;  %v4217_v0 = vor.u32 %v4216_v12, %v4213_v24  ;;  %v4228_v31 = vrot.slane %v4227_v46, 4  ;;  %v4081_v12 = vld [vmem:[#allocation2 + $0x64] sm:$0xf] }
 0x1d3   : > { %v9356_v15 = vadd.f32 %v2076_v52, %v1762_v51  ;;  %v1582_v52 = vshrl.u32 %v1241_v13, 16  ;;  %v4080_v51 = vld [vmem:[#allocation2 + $0x5c] sm:$0x1]  ;;  %v3306_v13 = vor.u32 %v3304_v5, %v3303_v55  ;;  %v3014_v55 = vld [vmem:[#allocation2 + $0xe4] sm:$0xf]  ;;  %v8133_v5 = vld [vmem:[#allocation12 + $0xb0] sm:$0xff] }
 0x1d4   : > { %v2079_v62 = vpop.f32.mrf.mxu2  ;;  %v1023_v39 = vadd.f32 %v9210_v2, %v988_v10  ;;  %v4230_v41 = vshll.u32 %v4080_v51, 16  ;;  %2790 = vmatpush.bf16.msrb.mxu3 %v8133_v5  ;;  %v8132_v5 = vld [vmem:[#allocation12 + $0xa8] sm:$0xff] }
 0x1d5   : > { %v1584_v32 = vrot.slane %v1582_v52, 7  ;;  %v3297_v52 = vor.u32 %v3295_v57, %v3294_v34  ;;  %v3307_v57 = vsel %vm9035_vm2, %v3299_v59, %v3306_v13  ;;  %v4238_v59 = vshll.u32 %v4081_v12, 16 }
 0x1d6   : > { %v1055_v50 = vmax.f32 %v1023_v39, 0.0  ;;  %v4232_v56 = vrot.slane %v4230_v41, 5  ;;  %v3416_v39 = vunpack.c.l.b16 %v3307_v57  ;;  %v4082_v41 = vld [vmem:[#allocation2 + $0x68] sm:$0xf] }
 0x1d7   : > { %v1587_v40 = vor.u32 %v1585_v36, %v1584_v32  ;;  %v1589_v18 = vrot.slane %v1584_v32, 4  ;;  %v3298_v34 = vsel %vm9035_vm2, %v7688_v58, %v3297_v52  ;;  %v4218_v36 = vrot.slane %v4217_v0, 4 }
 0x1d8   : > { %v9377_v54 = vpop.f32.mrf.mxu0  ;;  %v4235_v52 = vshrl.u32 %v4081_v12, 16  ;;  %v4244_v13 = vshll.u32 %v4082_v41, 16  ;;  %v3317_v0 = vshll.u32 %v3014_v55, 16  ;;  %2791 = vmatpush.bf16.msrb.mxu3 %v8132_v5 }
 0x1d9   : > { %10555 = vst [vmem:[#allocation37_spill] sm:$0xff] %v9377_v54  ;;  %v952_v51 = vpop.f32.mrf.mxu3  ;;  %v4223_v46 = vsel %vm9286_vm5, %v4218_v36, %v9375_v3  ;;  %v8146_v3 = vld [vmem:[#allocation2 + $0x44] sm:$0xff]  ;;  %v4240_v36 = vrot.slane %v4238_v59, 5 }
 0x1da   : > { %v1765_v22 = vpop.f32.mrf.mxu1  ;;  %v4523_v57 = vunpack.c.l.b16 %v4223_v46  ;;  %v8204_v59 = vld [vmem:[#allocation12 + $0x1e8] sm:$0xff] }
 0x1db   : > { %v9382_v17 = vadd.f32 %v2079_v62, %v1765_v22  ;;  %3566 = vmatmul.bf16.gmra.mxu0 %v3434_v8  ;;  %v4521_v62 = vunpack.c.l.b16 %v4199_v37  ;;  %v1596_v22 = vor.u32 %v1594_v23, %v1593_v27  ;;  %v1087_v8 = vpack.c.bf16 %v1055_v50, %v1055_v50 }
 0x1dc   : > { %1804 = vmatmul.bf16.gmra.mxu3 %v1660_v33  ;;  %v2081_v44 = vpop.f32.mrf.mxu2  ;;  %v989_v37 = vmul.f32 %v9222_v21, %v952_v51  ;;  %v1588_v33 = vsel %vm9035_vm2, %v7515_v60, %v1587_v40  ;;  %v3015_v21 = vld [vmem:[#allocation2 + $0xe8] sm:$0xf]  ;;  %v3415_v23 = vunpack.c.l.b16 %v3298_v34  ;;  %v4248_v60 = vshrl.u32 %v4082_v41, 16  ;;  %v8205_v41 = vld [vmem:[#allocation12 + $0x1f0] sm:$0xff] }
 0x1dd   : > { %3899 = vmatmul.bf16.gmra.mxu1 %v8145_v26  ;;  %v4550_v53 = vpack.c.b16 %v4522_v16, %v4521_v62  ;;  %1120 = vst [vmem:[#allocation2 + $0x104] sm:$0xf] %v1087_v8  ;;  %v1597_v26 = vsel %vm9035_vm2, %v1589_v18, %v1596_v22  ;;  %v3314_v16 = vshrl.u32 %v3014_v55, 16  ;;  %v1644_v61 = vunpack.c.l.b16 %v1588_v33  ;;  %v3013_v62 = vld [vmem:[#allocation2 + $0xe0] sm:$0x8]  ;;  %v8206_v33 = vld [vmem:[#allocation12 + $0x1f8] sm:$0xff] }
 0x1de   : > { %v1024_v32 = vadd.f32 %v9210_v2, %v989_v37  ;;  %v3323_v58 = vshrl.u32 %v3015_v21, 16  ;;  %v4233_v2 = vsel %vm9286_vm5, %v4228_v31, %v4232_v56  ;;  %v3435_v22 = vpack.c.b16 %v3416_v39, %v3415_v23  ;;  %v4083_v31 = vld [vmem:[#allocation2 + $0x6c] sm:$0x1]  ;;  %5720 = vmatpush.bf16.msra.mxu0 %v8206_v33 }
 0x1df   : > { %v3309_v8 = vshrl.u32 %v3013_v62, 16  ;;  %v3326_v34 = vshll.u32 %v3015_v21, 16  ;;  %v4524_v56 = vunpack.c.l.b16 %v4233_v2  ;;  %v9409_v23 = vrot.slane %v4244_v13, 5 }
 0x1e0   : > { %v9386_v28 = vpop.f32.mrf.mxu0  ;;  %v1056_v24 = vmax.f32 %v1024_v32, 0.0  ;;  %v3325_v37 = vrot.slane %v3323_v58, 7  ;;  %v4237_v32 = vrot.slane %v4235_v52, 4  ;;  %v4250_v55 = vrot.slane %v4248_v60, 4  ;;  %v8131_v52 = vld [vmem:[#allocation12 + $0xa0] sm:$0xff] }
 0x1e1   : > { %10556 = vst [vmem:[#allocation38_spill] sm:$0xff] %v9386_v28  ;;  %4650 = vmatmul.bf16.gmra.mxu2 %v4550_v53  ;;  %v3316_v53 = vrot.slane %v3314_v16, 7  ;;  %v4551_v21 = vpack.c.b16 %v4524_v56, %v4523_v57  ;;  %v4254_v12 = vshll.u32 %v4083_v31, 16  ;;  %v3018_v60 = vld [vmem:[#allocation2 + $0xf8] sm:$0xf]  ;;  %2792 = vmatpush.bf16.msrb.mxu3 %v8131_v52 }
 0x1e2   : > { %v1767_v10 = vpop.f32.mrf.mxu1  ;;  %v1088_v50 = vpack.c.bf16 %v1056_v24, %v1056_v24  ;;  %v3328_v24 = vor.u32 %v3326_v34, %v3325_v37  ;;  %v4251_v62 = vor.u32 %v4250_v55, %v9409_v23  ;;  %5721 = vmatpush.bf16.msra.mxu0 %v8205_v41  ;;  %v3016_v34 = vld [vmem:[#allocation2 + $0xf0] sm:$0x8]  ;;  %v3345_v57 = vshrl.u32 %v3018_v60, 16  ;;  %v8202_v52 = vld [vmem:[#allocation12 + $0x1d8] sm:$0xff] }
 0x1e3   : > { %v9389_v6 = vadd.f32 %v2081_v44, %v1767_v10  ;;  %v1645_v44 = vunpack.c.l.b16 %v1597_v26  ;;  %v3319_v39 = vor.u32 %v3317_v0, %v3316_v53  ;;  %v3321_v16 = vrot.slane %v3316_v53, 4 }
 0x1e4   : > { %v2084_v27 = vpop.f32.mrf.mxu2  ;;  %1121 = vst [vmem:[#allocation2 + $0x108] sm:$0xf] %v1088_v50  ;;  %v3017_v50 = vld [vmem:[#allocation2 + $0xf4] sm:$0xf]  ;;  %v3348_v41 = vshll.u32 %v3018_v60, 16 }
 0x1e5   : > { %v1661_v10 = vpack.c.b16 %v1645_v44, %v1644_v61  ;;  %v4241_v44 = vor.u32 %v4240_v36, %v4237_v32  ;;  %v3329_v2 = vsel %vm9035_vm2, %v3321_v16, %v3328_v24  ;;  %v8147_v36 = vld [vmem:[#allocation2 + $0x54] sm:$0xff]  ;;  %v8115_v24 = vld [vmem:[#allocation2 + $0xc4] sm:$0xff] }
 0x1e6   : > { %v3418_v0 = vunpack.c.l.b16 %v3329_v2  ;;  %5722 = vmatpush.bf16.msra.mxu0 %v8204_v59  ;;  %v8130_v2 = vld [vmem:[#allocation12 + $0x98] sm:$0xff] }
 0x1e7   : > { %v4242_v37 = vrot.slane %v4241_v44, 4  ;;  %2793 = vmatpush.bf16.msrb.mxu3 %v8130_v2 }
 0x1e8   : > { %v9405_v40 = vpop.f32.mrf.mxu0 }
 0x1e9   : > { %10557 = vst [vmem:[#allocation39_spill] sm:$0xff] %v9405_v40  ;;  %v4247_v33 = vsel %vm9286_vm5, %v4242_v37, %v9409_v23 }
 0x1ea   : > { %v1770_v18 = vpop.f32.mrf.mxu1 }
 0x1eb   : > { %v9407_v51 = vadd.f32 %v2084_v27, %v1770_v18  ;;  %3571 = vmatmul.bf16.gmra.mxu0 %v3435_v22  ;;  %v7689_v27 = vrot.slane %v3309_v8, 11  ;;  %v4256_v18 = vrot.slane %v4254_v12, 5  ;;  %v4085_v22 = vld [vmem:[#allocation2 + $0x78] sm:$0xf]  ;;  %v3347_v12 = vrot.slane %v3345_v57, 7  ;;  %v8201_v57 = vld [vmem:[#allocation12 + $0x1d0] sm:$0xff] }
 0x1ec   : > { %1809 = vmatmul.bf16.gmra.mxu3 %v1661_v10  ;;  %v2086_v26 = vpop.f32.mrf.mxu2  ;;  %v4252_v10 = vrot.slane %v4251_v62, 4  ;;  %v4268_v56 = vshll.u32 %v4085_v22, 16  ;;  %v4272_v5 = vshrl.u32 %v4085_v22, 16  ;;  %v4525_v22 = vunpack.c.l.b16 %v4247_v33 }
 0x1ed   : > { %3904 = vmatmul.bf16.gmra.mxu1 %v8146_v3  ;;  %v3320_v46 = vsel %vm9035_vm2, %v7689_v27, %v3319_v39  ;;  %v3336_v3 = vshrl.u32 %v3017_v50, 16  ;;  %v3331_v27 = vshrl.u32 %v3016_v34, 16 }
 0x1ee   : > { %v3417_v53 = vunpack.c.l.b16 %v3320_v46  ;;  %v4257_v55 = vsel %vm9286_vm5, %v4252_v10, %v4256_v18  ;;  %v9427_v44 = vrot.slane %v4268_v56, 5  ;;  %v4274_v23 = vrot.slane %v4272_v5, 4  ;;  %v4086_v46 = vld [vmem:[#allocation2 + $0x7c] sm:$0x1] }
 0x1ef   : > { %v3338_v39 = vrot.slane %v3336_v3, 7  ;;  %v4526_v62 = vunpack.c.l.b16 %v4257_v55  ;;  %v3350_v10 = vor.u32 %v3348_v41, %v3347_v12  ;;  %v4278_v37 = vshll.u32 %v4086_v46, 16  ;;  %v3019_v12 = vld [vmem:[#allocation2 + $0x100] sm:$0x8] }
 0x1f0   : > { %v9418_v13 = vpop.f32.mrf.mxu0  ;;  %v3436_v32 = vpack.c.b16 %v3418_v0, %v3417_v53  ;;  %v7690_v53 = vrot.slane %v3331_v27, 11  ;;  %v4275_v3 = vor.u32 %v4274_v23, %v9427_v44  ;;  %v8129_v27 = vld [vmem:[#allocation12 + $0x90] sm:$0xff] }
 0x1f1   : > { %4655 = vmatmul.bf16.gmra.mxu2 %v4551_v21  ;;  %10558 = vst [vmem:[#allocation40_spill] sm:$0xff] %v9418_v13  ;;  %v3339_v21 = vshll.u32 %v3017_v50, 16  ;;  %v3343_v0 = vrot.slane %v3338_v39, 4  ;;  %v4552_v34 = vpack.c.b16 %v4526_v62, %v4525_v22  ;;  %2794 = vmatpush.bf16.msrb.mxu3 %v8129_v27 }
 0x1f2   : > { %v1772_v61 = vpop.f32.mrf.mxu1 }
 0x1f3   : > { %v9412_v58 = vadd.f32 %v2086_v26, %v1772_v61  ;;  %v8203_v26 = vld [vmem:[#allocation12 + $0x1e0] sm:$0xff]  ;;  %v4084_v61 = vld [vmem:[#allocation2 + $0x74] sm:$0xf]  ;;  %v3341_v60 = vor.u32 %v3339_v21, %v3338_v39  ;;  %v3351_v55 = vsel %vm9035_vm2, %v3343_v0, %v3350_v10  ;;  %v8200_v39 = vld [vmem:[#allocation12 + $0x1c8] sm:$0xff]  ;;  %v4280_v21 = vrot.slane %v4278_v37, 5 }
 0x1f4   : > { %v2089_v8 = vpop.f32.mrf.mxu2  ;;  %5723 = vmatpush.bf16.msra.mxu0 %v8203_v26  ;;  %v4262_v50 = vshll.u32 %v4084_v61, 16  ;;  %v3420_v46 = vunpack.c.l.b16 %v3351_v55  ;;  %v8199_v10 = vld [vmem:[#allocation12 + $0x1c0] sm:$0xff] }
 0x1f5   : > { %v3342_v33 = vsel %vm9035_vm2, %v7690_v53, %v3341_v60  ;;  %v4087_v55 = vld [vmem:[#allocation2 + $0x84] sm:$0xf] }
 0x1f6   : > { %v4264_v26 = vrot.slane %v4262_v50, 5  ;;  %v3419_v62 = vunpack.c.l.b16 %v3342_v33 }
 0x1f8   : > { %v9429_v59 = vpop.f32.mrf.mxu0  ;;  %5724 = vmatpush.bf16.msra.mxu0 %v8202_v52  ;;  %v4088_v52 = vld [vmem:[#allocation2 + $0x88] sm:$0xf]  ;;  %v3437_v37 = vpack.c.b16 %v3420_v46, %v3419_v62 }
 0x1f9   : > { %10559 = vst [vmem:[#allocation41_spill] sm:$0xff] %v9429_v59  ;;  %v2229_v59 = vld [vmem:[#allocation2 + $0x18] sm:$0xf] }
 0x1fa   : > { %v1775_v31 = vpop.f32.mrf.mxu1 }
 0x1fb   : > { %v9425_v16 = vadd.f32 %v2089_v8, %v1775_v31  ;;  %3576 = vmatmul.bf16.gmra.mxu0 %v3436_v32  ;;  %v4259_v8 = vshrl.u32 %v4084_v61, 16  ;;  %v3020_v31 = vld [vmem:[#allocation2 + $0x104] sm:$0xf]  ;;  %v3021_v32 = vld [vmem:[#allocation2 + $0x108] sm:$0xf] }
 0x1fc   : > { %2108 = vmatmul.bf16.vlgmr.msra.gmra.mxu3 %v8115_v24  ;;  %v2091_v18 = vpop.f32.mrf.mxu2  ;;  %5725 = vmatpush.bf16.msra.mxu0 %v8201_v57  ;;  %v4276_v24 = vrot.slane %v4275_v3, 4  ;;  %v3358_v41 = vshrl.u32 %v3020_v31, 16  ;;  %v3367_v61 = vshrl.u32 %v3021_v32, 16  ;;  %v3361_v53 = vshll.u32 %v3020_v31, 16 }
 0x1fd   : > { %3909 = vmatmul.bf16.gmra.mxu1 %v8147_v36  ;;  %v4261_v5 = vrot.slane %v4259_v8, 4  ;;  %v3353_v8 = vshrl.u32 %v3019_v12, 16  ;;  %v3370_v0 = vshll.u32 %v3021_v32, 16  ;;  %v4292_v57 = vshll.u32 %v4088_v52, 16  ;;  %v8128_v12 = vld [vmem:[#allocation12 + $0x88] sm:$0xff] }
 0x1fe   : > { %v4281_v22 = vsel %vm9286_vm5, %v4276_v24, %v4280_v21  ;;  %v3360_v50 = vrot.slane %v3358_v41, 7  ;;  %v3369_v60 = vrot.slane %v3367_v61, 7  ;;  %v4283_v61 = vshrl.u32 %v4087_v55, 16  ;;  %2795 = vmatpush.bf16.msrb.mxu3 %v8128_v12 }
 0x1ff   : > { %v4265_v2 = vor.u32 %v4264_v26, %v4261_v5  ;;  %v8116_v5 = vld [vmem:[#allocation2 + $0xd4] sm:$0xff]  ;;  %v8148_v26 = vld [vmem:[#allocation2 + $0x64] sm:$0xff]  ;;  %v4528_v31 = vunpack.c.l.b16 %v4281_v22  ;;  %v7691_v32 = vrot.slane %v3353_v8, 11  ;;  %v4294_v62 = vrot.slane %v4292_v57, 5 }
 0x200   : > { %5726 = vmatpush.bf16.msra.mxu0 %v8200_v39  ;;  %v3363_v39 = vor.u32 %v3361_v53, %v3360_v50  ;;  %v3365_v24 = vrot.slane %v3360_v50, 4  ;;  %v3372_v21 = vor.u32 %v3370_v0, %v3369_v60  ;;  %v4285_v53 = vrot.slane %v4283_v61, 4 }
 0x201   : > { %4660 = vmatmul.bf16.gmra.mxu2 %v4552_v34  ;;  %v4266_v34 = vrot.slane %v4265_v2, 4 }
 0x202   : > { %v1777_v56 = vpop.f32.mrf.mxu1  ;;  %v3373_v22 = vsel %vm9035_vm2, %v3365_v24, %v3372_v21 }
 0x203   : > { %v9432_v36 = vadd.f32 %v2091_v18, %v1777_v56  ;;  %v9438_v18 = vpop.f32.mrf.mxu0  ;;  %v4296_v56 = vshrl.u32 %v4088_v52, 16  ;;  %v4271_v27 = vsel %vm9286_vm5, %v4266_v34, %v9427_v44  ;;  %v4089_v52 = vld [vmem:[#allocation2 + $0x8c] sm:$0x1]  ;;  %v3364_v44 = vsel %vm9035_vm2, %v7691_v32, %v3363_v39  ;;  %v8127_v34 = vld [vmem:[#allocation12 + $0x80] sm:$0xff]  ;;  %v4090_v39 = vld [vmem:[#allocation2 + $0x94] sm:$0xf] }
 0x204   : > { %v2094_v23 = vpop.f32.mrf.mxu2  ;;  %10560 = vst [vmem:[#allocation42_spill] sm:$0xff] %v9438_v18  ;;  %5727 = vmatpush.bf16.msra.mxu0 %v8199_v10  ;;  %v4527_v2 = vunpack.c.l.b16 %v4271_v27  ;;  %v3421_v57 = vunpack.c.l.b16 %v3364_v44  ;;  %2796 = vmatpush.bf16.msrb.mxu3 %v8127_v34  ;;  %v4307_v44 = vshrl.u32 %v4090_v39, 16 }
 0x205   : > { %v4298_v46 = vrot.slane %v4296_v56, 4  ;;  %v3422_v56 = vunpack.c.l.b16 %v3373_v22 }
 0x206   : > { %v4553_v10 = vpack.c.b16 %v4528_v31, %v4527_v2  ;;  %v4091_v31 = vld [vmem:[#allocation2 + $0x98] sm:$0xf] }
 0x207   : > { %v4299_v0 = vor.u32 %v4298_v46, %v4294_v62  ;;  %v3438_v32 = vpack.c.b16 %v3422_v56, %v3421_v57  ;;  %v4316_v24 = vshll.u32 %v4091_v31, 16  ;;  %v4320_v21 = vshrl.u32 %v4091_v31, 16  ;;  %v8117_v46 = vld [vmem:[#allocation2 + $0xe4] sm:$0xff]  ;;  %v8149_v2 = vld [vmem:[#allocation2 + $0x74] sm:$0xff] }
 0x208   : > { %v2225_v56 = vld [vmem:[#allocation2 + $0x4] sm:$0xf] }
 0x20a   : > { %v1780_v3 = vpop.f32.mrf.mxu1 }
 0x20b   : > { %v9442_v33 = vadd.f32 %v2094_v23, %v1780_v3  ;;  %3581 = vmatmul.bf16.gmra.mxu0 %v3437_v37  ;;  %v4286_v23 = vshll.u32 %v4087_v55, 16  ;;  %v9451_v8 = vpop.f32.mrf.mxu0  ;;  %v4302_v3 = vshll.u32 %v4089_v52, 16  ;;  %v4300_v55 = vrot.slane %v4299_v0, 4 }
 0x20c   : > { %2113 = vmatmul.bf16.gmra.mxu3 %v8116_v5  ;;  %v2096_v41 = vpop.f32.mrf.mxu2  ;;  %10561 = vst [vmem:[#allocation43_spill] sm:$0xff] %v9451_v8  ;;  %v4322_v0 = vrot.slane %v4320_v21, 4 }
 0x20d   : > { %3914 = vmatmul.bf16.gmra.mxu1 %v8148_v26  ;;  %v4288_v60 = vrot.slane %v4286_v23, 5  ;;  %v4304_v27 = vrot.slane %v4302_v3, 5  ;;  %v8182_v3 = vld [vmem:[#allocation12 + $0x1b8] sm:$0xff] }
 0x20e   : > { %5342 = vmatpush.bf16.msra.mxu3 %v8182_v3 }
 0x20f   : > { %v4289_v26 = vor.u32 %v4288_v60, %v4285_v53  ;;  %v4310_v53 = vshll.u32 %v4090_v39, 16  ;;  %v4318_v60 = vrot.slane %v4316_v24, 5 }
 0x211   : > { %4665 = vmatmul.bf16.gmra.mxu2 %v4553_v10  ;;  %v4290_v61 = vrot.slane %v4289_v26, 4  ;;  %v4312_v31 = vrot.slane %v4310_v53, 5  ;;  %v8214_v53 = vld [vmem:[#allocation12 + $0x238] sm:$0xff] }
 0x212   : > { %v1782_v50 = vpop.f32.mrf.mxu1  ;;  %6466 = vmatpush.bf16.msra.mxu1 %v8214_v53 }
 0x213   : > { %v9453_v37 = vadd.f32 %v2096_v41, %v1782_v50  ;;  %v4305_v41 = vsel %vm9286_vm5, %v4300_v55, %v4304_v27  ;;  %v9459_v52 = vpop.f32.mrf.mxu0  ;;  %v4295_v10 = vsel %vm9286_vm5, %v4290_v61, %v4294_v62  ;;  %v4092_v50 = vld [vmem:[#allocation2 + $0x9c] sm:$0x1]  ;;  %v4309_v27 = vrot.slane %v4307_v44, 4 }
 0x214   : > { %v2099_v5 = vpop.f32.mrf.mxu2  ;;  %10562 = vst [vmem:[#allocation44_spill] sm:$0xff] %v9459_v52  ;;  %v4530_v22 = vunpack.c.l.b16 %v4305_v41  ;;  %v4529_v57 = vunpack.c.l.b16 %v4295_v10  ;;  %v4326_v26 = vshll.u32 %v4092_v50, 16  ;;  %v2280_v61 = vshll.u32 %v2225_v56, 16  ;;  %v4094_v10 = vld [vmem:[#allocation2 + $0xa8] sm:$0xf] }
 0x215   : > { %v4313_v39 = vor.u32 %v4312_v31, %v4309_v27  ;;  %v8183_v27 = vld [vmem:[#allocation2 + $0x24] sm:$0xff] }
 0x216   : > { %v4554_v55 = vpack.c.b16 %v4530_v22, %v4529_v57  ;;  %v4328_v21 = vrot.slane %v4326_v26, 5  ;;  %v2282_v50 = vrot.slane %v2280_v61, 5  ;;  %v8118_v61 = vld [vmem:[#allocation2 + $0xf4] sm:$0xff] }
 0x21a   : > { %v1785_v12 = vpop.f32.mrf.mxu1 }
 0x21b   : > { %v9457_v23 = vadd.f32 %v2099_v5, %v1785_v12  ;;  %3586 = vmatmul.bf16.gmra.mxu0 %v3438_v32  ;;  %v2226_v5 = vld [vmem:[#allocation2 + $0x8] sm:$0xf]  ;;  %v4323_v32 = vor.u32 %v4322_v0, %v4318_v60  ;;  %v2277_v12 = vshrl.u32 %v2225_v56, 16  ;;  %v9465_v52 = vpop.f32.mrf.mxu0  ;;  %v2227_v0 = vld [vmem:[#allocation2 + $0xc] sm:$0x1]  ;;  %v4314_v56 = vrot.slane %v4313_v39, 4 }
 0x21c   : > { %2118 = vmatmul.bf16.gmra.mxu3 %v8117_v46  ;;  %v2101_v34 = vpop.f32.mrf.mxu2  ;;  %v2286_v46 = vshll.u32 %v2226_v5, 16  ;;  %v2290_v41 = vshrl.u32 %v2226_v5, 16  ;;  %10563 = vst [vmem:[#allocation45_spill] sm:$0xff] %v9465_v52  ;;  %v4340_v5 = vshll.u32 %v4094_v10, 16  ;;  %v4344_v52 = vshrl.u32 %v4094_v10, 16 }
 0x21d   : > { %3919 = vmatmul.bf16.gmra.mxu1 %v8149_v2  ;;  %v4324_v24 = vrot.slane %v4323_v32, 4  ;;  %v2279_v3 = vrot.slane %v2277_v12, 4  ;;  %v2296_v32 = vshll.u32 %v2227_v0, 16  ;;  %v4095_v10 = vld [vmem:[#allocation2 + $0xac] sm:$0x1] }
 0x21e   : > { %v2288_v22 = vrot.slane %v2286_v46, 5  ;;  %v2292_v44 = vrot.slane %v2290_v41, 4  ;;  %v8150_v46 = vld [vmem:[#allocation2 + $0x84] sm:$0xff]  ;;  %v4319_v41 = vsel %vm9286_vm5, %v4314_v56, %v4318_v60  ;;  %v4342_v53 = vrot.slane %v4340_v5, 5 }
 0x21f   : > { %v2283_v31 = vor.u32 %v2282_v50, %v2279_v3  ;;  %v2298_v50 = vrot.slane %v2296_v32, 5  ;;  %v4531_v0 = vunpack.c.l.b16 %v4319_v41  ;;  %v2310_v32 = vshll.u32 %v2229_v59, 16 }
 0x220   : > { %v2293_v26 = vor.u32 %v2292_v44, %v2288_v22  ;;  %v4346_v44 = vrot.slane %v4344_v52, 4  ;;  %v2228_v52 = vld [vmem:[#allocation2 + $0x14] sm:$0xf] }
 0x221   : > { %4670 = vmatmul.bf16.gmra.mxu2 %v4554_v55  ;;  %v2284_v8 = vrot.slane %v2283_v31, 4  ;;  %v4350_v31 = vshll.u32 %v4095_v10, 16 }
 0x222   : > { %v1787_v62 = vpop.f32.mrf.mxu1  ;;  %v2294_v3 = vrot.slane %v2293_v26, 4  ;;  %v4347_v5 = vor.u32 %v4346_v44, %v4342_v53  ;;  %v8184_v44 = vld [vmem:[#allocation2 + $0x34] sm:$0xff] }
 0x223   : > { %v9463_v2 = vadd.f32 %v2101_v34, %v1787_v62  ;;  %v4329_v34 = vsel %vm9286_vm5, %v4324_v24, %v4328_v21  ;;  %v4093_v62 = vld [vmem:[#allocation2 + $0xa4] sm:$0xf]  ;;  %v2289_v56 = vsel %vm9286_vm5, %v2284_v8, %v2288_v22  ;;  %v2312_v8 = vrot.slane %v2310_v32, 5 }
 0x224   : > { %v2104_v57 = vpop.f32.mrf.mxu2  ;;  %v4532_v39 = vunpack.c.l.b16 %v4329_v34  ;;  %v4331_v24 = vshrl.u32 %v4093_v62, 16  ;;  %v4334_v21 = vshll.u32 %v4093_v62, 16  ;;  %v2299_v34 = vsel %vm9286_vm5, %v2294_v3, %v2298_v50  ;;  %v2230_v3 = vld [vmem:[#allocation2 + $0x1c] sm:$0x1] }
 0x225   : > { %v2314_v62 = vshrl.u32 %v2229_v59, 16 }
 0x226   : > { %v4333_v18 = vrot.slane %v4331_v24, 4  ;;  %v4352_v24 = vrot.slane %v4350_v31, 5 }
 0x227   : > { %v2316_v22 = vrot.slane %v2314_v62, 4  ;;  %v8181_v62 = vld [vmem:[#allocation12 + $0x1b0] sm:$0xff] }
 0x228   : > { %5343 = vmatpush.bf16.msra.mxu3 %v8181_v62  ;;  %v8213_v62 = vld [vmem:[#allocation12 + $0x230] sm:$0xff] }
 0x229   : > { %v2317_v31 = vor.u32 %v2316_v22, %v2312_v8  ;;  %6467 = vmatpush.bf16.msra.mxu1 %v8213_v62 }
 0x22a   : > { %v1790_v55 = vpop.f32.mrf.mxu1 }
 0x22b   : > { %v9469_v12 = vadd.f32 %v2104_v57, %v1790_v55  ;;  %5728 = vmatmul.bf16.vlgmr.msra.gmra.mxu0 %v8183_v27  ;;  %v9473_v57 = vpop.f32.mrf.mxu0  ;;  %v4555_v55 = vpack.c.b16 %v4532_v39, %v4531_v0  ;;  %v4336_v27 = vrot.slane %v4334_v21, 5  ;;  %v4348_v39 = vrot.slane %v4347_v5, 4  ;;  %v4097_v0 = vld [vmem:[#allocation2 + $0xb8] sm:$0xf] }
 0x22c   : > { %2123 = vmatmul.bf16.gmra.mxu3 %v8118_v61  ;;  %10564 = vst [vmem:[#allocation46_spill] sm:$0xff] %v9473_v57  ;;  %v2106_v13 = vpop.f32.mrf.mxu2  ;;  %v2677_v61 = vunpack.c.l.b16 %v2289_v56  ;;  %v2301_v21 = vshrl.u32 %v2228_v52, 16  ;;  %v2304_v57 = vshll.u32 %v2228_v52, 16  ;;  %v4096_v56 = vld [vmem:[#allocation2 + $0xb4] sm:$0xf]  ;;  %v2320_v52 = vshll.u32 %v2230_v3, 16 }
 0x22d   : > { %3924 = vmatmul.bf16.gmra.mxu1 %v8150_v46  ;;  %v2678_v46 = vunpack.c.l.b16 %v2299_v34  ;;  %v4337_v41 = vor.u32 %v4336_v27, %v4333_v18  ;;  %v4353_v59 = vsel %vm9286_vm5, %v4348_v39, %v4352_v24  ;;  %v4368_v18 = vshrl.u32 %v4097_v0, 16  ;;  %v8151_v27 = vld [vmem:[#allocation2 + $0x94] sm:$0xff] }
 0x22e   : > { %v2306_v5 = vrot.slane %v2304_v57, 5  ;;  %v4534_v32 = vunpack.c.l.b16 %v4353_v59  ;;  %v2322_v28 = vrot.slane %v2320_v52, 5  ;;  %v2232_v57 = vld [vmem:[#allocation2 + $0x28] sm:$0xf] }
 0x22f   : > { %v2709_v40 = vpack.c.b16 %v2678_v46, %v2677_v61  ;;  %v4338_v10 = vrot.slane %v4337_v41, 4  ;;  %v4355_v61 = vshrl.u32 %v4096_v56, 16  ;;  %v4358_v46 = vshll.u32 %v4096_v56, 16  ;;  %v2231_v56 = vld [vmem:[#allocation2 + $0x24] sm:$0xf] }
 0x230   : > { %v4370_v39 = vrot.slane %v4368_v18, 4 }
 0x231   : > { %4675 = vmatmul.bf16.gmra.mxu2 %v4555_v55  ;;  %v4364_v55 = vshll.u32 %v4097_v0, 16  ;;  %v4343_v34 = vsel %vm9286_vm5, %v4338_v10, %v4342_v53  ;;  %v4098_v0 = vld [vmem:[#allocation2 + $0xbc] sm:$0x1]  ;;  %v4360_v3 = vrot.slane %v4358_v46, 5  ;;  %v2325_v46 = vshrl.u32 %v2231_v56, 16 }
 0x232   : > { %v1792_v60 = vpop.f32.mrf.mxu1  ;;  %v4533_v24 = vunpack.c.l.b16 %v4343_v34  ;;  %v4374_v59 = vshll.u32 %v4098_v0, 16  ;;  %v2334_v34 = vshll.u32 %v2232_v57, 16  ;;  %v2328_v0 = vshll.u32 %v2231_v56, 16 }
 0x233   : > { %v9479_v26 = vadd.f32 %v2106_v13, %v1792_v60  ;;  %v9481_v50 = vpop.f32.mrf.mxu0  ;;  %v2303_v60 = vrot.slane %v2301_v21, 4  ;;  %v4366_v41 = vrot.slane %v4364_v55, 5 }
 0x234   : > { %10565 = vst [vmem:[#allocation47_spill] sm:$0xff] %v9481_v50  ;;  %v2318_v50 = vrot.slane %v2317_v31, 4  ;;  %v4556_v53 = vpack.c.b16 %v4534_v32, %v4533_v24  ;;  %v4376_v32 = vrot.slane %v4374_v59, 5 }
 0x235   : > { %v4371_v10 = vor.u32 %v4370_v39, %v4366_v41  ;;  %v4100_v39 = vld [vmem:[#allocation2 + $0xc8] sm:$0xf] }
 0x236   : > { %v2323_v18 = vsel %vm9286_vm5, %v2318_v50, %v2322_v28  ;;  %v2233_v50 = vld [vmem:[#allocation2 + $0x2c] sm:$0x1] }
 0x237   : > { %v4372_v52 = vrot.slane %v4371_v10, 4  ;;  %v4392_v10 = vshrl.u32 %v4100_v39, 16 }
 0x23a   : > { %v9483_v13 = vpop.f32.mrf.mxu1 }
 0x23b   : > { %10566 = vst [vmem:[#allocation48_spill] sm:$0xff] %v9483_v13  ;;  %5733 = vmatmul.bf16.gmra.mxu0 %v8184_v44  ;;  %v2307_v44 = vor.u32 %v2306_v5, %v2303_v60  ;;  %v2338_v60 = vshrl.u32 %v2232_v57, 16  ;;  %v8185_v57 = vld [vmem:[#allocation2 + $0x44] sm:$0xff] }
 0x23c   : > { %2797 = vmatmul.bf16.vlgmr.msrb.gmra.mxu3 %v2709_v40  ;;  %v4357_v40 = vrot.slane %v4355_v61, 4  ;;  %v2680_v61 = vunpack.c.l.b16 %v2323_v18  ;;  %v2327_v18 = vrot.slane %v2325_v46, 4 }
 0x23d   : > { %3929 = vmatmul.bf16.gmra.mxu1 %v8151_v27  ;;  %v9493_v27 = vpop.f32.mrf.mxu0  ;;  %v2308_v55 = vrot.slane %v2307_v44, 4  ;;  %v2336_v44 = vrot.slane %v2334_v34, 5  ;;  %v2330_v34 = vrot.slane %v2328_v0, 5 }
 0x23e   : > { %10568 = vst [vmem:[#allocation50_spill] sm:$0xff] %v9493_v27  ;;  %v4361_v31 = vor.u32 %v4360_v3, %v4357_v40  ;;  %v4099_v40 = vld [vmem:[#allocation2 + $0xc4] sm:$0xf]  ;;  %v4388_v3 = vshll.u32 %v4100_v39, 16 }
 0x23f   : > { %v9489_v21 = vpop.f32.mrf.mxu3  ;;  %v2313_v5 = vsel %vm9286_vm5, %v2308_v55, %v2312_v8  ;;  %v4377_v8 = vsel %vm9286_vm5, %v4372_v52, %v4376_v32  ;;  %v8152_v55 = vld [vmem:[#allocation2 + $0xa4] sm:$0xff]  ;;  %v4382_v1 = vshll.u32 %v4099_v40, 16  ;;  %v4394_v32 = vrot.slane %v4392_v10, 4  ;;  %v2234_v10 = vld [vmem:[#allocation2 + $0x34] sm:$0xf] }
 0x240   : > { %v2679_v28 = vunpack.c.l.b16 %v2313_v5  ;;  %v4362_v54 = vrot.slane %v4361_v31, 4  ;;  %v2344_v5 = vshll.u32 %v2233_v50, 16  ;;  %v4536_v62 = vunpack.c.l.b16 %v4377_v8 }
 0x241   : > { %4680 = vmatmul.bf16.gmra.mxu2 %v4556_v53  ;;  %v2340_v53 = vrot.slane %v2338_v60, 4  ;;  %v4379_v31 = vshrl.u32 %v4099_v40, 16  ;;  %v4390_v52 = vrot.slane %v4388_v3, 5  ;;  %v2331_v46 = vor.u32 %v2330_v34, %v2327_v18 }
 0x242   : > { %v9491_v22 = vpop.f32.mrf.mxu1  ;;  %v2710_v59 = vpack.c.b16 %v2680_v61, %v2679_v28  ;;  %v4367_v56 = vsel %vm9286_vm5, %v4362_v54, %v4366_v41  ;;  %v4101_v61 = vld [vmem:[#allocation2 + $0xcc] sm:$0x1]  ;;  %v2346_v29 = vrot.slane %v2344_v5, 5  ;;  %v4384_v0 = vrot.slane %v4382_v1, 5  ;;  %v4102_v1 = vld [vmem:[#allocation2 + $0xd4] sm:$0xf] }
 0x243   : > { %10567 = vst [vmem:[#allocation49_spill] sm:$0xff] %v9491_v22  ;;  %v2341_v60 = vor.u32 %v2340_v53, %v2336_v44  ;;  %v4535_v39 = vunpack.c.l.b16 %v4367_v56  ;;  %v4381_v41 = vrot.slane %v4379_v31, 4  ;;  %v2235_v53 = vld [vmem:[#allocation2 + $0x38] sm:$0xf]  ;;  %v4395_v8 = vor.u32 %v4394_v32, %v4390_v52 }
 0x244   : > { %v2332_v40 = vrot.slane %v2331_v46, 4  ;;  %v2362_v56 = vshrl.u32 %v2235_v53, 16  ;;  %v4103_v31 = vld [vmem:[#allocation2 + $0xd8] sm:$0xf] }
 0x245   : > { %v9507_v11 = vpop.f32.mrf.mxu0  ;;  %v4557_v54 = vpack.c.b16 %v4536_v62, %v4535_v39  ;;  %v4396_v34 = vrot.slane %v4395_v8, 4  ;;  %v2349_v62 = vshrl.u32 %v2234_v10, 16 }
 0x246   : > { %10570 = vst [vmem:[#allocation52_spill] sm:$0xff] %v9507_v11  ;;  %v4385_v11 = vor.u32 %v4384_v0, %v4381_v41  ;;  %v2337_v18 = vsel %vm9286_vm5, %v2332_v40, %v2336_v44  ;;  %v2236_v41 = vld [vmem:[#allocation2 + $0x3c] sm:$0x1]  ;;  %v4403_v0 = vshrl.u32 %v4102_v1, 16  ;;  %v8186_v44 = vld [vmem:[#allocation2 + $0x54] sm:$0xff]  ;;  %v4412_v40 = vshll.u32 %v4103_v31, 16 }
 0x247   : > { %v9499_v24 = vpop.f32.mrf.mxu3 }
 0x24a   : > { %v9501_v27 = vpop.f32.mrf.mxu1 }
 0x24b   : > { %10569 = vst [vmem:[#allocation51_spill] sm:$0xff] %v9501_v27  ;;  %5738 = vmatmul.bf16.gmra.mxu0 %v8185_v57  ;;  %v2342_v57 = vrot.slane %v2341_v60, 4  ;;  %v2351_v27 = vrot.slane %v2349_v62, 4  ;;  %v4104_v62 = vld [vmem:[#allocation2 + $0xdc] sm:$0x1] }
 0x24c   : > { %2802 = vmatmul.bf16.gmra.mxu3 %v2710_v59  ;;  %v4398_v59 = vshll.u32 %v4101_v61, 16  ;;  %v2352_v61 = vshll.u32 %v2234_v10, 16 }
 0x24d   : > { %3934 = vmatmul.bf16.gmra.mxu1 %v8152_v55  ;;  %v2347_v3 = vsel %vm9286_vm5, %v2342_v57, %v2346_v29  ;;  %v2358_v55 = vshll.u32 %v2235_v53, 16  ;;  %v9517_v32 = vpop.f32.mrf.mxu0  ;;  %v2364_v29 = vrot.slane %v2362_v56, 4  ;;  %v2681_v57 = vunpack.c.l.b16 %v2337_v18  ;;  %v9530_v18 = vpop.f32.mrf.mxu2 }
 0x24e   : > { %v4400_v60 = vrot.slane %v4398_v59, 5  ;;  %v2682_v5 = vunpack.c.l.b16 %v2347_v3  ;;  %10572 = vst [vmem:[#allocation54_spill] sm:$0xff] %v9517_v32  ;;  %v4406_v59 = vshll.u32 %v4102_v1, 16  ;;  %v4416_v3 = vshrl.u32 %v4103_v31, 16 }
 0x24f   : > { %v9509_v28 = vpop.f32.mrf.mxu3  ;;  %v9521_v46 = vrot.slane %v2358_v55, 5  ;;  %v2354_v55 = vrot.slane %v2352_v61, 5  ;;  %v2368_v56 = vshll.u32 %v2236_v41, 16  ;;  %10574 = vst [vmem:[#allocation56_spill] sm:$0xff] %v9530_v18  ;;  %v4414_v31 = vrot.slane %v4412_v40, 5 }
 0x250   : > { %v4401_v8 = vsel %vm9286_vm5, %v4396_v34, %v4400_v60  ;;  %v2711_v32 = vpack.c.b16 %v2682_v5, %v2681_v57  ;;  %v8180_v34 = vld [vmem:[#allocation12 + $0x1a8] sm:$0xff]  ;;  %v4405_v60 = vrot.slane %v4403_v0, 4  ;;  %v4408_v1 = vrot.slane %v4406_v59, 5  ;;  %v2237_v59 = vld [vmem:[#allocation2 + $0x44] sm:$0xf] }
 0x251   : > { %4685 = vmatmul.bf16.gmra.mxu2 %v4557_v54  ;;  %v4386_v54 = vrot.slane %v4385_v11, 4  ;;  %v2365_v11 = vor.u32 %v2364_v29, %v9521_v46  ;;  %v4418_v5 = vrot.slane %v4416_v3, 4  ;;  %5344 = vmatpush.bf16.msra.mxu3 %v8180_v34  ;;  %v2238_v29 = vld [vmem:[#allocation2 + $0x48] sm:$0xf]  ;;  %v4422_v0 = vshll.u32 %v4104_v62, 16 }
 0x252   : > { %v9511_v50 = vpop.f32.mrf.mxu1  ;;  %v2382_v40 = vshll.u32 %v2238_v29, 16  ;;  %v2386_v3 = vshrl.u32 %v2238_v29, 16 }
 0x253   : > { %10571 = vst [vmem:[#allocation53_spill] sm:$0xff] %v9511_v50  ;;  %v8153_v50 = vld [vmem:[#allocation2 + $0xb4] sm:$0xff]  ;;  %v4391_v10 = vsel %vm9286_vm5, %v4386_v54, %v4390_v52  ;;  %v2355_v52 = vor.u32 %v2354_v55, %v2351_v27  ;;  %v2366_v61 = vrot.slane %v2365_v11, 4  ;;  %v2370_v54 = vrot.slane %v2368_v56, 5  ;;  %v4105_v55 = vld [vmem:[#allocation2 + $0xe4] sm:$0xf] }
 0x254   : > { %v4537_v57 = vunpack.c.l.b16 %v4391_v10  ;;  %v2373_v27 = vshrl.u32 %v2237_v59, 16  ;;  %v4106_v11 = vld [vmem:[#allocation2 + $0xe8] sm:$0xf]  ;;  %v2384_v29 = vrot.slane %v2382_v40, 5 }
 0x255   : > { %v9534_v49 = vpop.f32.mrf.mxu0  ;;  %v2356_v10 = vrot.slane %v2355_v52, 4  ;;  %v2371_v34 = vsel %vm9286_vm5, %v2366_v61, %v2370_v54  ;;  %v2388_v52 = vrot.slane %v2386_v3, 4  ;;  %v2239_v61 = vld [vmem:[#allocation2 + $0x4c] sm:$0x1]  ;;  %v4427_v54 = vshrl.u32 %v4105_v55, 16  ;;  %v8154_v3 = vld [vmem:[#allocation2 + $0xc4] sm:$0xff] }
 0x256   : > { %10575 = vst [vmem:[#allocation57_spill] sm:$0xff] %v9534_v49  ;;  %v2684_v62 = vunpack.c.l.b16 %v2371_v34  ;;  %v4436_v22 = vshll.u32 %v4106_v11, 16  ;;  %v4440_v18 = vshrl.u32 %v4106_v11, 16 }
 0x257   : > { %v9519_v39 = vpop.f32.mrf.mxu3  ;;  %v2389_v34 = vor.u32 %v2388_v52, %v2384_v29  ;;  %v4429_v11 = vrot.slane %v4427_v54, 4  ;;  %v2241_v52 = vld [vmem:[#allocation2 + $0x58] sm:$0xf] }
 0x25a   : > { %v9523_v53 = vpop.f32.mrf.mxu1 }
 0x25b   : > { %10573 = vst [vmem:[#allocation55_spill] sm:$0xff] %v9523_v53  ;;  %5743 = vmatmul.bf16.gmra.mxu0 %v8186_v44  ;;  %v4538_v53 = vunpack.c.l.b16 %v4401_v8  ;;  %v4419_v8 = vor.u32 %v4418_v5, %v4414_v31  ;;  %v9543_v5 = vpop.f32.mrf.mxu2 }
 0x25c   : > { %2807 = vmatmul.bf16.gmra.mxu3 %v2711_v32  ;;  %10577 = vst [vmem:[#allocation59_spill] sm:$0xff] %v9543_v5  ;;  %v2392_v5 = vshll.u32 %v2239_v61, 16 }
 0x25d   : > { %3939 = vmatmul.bf16.gmra.mxu1 %v8153_v50  ;;  %v4558_v41 = vpack.c.b16 %v4538_v53, %v4537_v57  ;;  %v4409_v50 = vor.u32 %v4408_v1, %v4405_v60  ;;  %v2361_v53 = vsel %vm9286_vm5, %v2356_v10, %v9521_v46  ;;  %v4420_v57 = vrot.slane %v4419_v8, 4  ;;  %v8212_v1 = vld [vmem:[#allocation12 + $0x228] sm:$0xff] }
 0x25e   : > { %v4424_v60 = vrot.slane %v4422_v0, 5  ;;  %6468 = vmatpush.bf16.msra.mxu1 %v8212_v1  ;;  %v2683_v63 = vunpack.c.l.b16 %v2361_v53  ;;  %v4438_v1 = vrot.slane %v4436_v22, 5 }
 0x25f   : > { %v9532_v44 = vpop.f32.mrf.mxu3  ;;  %v4410_v56 = vrot.slane %v4409_v50, 4  ;;  %v8187_v50 = vld [vmem:[#allocation2 + $0x64] sm:$0xff] }
 0x260   : > { %v4425_v0 = vsel %vm9286_vm5, %v4420_v57, %v4424_v60  ;;  %v2712_v40 = vpack.c.b16 %v2684_v62, %v2683_v63  ;;  %v2394_v57 = vrot.slane %v2392_v5, 5  ;;  %v2390_v63 = vrot.slane %v2389_v34, 4 }
 0x261   : > { %4690 = vmatmul.bf16.gmra.mxu2 %v4558_v41  ;;  %v2376_v41 = vshll.u32 %v2237_v59, 16  ;;  %v4415_v8 = vsel %vm9286_vm5, %v4410_v56, %v4414_v31  ;;  %v2375_v59 = vrot.slane %v2373_v27, 4  ;;  %v4540_v31 = vunpack.c.l.b16 %v4425_v0  ;;  %v4107_v56 = vld [vmem:[#allocation2 + $0xec] sm:$0x1] }
 0x262   : > { %v9536_v32 = vpop.f32.mrf.mxu1  ;;  %v4539_v13 = vunpack.c.l.b16 %v4415_v8  ;;  %v2395_v8 = vsel %vm9286_vm5, %v2390_v63, %v2394_v57 }
 0x263   : > { %10576 = vst [vmem:[#allocation58_spill] sm:$0xff] %v9536_v32  ;;  %v4430_v32 = vshll.u32 %v4105_v55, 16  ;;  %v2378_v10 = vrot.slane %v2376_v41, 5  ;;  %v9553_v55 = vpop.f32.mrf.mxu0  ;;  %v4446_v41 = vshll.u32 %v4107_v56, 16  ;;  %v9557_v61 = vpop.f32.mrf.mxu2  ;;  %v2686_v34 = vunpack.c.l.b16 %v2395_v8 }
 0x264   : > { %10579 = vst [vmem:[#allocation61_spill] sm:$0xff] %v9553_v55  ;;  %v4559_v54 = vpack.c.b16 %v4540_v31, %v4539_v13  ;;  %v4109_v13 = vld [vmem:[#allocation2 + $0xf8] sm:$0xf] }
 0x265   : > { %v4432_v53 = vrot.slane %v4430_v32, 5  ;;  %v2379_v35 = vor.u32 %v2378_v10, %v2375_v59  ;;  %10580 = vst [vmem:[#allocation62_spill] sm:$0xff] %v9557_v61  ;;  %v4448_v59 = vrot.slane %v4446_v41, 5  ;;  %v4108_v10 = vld [vmem:[#allocation2 + $0xf4] sm:$0xf]  ;;  %v8179_v61 = vld [vmem:[#allocation12 + $0x1a0] sm:$0xff] }
 0x266   : > { %v4454_v41 = vshll.u32 %v4108_v10, 16  ;;  %5345 = vmatpush.bf16.msra.mxu3 %v8179_v61 }
 0x267   : > { %v9545_v49 = vpop.f32.mrf.mxu3  ;;  %v4433_v60 = vor.u32 %v4432_v53, %v4429_v11  ;;  %v2380_v22 = vrot.slane %v2379_v35, 4 }
 0x269   : > { %v4434_v5 = vrot.slane %v4433_v60, 4  ;;  %v2242_v60 = vld [vmem:[#allocation2 + $0x5c] sm:$0x1] }
 0x26a   : > { %v9547_v46 = vpop.f32.mrf.mxu1  ;;  %v2416_v55 = vshll.u32 %v2242_v60, 16 }
 0x26b   : > { %10578 = vst [vmem:[#allocation60_spill] sm:$0xff] %v9547_v46  ;;  %5748 = vmatmul.bf16.gmra.mxu0 %v8187_v50  ;;  %v4442_v46 = vrot.slane %v4440_v18, 4  ;;  %v2406_v18 = vshll.u32 %v2241_v52, 16  ;;  %v2410_v50 = vshrl.u32 %v2241_v52, 16  ;;  %v4439_v57 = vsel %vm9286_vm5, %v4434_v5, %v4438_v1  ;;  %v9575_v8 = vpop.f32.mrf.mxu2 }
 0x26c   : > { %2812 = vmatmul.bf16.gmra.mxu3 %v2712_v40  ;;  %v2240_v40 = vld [vmem:[#allocation2 + $0x54] sm:$0xf]  ;;  %v4460_v52 = vshll.u32 %v4109_v13, 16  ;;  %10583 = vst [vmem:[#allocation65_spill] sm:$0xff] %v9575_v8  ;;  %v4110_v8 = vld [vmem:[#allocation2 + $0xfc] sm:$0x1] }
 0x26d   : > { %3944 = vmatmul.bf16.gmra.mxu1 %v8154_v3  ;;  %v4443_v62 = vor.u32 %v4442_v46, %v4438_v1  ;;  %v2385_v46 = vsel %vm9286_vm5, %v2380_v22, %v2384_v29  ;;  %v9565_v3 = vpop.f32.mrf.mxu0  ;;  %v2397_v11 = vshrl.u32 %v2240_v40, 16  ;;  %v2400_v53 = vshll.u32 %v2240_v40, 16  ;;  %v8188_v22 = vld [vmem:[#allocation2 + $0x74] sm:$0xff] }
 0x26e   : > { %10582 = vst [vmem:[#allocation64_spill] sm:$0xff] %v9565_v3  ;;  %v9567_v35 = vrot.slane %v2406_v18, 5  ;;  %v2685_v56 = vunpack.c.l.b16 %v2385_v46  ;;  %v2412_v29 = vrot.slane %v2410_v50, 4  ;;  %v8155_v3 = vld [vmem:[#allocation2 + $0xd4] sm:$0xff]  ;;  %v4541_v1 = vunpack.c.l.b16 %v4439_v57 }
 0x26f   : > { %v9555_v27 = vpop.f32.mrf.mxu3  ;;  %v4444_v0 = vrot.slane %v4443_v62, 4  ;;  %v4451_v62 = vshrl.u32 %v4108_v10, 16  ;;  %v2399_v46 = vrot.slane %v2397_v11, 4  ;;  %v4462_v10 = vrot.slane %v4460_v52, 5 }
 0x270   : > { %v2713_v40 = vpack.c.b16 %v2686_v34, %v2685_v56  ;;  %v2418_v57 = vrot.slane %v2416_v55, 5 }
 0x271   : > { %4695 = vmatmul.bf16.gmra.mxu2 %v4559_v54  ;;  %v4449_v63 = vsel %vm9286_vm5, %v4444_v0, %v4448_v59  ;;  %v4464_v54 = vshrl.u32 %v4109_v13, 16  ;;  %v2413_v0 = vor.u32 %v2412_v29, %v9567_v35  ;;  %v4453_v50 = vrot.slane %v4451_v62, 4  ;;  %v2244_v62 = vld [vmem:[#allocation2 + $0x68] sm:$0xf] }
 0x272   : > { %v9559_v32 = vpop.f32.mrf.mxu1  ;;  %v4542_v5 = vunpack.c.l.b16 %v4449_v63  ;;  %v4456_v59 = vrot.slane %v4454_v41, 5  ;;  %v2430_v61 = vshll.u32 %v2244_v62, 16 }
 0x273   : > { %10581 = vst [vmem:[#allocation63_spill] sm:$0xff] %v9559_v32  ;;  %v2402_v32 = vrot.slane %v2400_v53, 5  ;;  %v4466_v13 = vrot.slane %v4464_v54, 4  ;;  %v2414_v60 = vrot.slane %v2413_v0, 4  ;;  %v2434_v54 = vshrl.u32 %v2244_v62, 16  ;;  %v8189_v62 = vld [vmem:[#allocation2 + $0x84] sm:$0xff] }
 0x274   : > { %v4560_v11 = vpack.c.b16 %v4542_v5, %v4541_v1  ;;  %v4457_v63 = vor.u32 %v4456_v59, %v4453_v50  ;;  %v8211_v1 = vld [vmem:[#allocation12 + $0x220] sm:$0xff]  ;;  %v4112_v50 = vld [vmem:[#allocation2 + $0x108] sm:$0xf] }
 0x275   : > { %v2403_v56 = vor.u32 %v2402_v32, %v2399_v46  ;;  %v4467_v29 = vor.u32 %v4466_v13, %v4462_v10  ;;  %v2419_v52 = vsel %vm9286_vm5, %v2414_v60, %v2418_v57  ;;  %v4111_v0 = vld [vmem:[#allocation2 + $0x104] sm:$0xf]  ;;  %6469 = vmatpush.bf16.msra.mxu1 %v8211_v1 }
 0x276   : > { %v4458_v32 = vrot.slane %v4457_v63, 4  ;;  %v2688_v5 = vunpack.c.l.b16 %v2419_v52  ;;  %v4478_v52 = vshll.u32 %v4111_v0, 16  ;;  %v8156_v1 = vld [vmem:[#allocation2 + $0xe4] sm:$0xff] }
 0x277   : > { %v9569_v31 = vpop.f32.mrf.mxu3  ;;  %v2404_v41 = vrot.slane %v2403_v56, 4  ;;  %v4468_v55 = vrot.slane %v4467_v29, 4  ;;  %v2436_v56 = vrot.slane %v2434_v54, 4  ;;  %v2245_v29 = vld [vmem:[#allocation2 + $0x6c] sm:$0x1] }
 0x278   : > { %v4463_v63 = vsel %vm9286_vm5, %v4458_v32, %v4462_v10 }
 0x279   : > { %v4543_v10 = vunpack.c.l.b16 %v4463_v63 }
 0x27a   : > { %v9577_v18 = vpop.f32.mrf.mxu1 }
 0x27b   : > { %10584 = vst [vmem:[#allocation66_spill] sm:$0xff] %v9577_v18  ;;  %5753 = vmatmul.bf16.gmra.mxu0 %v8188_v22  ;;  %v9580_v18 = vpop.f32.mrf.mxu0  ;;  %v9587_v22 = vpop.f32.mrf.mxu2 }
 0x27c   : > { %2817 = vmatmul.bf16.gmra.mxu3 %v2713_v40  ;;  %10585 = vst [vmem:[#allocation67_spill] sm:$0xff] %v9580_v18  ;;  %v2440_v18 = vshll.u32 %v2245_v29, 16 }
 0x27d   : > { %3949 = vmatmul.bf16.gmra.mxu1 %v8155_v3  ;;  %v4470_v3 = vshll.u32 %v4110_v8, 16  ;;  %10586 = vst [vmem:[#allocation68_spill] sm:$0xff] %v9587_v22  ;;  %v2409_v8 = vsel %vm9286_vm5, %v2404_v41, %v9567_v35  ;;  %v4475_v41 = vshrl.u32 %v4111_v0, 16 }
 0x27e   : > { %v2687_v57 = vunpack.c.l.b16 %v2409_v8 }
 0x27f   : > { %v2109_v34 = vpop.f32.mrf.mxu3  ;;  %v4472_v46 = vrot.slane %v4470_v3, 5 }
 0x280   : > { %v9583_v53 = vadd.f32 %v2109_v34, %v9489_v21  ;;  %v2243_v21 = vld [vmem:[#allocation2 + $0x64] sm:$0xf]  ;;  %v2714_v54 = vpack.c.b16 %v2688_v5, %v2687_v57  ;;  %v4113_v5 = vld [vmem:[#allocation2 + $0x10c] sm:$0x1] }
 0x281   : > { %4700 = vmatmul.bf16.gmra.mxu2 %v4560_v11  ;;  %v2421_v13 = vshrl.u32 %v2243_v21, 16  ;;  %v2424_v34 = vshll.u32 %v2243_v21, 16  ;;  %v9594_v11 = vrot.slane %v2430_v61, 5  ;;  %v4473_v35 = vsel %vm9286_vm5, %v4468_v55, %v4472_v46  ;;  %v8210_v55 = vld [vmem:[#allocation12 + $0x218] sm:$0xff] }
 0x282   : > { %v9589_v40 = vpop.f32.mrf.mxu1  ;;  %v4484_v61 = vshll.u32 %v4112_v50, 16  ;;  %v4488_v21 = vshrl.u32 %v4112_v50, 16  ;;  %v4544_v32 = vunpack.c.l.b16 %v4473_v35  ;;  %v4477_v46 = vrot.slane %v4475_v41, 4  ;;  %6470 = vmatpush.bf16.msra.mxu1 %v8210_v55  ;;  %v2247_v35 = vld [vmem:[#allocation2 + $0x78] sm:$0xf] }
 0x283   : > { %10587 = vst [vmem:[#allocation69_spill] sm:$0xff] %v9589_v40  ;;  %v9603_v3 = vpop.f32.mrf.mxu0  ;;  %v2437_v8 = vor.u32 %v2436_v56, %v9594_v11  ;;  %v9606_v0 = vpop.f32.mrf.mxu2  ;;  %v2442_v56 = vrot.slane %v2440_v18, 5  ;;  %v2454_v55 = vshll.u32 %v2247_v35, 16  ;;  %v8208_v18 = vld [vmem:[#allocation12 + $0x208] sm:$0xff] }
 0x284   : > { %10588 = vst [vmem:[#allocation70_spill] sm:$0xff] %v9603_v3  ;;  %v4480_v3 = vrot.slane %v4478_v52, 5  ;;  %v4486_v40 = vrot.slane %v4484_v61, 5  ;;  %v4490_v22 = vrot.slane %v4488_v21, 4  ;;  %v4561_v63 = vpack.c.b16 %v4544_v32, %v4543_v10  ;;  %v8209_v61 = vld [vmem:[#allocation12 + $0x210] sm:$0xff] }
 0x285   : > { %10589 = vst [vmem:[#allocation71_spill] sm:$0xff] %v9606_v0  ;;  %v2438_v57 = vrot.slane %v2437_v8, 4  ;;  %v4494_v52 = vshll.u32 %v4113_v5, 16 }
 0x286   : > { %v4491_v41 = vor.u32 %v4490_v22, %v4486_v40  ;;  %6471 = vmatpush.bf16.msra.mxu1 %v8209_v61  ;;  %v2248_v61 = vld [vmem:[#allocation2 + $0x7c] sm:$0x1] }
 0x287   : > { %v2111_v59 = vpop.f32.mrf.mxu3  ;;  %v4496_v8 = vrot.slane %v4494_v52, 5  ;;  %v8207_v52 = vld [vmem:[#allocation12 + $0x200] sm:$0xff] }
 0x288   : > { %v9597_v60 = vadd.f32 %v2111_v59, %v9499_v24  ;;  %v2423_v24 = vrot.slane %v2421_v13, 4  ;;  %v2426_v59 = vrot.slane %v2424_v34, 5  ;;  %v4492_v22 = vrot.slane %v4491_v41, 4 }
 0x28a   : > { %v9608_v50 = vpop.f32.mrf.mxu1  ;;  %v2427_v34 = vor.u32 %v2426_v59, %v2423_v24  ;;  %v2458_v24 = vshrl.u32 %v2247_v35, 16  ;;  %v2246_v59 = vld [vmem:[#allocation2 + $0x74] sm:$0xf]  ;;  %6472 = vmatpush.bf16.msra.mxu1 %v8208_v18  ;;  %v4497_v41 = vsel %vm9286_vm5, %v4492_v22, %v4496_v8 }
 0x28b   : > { %5758 = vmatmul.bf16.gmra.mxu0 %v8189_v62  ;;  %10590 = vst [vmem:[#allocation72_spill] sm:$0xff] %v9608_v50  ;;  %v4481_v62 = vor.u32 %v4480_v3, %v4477_v46  ;;  %v9613_v21 = vpop.f32.mrf.mxu0  ;;  %v2445_v46 = vshrl.u32 %v2246_v59, 16  ;;  %v2448_v5 = vshll.u32 %v2246_v59, 16  ;;  %v2464_v59 = vshll.u32 %v2248_v61, 16 }
 0x28c   : > { %2822 = vmatmul.bf16.gmra.mxu3 %v2714_v54  ;;  %10591 = vst [vmem:[#allocation73_spill] sm:$0xff] %v9613_v21  ;;  %v2428_v54 = vrot.slane %v2427_v34, 4  ;;  %v2460_v34 = vrot.slane %v2458_v24, 4 }
 0x28d   : > { %3954 = vmatmul.bf16.gmra.mxu1 %v8156_v1  ;;  %v2443_v1 = vsel %vm9286_vm5, %v2438_v57, %v2442_v56  ;;  %v4482_v3 = vrot.slane %v4481_v62, 4  ;;  %v9620_v57 = vpop.f32.mrf.mxu2  ;;  %v2450_v24 = vrot.slane %v2448_v5, 5  ;;  %v2466_v8 = vrot.slane %v2464_v59, 5  ;;  %v2250_v5 = vld [vmem:[#allocation2 + $0x88] sm:$0xf] }
 0x28e   : > { %v2690_v10 = vunpack.c.l.b16 %v2443_v1  ;;  %10592 = vst [vmem:[#allocation74_spill] sm:$0xff] %v9620_v57  ;;  %v8157_v1 = vld [vmem:[#allocation2 + $0xf4] sm:$0xff]  ;;  %6473 = vmatpush.bf16.msra.mxu1 %v8207_v52 }
 0x28f   : > { %v2114_v13 = vpop.f32.mrf.mxu3  ;;  %v4487_v62 = vsel %vm9286_vm5, %v4482_v3, %v4486_v40 }
 0x290   : > { %v9611_v29 = vadd.f32 %v2114_v13, %v9509_v28  ;;  %v2433_v28 = vsel %vm9286_vm5, %v2428_v54, %v9594_v11  ;;  %v2456_v13 = vrot.slane %v2454_v55, 5  ;;  %v8190_v11 = vld [vmem:[#allocation2 + $0x94] sm:$0xff]  ;;  %v2447_v55 = vrot.slane %v2445_v46, 4 }
 0x291   : > { %4705 = vmatmul.bf16.gmra.mxu2 %v4561_v63  ;;  %v2689_v35 = vunpack.c.l.b16 %v2433_v28  ;;  %v4546_v28 = vunpack.c.l.b16 %v4497_v41 }
 0x292   : > { %v9622_v56 = vpop.f32.mrf.mxu1  ;;  %v2461_v18 = vor.u32 %v2460_v34, %v2456_v13  ;;  %v2451_v3 = vor.u32 %v2450_v24, %v2447_v55  ;;  %v2482_v55 = vshrl.u32 %v2250_v5, 16  ;;  %v2249_v24 = vld [vmem:[#allocation2 + $0x84] sm:$0xf] }
 0x293   : > { %10593 = vst [vmem:[#allocation75_spill] sm:$0xff] %v9622_v56  ;;  %v2715_v54 = vpack.c.b16 %v2690_v10, %v2689_v35  ;;  %v9631_v21 = vpop.f32.mrf.mxu0  ;;  %v5906_v10 = vld [vmem:[#allocation2 + $0x28] sm:$0xf]  ;;  %v2251_v56 = vld [vmem:[#allocation2 + $0x8c] sm:$0x1] }
 0x294   : > { %10594 = vst [vmem:[#allocation76_spill] sm:$0xff] %v9631_v21  ;;  %v2462_v22 = vrot.slane %v2461_v18, 4  ;;  %v5967_v41 = vshrl.u32 %v5906_v10, 16  ;;  %v2452_v52 = vrot.slane %v2451_v3, 4  ;;  %v2472_v3 = vshll.u32 %v2249_v24, 16 }
 0x295   : > { %v9636_v34 = vpop.f32.mrf.mxu2 }
 0x296   : > { %10595 = vst [vmem:[#allocation77_spill] sm:$0xff] %v9636_v34  ;;  %v2474_v34 = vrot.slane %v2472_v3, 5  ;;  %v5908_v3 = vld [vmem:[#allocation2 + $0x34] sm:$0xf] }
 0x297   : > { %v2116_v32 = vpop.f32.mrf.mxu3 }
 0x298   : > { %v9625_v63 = vadd.f32 %v2116_v32, %v9519_v39  ;;  %v4545_v39 = vunpack.c.l.b16 %v4487_v62  ;;  %v8178_v32 = vld [vmem:[#allocation12 + $0x198] sm:$0xff]  ;;  %v5963_v62 = vshll.u32 %v5906_v10, 16  ;;  %v2469_v10 = vshrl.u32 %v2249_v24, 16 }
 0x299   : > { %5346 = vmatpush.bf16.msra.mxu3 %v8178_v32  ;;  %v5969_v32 = vrot.slane %v5967_v41, 4 }
 0x29a   : > { %v4562_v46 = vpack.c.b16 %v4546_v28, %v4545_v39  ;;  %v9638_v61 = vpop.f32.mrf.mxu1  ;;  %v9644_v28 = vrot.slane %v5963_v62, 5 }
 0x29b   : > { %5763 = vmatmul.bf16.gmra.mxu0 %v8190_v11  ;;  %10596 = vst [vmem:[#allocation78_spill] sm:$0xff] %v9638_v61  ;;  %v5905_v11 = vld [vmem:[#allocation2 + $0x24] sm:$0xf]  ;;  %v2484_v61 = vrot.slane %v2482_v55, 4 }
 0x29c   : > { %2827 = vmatmul.bf16.gmra.mxu3 %v2715_v54  ;;  %v2467_v54 = vsel %vm9286_vm5, %v2462_v22, %v2466_v8  ;;  %v5954_v18 = vshrl.u32 %v5905_v11, 16  ;;  %v5957_v39 = vshll.u32 %v5905_v11, 16  ;;  %v5907_v22 = vld [vmem:[#allocation2 + $0x2c] sm:$0x1]  ;;  %v8158_v11 = vld [vmem:[#allocation2 + $0x104] sm:$0xff]  ;;  %v5970_v41 = vor.u32 %v5969_v32, %v9644_v28 }
 0x29d   : > { %3959 = vmatmul.bf16.gmra.mxu1 %v8157_v1  ;;  %v2478_v1 = vshll.u32 %v2250_v5, 16  ;;  %v2692_v59 = vunpack.c.l.b16 %v2467_v54  ;;  %v5973_v50 = vshll.u32 %v5907_v22, 16  ;;  %v2253_v22 = vld [vmem:[#allocation2 + $0x98] sm:$0xf] }
 0x29e   : > { %v5959_v62 = vrot.slane %v5957_v39, 5  ;;  %v5909_v39 = vld [vmem:[#allocation2 + $0x38] sm:$0xf] }
 0x29f   : > { %v2119_v40 = vpop.f32.mrf.mxu3  ;;  %v2480_v21 = vrot.slane %v2478_v1, 5  ;;  %v2488_v1 = vshll.u32 %v2251_v56, 16 }
 0x2a0   : > { %v9634_v35 = vadd.f32 %v2119_v40, %v9532_v44  ;;  %v2457_v44 = vsel %vm9286_vm5, %v2452_v52, %v2456_v13  ;;  %v9646_v40 = vpop.f32.mrf.mxu0  ;;  %v8191_v13 = vld [vmem:[#allocation2 + $0xa4] sm:$0xff]  ;;  %v5956_v52 = vrot.slane %v5954_v18, 4 }
 0x2a1   : > { %4710 = vmatmul.bf16.gmra.mxu2 %v4562_v46  ;;  %10597 = vst [vmem:[#allocation79_spill] sm:$0xff] %v9646_v40  ;;  %v2691_v5 = vunpack.c.l.b16 %v2457_v44  ;;  %v2471_v40 = vrot.slane %v2469_v10, 4  ;;  %v2485_v24 = vor.u32 %v2484_v61, %v2480_v21  ;;  %v5971_v44 = vrot.slane %v5970_v41, 4 }
 0x2a2   : > { %v9652_v55 = vpop.f32.mrf.mxu1  ;;  %v5981_v41 = vshll.u32 %v5908_v3, 16 }
 0x2a3   : > { %v2716_v54 = vpack.c.b16 %v2692_v59, %v2691_v5  ;;  %10598 = vst [vmem:[#allocation80_spill] sm:$0xff] %v9652_v55  ;;  %v2475_v18 = vor.u32 %v2474_v34, %v2471_v40  ;;  %v2486_v59 = vrot.slane %v2485_v24, 4  ;;  %v2490_v5 = vrot.slane %v2488_v1, 5  ;;  %v8222_v24 = vld [vmem:[#allocation13 + $0x38] sm:$0xff] }
 0x2a4   : > { %v2502_v34 = vshll.u32 %v2253_v22, 16  ;;  %v2506_v40 = vshrl.u32 %v2253_v22, 16  ;;  %6867 = vmatpush.bf16.msra.mxu2 %v8222_v24  ;;  %v8192_v55 = vld [vmem:[#allocation2 + $0xb4] sm:$0xff] }
 0x2a6   : > { %v2504_v22 = vrot.slane %v2502_v34, 5 }
 0x2a7   : > { %v2121_v46 = vpop.f32.mrf.mxu3 }
 0x2a8   : > { %v9649_v8 = vadd.f32 %v2121_v46, %v9545_v49  ;;  %v5960_v49 = vor.u32 %v5959_v62, %v5956_v52  ;;  %v5975_v46 = vrot.slane %v5973_v50, 5  ;;  %v9657_v10 = vpop.f32.mrf.mxu0  ;;  %v5991_v52 = vshrl.u32 %v5909_v39, 16 }
 0x2a9   : > { %10599 = vst [vmem:[#allocation81_spill] sm:$0xff] %v9657_v10  ;;  %v2491_v50 = vsel %vm9286_vm5, %v2486_v59, %v2490_v5  ;;  %v5978_v62 = vshrl.u32 %v5908_v3, 16  ;;  %v2508_v10 = vrot.slane %v2506_v40, 4  ;;  %v2254_v3 = vld [vmem:[#allocation2 + $0x9c] sm:$0x1] }
 0x2aa   : > { %v5961_v61 = vrot.slane %v5960_v49, 4  ;;  %v5976_v56 = vsel %vm9286_vm5, %v5971_v44, %v5975_v46  ;;  %v9668_v1 = vpop.f32.mrf.mxu1  ;;  %v2694_v49 = vunpack.c.l.b16 %v2491_v50  ;;  %v5983_v50 = vrot.slane %v5981_v41, 5 }
 0x2ab   : > { %5768 = vmatmul.bf16.gmra.mxu0 %v8191_v13  ;;  %v5987_v13 = vshll.u32 %v5909_v39, 16  ;;  %10600 = vst [vmem:[#allocation82_spill] sm:$0xff] %v9668_v1  ;;  %v6355_v44 = vunpack.c.l.b16 %v5976_v56  ;;  %v5980_v1 = vrot.slane %v5978_v62, 4  ;;  %v2512_v24 = vshll.u32 %v2254_v3, 16 }
 0x2ac   : > { %2832 = vmatmul.bf16.gmra.mxu3 %v2716_v54  ;;  %v2476_v54 = vrot.slane %v2475_v18, 4  ;;  %v5993_v18 = vrot.slane %v5991_v52, 4 }
 0x2ad   : > { %3964 = vmatmul.bf16.gmra.mxu1 %v8158_v11  ;;  %v2252_v11 = vld [vmem:[#allocation2 + $0x94] sm:$0xf]  ;;  %v9670_v46 = vrot.slane %v5987_v13, 5 }
 0x2ae   : > { %v2493_v5 = vshrl.u32 %v2252_v11, 16  ;;  %v2496_v39 = vshll.u32 %v2252_v11, 16  ;;  %v2509_v11 = vor.u32 %v2508_v10, %v2504_v22 }
 0x2af   : > { %v2124_v57 = vpop.f32.mrf.mxu3  ;;  %v5994_v52 = vor.u32 %v5993_v18, %v9670_v46  ;;  %v5912_v18 = vld [vmem:[#allocation2 + $0x48] sm:$0xf] }
 0x2b0   : > { %v9655_v32 = vadd.f32 %v2124_v57, %v9555_v27  ;;  %v2481_v27 = vsel %vm9286_vm5, %v2476_v54, %v2480_v21  ;;  %v5966_v57 = vsel %vm9286_vm5, %v5961_v61, %v9644_v28  ;;  %v5910_v21 = vld [vmem:[#allocation2 + $0x3c] sm:$0x1]  ;;  %v9676_v47 = vpop.f32.mrf.mxu0  ;;  %v2495_v34 = vrot.slane %v2493_v5, 4  ;;  %v2256_v5 = vld [vmem:[#allocation2 + $0xa8] sm:$0xf] }
 0x2b1   : > { %v2693_v28 = vunpack.c.l.b16 %v2481_v27  ;;  %v6354_v61 = vunpack.c.l.b16 %v5966_v57  ;;  %v5997_v0 = vshll.u32 %v5910_v21, 16  ;;  %10601 = vst [vmem:[#allocation83_spill] sm:$0xff] %v9676_v47  ;;  %v2498_v40 = vrot.slane %v2496_v39, 5 }
 0x2b2   : > { %v5984_v27 = vor.u32 %v5983_v50, %v5980_v1  ;;  %v5995_v57 = vrot.slane %v5994_v52, 4  ;;  %v9678_v21 = vpop.f32.mrf.mxu1  ;;  %v6011_v1 = vshll.u32 %v5912_v18, 16  ;;  %v2526_v50 = vshll.u32 %v2256_v5, 16 }
 0x2b3   : > { %v2717_v56 = vpack.c.b16 %v2694_v49, %v2693_v28  ;;  %v6386_v13 = vpack.c.b16 %v6355_v44, %v6354_v61  ;;  %v2499_v41 = vor.u32 %v2498_v40, %v2495_v34  ;;  %v2510_v49 = vrot.slane %v2509_v11, 4  ;;  %10602 = vst [vmem:[#allocation84_spill] sm:$0xff] %v9678_v21  ;;  %v5911_v28 = vld [vmem:[#allocation2 + $0x44] sm:$0xf] }
 0x2b4   : > { %v2514_v44 = vrot.slane %v2512_v24, 5  ;;  %v5985_v10 = vrot.slane %v5984_v27, 4  ;;  %v6015_v61 = vshrl.u32 %v5912_v18, 16  ;;  %v6002_v40 = vshrl.u32 %v5911_v28, 16  ;;  %v5913_v18 = vld [vmem:[#allocation2 + $0x4c] sm:$0x1] }
 0x2b5   : > { %v6005_v11 = vshll.u32 %v5911_v28, 16  ;;  %v9694_v27 = vrot.slane %v6011_v1, 5 }
 0x2b6   : > { %v2515_v3 = vsel %vm9286_vm5, %v2510_v49, %v2514_v44  ;;  %v5990_v34 = vsel %vm9286_vm5, %v5985_v10, %v9670_v46  ;;  %v2528_v49 = vrot.slane %v2526_v50, 5  ;;  %v6004_v47 = vrot.slane %v6002_v40, 4 }
 0x2b7   : > { %v2126_v59 = vpop.f32.mrf.mxu3  ;;  %v2696_v24 = vunpack.c.l.b16 %v2515_v3  ;;  %v6007_v46 = vrot.slane %v6005_v11, 5 }
 0x2b8   : > { %v9673_v54 = vadd.f32 %v2126_v59, %v9569_v31  ;;  %v8177_v31 = vld [vmem:[#allocation12 + $0x190] sm:$0xff]  ;;  %v5999_v59 = vrot.slane %v5997_v0, 5  ;;  %v2500_v0 = vrot.slane %v2499_v41, 4  ;;  %v9687_v52 = vpop.f32.mrf.mxu0 }
 0x2b9   : > { %5347 = vmatpush.bf16.msra.mxu3 %v8177_v31  ;;  %10603 = vst [vmem:[#allocation85_spill] sm:$0xff] %v9687_v52  ;;  %v8193_v52 = vld [vmem:[#allocation2 + $0xc4] sm:$0xff] }
 0x2ba   : > { %v6000_v39 = vsel %vm9286_vm5, %v5995_v57, %v5999_v59  ;;  %v6017_v57 = vrot.slane %v6015_v61, 4  ;;  %v9698_v10 = vpop.f32.mrf.mxu1  ;;  %v6021_v61 = vshll.u32 %v5913_v18, 16 }
 0x2bb   : > { %5773 = vmatmul.bf16.gmra.mxu0 %v8192_v55  ;;  %v6357_v31 = vunpack.c.l.b16 %v6000_v39  ;;  %10605 = vst [vmem:[#allocation87_spill] sm:$0xff] %v9698_v10 }
 0x2bc   : > { %2837 = vmatmul.bf16.gmra.mxu3 %v2717_v56  ;;  %v2530_v56 = vshrl.u32 %v2256_v5, 16  ;;  %v6018_v1 = vor.u32 %v6017_v57, %v9694_v27 }
 0x2bd   : > { %6474 = vmatmul.bf16.vlgmr.msra.gmra.mxu1 %v6386_v13  ;;  %v2255_v13 = vld [vmem:[#allocation2 + $0xa4] sm:$0xf] }
 0x2be   : > { %v2520_v41 = vshll.u32 %v2255_v13, 16  ;;  %v2532_v44 = vrot.slane %v2530_v56, 4  ;;  %v6008_v56 = vor.u32 %v6007_v46, %v6004_v47 }
 0x2bf   : > { %v2798_v62 = vpop.f32.mrf.mxu3 }
 0x2c0   : > { %v9681_v55 = vadd.f32 %v2798_v62, %v9169_v7  ;;  %v2505_v7 = vsel %vm9286_vm5, %v2500_v0, %v2504_v22  ;;  %v2517_v62 = vshrl.u32 %v2255_v13, 16  ;;  %v6356_v22 = vunpack.c.l.b16 %v5990_v34  ;;  %v2257_v0 = vld [vmem:[#allocation2 + $0xac] sm:$0x1] }
 0x2c1   : > { %v2695_v5 = vunpack.c.l.b16 %v2505_v7  ;;  %v2522_v21 = vrot.slane %v2520_v41, 5  ;;  %v2533_v13 = vor.u32 %v2532_v44, %v2528_v49  ;;  %v2536_v50 = vshll.u32 %v2257_v0, 16  ;;  %v5914_v44 = vld [vmem:[#allocation2 + $0x54] sm:$0xf] }
 0x2c2   : > { %v6387_v39 = vpack.c.b16 %v6357_v31, %v6356_v22  ;;  %v2519_v3 = vrot.slane %v2517_v62, 4  ;;  %v6019_v7 = vrot.slane %v6018_v1, 4  ;;  %v6023_v34 = vrot.slane %v6021_v61, 5  ;;  %v5915_v31 = vld [vmem:[#allocation2 + $0x58] sm:$0xf]  ;;  %v9710_v46 = vpop.f32.mrf.mxu1 }
 0x2c3   : > { %v2718_v28 = vpack.c.b16 %v2696_v24, %v2695_v5  ;;  %v2534_v10 = vrot.slane %v2533_v13, 4  ;;  %v2538_v24 = vrot.slane %v2536_v50, 5  ;;  %v6009_v62 = vrot.slane %v6008_v56, 4  ;;  %10607 = vst [vmem:[#allocation89_spill] sm:$0xff] %v9710_v46 }
 0x2c4   : > { %v2523_v11 = vor.u32 %v2522_v21, %v2519_v3  ;;  %v6024_v41 = vsel %vm9286_vm5, %v6019_v7, %v6023_v34  ;;  %v6035_v18 = vshll.u32 %v5915_v31, 16  ;;  %v6039_v47 = vshrl.u32 %v5915_v31, 16  ;;  %v8221_v3 = vld [vmem:[#allocation13 + $0x30] sm:$0xff]  ;;  %v5916_v31 = vld [vmem:[#allocation2 + $0x5c] sm:$0x1] }
 0x2c5   : > { %v2539_v22 = vsel %vm9286_vm5, %v2534_v10, %v2538_v24  ;;  %v6026_v1 = vshrl.u32 %v5914_v44, 16  ;;  %v6029_v61 = vshll.u32 %v5914_v44, 16  ;;  %v6359_v50 = vunpack.c.l.b16 %v6024_v41  ;;  %6868 = vmatpush.bf16.msra.mxu2 %v8221_v3 }
 0x2c6   : > { %v2524_v5 = vrot.slane %v2523_v11, 4  ;;  %v2698_v13 = vunpack.c.l.b16 %v2539_v22  ;;  %v9717_v56 = vrot.slane %v6035_v18, 5  ;;  %v6041_v10 = vrot.slane %v6039_v47, 4 }
 0x2c7   : > { %v9696_v59 = vpop.f32.mrf.mxu3  ;;  %v6028_v41 = vrot.slane %v6026_v1, 4  ;;  %v6031_v18 = vrot.slane %v6029_v61, 5 }
 0x2c8   : > { %10604 = vst [vmem:[#allocation86_spill] sm:$0xff] %v9696_v59  ;;  %v9701_v59 = vpop.f32.mrf.mxu0 }
 0x2c9   : > { %10606 = vst [vmem:[#allocation88_spill] sm:$0xff] %v9701_v59  ;;  %v6042_v59 = vor.u32 %v6041_v10, %v9717_v56  ;;  %v5918_v10 = vld [vmem:[#allocation2 + $0x68] sm:$0xf] }
 0x2cb   : > { %5778 = vmatmul.bf16.gmra.mxu0 %v8193_v52  ;;  %v2259_v52 = vld [vmem:[#allocation2 + $0xb8] sm:$0xf] }
 0x2cc   : > { %2842 = vmatmul.bf16.gmra.mxu3 %v2718_v28  ;;  %v2550_v0 = vshll.u32 %v2259_v52, 16  ;;  %v2554_v21 = vshrl.u32 %v2259_v52, 16  ;;  %v2258_v28 = vld [vmem:[#allocation2 + $0xb4] sm:$0xf] }
 0x2cd   : > { %6479 = vmatmul.bf16.gmra.mxu1 %v6387_v39  ;;  %v6014_v39 = vsel %vm9286_vm5, %v6009_v62, %v9694_v27  ;;  %v2541_v34 = vshrl.u32 %v2258_v28, 16  ;;  %v2260_v62 = vld [vmem:[#allocation2 + $0xbc] sm:$0x1] }
 0x2ce   : > { %v2552_v11 = vrot.slane %v2550_v0, 5  ;;  %v2556_v24 = vrot.slane %v2554_v21, 4  ;;  %v6358_v27 = vunpack.c.l.b16 %v6014_v39  ;;  %v2560_v46 = vshll.u32 %v2260_v62, 16 }
 0x2cf   : > { %v2803_v40 = vpop.f32.mrf.mxu3  ;;  %v2543_v0 = vrot.slane %v2541_v34, 4  ;;  %v6032_v39 = vor.u32 %v6031_v18, %v6028_v41  ;;  %v2262_v34 = vld [vmem:[#allocation2 + $0xc8] sm:$0xf]  ;;  %v6063_v62 = vshrl.u32 %v5918_v10, 16  ;;  %v2261_v18 = vld [vmem:[#allocation2 + $0xc4] sm:$0xf] }
 0x2d0   : > { %v9704_v57 = vadd.f32 %v2803_v40, %v9227_v38  ;;  %v2529_v38 = vsel %vm9286_vm5, %v2524_v5, %v2528_v49  ;;  %v2544_v40 = vshll.u32 %v2258_v28, 16  ;;  %v9722_v44 = vpop.f32.mrf.mxu0  ;;  %v8194_v5 = vld [vmem:[#allocation2 + $0xd4] sm:$0xff]  ;;  %v6388_v47 = vpack.c.b16 %v6359_v50, %v6358_v27 }
 0x2d1   : > { %v2697_v52 = vunpack.c.l.b16 %v2529_v38  ;;  %v6045_v28 = vshll.u32 %v5916_v31, 16  ;;  %v2557_v3 = vor.u32 %v2556_v24, %v2552_v11  ;;  %v9725_v38 = vpop.f32.mrf.mxu1  ;;  %v2562_v50 = vrot.slane %v2560_v46, 5 }
 0x2d2   : > { %v2546_v21 = vrot.slane %v2544_v40, 5  ;;  %10609 = vst [vmem:[#allocation91_spill] sm:$0xff] %v9725_v38  ;;  %v6033_v40 = vrot.slane %v6032_v39, 4  ;;  %v6059_v27 = vshll.u32 %v5918_v10, 16  ;;  %v2574_v46 = vshll.u32 %v2262_v34, 16 }
 0x2d3   : > { %v2719_v22 = vpack.c.b16 %v2698_v13, %v2697_v52  ;;  %v2558_v13 = vrot.slane %v2557_v3, 4  ;;  %v5917_v52 = vld [vmem:[#allocation2 + $0x64] sm:$0xf]  ;;  %v2565_v3 = vshrl.u32 %v2261_v18, 16 }
 0x2d4   : > { %v2547_v61 = vor.u32 %v2546_v21, %v2543_v0 }
 0x2d5   : > { %v2563_v41 = vsel %vm9286_vm5, %v2558_v13, %v2562_v50  ;;  %v6065_v13 = vrot.slane %v6063_v62, 4 }
 0x2d6   : > { %v2700_v0 = vunpack.c.l.b16 %v2563_v41 }
 0x2d7   : > { %v2805_v7 = vpop.f32.mrf.mxu3 }
 0x2d8   : > { %v9720_v49 = vadd.f32 %v2805_v7, %v9243_v19  ;;  %v8176_v19 = vld [vmem:[#allocation12 + $0x188] sm:$0xff]  ;;  %v6043_v7 = vrot.slane %v6042_v59, 4  ;;  %v2548_v59 = vrot.slane %v2547_v61, 4  ;;  %v9743_v61 = vrot.slane %v6059_v27, 5 }
 0x2d9   : > { %5348 = vmatpush.bf16.msra.mxu3 %v8176_v19  ;;  %v2568_v19 = vshll.u32 %v2261_v18, 16  ;;  %v9745_v50 = vpop.f32.mrf.mxu1 }
 0x2da   : > { %10608 = vst [vmem:[#allocation90_spill] sm:$0xff] %v9720_v49  ;;  %v6047_v49 = vrot.slane %v6045_v28, 5  ;;  %v6053_v28 = vshll.u32 %v5917_v52, 16 }
 0x2db   : > { %5783 = vmatmul.bf16.gmra.mxu0 %v8194_v5  ;;  %v9732_v5 = vpop.f32.mrf.mxu0  ;;  %10610 = vst [vmem:[#allocation92_spill] sm:$0xff] %v9745_v50  ;;  %v2570_v38 = vrot.slane %v2568_v19, 5 }
 0x2dc   : > { %2847 = vmatmul.bf16.gmra.mxu3 %v2719_v22  ;;  %v6048_v24 = vsel %vm9286_vm5, %v6043_v7, %v6047_v49  ;;  %v2578_v22 = vshrl.u32 %v2262_v34, 16  ;;  %v6050_v49 = vshrl.u32 %v5917_v52, 16  ;;  %v9741_v7 = vrot.slane %v2574_v46, 5  ;;  %v2263_v34 = vld [vmem:[#allocation2 + $0xcc] sm:$0x1]  ;;  %v8195_v52 = vld [vmem:[#allocation2 + $0xe4] sm:$0xff] }
 0x2dd   : > { %6484 = vmatmul.bf16.gmra.mxu1 %v6388_v47  ;;  %v6038_v47 = vsel %vm9286_vm5, %v6033_v40, %v9717_v56  ;;  %v6361_v21 = vunpack.c.l.b16 %v6048_v24  ;;  %v5919_v40 = vld [vmem:[#allocation2 + $0x6c] sm:$0x1]  ;;  %v2567_v46 = vrot.slane %v2565_v3, 4  ;;  %v2584_v62 = vshll.u32 %v2263_v34, 16 }
 0x2de   : > { %v6360_v56 = vunpack.c.l.b16 %v6038_v47  ;;  %v6052_v24 = vrot.slane %v6050_v49, 4  ;;  %v6069_v50 = vshll.u32 %v5919_v40, 16  ;;  %v2264_v49 = vld [vmem:[#allocation2 + $0xd4] sm:$0xf] }
 0x2df   : > { %v2808_v1 = vpop.f32.mrf.mxu3  ;;  %v2571_v47 = vor.u32 %v2570_v38, %v2567_v46  ;;  %v2586_v3 = vrot.slane %v2584_v62, 5  ;;  %v2589_v40 = vshrl.u32 %v2264_v49, 16 }
 0x2e0   : > { %v9728_v31 = vadd.f32 %v2808_v1, %v9261_v4  ;;  %v2553_v4 = vsel %vm9286_vm5, %v2548_v59, %v2552_v11  ;;  %v2580_v1 = vrot.slane %v2578_v22, 4  ;;  %v6055_v59 = vrot.slane %v6053_v28, 5  ;;  %v2265_v28 = vld [vmem:[#allocation2 + $0xd8] sm:$0xf] }
 0x2e1   : > { %v2699_v10 = vunpack.c.l.b16 %v2553_v4  ;;  %v6389_v18 = vpack.c.b16 %v6361_v21, %v6360_v56  ;;  %v6066_v22 = vor.u32 %v6065_v13, %v9743_v61  ;;  %v5921_v4 = vld [vmem:[#allocation2 + $0x78] sm:$0xf]  ;;  %v5920_v56 = vld [vmem:[#allocation2 + $0x74] sm:$0xf]  ;;  %v2572_v38 = vrot.slane %v2571_v47, 4 }
 0x2e2   : > { %v2581_v27 = vor.u32 %v2580_v1, %v9741_v7  ;;  %v6083_v13 = vshll.u32 %v5921_v4, 16  ;;  %v6087_v34 = vshrl.u32 %v5921_v4, 16  ;;  %v6074_v46 = vshrl.u32 %v5920_v56, 16 }
 0x2e3   : > { %v2720_v41 = vpack.c.b16 %v2700_v0, %v2699_v10  ;;  %v6067_v19 = vrot.slane %v6066_v22, 4  ;;  %v6071_v10 = vrot.slane %v6069_v50, 5  ;;  %v5922_v22 = vld [vmem:[#allocation2 + $0x7c] sm:$0x1] }
 0x2e4   : > { %v2582_v21 = vrot.slane %v2581_v27, 4  ;;  %v2577_v27 = vsel %vm9286_vm5, %v2572_v38, %v9741_v7  ;;  %v9769_v4 = vrot.slane %v6083_v13, 5  ;;  %v6089_v47 = vrot.slane %v6087_v34, 4 }
 0x2e5   : > { %v6072_v50 = vsel %vm9286_vm5, %v6067_v19, %v6071_v10  ;;  %v2266_v10 = vld [vmem:[#allocation2 + $0xdc] sm:$0x1]  ;;  %v6076_v38 = vrot.slane %v6074_v46, 4  ;;  %v2701_v13 = vunpack.c.l.b16 %v2577_v27 }
 0x2e6   : > { %v6363_v19 = vunpack.c.l.b16 %v6072_v50  ;;  %v6090_v34 = vor.u32 %v6089_v47, %v9769_v4 }
 0x2e7   : > { %v2810_v39 = vpop.f32.mrf.mxu3 }
 0x2e8   : > { %v9748_v11 = vadd.f32 %v2810_v39, %v9277_v48  ;;  %v9752_v48 = vpop.f32.mrf.mxu0  ;;  %v6056_v39 = vor.u32 %v6055_v59, %v6052_v24  ;;  %v2587_v59 = vsel %vm9286_vm5, %v2582_v21, %v2586_v3  ;;  %v8220_v21 = vld [vmem:[#allocation13 + $0x28] sm:$0xff] }
 0x2e9   : > { %v2702_v3 = vunpack.c.l.b16 %v2587_v59  ;;  %6869 = vmatpush.bf16.msra.mxu2 %v8220_v21 }
 0x2ea   : > { %10611 = vst [vmem:[#allocation93_spill] sm:$0xff] %v9748_v11  ;;  %v9757_v11 = vpop.f32.mrf.mxu1  ;;  %v6057_v24 = vrot.slane %v6056_v39, 4  ;;  %v2591_v39 = vrot.slane %v2589_v40, 4  ;;  %v6093_v40 = vshll.u32 %v5922_v22, 16  ;;  %v5924_v22 = vld [vmem:[#allocation2 + $0x88] sm:$0xf] }
 0x2eb   : > { %5788 = vmatmul.bf16.gmra.mxu0 %v8195_v52  ;;  %v2592_v52 = vshll.u32 %v2264_v49, 16  ;;  %10613 = vst [vmem:[#allocation95_spill] sm:$0xff] %v9757_v11  ;;  %v2721_v59 = vpack.c.b16 %v2702_v3, %v2701_v13  ;;  %v6107_v13 = vshll.u32 %v5924_v22, 16 }
 0x2ec   : > { %2852 = vmatmul.bf16.gmra.mxu3 %v2720_v41  ;;  %v2598_v41 = vshll.u32 %v2265_v28, 16  ;;  %v6062_v62 = vsel %vm9286_vm5, %v6057_v24, %v9743_v61  ;;  %v2608_v24 = vshll.u32 %v2266_v10, 16  ;;  %v5923_v10 = vld [vmem:[#allocation2 + $0x84] sm:$0xf] }
 0x2ed   : > { %6489 = vmatmul.bf16.gmra.mxu1 %v6389_v18  ;;  %v2602_v18 = vshrl.u32 %v2265_v28, 16  ;;  %v2594_v49 = vrot.slane %v2592_v52, 5  ;;  %v6362_v7 = vunpack.c.l.b16 %v6062_v62  ;;  %v8196_v52 = vld [vmem:[#allocation2 + $0xf4] sm:$0xff]  ;;  %v6095_v62 = vrot.slane %v6093_v40, 5 }
 0x2ee   : > { %v2600_v28 = vrot.slane %v2598_v41, 5  ;;  %v2610_v21 = vrot.slane %v2608_v24, 5  ;;  %v6101_v24 = vshll.u32 %v5923_v10, 16 }
 0x2ef   : > { %v2813_v0 = vpop.f32.mrf.mxu3  ;;  %v2595_v41 = vor.u32 %v2594_v49, %v2591_v39  ;;  %v6390_v50 = vpack.c.b16 %v6363_v19, %v6362_v7  ;;  %v2267_v39 = vld [vmem:[#allocation2 + $0xe4] sm:$0xf]  ;;  %v2268_v49 = vld [vmem:[#allocation2 + $0xe8] sm:$0xf] }
 0x2f0   : > { %v9755_v1 = vadd.f32 %v2813_v0, %v9299_v14  ;;  %v6077_v14 = vshll.u32 %v5920_v56, 16  ;;  %v2604_v0 = vrot.slane %v2602_v18, 4  ;;  %v9771_v56 = vpop.f32.mrf.mxu0  ;;  %v2613_v40 = vshrl.u32 %v2267_v39, 16 }
 0x2f1   : > { %10614 = vst [vmem:[#allocation96_spill] sm:$0xff] %v9771_v56 }
 0x2f2   : > { %10612 = vst [vmem:[#allocation94_spill] sm:$0xff] %v9755_v1  ;;  %v6079_v1 = vrot.slane %v6077_v14, 5  ;;  %v2605_v18 = vor.u32 %v2604_v0, %v2600_v28  ;;  %v9777_v56 = vpop.f32.mrf.mxu1  ;;  %v6091_v14 = vrot.slane %v6090_v34, 4  ;;  %v6111_v34 = vshrl.u32 %v5924_v22, 16 }
 0x2f3   : > { %10616 = vst [vmem:[#allocation98_spill] sm:$0xff] %v9777_v56  ;;  %v2269_v56 = vld [vmem:[#allocation2 + $0xec] sm:$0x1] }
 0x2f4   : > { %v6080_v46 = vor.u32 %v6079_v1, %v6076_v38  ;;  %v2606_v27 = vrot.slane %v2605_v18, 4  ;;  %v6096_v19 = vsel %vm9286_vm5, %v6091_v14, %v6095_v62  ;;  %v6098_v18 = vshrl.u32 %v5923_v10, 16 }
 0x2f5   : > { %v6109_v62 = vrot.slane %v6107_v13, 5 }
 0x2f6   : > { %v6081_v3 = vrot.slane %v6080_v46, 4  ;;  %v2611_v38 = vsel %vm9286_vm5, %v2606_v27, %v2610_v21  ;;  %v6100_v10 = vrot.slane %v6098_v18, 4 }
 0x2f7   : > { %v2815_v11 = vpop.f32.mrf.mxu3  ;;  %v2704_v14 = vunpack.c.l.b16 %v2611_v38 }
 0x2f8   : > { %v9774_v61 = vadd.f32 %v2815_v11, %v9307_v9  ;;  %v8175_v9 = vld [vmem:[#allocation12 + $0x180] sm:$0xff]  ;;  %v2596_v11 = vrot.slane %v2595_v41, 4  ;;  %v9784_v1 = vpop.f32.mrf.mxu0  ;;  %v2622_v41 = vshll.u32 %v2268_v49, 16 }
 0x2f9   : > { %5349 = vmatpush.bf16.msra.mxu3 %v8175_v9 }
 0x2fa   : > { %10615 = vst [vmem:[#allocation97_spill] sm:$0xff] %v9774_v61  ;;  %v2601_v7 = vsel %vm9286_vm5, %v2596_v11, %v2600_v28  ;;  %v6113_v28 = vrot.slane %v6111_v34, 4  ;;  %v9793_v9 = vpop.f32.mrf.mxu1  ;;  %v2615_v11 = vrot.slane %v2613_v40, 4  ;;  %v2624_v21 = vrot.slane %v2622_v41, 5 }
 0x2fb   : > { %5793 = vmatmul.bf16.gmra.mxu0 %v8196_v52  ;;  %v2616_v52 = vshll.u32 %v2267_v39, 16  ;;  %v2703_v46 = vunpack.c.l.b16 %v2601_v7  ;;  %10618 = vst [vmem:[#allocation100_spill] sm:$0xff] %v9793_v9  ;;  %v2632_v40 = vshll.u32 %v2269_v56, 16  ;;  %v2270_v56 = vld [vmem:[#allocation2 + $0xf4] sm:$0xf] }
 0x2fc   : > { %2857 = vmatmul.bf16.gmra.mxu3 %v2721_v59  ;;  %v6086_v59 = vsel %vm9286_vm5, %v6081_v3, %v9769_v4  ;;  %v8197_v4 = vld [vmem:[#allocation2 + $0x104] sm:$0xff] }
 0x2fd   : > { %6494 = vmatmul.bf16.gmra.mxu1 %v6390_v50  ;;  %v6365_v50 = vunpack.c.l.b16 %v6096_v19  ;;  %v2618_v27 = vrot.slane %v2616_v52, 5  ;;  %v6114_v19 = vor.u32 %v6113_v28, %v6109_v62  ;;  %v2722_v38 = vpack.c.b16 %v2704_v14, %v2703_v46  ;;  %v2271_v14 = vld [vmem:[#allocation2 + $0xf8] sm:$0xf] }
 0x2ff   : > { %v2818_v47 = vpop.f32.mrf.mxu3  ;;  %v2619_v13 = vor.u32 %v2618_v27, %v2615_v11 }
 0x300   : > { %v9780_v0 = vadd.f32 %v2818_v47, %v9325_v45  ;;  %v2626_v45 = vshrl.u32 %v2268_v49, 16  ;;  %v5925_v47 = vld [vmem:[#allocation2 + $0x8c] sm:$0x1]  ;;  %v6364_v49 = vunpack.c.l.b16 %v6086_v59  ;;  %v9798_v52 = vpop.f32.mrf.mxu0 }
 0x301   : > { %v6117_v7 = vshll.u32 %v5925_v47, 16  ;;  %v5926_v47 = vld [vmem:[#allocation2 + $0x94] sm:$0xf] }
 0x302   : > { %10617 = vst [vmem:[#allocation99_spill] sm:$0xff] %v9780_v0  ;;  %v2628_v22 = vrot.slane %v2626_v45, 4  ;;  %v6103_v0 = vrot.slane %v6101_v24, 5  ;;  %v6391_v3 = vpack.c.b16 %v6365_v50, %v6364_v49  ;;  %v6115_v45 = vrot.slane %v6114_v19, 4  ;;  %v5927_v50 = vld [vmem:[#allocation2 + $0x98] sm:$0xf]  ;;  %v9800_v28 = vpop.f32.mrf.mxu1 }
 0x303   : > { %v6119_v18 = vrot.slane %v6117_v7, 5  ;;  %v2620_v24 = vrot.slane %v2619_v13, 4  ;;  %10619 = vst [vmem:[#allocation101_spill] sm:$0xff] %v9800_v28  ;;  %v6131_v49 = vshll.u32 %v5927_v50, 16  ;;  %v2646_v19 = vshll.u32 %v2271_v14, 16 }
 0x304   : > { %v2629_v34 = vor.u32 %v2628_v22, %v2624_v21  ;;  %v6104_v41 = vor.u32 %v6103_v0, %v6100_v10  ;;  %v6135_v10 = vshrl.u32 %v5927_v50, 16  ;;  %v2650_v7 = vshrl.u32 %v2271_v14, 16 }
 0x305   : > { %v6120_v11 = vsel %vm9286_vm5, %v6115_v45, %v6119_v18  ;;  %v2625_v27 = vsel %vm9286_vm5, %v2620_v24, %v2624_v21  ;;  %v6125_v13 = vshll.u32 %v5926_v47, 16 }
 0x306   : > { %v2630_v59 = vrot.slane %v2629_v34, 4  ;;  %v6105_v9 = vrot.slane %v6104_v41, 4  ;;  %v2705_v34 = vunpack.c.l.b16 %v2625_v27  ;;  %v6133_v41 = vrot.slane %v6131_v49, 5 }
 0x307   : > { %v2820_v39 = vpop.f32.mrf.mxu3  ;;  %v6137_v21 = vrot.slane %v6135_v10, 4 }
 0x308   : > { %v9796_v61 = vadd.f32 %v2820_v39, %v9330_v42  ;;  %v2634_v42 = vrot.slane %v2632_v40, 5  ;;  %v6110_v0 = vsel %vm9286_vm5, %v6105_v9, %v6109_v62  ;;  %v6367_v62 = vunpack.c.l.b16 %v6120_v11 }
 0x309   : > { %v6122_v9 = vshrl.u32 %v5926_v47, 16  ;;  %v6127_v47 = vrot.slane %v6125_v13, 5  ;;  %v6138_v27 = vor.u32 %v6137_v21, %v6133_v41  ;;  %v4815_v21 = vld [vmem:[#allocation2 + $0x28] sm:$0xf] }
 0x30a   : > { %v2635_v22 = vsel %vm9286_vm5, %v2630_v59, %v2634_v42  ;;  %v2648_v59 = vrot.slane %v2646_v19, 5  ;;  %v2652_v42 = vrot.slane %v2650_v7, 4 }
 0x30b   : > { %5798 = vmatmul.bf16.gmra.mxu0 %v8197_v4  ;;  %v8219_v4 = vld [vmem:[#allocation13 + $0x20] sm:$0xff]  ;;  %v2706_v40 = vunpack.c.l.b16 %v2635_v22 }
 0x30c   : > { %2862 = vmatmul.bf16.gmra.mxu3 %v2722_v38  ;;  %6870 = vmatpush.bf16.msra.mxu2 %v8219_v4  ;;  %v6366_v38 = vunpack.c.l.b16 %v6110_v0  ;;  %v6124_v4 = vrot.slane %v6122_v9, 4  ;;  %v9816_v0 = vpop.f32.mrf.mxu1  ;;  %v2653_v10 = vor.u32 %v2652_v42, %v2648_v59 }
 0x30d   : > { %6499 = vmatmul.bf16.gmra.mxu1 %v6391_v3  ;;  %v2640_v3 = vshll.u32 %v2270_v56, 16  ;;  %10621 = vst [vmem:[#allocation103_spill] sm:$0xff] %v9816_v0  ;;  %v2723_v11 = vpack.c.b16 %v2706_v40, %v2705_v34 }
 0x30e   : > { %v6392_v14 = vpack.c.b16 %v6367_v62, %v6366_v38  ;;  %v5930_v62 = vld [vmem:[#allocation2 + $0xa8] sm:$0xf] }
 0x30f   : > { %v2823_v39 = vpop.f32.mrf.mxu3  ;;  %v2642_v24 = vrot.slane %v2640_v3, 5  ;;  %v6139_v3 = vrot.slane %v6138_v27, 4 }
 0x310   : > { %v9803_v46 = vadd.f32 %v2823_v39, %v9349_v30  ;;  %v2637_v30 = vshrl.u32 %v2270_v56, 16  ;;  %v5928_v39 = vld [vmem:[#allocation2 + $0x9c] sm:$0x1] }
 0x311   : > { %v2272_v56 = vld [vmem:[#allocation2 + $0xfc] sm:$0x1]  ;;  %v6141_v22 = vshll.u32 %v5928_v39, 16  ;;  %v4814_v39 = vld [vmem:[#allocation2 + $0x24] sm:$0xf] }
 0x312   : > { %v2639_v18 = vrot.slane %v2637_v30, 4  ;;  %v2656_v28 = vshll.u32 %v2272_v56, 16  ;;  %v6128_v30 = vor.u32 %v6127_v47, %v6124_v4 }
 0x313   : > { %v6143_v19 = vrot.slane %v6141_v22, 5 }
 0x314   : > { %v2643_v49 = vor.u32 %v2642_v24, %v2639_v18  ;;  %v6129_v9 = vrot.slane %v6128_v30, 4  ;;  %v6155_v18 = vshll.u32 %v5930_v62, 16  ;;  %v6159_v24 = vshrl.u32 %v5930_v62, 16  ;;  %v9827_v42 = vpop.f32.mrf.mxu1 }
 0x315   : > { %v6144_v13 = vsel %vm9286_vm5, %v6139_v3, %v6143_v19  ;;  %10622 = vst [vmem:[#allocation104_spill] sm:$0xff] %v9827_v42  ;;  %v4867_v30 = vshrl.u32 %v4814_v39, 16  ;;  %v5931_v3 = vld [vmem:[#allocation2 + $0xac] sm:$0x1] }
 0x316   : > { %v6369_v4 = vunpack.c.l.b16 %v6144_v13  ;;  %v6157_v22 = vrot.slane %v6155_v18, 5  ;;  %v6165_v13 = vshll.u32 %v5931_v3, 16  ;;  %v4818_v3 = vld [vmem:[#allocation2 + $0x38] sm:$0xf] }
 0x317   : > { %v2825_v45 = vpop.f32.mrf.mxu3 }
 0x318   : > { %v9814_v50 = vadd.f32 %v2825_v45, %v9356_v15  ;;  %v2644_v15 = vrot.slane %v2643_v49, 4  ;;  %v2654_v45 = vrot.slane %v2653_v10, 4  ;;  %v6161_v49 = vrot.slane %v6159_v24, 4 }
 0x31a   : > { %10620 = vst [vmem:[#allocation102_spill] sm:$0xff] %v9814_v50  ;;  %v2658_v50 = vrot.slane %v2656_v28, 5  ;;  %v2649_v34 = vsel %vm9286_vm5, %v2644_v15, %v2648_v59  ;;  %v5929_v28 = vld [vmem:[#allocation2 + $0xa4] sm:$0xf]  ;;  %v4813_v15 = vld [vmem:[#allocation2 + $0x20] sm:$0x8] }
 0x31b   : > { %v2707_v56 = vunpack.c.l.b16 %v2649_v34  ;;  %v6146_v27 = vshrl.u32 %v5929_v28, 16  ;;  %v6149_v59 = vshll.u32 %v5929_v28, 16  ;;  %v4869_v34 = vrot.slane %v4867_v30, 7 }
 0x31c   : > { %2867 = vmatmul.bf16.gmra.mxu3 %v2723_v11  ;;  %v2659_v40 = vsel %vm9286_vm5, %v2654_v45, %v2658_v50  ;;  %v4876_v11 = vshrl.u32 %v4815_v21, 16  ;;  %v4862_v18 = vshrl.u32 %v4813_v15, 16  ;;  %v9834_v24 = vpop.f32.mrf.mxu1 }
 0x31d   : > { %6504 = vmatmul.bf16.gmra.mxu1 %v6392_v14  ;;  %v2708_v14 = vunpack.c.l.b16 %v2659_v40  ;;  %v6148_v45 = vrot.slane %v6146_v27, 4  ;;  %v6151_v62 = vrot.slane %v6149_v59, 5  ;;  %v4879_v40 = vshll.u32 %v4815_v21, 16  ;;  %10623 = vst [vmem:[#allocation105_spill] sm:$0xff] %v9834_v24  ;;  %v8218_v21 = vld [vmem:[#allocation13 + $0x18] sm:$0xff] }
 0x31e   : > { %v7852_v27 = vrot.slane %v4862_v18, 11  ;;  %6871 = vmatpush.bf16.msra.mxu2 %v8218_v21 }
 0x31f   : > { %v2828_v7 = vpop.f32.mrf.mxu3  ;;  %v2724_v19 = vpack.c.b16 %v2708_v14, %v2707_v56  ;;  %v6167_v56 = vrot.slane %v6165_v13, 5 }
 0x320   : > { %v9819_v38 = vadd.f32 %v2828_v7, %v9382_v17  ;;  %v6134_v17 = vsel %vm9286_vm5, %v6129_v9, %v6133_v41  ;;  %v4878_v41 = vrot.slane %v4876_v11, 7  ;;  %v6162_v9 = vor.u32 %v6161_v49, %v6157_v22  ;;  %v5933_v11 = vld [vmem:[#allocation2 + $0xb8] sm:$0xf] }
 0x321   : > { %v6368_v10 = vunpack.c.l.b16 %v6134_v17  ;;  %v4870_v17 = vshll.u32 %v4814_v39, 16  ;;  %v6179_v39 = vshll.u32 %v5933_v11, 16 }
 0x322   : > { %v6163_v42 = vrot.slane %v6162_v9, 4  ;;  %v4898_v9 = vshrl.u32 %v4818_v3, 16 }
 0x323   : > { %v6393_v7 = vpack.c.b16 %v6369_v4, %v6368_v10  ;;  %v4874_v4 = vrot.slane %v4869_v34, 4  ;;  %v4872_v59 = vor.u32 %v4870_v17, %v4869_v34  ;;  %v6181_v18 = vrot.slane %v6179_v39, 5 }
 0x324   : > { %v6168_v30 = vsel %vm9286_vm5, %v6163_v42, %v6167_v56 }
 0x327   : > { %v2830_v47 = vpop.f32.mrf.mxu3 }
 0x328   : > { %v9832_v50 = vadd.f32 %v2830_v47, %v9389_v6  ;;  %v4881_v6 = vor.u32 %v4879_v40, %v4878_v41  ;;  %v6152_v47 = vor.u32 %v6151_v62, %v6148_v45  ;;  %v4817_v41 = vld [vmem:[#allocation2 + $0x34] sm:$0xf]  ;;  %v6371_v62 = vunpack.c.l.b16 %v6168_v30 }
 0x329   : > { %v4889_v56 = vshrl.u32 %v4817_v41, 16 }
 0x32a   : > { %v4882_v49 = vsel %vm9035_vm2, %v4874_v4, %v4881_v6  ;;  %v6153_v10 = vrot.slane %v6152_v47, 4  ;;  %v9847_v6 = vpop.f32.mrf.mxu1  ;;  %v5934_v4 = vld [vmem:[#allocation2 + $0xbc] sm:$0x1] }
 0x32b   : > { %v5231_v45 = vunpack.c.l.b16 %v4882_v49  ;;  %10624 = vst [vmem:[#allocation106_spill] sm:$0xff] %v9847_v6  ;;  %v6189_v30 = vshll.u32 %v5934_v4, 16  ;;  %v4891_v39 = vrot.slane %v4889_v56, 7  ;;  %v5935_v56 = vld [vmem:[#allocation2 + $0xc4] sm:$0xf] }
 0x32c   : > { %2872 = vmatmul.bf16.gmra.mxu3 %v2724_v19  ;;  %v6183_v19 = vshrl.u32 %v5933_v11, 16  ;;  %v6158_v15 = vsel %vm9286_vm5, %v6153_v10, %v6157_v22 }
 0x32d   : > { %6509 = vmatmul.bf16.gmra.mxu1 %v6393_v7  ;;  %v5932_v7 = vld [vmem:[#allocation2 + $0xb4] sm:$0xf]  ;;  %v6370_v47 = vunpack.c.l.b16 %v6158_v15  ;;  %v6191_v24 = vrot.slane %v6189_v30, 5 }
 0x32e   : > { %v6170_v34 = vshrl.u32 %v5932_v7, 16  ;;  %v6173_v40 = vshll.u32 %v5932_v7, 16  ;;  %v6185_v42 = vrot.slane %v6183_v19, 4  ;;  %v4901_v19 = vshll.u32 %v4818_v3, 16  ;;  %v4821_v3 = vld [vmem:[#allocation2 + $0x48] sm:$0xf] }
 0x32f   : > { %v2833_v28 = vpop.f32.mrf.mxu3  ;;  %v6394_v22 = vpack.c.b16 %v6371_v62, %v6370_v47  ;;  %v4896_v62 = vrot.slane %v4891_v39, 4 }
 0x330   : > { %v9837_v14 = vadd.f32 %v2833_v28, %v9407_v51  ;;  %v4873_v51 = vsel %vm9035_vm2, %v7852_v27, %v4872_v59  ;;  %v4816_v27 = vld [vmem:[#allocation2 + $0x30] sm:$0x8]  ;;  %v4900_v59 = vrot.slane %v4898_v9, 7  ;;  %v6172_v49 = vrot.slane %v6170_v34, 4  ;;  %v5936_v9 = vld [vmem:[#allocation2 + $0xc8] sm:$0xf] }
 0x331   : > { %v5230_v17 = vunpack.c.l.b16 %v4873_v51  ;;  %v6175_v21 = vrot.slane %v6173_v40, 5  ;;  %v6186_v10 = vor.u32 %v6185_v42, %v6181_v18  ;;  %v4884_v7 = vshrl.u32 %v4816_v27, 16  ;;  %v4820_v27 = vld [vmem:[#allocation2 + $0x44] sm:$0xf] }
 0x332   : > { %v4903_v6 = vor.u32 %v4901_v19, %v4900_v59  ;;  %v9855_v42 = vpop.f32.mrf.mxu1  ;;  %v6203_v4 = vshll.u32 %v5936_v9, 16  ;;  %v4920_v59 = vshrl.u32 %v4821_v3, 16 }
 0x333   : > { %v5262_v11 = vpack.c.b16 %v5231_v45, %v5230_v17  ;;  %v6176_v51 = vor.u32 %v6175_v21, %v6172_v49  ;;  %v6187_v15 = vrot.slane %v6186_v10, 4  ;;  %v7853_v34 = vrot.slane %v4884_v7, 11  ;;  %10625 = vst [vmem:[#allocation107_spill] sm:$0xff] %v9855_v42 }
 0x334   : > { %v4904_v17 = vsel %vm9035_vm2, %v4896_v62, %v4903_v6  ;;  %v6194_v10 = vshrl.u32 %v5935_v56, 16  ;;  %v6197_v6 = vshll.u32 %v5935_v56, 16 }
 0x335   : > { %v6177_v47 = vrot.slane %v6176_v51, 4  ;;  %v5233_v49 = vunpack.c.l.b16 %v4904_v17  ;;  %v5937_v51 = vld [vmem:[#allocation2 + $0xcc] sm:$0x1] }
 0x337   : > { %v2835_v13 = vpop.f32.mrf.mxu3 }
 0x338   : > { %v9850_v28 = vadd.f32 %v2835_v13, %v9412_v58  ;;  %v4892_v13 = vshll.u32 %v4817_v41, 16  ;;  %v6192_v41 = vsel %vm9286_vm5, %v6187_v15, %v6191_v24  ;;  %v4922_v15 = vrot.slane %v4920_v59, 7 }
 0x339   : > { %v6373_v21 = vunpack.c.l.b16 %v6192_v41 }
 0x33a   : > { %v4894_v40 = vor.u32 %v4892_v13, %v4891_v39  ;;  %v6205_v39 = vrot.slane %v6203_v4, 5  ;;  %v4911_v13 = vshrl.u32 %v4820_v27, 16  ;;  %v9868_v41 = vpop.f32.mrf.mxu1  ;;  %v4923_v4 = vshll.u32 %v4821_v3, 16 }
 0x33b   : > { %10626 = vst [vmem:[#allocation108_spill] sm:$0xff] %v9868_v41 }
 0x33c   : > { %5350 = vmatmul.bf16.vlgmr.msra.gmra.mxu3 %v5262_v11  ;;  %v6207_v11 = vshrl.u32 %v5936_v9, 16  ;;  %v4913_v56 = vrot.slane %v4911_v13, 7 }
 0x33d   : > { %6514 = vmatmul.bf16.gmra.mxu1 %v6394_v22  ;;  %v6182_v22 = vsel %vm9286_vm5, %v6177_v47, %v6181_v18  ;;  %v4819_v18 = vld [vmem:[#allocation2 + $0x40] sm:$0x8]  ;;  %v6213_v47 = vshll.u32 %v5937_v51, 16  ;;  %v8217_v51 = vld [vmem:[#allocation13 + $0x10] sm:$0xff] }
 0x33e   : > { %v6209_v19 = vrot.slane %v6207_v11, 4  ;;  %v4925_v11 = vor.u32 %v4923_v4, %v4922_v15  ;;  %6872 = vmatpush.bf16.msra.mxu2 %v8217_v51 }
 0x33f   : > { %v2838_v58 = vpop.f32.mrf.mxu3  ;;  %v6215_v59 = vrot.slane %v6213_v47, 5 }
 0x340   : > { %v9853_v45 = vadd.f32 %v2838_v58, %v9425_v16  ;;  %v4895_v16 = vsel %vm9035_vm2, %v7853_v34, %v4894_v40  ;;  %v6372_v58 = vunpack.c.l.b16 %v6182_v22  ;;  %v6196_v34 = vrot.slane %v6194_v10, 4 }
 0x341   : > { %v5232_v7 = vunpack.c.l.b16 %v4895_v16  ;;  %v6199_v40 = vrot.slane %v6197_v6, 5  ;;  %v6210_v17 = vor.u32 %v6209_v19, %v6205_v39  ;;  %v4918_v10 = vrot.slane %v4913_v56, 4  ;;  %v5939_v6 = vld [vmem:[#allocation2 + $0xd8] sm:$0xf] }
 0x342   : > { %v6395_v9 = vpack.c.b16 %v6373_v21, %v6372_v58 }
 0x343   : > { %v5263_v62 = vpack.c.b16 %v5233_v49, %v5232_v7  ;;  %v6200_v16 = vor.u32 %v6199_v40, %v6196_v34  ;;  %v6211_v42 = vrot.slane %v6210_v17, 4  ;;  %v5938_v49 = vld [vmem:[#allocation2 + $0xd4] sm:$0xf]  ;;  %v4926_v58 = vsel %vm9035_vm2, %v4918_v10, %v4925_v11  ;;  %v9881_v17 = vpop.f32.mrf.mxu1 }
 0x344   : > { %v6218_v3 = vshrl.u32 %v5938_v49, 16  ;;  %v4823_v40 = vld [vmem:[#allocation2 + $0x54] sm:$0xf]  ;;  %10627 = vst [vmem:[#allocation109_spill] sm:$0xff] %v9881_v17  ;;  %v5235_v47 = vunpack.c.l.b16 %v4926_v58  ;;  %v5941_v17 = vld [vmem:[#allocation2 + $0xe4] sm:$0xf] }
 0x345   : > { %v6201_v13 = vrot.slane %v6200_v16, 4  ;;  %v6216_v15 = vsel %vm9286_vm5, %v6211_v42, %v6215_v59  ;;  %v4933_v10 = vshrl.u32 %v4823_v40, 16 }
 0x346   : > { %v6220_v11 = vrot.slane %v6218_v3, 4 }
 0x347   : > { %v2840_v30 = vpop.f32.mrf.mxu3  ;;  %v6206_v34 = vsel %vm9286_vm5, %v6201_v13, %v6205_v39 }
 0x348   : > { %v9866_v24 = vadd.f32 %v2840_v30, %v9432_v36  ;;  %v4906_v36 = vshrl.u32 %v4819_v18, 16  ;;  %v4914_v30 = vshll.u32 %v4820_v27, 16  ;;  %v4824_v27 = vld [vmem:[#allocation2 + $0x58] sm:$0xf]  ;;  %v6231_v18 = vshrl.u32 %v5939_v6, 16 }
 0x349   : > { %v4942_v4 = vshrl.u32 %v4824_v27, 16 }
 0x34a   : > { %v7854_v19 = vrot.slane %v4906_v36, 11  ;;  %v4916_v7 = vor.u32 %v4914_v30, %v4913_v56  ;;  %v6375_v56 = vunpack.c.l.b16 %v6216_v15 }
 0x34b   : > { %v4944_v13 = vrot.slane %v4942_v4, 7 }
 0x34c   : > { %5355 = vmatmul.bf16.gmra.mxu3 %v5263_v62  ;;  %v6221_v62 = vshll.u32 %v5938_v49, 16  ;;  %v6374_v49 = vunpack.c.l.b16 %v6206_v34 }
 0x34d   : > { %6519 = vmatmul.bf16.gmra.mxu1 %v6395_v9  ;;  %v6227_v9 = vshll.u32 %v5939_v6, 16  ;;  %v5940_v6 = vld [vmem:[#allocation2 + $0xdc] sm:$0x1] }
 0x34e   : > { %v6223_v42 = vrot.slane %v6221_v62, 5  ;;  %v6237_v15 = vshll.u32 %v5940_v6, 16  ;;  %v4935_v62 = vrot.slane %v4933_v10, 7 }
 0x34f   : > { %v2843_v22 = vpop.f32.mrf.mxu3  ;;  %v6229_v16 = vrot.slane %v6227_v9, 5  ;;  %v4945_v9 = vshll.u32 %v4824_v27, 16 }
 0x350   : > { %v9871_v21 = vadd.f32 %v2843_v22, %v9442_v33  ;;  %v4917_v33 = vsel %vm9035_vm2, %v7854_v19, %v4916_v7  ;;  %v6233_v22 = vrot.slane %v6231_v18, 4  ;;  %v4822_v19 = vld [vmem:[#allocation2 + $0x50] sm:$0x8]  ;;  %v6396_v7 = vpack.c.b16 %v6375_v56, %v6374_v49 }
 0x351   : > { %v5234_v59 = vunpack.c.l.b16 %v4917_v33  ;;  %v6224_v51 = vor.u32 %v6223_v42, %v6220_v11  ;;  %v4928_v3 = vshrl.u32 %v4822_v19, 16  ;;  %v4936_v18 = vshll.u32 %v4823_v40, 16  ;;  %v4827_v42 = vld [vmem:[#allocation2 + $0x68] sm:$0xf]  ;;  %v4826_v19 = vld [vmem:[#allocation2 + $0x64] sm:$0xf] }
 0x352   : > { %v6234_v58 = vor.u32 %v6233_v22, %v6229_v16  ;;  %v4947_v33 = vor.u32 %v4945_v9, %v4944_v13  ;;  %v6239_v0 = vrot.slane %v6237_v15, 5  ;;  %v4940_v11 = vrot.slane %v4935_v62, 4 }
 0x353   : > { %v5264_v39 = vpack.c.b16 %v5235_v47, %v5234_v59  ;;  %v6225_v34 = vrot.slane %v6224_v51, 4  ;;  %v7855_v56 = vrot.slane %v4928_v3, 11  ;;  %v4938_v4 = vor.u32 %v4936_v18, %v4935_v62  ;;  %v5943_v62 = vld [vmem:[#allocation2 + $0xec] sm:$0x1] }
 0x354   : > { %v6235_v41 = vrot.slane %v6234_v58, 4  ;;  %v6242_v22 = vshrl.u32 %v5941_v17, 16  ;;  %v6245_v59 = vshll.u32 %v5941_v17, 16  ;;  %v4948_v49 = vsel %vm9035_vm2, %v4940_v11, %v4947_v33 }
 0x355   : > { %v6230_v10 = vsel %vm9286_vm5, %v6225_v34, %v6229_v16  ;;  %v5237_v58 = vunpack.c.l.b16 %v4948_v49  ;;  %v4955_v18 = vshrl.u32 %v4826_v19, 16  ;;  %v6261_v34 = vshll.u32 %v5943_v62, 16 }
 0x356   : > { %v6240_v6 = vsel %vm9286_vm5, %v6235_v41, %v6239_v0  ;;  %v6247_v13 = vrot.slane %v6245_v59, 5  ;;  %v6376_v15 = vunpack.c.l.b16 %v6230_v10  ;;  %v4825_v0 = vld [vmem:[#allocation2 + $0x60] sm:$0x8] }
 0x357   : > { %v2845_v36 = vpop.f32.mrf.mxu3  ;;  %v6377_v3 = vunpack.c.l.b16 %v6240_v6  ;;  %v4957_v59 = vrot.slane %v4955_v18, 7  ;;  %v6263_v6 = vrot.slane %v6261_v34, 5  ;;  %v4830_v18 = vld [vmem:[#allocation2 + $0x78] sm:$0xf] }
 0x358   : > { %v9884_v30 = vadd.f32 %v2845_v36, %v9453_v37  ;;  %v5942_v37 = vld [vmem:[#allocation2 + $0xe8] sm:$0xf] }
 0x359   : > { %v6251_v27 = vshll.u32 %v5942_v37, 16  ;;  %v6255_v40 = vshrl.u32 %v5942_v37, 16  ;;  %v6397_v11 = vpack.c.b16 %v6377_v3, %v6376_v15 }
 0x35a   : > { %10628 = vst [vmem:[#allocation110_spill] sm:$0xff] %v9884_v30  ;;  %v9886_v30 = vpop.f32.mrf.mxu1 }
 0x35b   : > { %10629 = vst [vmem:[#allocation111_spill] sm:$0xff] %v9886_v30  ;;  %v6253_v51 = vrot.slane %v6251_v27, 5  ;;  %v6257_v17 = vrot.slane %v6255_v40, 4  ;;  %v4967_v27 = vshll.u32 %v4827_v42, 16  ;;  %v4950_v40 = vshrl.u32 %v4825_v0, 16 }
 0x35c   : > { %5360 = vmatmul.bf16.gmra.mxu3 %v5264_v39  ;;  %v4964_v39 = vshrl.u32 %v4827_v42, 16 }
 0x35d   : > { %6524 = vmatmul.bf16.gmra.mxu1 %v6396_v7  ;;  %v6244_v7 = vrot.slane %v6242_v22, 4  ;;  %v6258_v33 = vor.u32 %v6257_v17, %v6253_v51  ;;  %v9904_v22 = vpop.f32.mrf.mxu2  ;;  %v5945_v17 = vld [vmem:[#allocation2 + $0xf8] sm:$0xf] }
 0x35e   : > { %v4966_v41 = vrot.slane %v4964_v39, 7  ;;  %v6275_v0 = vshll.u32 %v5945_v17, 16 }
 0x35f   : > { %v2848_v36 = vpop.f32.mrf.mxu3  ;;  %v6259_v10 = vrot.slane %v6258_v33, 4 }
 0x360   : > { %v9889_v47 = vadd.f32 %v2848_v36, %v9457_v23  ;;  %v4939_v23 = vsel %vm9035_vm2, %v7855_v56, %v4938_v4  ;;  %v6248_v36 = vor.u32 %v6247_v13, %v6244_v7  ;;  %v4969_v49 = vor.u32 %v4967_v27, %v4966_v41  ;;  %v5944_v13 = vld [vmem:[#allocation2 + $0xf4] sm:$0xf] }
 0x361   : > { %v5236_v37 = vunpack.c.l.b16 %v4939_v23  ;;  %v4958_v23 = vshll.u32 %v4826_v19, 16  ;;  %v4962_v7 = vrot.slane %v4957_v59, 4  ;;  %v6266_v19 = vshrl.u32 %v5944_v13, 16 }
 0x362   : > { %10630 = vst [vmem:[#allocation112_spill] sm:$0xff] %v9889_v47  ;;  %v9902_v56 = vpop.f32.mrf.mxu1  ;;  %v6279_v41 = vshrl.u32 %v5945_v17, 16  ;;  %v4986_v27 = vshrl.u32 %v4830_v18, 16 }
 0x363   : > { %v5265_v4 = vpack.c.b16 %v5237_v58, %v5236_v37  ;;  %v7856_v58 = vrot.slane %v4950_v40, 11  ;;  %v4960_v15 = vor.u32 %v4958_v23, %v4957_v59  ;;  %v4970_v42 = vsel %vm9035_vm2, %v4962_v7, %v4969_v49  ;;  %v4829_v59 = vld [vmem:[#allocation2 + $0x74] sm:$0xf] }
 0x364   : > { %v6269_v37 = vshll.u32 %v5944_v13, 16  ;;  %v6268_v40 = vrot.slane %v6266_v19, 4  ;;  %v4977_v13 = vshrl.u32 %v4829_v59, 16 }
 0x365   : > { %v9919_v34 = vpop.f32.mrf.mxu2 }
 0x366   : > { %v6271_v49 = vrot.slane %v6269_v37, 5  ;;  %v4979_v19 = vrot.slane %v4977_v13, 7  ;;  %v4989_v37 = vshll.u32 %v4830_v18, 16 }
 0x367   : > { %v2850_v9 = vpop.f32.mrf.mxu3 }
 0x368   : > { %v9900_v16 = vadd.f32 %v2850_v9, %v9463_v2  ;;  %v6249_v2 = vrot.slane %v6248_v36, 4  ;;  %v6264_v9 = vsel %vm9286_vm5, %v6259_v10, %v6263_v6  ;;  %v8216_v36 = vld [vmem:[#allocation13 + $0x8] sm:$0xff]  ;;  %v6281_v10 = vrot.slane %v6279_v41, 4 }
 0x369   : > { %6873 = vmatpush.bf16.msra.mxu2 %v8216_v36  ;;  %v4828_v36 = vld [vmem:[#allocation2 + $0x70] sm:$0x8] }
 0x36a   : > { %10631 = vst [vmem:[#allocation113_spill] sm:$0xff] %v9900_v16  ;;  %v6254_v3 = vsel %vm9286_vm5, %v6249_v2, %v6253_v51  ;;  %v9915_v33 = vpop.f32.mrf.mxu1  ;;  %v6379_v51 = vunpack.c.l.b16 %v6264_v9  ;;  %v6277_v2 = vrot.slane %v6275_v0, 5  ;;  %v4972_v0 = vshrl.u32 %v4828_v36, 16 }
 0x36c   : > { %5365 = vmatmul.bf16.gmra.mxu3 %v5265_v4  ;;  %v5239_v4 = vunpack.c.l.b16 %v4970_v42  ;;  %v6272_v42 = vor.u32 %v6271_v49, %v6268_v40  ;;  %v5947_v40 = vld [vmem:[#allocation2 + $0x104] sm:$0xf]  ;;  %v5948_v49 = vld [vmem:[#allocation2 + $0x108] sm:$0xf] }
 0x36d   : > { %6529 = vmatmul.bf16.gmra.mxu1 %v6397_v11  ;;  %v6378_v11 = vunpack.c.l.b16 %v6254_v3  ;;  %v6282_v3 = vor.u32 %v6281_v10, %v6277_v2  ;;  %v7857_v10 = vrot.slane %v4972_v0, 11 }
 0x36e   : > { %v6273_v30 = vrot.slane %v6272_v42, 4 }
 0x36f   : > { %v2853_v39 = vpop.f32.mrf.mxu3 }
 0x370   : > { %v9907_v62 = vadd.f32 %v2853_v39, %v9469_v12  ;;  %v4961_v12 = vsel %vm9035_vm2, %v7856_v58, %v4960_v15  ;;  %v5946_v39 = vld [vmem:[#allocation2 + $0xfc] sm:$0x1]  ;;  %v4988_v58 = vrot.slane %v4986_v27, 7  ;;  %v6398_v15 = vpack.c.b16 %v6379_v51, %v6378_v11 }
 0x371   : > { %v5238_v23 = vunpack.c.l.b16 %v4961_v12  ;;  %v6285_v9 = vshll.u32 %v5946_v39, 16  ;;  %v4980_v27 = vshll.u32 %v4829_v59, 16  ;;  %v4984_v51 = vrot.slane %v4979_v19, 4 }
 0x372   : > { %10632 = vst [vmem:[#allocation114_spill] sm:$0xff] %v9907_v62  ;;  %v9924_v41 = vpop.f32.mrf.mxu1  ;;  %v4991_v12 = vor.u32 %v4989_v37, %v4988_v58  ;;  %v6283_v62 = vrot.slane %v6282_v3, 4  ;;  %v6278_v39 = vsel %vm9286_vm5, %v6273_v30, %v6277_v2  ;;  %v6290_v58 = vshrl.u32 %v5947_v40, 16 }
 0x373   : > { %v5266_v17 = vpack.c.b16 %v5239_v4, %v5238_v23  ;;  %v4982_v23 = vor.u32 %v4980_v27, %v4979_v19  ;;  %v6293_v59 = vshll.u32 %v5947_v40, 16  ;;  %v6380_v3 = vunpack.c.l.b16 %v6278_v39  ;;  %v4832_v19 = vld [vmem:[#allocation2 + $0x84] sm:$0xf] }
 0x374   : > { %v4992_v18 = vsel %vm9035_vm2, %v4984_v51, %v4991_v12  ;;  %v6292_v12 = vrot.slane %v6290_v58, 4  ;;  %v5949_v51 = vld [vmem:[#allocation2 + $0x10c] sm:$0x1] }
 0x375   : > { %v4983_v36 = vsel %vm9035_vm2, %v7857_v10, %v4982_v23  ;;  %v5241_v42 = vunpack.c.l.b16 %v4992_v18  ;;  %v4831_v18 = vld [vmem:[#allocation2 + $0x80] sm:$0x8]  ;;  %v6309_v58 = vshll.u32 %v5949_v51, 16 }
 0x377   : > { %v2855_v6 = vpop.f32.mrf.mxu3  ;;  %v6311_v16 = vrot.slane %v6309_v58, 5 }
 0x378   : > { %v9922_v7 = vadd.f32 %v2855_v6, %v9479_v26  ;;  %v6287_v26 = vrot.slane %v6285_v9, 5  ;;  %v9926_v6 = vpop.f32.mrf.mxu2 }
 0x37a   : > { %10633 = vst [vmem:[#allocation115_spill] sm:$0xff] %v9922_v7  ;;  %v6288_v13 = vsel %vm9286_vm5, %v6283_v62, %v6287_v26  ;;  %v9939_v27 = vpop.f32.mrf.mxu1  ;;  %v5240_v26 = vunpack.c.l.b16 %v4983_v36  ;;  %v5002_v7 = vshll.u32 %v4832_v19, 16 }
 0x37b   : > { %v6381_v9 = vunpack.c.l.b16 %v6288_v13 }
 0x37c   : > { %5370 = vmatmul.bf16.gmra.mxu3 %v5266_v17  ;;  %v4833_v17 = vld [vmem:[#allocation2 + $0x88] sm:$0xf]  ;;  %v5267_v10 = vpack.c.b16 %v5241_v42, %v5240_v26 }
 0x37d   : > { %6534 = vmatmul.bf16.gmra.mxu1 %v6398_v15  ;;  %v6299_v15 = vshll.u32 %v5948_v49, 16  ;;  %v5008_v37 = vshrl.u32 %v4833_v17, 16  ;;  %v6399_v23 = vpack.c.b16 %v6381_v9, %v6380_v3 }
 0x37f   : > { %v2858_v4 = vpop.f32.mrf.mxu3  ;;  %v6301_v30 = vrot.slane %v6299_v15, 5  ;;  %v5010_v39 = vrot.slane %v5008_v37, 7 }
 0x380   : > { %v9929_v11 = vadd.f32 %v2858_v4, %v9583_v53  ;;  %v6303_v53 = vshrl.u32 %v5948_v49, 16  ;;  %v6295_v4 = vrot.slane %v6293_v59, 5  ;;  %v9944_v40 = vpop.f32.mrf.mxu2  ;;  %v4999_v49 = vshrl.u32 %v4832_v19, 16 }
 0x381   : > { %v4994_v59 = vshrl.u32 %v4831_v18, 16 }
 0x382   : > { %10634 = vst [vmem:[#allocation116_spill] sm:$0xff] %v9929_v11  ;;  %v6305_v2 = vrot.slane %v6303_v53, 4  ;;  %v6296_v13 = vor.u32 %v6295_v4, %v6292_v12  ;;  %v5001_v15 = vrot.slane %v4999_v49, 7  ;;  %v5011_v53 = vshll.u32 %v4833_v17, 16  ;;  %v9949_v37 = vpop.f32.mrf.mxu1  ;;  %v8215_v12 = vld [vmem:[#allocation13] sm:$0xff] }
 0x383   : > { %v7858_v42 = vrot.slane %v4994_v59, 11  ;;  %6874 = vmatpush.bf16.msra.mxu2 %v8215_v12  ;;  %v4835_v49 = vld [vmem:[#allocation2 + $0x94] sm:$0xf]  ;;  %v4834_v59 = vld [vmem:[#allocation2 + $0x90] sm:$0x8] }
 0x384   : > { %v6306_v11 = vor.u32 %v6305_v2, %v6301_v30  ;;  %v6297_v36 = vrot.slane %v6296_v13, 4  ;;  %v5004_v3 = vor.u32 %v5002_v7, %v5001_v15  ;;  %v5006_v9 = vrot.slane %v5001_v15, 4  ;;  %v4836_v2 = vld [vmem:[#allocation2 + $0x98] sm:$0xf] }
 0x385   : > { %v5021_v13 = vshrl.u32 %v4835_v49, 16 }
 0x386   : > { %v6302_v19 = vsel %vm9286_vm5, %v6297_v36, %v6301_v30 }
 0x387   : > { %v2860_v0 = vpop.f32.mrf.mxu3  ;;  %v6382_v26 = vunpack.c.l.b16 %v6302_v19 }
 0x388   : > { %v9942_v62 = vadd.f32 %v2860_v0, %v9597_v60  ;;  %v5013_v0 = vor.u32 %v5011_v53, %v5010_v39  ;;  %v9951_v4 = vpop.f32.mrf.mxu2  ;;  %v5016_v53 = vshrl.u32 %v4834_v59, 16 }
 0x38a   : > { %10635 = vst [vmem:[#allocation117_spill] sm:$0xff] %v9942_v62  ;;  %v6307_v62 = vrot.slane %v6306_v11, 4  ;;  %v5014_v17 = vsel %vm9035_vm2, %v5006_v9, %v5013_v0  ;;  %v5033_v0 = vshll.u32 %v4836_v2, 16  ;;  %v7859_v9 = vrot.slane %v5016_v53, 11 }
 0x38b   : > { %v5243_v7 = vunpack.c.l.b16 %v5014_v17 }
 0x38c   : > { %5375 = vmatmul.bf16.gmra.mxu3 %v5267_v10  ;;  %v6312_v11 = vsel %vm9286_vm5, %v6307_v62, %v6311_v16  ;;  %v9964_v62 = vpop.f32.mrf.mxu1 }
 0x38d   : > { %6539 = vmatmul.bf16.gmra.mxu1 %v6399_v23  ;;  %v6383_v51 = vunpack.c.l.b16 %v6312_v11  ;;  %v5030_v23 = vshrl.u32 %v4836_v2, 16  ;;  %v4839_v11 = vld [vmem:[#allocation2 + $0xa8] sm:$0xf] }
 0x38f   : > { %v2863_v60 = vpop.f32.mrf.mxu3  ;;  %v6400_v58 = vpack.c.b16 %v6383_v51, %v6382_v26  ;;  %v5032_v16 = vrot.slane %v5030_v23, 7  ;;  %v4838_v26 = vld [vmem:[#allocation2 + $0xa4] sm:$0xf] }
 0x390   : > { %v9947_v47 = vadd.f32 %v2863_v60, %v9611_v29  ;;  %v5005_v29 = vsel %vm9035_vm2, %v7858_v42, %v5004_v3  ;;  %v9966_v15 = vpop.f32.mrf.mxu2  ;;  %v5023_v60 = vrot.slane %v5021_v13, 7  ;;  %v5024_v42 = vshll.u32 %v4835_v49, 16  ;;  %v4837_v13 = vld [vmem:[#allocation2 + $0xa0] sm:$0x8] }
 0x391   : > { %v5242_v39 = vunpack.c.l.b16 %v5005_v29  ;;  %v5035_v3 = vor.u32 %v5033_v0, %v5032_v16  ;;  %v5052_v49 = vshrl.u32 %v4839_v11, 16  ;;  %v5043_v23 = vshrl.u32 %v4838_v26, 16 }
 0x392   : > { %10636 = vst [vmem:[#allocation118_spill] sm:$0xff] %v9947_v47  ;;  %v5026_v12 = vor.u32 %v5024_v42, %v5023_v60  ;;  %v5028_v17 = vrot.slane %v5023_v60, 4  ;;  %v5055_v16 = vshll.u32 %v4839_v11, 16  ;;  %v5046_v60 = vshll.u32 %v4838_v26, 16 }
 0x393   : > { %v5268_v30 = vpack.c.b16 %v5243_v7, %v5242_v39  ;;  %v5045_v59 = vrot.slane %v5043_v23, 7  ;;  %v3624_v11 = vadd.f32 %v9296_v25, %v9681_v55 }
 0x394   : > { %v5036_v19 = vsel %vm9035_vm2, %v5028_v17, %v5035_v3  ;;  %v5027_v29 = vsel %vm9035_vm2, %v7859_v9, %v5026_v12  ;;  %v4842_v17 = vld [vmem:[#allocation2 + $0xb8] sm:$0xf] }
 0x395   : > { %v5245_v7 = vunpack.c.l.b16 %v5036_v19  ;;  %v5050_v9 = vrot.slane %v5045_v59, 4 }
 0x397   : > { %v2865_v10 = vpop.f32.mrf.mxu3 }
 0x398   : > { %v9962_v18 = vadd.f32 %v2865_v10, %v9625_v63  ;;  %v9975_v51 = vpop.f32.mrf.mxu2 }
 0x39a   : > { %10637 = vst [vmem:[#allocation119_spill] sm:$0xff] %v9962_v18 }
 0x39c   : > { %5380 = vmatmul.bf16.gmra.mxu3 %v5268_v30  ;;  %v5054_v30 = vrot.slane %v5052_v49, 7  ;;  %v10642_v49 = vld [vmem:[#allocation30_spill] sm:$0xff] }
 0x39d   : > { %6544 = vmatmul.bf16.gmra.mxu1 %v6400_v58  ;;  %v5038_v58 = vshrl.u32 %v4837_v13, 16 }
 0x39e   : > { %v5057_v0 = vor.u32 %v5055_v16, %v5054_v30  ;;  %v10644_v30 = vld [vmem:[#allocation86_spill] sm:$0xff]  ;;  %v10645_v16 = vld [vmem:[#allocation48_spill] sm:$0xff] }
 0x39f   : > { %v2868_v36 = vpop.f32.mrf.mxu3  ;;  %v7860_v3 = vrot.slane %v5038_v58, 11 }
 0x3a0   : > { %v9969_v63 = vadd.f32 %v2868_v36, %v9634_v35  ;;  %v5244_v35 = vunpack.c.l.b16 %v5027_v29  ;;  %v9983_v42 = vpop.f32.mrf.mxu2  ;;  %v5058_v12 = vsel %vm9035_vm2, %v5050_v9, %v5057_v0  ;;  %v10646_v9 = vld [vmem:[#allocation32_spill] sm:$0xff] }
 0x3a1   : > { %v5247_v29 = vunpack.c.l.b16 %v5058_v12 }
 0x3a2   : > { %10638 = vst [vmem:[#allocation120_spill] sm:$0xff] %v9969_v63  ;;  %v5269_v39 = vpack.c.b16 %v5245_v7, %v5244_v35  ;;  %v4841_v7 = vld [vmem:[#allocation2 + $0xb4] sm:$0xf]  ;;  %v4848_v63 = vld [vmem:[#allocation2 + $0xd8] sm:$0xf] }
 0x3a3   : > { %v5065_v13 = vshrl.u32 %v4841_v7, 16 }
 0x3a7   : > { %v2870_v2 = vpop.f32.mrf.mxu3 }
 0x3a8   : > { %v9978_v10 = vadd.f32 %v2870_v2, %v9649_v8  ;;  %v5048_v8 = vor.u32 %v5046_v60, %v5045_v59  ;;  %v10641_v2 = vld [vmem:[#allocation31_spill] sm:$0xff]  ;;  %v4840_v60 = vld [vmem:[#allocation2 + $0xb0] sm:$0x8]  ;;  %v9998_v0 = vpop.f32.mrf.mxu2 }
 0x3a9   : > { %v2162_v35 = vadd.f32 %v10642_v49, %v10641_v2  ;;  %v5060_v55 = vshrl.u32 %v4840_v60, 16  ;;  %v10647_v2 = vld [vmem:[#allocation56_spill] sm:$0xff] }
 0x3aa   : > { %10639 = vst [vmem:[#allocation121_spill] sm:$0xff] %v9978_v10  ;;  %v5049_v19 = vsel %vm9035_vm2, %v7860_v3, %v5048_v8  ;;  %v5067_v3 = vrot.slane %v5065_v13, 7  ;;  %v5077_v8 = vshll.u32 %v4842_v17, 16  ;;  %v4845_v13 = vld [vmem:[#allocation2 + $0xc8] sm:$0xf] }
 0x3ab   : > { %v2911_v58 = vadd.f32 %v10644_v30, %v2162_v35  ;;  %v10002_v35 = vpop.f32.mrf.mxu0 }
 0x3ac   : > { %5385 = vmatmul.bf16.gmra.mxu3 %v5269_v39  ;;  %v5246_v39 = vunpack.c.l.b16 %v5049_v19  ;;  %v5068_v19 = vshll.u32 %v4841_v7, 16 }
 0x3ad   : > { %v3625_v12 = vadd.f32 %v10646_v9, %v2911_v58 }
 0x3ae   : > { %v5270_v59 = vpack.c.b16 %v5247_v29, %v5246_v39  ;;  %v7861_v29 = vrot.slane %v5060_v55, 11  ;;  %v5072_v39 = vrot.slane %v5067_v3, 4 }
 0x3af   : > { %v2873_v53 = vpop.f32.mrf.mxu3 }
 0x3b0   : > { %v9981_v36 = vadd.f32 %v2873_v53, %v9655_v32  ;;  %v5074_v32 = vshrl.u32 %v4842_v17, 16  ;;  %v4002_v53 = vadd.f32 %v10645_v16, %v3624_v11  ;;  %v5070_v11 = vor.u32 %v5068_v19, %v5067_v3  ;;  %v10006_v16 = vpop.f32.mrf.mxu1  ;;  %v10010_v58 = vpop.f32.mrf.mxu2 }
 0x3b2   : > { %10640 = vst [vmem:[#allocation122_spill] sm:$0xff] %v9981_v36  ;;  %v5076_v25 = vrot.slane %v5074_v32, 7  ;;  %v10648_v32 = vld [vmem:[#allocation49_spill] sm:$0xff]  ;;  %v5071_v7 = vsel %vm9035_vm2, %v7861_v29, %v5070_v11  ;;  %v10652_v29 = vld [vmem:[#allocation51_spill] sm:$0xff] }
 0x3b4   : > { %v5079_v49 = vor.u32 %v5077_v8, %v5076_v25  ;;  %v4844_v8 = vld [vmem:[#allocation2 + $0xc4] sm:$0xf] }
 0x3b6   : > { %v5080_v17 = vsel %vm9035_vm2, %v5072_v39, %v5079_v49  ;;  %v4843_v39 = vld [vmem:[#allocation2 + $0xc0] sm:$0x8] }
 0x3b7   : > { %v2875_v26 = vpop.f32.mrf.mxu3  ;;  %v5249_v3 = vunpack.c.l.b16 %v5080_v17 }
 0x3b8   : > { %v9994_v23 = vadd.f32 %v2875_v26, %v9673_v54  ;;  %v4748_v54 = vadd.f32 %v10647_v2, %v4002_v53  ;;  %v10649_v53 = vld [vmem:[#allocation33_spill] sm:$0xff]  ;;  %v10034_v17 = vpop.f32.mrf.mxu1 }
 0x3b9   : > { %v3626_v60 = vadd.f32 %v10649_v53, %v9704_v57  ;;  %v10027_v57 = vld [vmem:[%s10651_s12] ss:$0 sm:$0xff] }
 0x3ba   : > { %10643 = vst [vmem:[#allocation31_spill] sm:$0xff] %v9994_v23 }
 0x3bb   : > { %v4004_v11 = vadd.f32 %v10652_v29, %v3626_v60  ;;  %v10655_v60 = vld [vmem:[#allocation62_spill] sm:$0xff]  ;;  %v5090_v29 = vshll.u32 %v4844_v8, 16 }
 0x3bc   : > { %5390 = vmatmul.bf16.gmra.mxu3 %v5270_v59  ;;  %v4003_v59 = vadd.f32 %v10648_v32, %v3625_v12  ;;  %v5096_v12 = vshrl.u32 %v4845_v13, 16 }
 0x3be   : > { %v5098_v32 = vrot.slane %v5096_v12, 7 }
 0x3bf   : > { %v5351_v26 = vpop.f32.mrf.mxu3 }
 0x3c0   : > { %v5463_v23 = vadd.f32 %v5351_v26, %v4748_v54  ;;  %v5248_v54 = vunpack.c.l.b16 %v5071_v7  ;;  %v5087_v26 = vshrl.u32 %v4844_v8, 16  ;;  %v5082_v7 = vshrl.u32 %v4843_v39, 16 }
 0x3c2   : > { %v5841_v30 = vadd.f32 %v9722_v44, %v5463_v23  ;;  %v10020_v44 = vld [vmem:[%s10499_s8] ss:$0 sm:$0xff]  ;;  %v10650_v23 = vld [vmem:[#allocation59_spill] sm:$0xff]  ;;  %v5271_v49 = vpack.c.b16 %v5249_v3, %v5248_v54  ;;  %v5089_v53 = vrot.slane %v5087_v26, 7  ;;  %v10041_v54 = vpop.f32.mrf.mxu2  ;;  %v7862_v39 = vrot.slane %v5082_v7, 11 }
 0x3c3   : > { %v4749_v55 = vadd.f32 %v10650_v23, %v4003_v59  ;;  %v10653_v23 = vld [vmem:[#allocation90_spill] sm:$0xff] }
 0x3c4   : > { %v6587_v25 = vadd.f32 %v9902_v56, %v5841_v30  ;;  %v10031_v30 = vpop.f32.mrf.mxu0  ;;  %v5092_v26 = vor.u32 %v5090_v29, %v5089_v53 }
 0x3c6   : > { %v6687_v19 = vmul.f32 %v10020_v44, %v6587_v25  ;;  %v5099_v25 = vshll.u32 %v4845_v13, 16  ;;  %v5094_v13 = vrot.slane %v5089_v53, 4  ;;  %v10657_v53 = vld [vmem:[#allocation35_spill] sm:$0xff] }
 0x3c7   : > { %v5353_v9 = vpop.f32.mrf.mxu3 }
 0x3c8   : > { %v5464_v2 = vadd.f32 %v5353_v9, %v4749_v55  ;;  %v10654_v55 = vld [vmem:[#allocation34_spill] sm:$0xff] }
 0x3c9   : > { %v3627_v9 = vadd.f32 %v10654_v55, %v10653_v23 }
 0x3ca   : > { %v5842_v56 = vadd.f32 %v9732_v5, %v5464_v2  ;;  %v6723_v5 = vadd.f32 %v10027_v57, %v6687_v19  ;;  %v4750_v2 = vadd.f32 %v10655_v60, %v4004_v11  ;;  %v10656_v19 = vld [vmem:[#allocation53_spill] sm:$0xff] }
 0x3cb   : > { %v4005_v55 = vadd.f32 %v10656_v19, %v3627_v9  ;;  %v10660_v19 = vld [vmem:[#allocation55_spill] sm:$0xff] }
 0x3cc   : > { %v6588_v59 = vadd.f32 %v9915_v33, %v5842_v56  ;;  %5395 = vmatmul.bf16.gmra.mxu3 %v5271_v49  ;;  %v5101_v33 = vor.u32 %v5099_v25, %v5098_v32  ;;  %v6755_v36 = vmax.f32 %v6723_v5, 0.0  ;;  %v10048_v8 = vpop.f32.mrf.mxu0  ;;  %v5093_v32 = vsel %vm9035_vm2, %v7862_v39, %v5092_v26 }
 0x3cd   : > { %v3628_v25 = vadd.f32 %v10657_v53, %v9728_v31 }
 0x3ce   : > { %v6688_v3 = vmul.f32 %v10020_v44, %v6588_v59  ;;  %v4847_v59 = vld [vmem:[#allocation2 + $0xd4] sm:$0xf]  ;;  %v5102_v11 = vsel %vm9035_vm2, %v5094_v13, %v5101_v33  ;;  %v5250_v33 = vunpack.c.l.b16 %v5093_v32  ;;  %v10661_v32 = vld [vmem:[#allocation93_spill] sm:$0xff] }
 0x3cf   : > { %v5356_v12 = vpop.f32.mrf.mxu3  ;;  %v5109_v7 = vshrl.u32 %v4847_v59, 16  ;;  %v5112_v26 = vshll.u32 %v4847_v59, 16  ;;  %v10659_v13 = vld [vmem:[#allocation96_spill] sm:$0xff] }
 0x3d0   : > { %v6724_v56 = vadd.f32 %v10027_v57, %v6688_v3  ;;  %v5465_v49 = vadd.f32 %v5356_v12, %v4750_v2  ;;  %v5251_v3 = vunpack.c.l.b16 %v5102_v11  ;;  %v4846_v2 = vld [vmem:[#allocation2 + $0xd0] sm:$0x8]  ;;  %v10056_v12 = vpop.f32.mrf.mxu1 }
 0x3d1   : > { %v5111_v39 = vrot.slane %v5109_v7, 7  ;;  %v10663_v59 = vld [vmem:[#allocation68_spill] sm:$0xff] }
 0x3d2   : > { %v6756_v10 = vmax.f32 %v6724_v56, 0.0  ;;  %v5843_v23 = vadd.f32 %v9752_v48, %v5465_v49  ;;  %v10658_v48 = vld [vmem:[#allocation65_spill] sm:$0xff]  ;;  %v10058_v56 = vpop.f32.mrf.mxu2  ;;  %v5104_v49 = vshrl.u32 %v4846_v2, 16 }
 0x3d3   : > { %v4751_v9 = vadd.f32 %v10658_v48, %v4005_v55  ;;  %v4006_v55 = vadd.f32 %v10660_v19, %v3628_v25  ;;  %v5116_v25 = vrot.slane %v5111_v39, 4 }
 0x3d4   : > { %v6787_v60 = vpack.c.bf16 %v6756_v10, %v6755_v36  ;;  %v6589_v5 = vadd.f32 %v9924_v41, %v5843_v23  ;;  %v5118_v36 = vshrl.u32 %v4848_v63, 16  ;;  %v5272_v23 = vpack.c.b16 %v5251_v3, %v5250_v33 }
 0x3d5   : > { %v7863_v48 = vrot.slane %v5104_v49, 11  ;;  %v4752_v2 = vadd.f32 %v10663_v59, %v4006_v55  ;;  %v4851_v55 = vld [vmem:[#allocation2 + $0xe8] sm:$0xf]  ;;  %v10665_v59 = vld [vmem:[#allocation94_spill] sm:$0xff] }
 0x3d6   : > { %6875 = vmatmul.bf16.vlgmr.msra.gmra.mxu2 %v6787_v60  ;;  %v6689_v31 = vmul.f32 %v10020_v44, %v6589_v5  ;;  %v5120_v11 = vrot.slane %v5118_v36, 7  ;;  %v5121_v60 = vshll.u32 %v4848_v63, 16 }
 0x3d7   : > { %v5358_v10 = vpop.f32.mrf.mxu3 }
 0x3d8   : > { %v5466_v29 = vadd.f32 %v5358_v10, %v4751_v9  ;;  %v5114_v9 = vor.u32 %v5112_v26, %v5111_v39  ;;  %v10662_v10 = vld [vmem:[#allocation36_spill] sm:$0xff]  ;;  %v6725_v5 = vadd.f32 %v10027_v57, %v6689_v31  ;;  %v5123_v36 = vor.u32 %v5121_v60, %v5120_v11  ;;  %v10072_v33 = vpop.f32.mrf.mxu1  ;;  %v4850_v31 = vld [vmem:[#allocation2 + $0xe4] sm:$0xf] }
 0x3d9   : > { %v3629_v18 = vadd.f32 %v10662_v10, %v10661_v32  ;;  %v4849_v32 = vld [vmem:[#allocation2 + $0xe0] sm:$0x8]  ;;  %v5131_v10 = vshrl.u32 %v4850_v31, 16 }
 0x3da   : > { %v5844_v41 = vadd.f32 %v10659_v13, %v5466_v29  ;;  %v10069_v29 = vpop.f32.mrf.mxu0  ;;  %v5115_v49 = vsel %vm9035_vm2, %v7863_v48, %v5114_v9  ;;  %v6757_v13 = vmax.f32 %v6725_v5, 0.0  ;;  %v5124_v39 = vsel %vm9035_vm2, %v5116_v25, %v5123_v36  ;;  %v10666_v48 = vld [vmem:[#allocation37_spill] sm:$0xff] }
 0x3db   : > { %v5252_v60 = vunpack.c.l.b16 %v5115_v49  ;;  %v3630_v9 = vadd.f32 %v10666_v48, %v10665_v59  ;;  %v5253_v5 = vunpack.c.l.b16 %v5124_v39  ;;  %v5133_v25 = vrot.slane %v5131_v10, 7  ;;  %v10668_v48 = vld [vmem:[#allocation60_spill] sm:$0xff] }
 0x3dc   : > { %v6590_v53 = vadd.f32 %v9939_v27, %v5844_v41  ;;  %5400 = vmatmul.bf16.gmra.mxu3 %v5272_v23  ;;  %v10664_v23 = vld [vmem:[#allocation58_spill] sm:$0xff]  ;;  %v5134_v36 = vshll.u32 %v4850_v31, 16 }
 0x3dd   : > { %v4007_v19 = vadd.f32 %v10664_v23, %v3629_v18  ;;  %v5273_v59 = vpack.c.b16 %v5253_v5, %v5252_v60  ;;  %v5138_v10 = vrot.slane %v5133_v25, 4 }
 0x3de   : > { %v6690_v7 = vmul.f32 %v10020_v44, %v6590_v53  ;;  %v10078_v53 = vpop.f32.mrf.mxu2 }
 0x3df   : > { %v5361_v3 = vpop.f32.mrf.mxu3 }
 0x3e0   : > { %v5467_v63 = vadd.f32 %v5361_v3, %v4752_v2  ;;  %v6726_v27 = vadd.f32 %v10027_v57, %v6690_v7  ;;  %v5140_v7 = vshrl.u32 %v4851_v55, 16  ;;  %v10667_v2 = vld [vmem:[#allocation71_spill] sm:$0xff] }
 0x3e1   : > { %v4753_v18 = vadd.f32 %v10667_v2, %v4007_v19 }
 0x3e2   : > { %v5845_v26 = vadd.f32 %v9784_v1, %v5467_v63  ;;  %v6758_v41 = vmax.f32 %v6726_v27, 0.0  ;;  %v5126_v27 = vshrl.u32 %v4849_v32, 16  ;;  %v10086_v23 = vpop.f32.mrf.mxu0  ;;  %v5142_v49 = vrot.slane %v5140_v7, 7  ;;  %v10669_v7 = vld [vmem:[#allocation97_spill] sm:$0xff] }
 0x3e3   : > { %v5136_v32 = vor.u32 %v5134_v36, %v5133_v25  ;;  %v10672_v36 = vld [vmem:[#allocation63_spill] sm:$0xff] }
 0x3e4   : > { %v6788_v11 = vpack.c.bf16 %v6758_v41, %v6757_v13  ;;  %v6591_v1 = vadd.f32 %v9949_v37, %v5845_v26  ;;  %v5143_v13 = vshll.u32 %v4851_v55, 16  ;;  %v4008_v37 = vadd.f32 %v10668_v48, %v3630_v9  ;;  %v10091_v26 = vpop.f32.mrf.mxu1  ;;  %v10670_v55 = vld [vmem:[#allocation38_spill] sm:$0xff]  ;;  %v4854_v48 = vld [vmem:[#allocation2 + $0xf8] sm:$0xf] }
 0x3e5   : > { %v3631_v2 = vadd.f32 %v10670_v55, %v10669_v7  ;;  %v10673_v55 = vld [vmem:[#allocation99_spill] sm:$0xff] }
 0x3e6   : > { %6880 = vmatmul.bf16.gmra.mxu2 %v6788_v11  ;;  %v6691_v41 = vmul.f32 %v10020_v44, %v6591_v1  ;;  %v10094_v39 = vpop.f32.mrf.mxu2  ;;  %v7864_v11 = vrot.slane %v5126_v27, 11  ;;  %v5145_v31 = vor.u32 %v5143_v13, %v5142_v49 }
 0x3e7   : > { %v5363_v3 = vpop.f32.mrf.mxu3  ;;  %v4009_v49 = vadd.f32 %v10672_v36, %v3631_v2 }
 0x3e8   : > { %v5468_v63 = vadd.f32 %v5363_v3, %v4753_v18  ;;  %v6727_v9 = vadd.f32 %v10027_v57, %v6691_v41  ;;  %v5146_v3 = vsel %vm9035_vm2, %v5138_v10, %v5145_v31  ;;  %v4853_v41 = vld [vmem:[#allocation2 + $0xf4] sm:$0xf] }
 0x3e9   : > { %v5255_v7 = vunpack.c.l.b16 %v5146_v3  ;;  %v10676_v3 = vld [vmem:[#allocation66_spill] sm:$0xff] }
 0x3ea   : > { %v5846_v47 = vadd.f32 %v9798_v52, %v5468_v63  ;;  %v10671_v52 = vld [vmem:[#allocation74_spill] sm:$0xff]  ;;  %v6759_v27 = vmax.f32 %v6727_v9, 0.0  ;;  %v10108_v13 = vpop.f32.mrf.mxu0  ;;  %v5162_v9 = vshrl.u32 %v4854_v48, 16 }
 0x3eb   : > { %v4754_v60 = vadd.f32 %v10671_v52, %v4008_v37  ;;  %v4852_v52 = vld [vmem:[#allocation2 + $0xf0] sm:$0x8] }
 0x3ec   : > { %v6592_v19 = vadd.f32 %v9964_v62, %v5846_v47  ;;  %5405 = vmatmul.bf16.gmra.mxu3 %v5273_v59  ;;  %v5137_v62 = vsel %vm9035_vm2, %v7864_v11, %v5136_v32  ;;  %v10110_v37 = vpop.f32.mrf.mxu1  ;;  %v10674_v11 = vld [vmem:[#allocation39_spill] sm:$0xff] }
 0x3ed   : > { %v3632_v32 = vadd.f32 %v10674_v11, %v10673_v55  ;;  %v10677_v11 = vld [vmem:[#allocation40_spill] sm:$0xff] }
 0x3ee   : > { %v6692_v1 = vmul.f32 %v10020_v44, %v6592_v19  ;;  %v5254_v19 = vunpack.c.l.b16 %v5137_v62 }
 0x3ef   : > { %v5366_v18 = vpop.f32.mrf.mxu3 }
 0x3f0   : > { %v5469_v5 = vadd.f32 %v5366_v18, %v4754_v60  ;;  %v6728_v47 = vadd.f32 %v10027_v57, %v6692_v1  ;;  %v10116_v1 = vpop.f32.mrf.mxu2  ;;  %v5153_v60 = vshrl.u32 %v4853_v41, 16 }
 0x3f2   : > { %v5847_v63 = vadd.f32 %v10002_v35, %v5469_v5  ;;  %v6760_v25 = vmax.f32 %v6728_v47, 0.0  ;;  %v10675_v35 = vld [vmem:[#allocation77_spill] sm:$0xff]  ;;  %v5274_v5 = vpack.c.b16 %v5255_v7, %v5254_v19  ;;  %v5155_v36 = vrot.slane %v5153_v60, 7  ;;  %v10122_v55 = vpop.f32.mrf.mxu0  ;;  %v4856_v60 = vld [vmem:[#allocation2 + $0x104] sm:$0xf] }
 0x3f3   : > { %v4755_v31 = vadd.f32 %v10675_v35, %v4009_v49  ;;  %v3633_v35 = vadd.f32 %v10677_v11, %v9796_v61  ;;  %v4857_v61 = vld [vmem:[#allocation2 + $0x108] sm:$0xf] }
 0x3f4   : > { %v6789_v59 = vpack.c.bf16 %v6760_v25, %v6759_v27  ;;  %v6593_v10 = vadd.f32 %v10006_v16, %v5847_v63  ;;  %v4010_v27 = vadd.f32 %v10676_v3, %v3632_v32  ;;  %v5148_v25 = vshrl.u32 %v4852_v52, 16  ;;  %v10129_v32 = vpop.f32.mrf.mxu1 }
 0x3f5   : > { %v5156_v16 = vshll.u32 %v4853_v41, 16  ;;  %v5164_v63 = vrot.slane %v5162_v9, 7 }
 0x3f6   : > { %6885 = vmatmul.bf16.gmra.mxu2 %v6789_v59  ;;  %v6693_v47 = vmul.f32 %v10020_v44, %v6593_v10  ;;  %v5165_v59 = vshll.u32 %v4854_v48, 16  ;;  %v4756_v7 = vadd.f32 %v9904_v22, %v4010_v27  ;;  %v7865_v41 = vrot.slane %v5148_v25, 11 }
 0x3f7   : > { %v5368_v2 = vpop.f32.mrf.mxu3  ;;  %v5160_v48 = vrot.slane %v5155_v36, 4  ;;  %v5175_v25 = vshrl.u32 %v4856_v60, 16 }
 0x3f8   : > { %v5470_v18 = vadd.f32 %v5368_v2, %v4755_v31  ;;  %v5158_v31 = vor.u32 %v5156_v16, %v5155_v36  ;;  %v5167_v2 = vor.u32 %v5165_v59, %v5164_v63  ;;  %v10132_v9 = vpop.f32.mrf.mxu2  ;;  %v4855_v16 = vld [vmem:[#allocation2 + $0x100] sm:$0x8]  ;;  %v5184_v63 = vshrl.u32 %v4857_v61, 16 }
 0x3f9   : > { %10678 = vst [vmem:[#allocation30_spill] sm:$0xff] %v10132_v9 }
 0x3fa   : > { %v5848_v62 = vadd.f32 %v10031_v30, %v5470_v18  ;;  %v6729_v30 = vadd.f32 %v10027_v57, %v6693_v47  ;;  %v5159_v3 = vsel %vm9035_vm2, %v7865_v41, %v5158_v31  ;;  %v5168_v27 = vsel %vm9035_vm2, %v5160_v48, %v5167_v2 }
 0x3fb   : > { %v5177_v41 = vrot.slane %v5175_v25, 7  ;;  %v5178_v48 = vshll.u32 %v4856_v60, 16  ;;  %v5186_v2 = vrot.slane %v5184_v63, 7  ;;  %v10683_v25 = vld [vmem:[#allocation102_spill] sm:$0xff] }
 0x3fc   : > { %v6594_v49 = vadd.f32 %v10034_v17, %v5848_v62  ;;  %5410 = vmatmul.bf16.gmra.mxu3 %v5274_v5  ;;  %v6761_v5 = vmax.f32 %v6729_v30, 0.0  ;;  %v10679_v62 = vld [vmem:[#allocation69_spill] sm:$0xff] }
 0x3fd   : > { %v4011_v47 = vadd.f32 %v10679_v62, %v3633_v35  ;;  %v5257_v35 = vunpack.c.l.b16 %v5168_v27  ;;  %v5182_v27 = vrot.slane %v5177_v41, 4 }
 0x3fe   : > { %v6694_v19 = vmul.f32 %v10020_v44, %v6594_v49  ;;  %v10680_v49 = vld [vmem:[#allocation41_spill] sm:$0xff] }
 0x3ff   : > { %v5371_v10 = vpop.f32.mrf.mxu3  ;;  %v3634_v11 = vadd.f32 %v10680_v49, %v9803_v46  ;;  %v8198_v49 = vld [vmem:[#allocation2 + $0x114] sm:$0xff] }
 0x400   : > { %v5471_v17 = vadd.f32 %v5371_v10, %v4756_v7  ;;  %v6730_v52 = vadd.f32 %v10027_v57, %v6694_v19  ;;  %v5256_v19 = vunpack.c.l.b16 %v5159_v3  ;;  %v10144_v7 = vpop.f32.mrf.mxu0  ;;  %v5170_v10 = vshrl.u32 %v4855_v16, 16  ;;  %5803 = vmatmul.bf16.gmra.mxu0 %v8198_v49 }
 0x401   : > { %v5180_v3 = vor.u32 %v5178_v48, %v5177_v41 }
 0x402   : > { %v5849_v18 = vadd.f32 %v10048_v8, %v5471_v17  ;;  %v6762_v22 = vmax.f32 %v6730_v52, 0.0  ;;  %v4757_v8 = vadd.f32 %v9919_v34, %v4011_v47  ;;  %v5187_v17 = vshll.u32 %v4857_v61, 16  ;;  %v10146_v52 = vpop.f32.mrf.mxu1  ;;  %v10684_v61 = vld [vmem:[#allocation42_spill] sm:$0xff] }
 0x403   : > { %v7866_v62 = vrot.slane %v5170_v10, 11 }
 0x404   : > { %v6790_v36 = vpack.c.bf16 %v6762_v22, %v6761_v5  ;;  %v6595_v59 = vadd.f32 %v10056_v12, %v5849_v18  ;;  %v5275_v18 = vpack.c.b16 %v5257_v35, %v5256_v19  ;;  %v10681_v5 = vld [vmem:[#allocation72_spill] sm:$0xff]  ;;  %v10151_v22 = vpop.f32.mrf.mxu2  ;;  %v5189_v60 = vor.u32 %v5187_v17, %v5186_v2 }
 0x405   : > { %v4012_v34 = vadd.f32 %v10681_v5, %v3634_v11  ;;  %10682 = vst [vmem:[#allocation86_spill] sm:$0xff] %v10151_v22  ;;  %v5950_v35 = vld [vmem:[#allocation2 + $0x114] sm:$0xf] }
 0x406   : > { %6890 = vmatmul.bf16.gmra.mxu2 %v6790_v36  ;;  %v6695_v12 = vmul.f32 %v10020_v44, %v6595_v59  ;;  %v3635_v36 = vadd.f32 %v10684_v61, %v10683_v25  ;;  %v5190_v19 = vsel %vm9035_vm2, %v5182_v27, %v5189_v60  ;;  %v4859_v2 = vld [vmem:[#allocation2 + $0x114] sm:$0xf]  ;;  %v6314_v17 = vshrl.u32 %v5950_v35, 16  ;;  %v4858_v25 = vld [vmem:[#allocation2 + $0x110] sm:$0x8] }
 0x407   : > { %v5373_v30 = vpop.f32.mrf.mxu3  ;;  %v6317_v5 = vshll.u32 %v5950_v35, 16  ;;  %v5197_v61 = vshrl.u32 %v4859_v2, 16 }
 0x408   : > { %v5472_v31 = vadd.f32 %v5373_v30, %v4757_v8  ;;  %v6731_v16 = vadd.f32 %v10027_v57, %v6695_v12  ;;  %v5951_v30 = vld [vmem:[#allocation2 + $0x118] sm:$0xf]  ;;  %v10164_v10 = vpop.f32.mrf.mxu0  ;;  %v6316_v27 = vrot.slane %v6314_v17, 4 }
 0x40a   : > { %v5850_v46 = vadd.f32 %v10069_v29, %v5472_v31  ;;  %v4758_v29 = vadd.f32 %v9926_v6, %v4012_v34  ;;  %v6763_v41 = vmax.f32 %v6731_v16, 0.0  ;;  %v10685_v31 = vld [vmem:[#allocation75_spill] sm:$0xff]  ;;  %v4860_v6 = vld [vmem:[#allocation2 + $0x118] sm:$0xf]  ;;  %v6323_v34 = vshll.u32 %v5951_v30, 16 }
 0x40b   : > { %v4013_v48 = vadd.f32 %v10685_v31, %v3635_v36  ;;  %v6319_v16 = vrot.slane %v6317_v5, 5  ;;  %v5192_v31 = vshrl.u32 %v4858_v25, 16  ;;  %v5200_v5 = vshll.u32 %v4859_v2, 16  ;;  %v10689_v2 = vld [vmem:[#allocation44_spill] sm:$0xff] }
 0x40c   : > { %v6596_v47 = vadd.f32 %v10072_v33, %v5850_v46  ;;  %5415 = vmatmul.bf16.gmra.mxu3 %v5275_v18  ;;  %v5181_v33 = vsel %vm9035_vm2, %v7866_v62, %v5180_v3  ;;  %v5952_v18 = vld [vmem:[#allocation2 + $0x11c] sm:$0x1]  ;;  %v10168_v62 = vpop.f32.mrf.mxu1  ;;  %v5259_v3 = vunpack.c.l.b16 %v5190_v19  ;;  %v10170_v36 = vpop.f32.mrf.mxu2 }
 0x40d   : > { %10686 = vst [vmem:[#allocation48_spill] sm:$0xff] %v10170_v36  ;;  %v6333_v49 = vshll.u32 %v5952_v18, 16  ;;  %v6320_v19 = vor.u32 %v6319_v16, %v6316_v27  ;;  %v5209_v36 = vshll.u32 %v4860_v6, 16  ;;  %v7867_v27 = vrot.slane %v5192_v31, 11 }
 0x40e   : > { %v6696_v63 = vmul.f32 %v10020_v44, %v6596_v47  ;;  %v5258_v47 = vunpack.c.l.b16 %v5181_v33  ;;  %v4759_v33 = vadd.f32 %v9944_v40, %v4013_v48 }
 0x40f   : > { %v5376_v59 = vpop.f32.mrf.mxu3  ;;  %v6321_v22 = vrot.slane %v6320_v19, 4  ;;  %v6335_v9 = vrot.slane %v6333_v49, 5 }
 0x410   : > { %v5473_v11 = vadd.f32 %v5376_v59, %v4758_v29  ;;  %v6732_v8 = vadd.f32 %v10027_v57, %v6696_v63  ;;  %v5206_v63 = vshrl.u32 %v4860_v6, 16  ;;  %v6325_v29 = vrot.slane %v6323_v34, 5  ;;  %v10181_v48 = vpop.f32.mrf.mxu0 }
 0x411   : > { %v6327_v59 = vshrl.u32 %v5951_v30, 16  ;;  %v5199_v34 = vrot.slane %v5197_v61, 7  ;;  %v3637_v6 = vadd.f32 %v10689_v2, %v9832_v50  ;;  %v10692_v2 = vld [vmem:[#allocation82_spill] sm:$0xff] }
 0x412   : > { %v5851_v12 = vadd.f32 %v10086_v23, %v5473_v11  ;;  %v6764_v46 = vmax.f32 %v6732_v8, 0.0  ;;  %v10687_v23 = vld [vmem:[#allocation43_spill] sm:$0xff]  ;;  %v5208_v30 = vrot.slane %v5206_v63, 7  ;;  %v6326_v40 = vsel %vm9286_vm5, %v6321_v22, %v6325_v29 }
 0x413   : > { %v3636_v11 = vadd.f32 %v10687_v23, %v9819_v38  ;;  %v6329_v17 = vrot.slane %v6327_v59, 4  ;;  %v6384_v25 = vunpack.c.l.b16 %v6326_v40  ;;  %v5202_v16 = vor.u32 %v5200_v5, %v5199_v34 }
 0x414   : > { %v6791_v60 = vpack.c.bf16 %v6764_v46, %v6763_v41  ;;  %v6597_v8 = vadd.f32 %v10091_v26, %v5851_v12  ;;  %v5276_v41 = vpack.c.b16 %v5259_v3, %v5258_v47  ;;  %v10688_v12 = vld [vmem:[#allocation78_spill] sm:$0xff]  ;;  %v10186_v61 = vpop.f32.mrf.mxu1  ;;  %v5211_v63 = vor.u32 %v5209_v36, %v5208_v30  ;;  %v10193_v23 = vpop.f32.mrf.mxu2 }
 0x415   : > { %v6330_v18 = vor.u32 %v6329_v17, %v6325_v29  ;;  %v5203_v36 = vsel %vm9035_vm2, %v7867_v27, %v5202_v16 }
 0x416   : > { %6895 = vmatmul.bf16.gmra.mxu2 %v6791_v60  ;;  %v6697_v38 = vmul.f32 %v10020_v44, %v6597_v8  ;;  %v4014_v60 = vadd.f32 %v10688_v12, %v3636_v11  ;;  %v5260_v17 = vunpack.c.l.b16 %v5203_v36 }
 0x417   : > { %v5378_v35 = vpop.f32.mrf.mxu3  ;;  %v6331_v47 = vrot.slane %v6330_v18, 4 }
 0x418   : > { %v5474_v46 = vadd.f32 %v5378_v35, %v4759_v33  ;;  %v4760_v29 = vadd.f32 %v9951_v4, %v4014_v60  ;;  %v6733_v49 = vadd.f32 %v10027_v57, %v6697_v38  ;;  %v10690_v35 = vld [vmem:[#allocation80_spill] sm:$0xff]  ;;  %v5769_v5 = vpop.f32.mrf.mxu0 }
 0x419   : > { %v6336_v59 = vsel %vm9286_vm5, %v6331_v47, %v6335_v9 }
 0x41a   : > { %v5852_v26 = vadd.f32 %v10108_v13, %v5474_v46  ;;  %v5204_v13 = vrot.slane %v5199_v34, 4  ;;  %v6385_v50 = vunpack.c.l.b16 %v6336_v59  ;;  %v6765_v19 = vmax.f32 %v6733_v49, 0.0  ;;  %v10691_v34 = vld [vmem:[#allocation45_spill] sm:$0xff]  ;;  %v10694_v49 = vld [vmem:[#allocation84_spill] sm:$0xff] }
 0x41b   : > { %v3638_v30 = vadd.f32 %v10691_v34, %v9837_v14  ;;  %v10693_v14 = vld [vmem:[#allocation46_spill] sm:$0xff] }
 0x41c   : > { %v6598_v3 = vadd.f32 %v10110_v37, %v5852_v26  ;;  %5420 = vmatmul.bf16.gmra.mxu3 %v5276_v41  ;;  %v6401_v33 = vpack.c.b16 %v6385_v50, %v6384_v25  ;;  %v5212_v20 = vsel %vm9035_vm2, %v5204_v13, %v5211_v63  ;;  %v4015_v41 = vadd.f32 %v10690_v35, %v3637_v6  ;;  %v6515_v38 = vpop.f32.mrf.mxu1  ;;  %v10206_v60 = vpop.f32.mrf.mxu2 }
 0x41d   : > { %v5261_v46 = vunpack.c.l.b16 %v5212_v20  ;;  %v4016_v6 = vadd.f32 %v10692_v2, %v3638_v30 }
 0x41e   : > { %v6698_v22 = vmul.f32 %v10020_v44, %v6598_v3  ;;  %6549 = vmatmul.bf16.gmra.mxu1 %v6401_v33  ;;  %v4761_v43 = vadd.f32 %v9966_v15, %v4015_v41 }
 0x41f   : > { %v5381_v37 = vpop.f32.mrf.mxu3  ;;  %v5277_v12 = vpack.c.b16 %v5261_v46, %v5260_v17  ;;  %v4762_v27 = vadd.f32 %v9975_v51, %v4016_v6 }
 0x420   : > { %v5475_v11 = vadd.f32 %v5381_v37, %v4760_v29  ;;  %v6734_v8 = vadd.f32 %v10027_v57, %v6698_v22  ;;  %v5771_v16 = vpop.f32.mrf.mxu0 }
 0x422   : > { %v5853_v9 = vadd.f32 %v10122_v55, %v5475_v11  ;;  %v6766_v4 = vmax.f32 %v6734_v8, 0.0  ;;  %v10695_v11 = vld [vmem:[#allocation47_spill] sm:$0xff] }
 0x423   : > { %v3640_v51 = vadd.f32 %v10695_v11, %v9853_v45  ;;  %v10697_v45 = vld [vmem:[#allocation50_spill] sm:$0xff] }
 0x424   : > { %v6792_v31 = vpack.c.bf16 %v6766_v4, %v6765_v19  ;;  %v6599_v18 = vadd.f32 %v10129_v32, %v5853_v9  ;;  %v3639_v32 = vadd.f32 %v10693_v14, %v9850_v28  ;;  %v10220_v37 = vpop.f32.mrf.mxu2  ;;  %v10696_v4 = vld [vmem:[#allocation87_spill] sm:$0xff] }
 0x425   : > { %v4018_v35 = vadd.f32 %v10696_v4, %v3640_v51 }
 0x426   : > { %6900 = vmatmul.bf16.gmra.mxu2 %v6792_v31  ;;  %v6699_v40 = vmul.f32 %v10020_v44, %v6599_v18  ;;  %v4017_v50 = vadd.f32 %v10694_v49, %v3639_v32 }
 0x427   : > { %v5383_v26 = vpop.f32.mrf.mxu3 }
 0x428   : > { %v5476_v55 = vadd.f32 %v5383_v26, %v4761_v43  ;;  %v6735_v25 = vadd.f32 %v10027_v57, %v6699_v40  ;;  %v4763_v33 = vadd.f32 %v9983_v42, %v4017_v50  ;;  %v5774_v9 = vpop.f32.mrf.mxu0  ;;  %v4764_v42 = vadd.f32 %v9998_v0, %v4018_v35 }
 0x42a   : > { %v5854_v47 = vadd.f32 %v10144_v7, %v5476_v55  ;;  %v6517_v7 = vpop.f32.mrf.mxu1  ;;  %v6767_v29 = vmax.f32 %v6735_v25, 0.0  ;;  %v10700_v25 = vld [vmem:[#allocation91_spill] sm:$0xff] }
 0x42c   : > { %v6600_v3 = vadd.f32 %v10146_v52, %v5854_v47  ;;  %5425 = vmatmul.bf16.gmra.mxu3 %v5277_v12  ;;  %v10230_v17 = vpop.f32.mrf.mxu2  ;;  %v10698_v12 = vld [vmem:[#allocation89_spill] sm:$0xff] }
 0x42e   : > { %v6700_v15 = vmul.f32 %v10020_v44, %v6600_v3 }
 0x42f   : > { %v5386_v13 = vpop.f32.mrf.mxu3 }
 0x430   : > { %v5477_v63 = vadd.f32 %v5386_v13, %v4762_v27  ;;  %v6736_v59 = vadd.f32 %v10027_v57, %v6700_v15  ;;  %v5776_v40 = vpop.f32.mrf.mxu0 }
 0x432   : > { %v5855_v22 = vadd.f32 %v10164_v10, %v5477_v63  ;;  %v6768_v52 = vmax.f32 %v6736_v59, 0.0  ;;  %v6520_v41 = vpop.f32.mrf.mxu1 }
 0x434   : > { %v6793_v28 = vpack.c.bf16 %v6768_v52, %v6767_v29  ;;  %v6601_v8 = vadd.f32 %v10168_v62, %v5855_v22  ;;  %v3641_v62 = vadd.f32 %v10697_v45, %v9866_v24  ;;  %v10699_v24 = vld [vmem:[#allocation52_spill] sm:$0xff]  ;;  %v10242_v14 = vpop.f32.mrf.mxu2  ;;  %v10701_v22 = vld [vmem:[#allocation110_spill] sm:$0xff] }
 0x435   : > { %v3642_v6 = vadd.f32 %v10699_v24, %v9871_v21  ;;  %v10702_v29 = vld [vmem:[#allocation54_spill] sm:$0xff] }
 0x436   : > { %6905 = vmatmul.bf16.gmra.mxu2 %v6793_v28  ;;  %v6701_v10 = vmul.f32 %v10020_v44, %v6601_v8  ;;  %v3643_v52 = vadd.f32 %v10702_v29, %v10701_v22 }
 0x437   : > { %v5388_v36 = vpop.f32.mrf.mxu3  ;;  %v4020_v13 = vadd.f32 %v10700_v25, %v3642_v6  ;;  %v10711_v25 = vld [vmem:[#allocation98_spill] sm:$0xff] }
 0x438   : > { %v5478_v20 = vadd.f32 %v5388_v36, %v4763_v33  ;;  %v6737_v34 = vadd.f32 %v10027_v57, %v6701_v10  ;;  %v5779_v59 = vpop.f32.mrf.mxu0  ;;  %v10703_v33 = vld [vmem:[#allocation92_spill] sm:$0xff] }
 0x439   : > { %v4021_v36 = vadd.f32 %v10703_v33, %v3643_v52  ;;  %v10704_v10 = vld [vmem:[#allocation112_spill] sm:$0xff] }
 0x43a   : > { %v5856_v19 = vadd.f32 %v10181_v48, %v5478_v20  ;;  %v6769_v26 = vmax.f32 %v6737_v34, 0.0  ;;  %v6522_v2 = vpop.f32.mrf.mxu1 }
 0x43c   : > { %v6602_v31 = vadd.f32 %v10186_v61, %v5856_v19  ;;  %v4019_v61 = vadd.f32 %v10698_v12, %v3641_v62  ;;  %v10252_v51 = vpop.f32.mrf.mxu2  ;;  %v10705_v19 = vld [vmem:[#allocation57_spill] sm:$0xff] }
 0x43d   : > { %v3644_v4 = vadd.f32 %v10705_v19, %v10704_v10 }
 0x43e   : > { %v6702_v46 = vmul.f32 %v10020_v44, %v6602_v31  ;;  %v4765_v0 = vadd.f32 %v10010_v58, %v4019_v61  ;;  %v690_v61 = vld [vmem:[%s8971_s23] sm:$0xff]  }
 0x43f   : > { %v5391_v30 = vpop.f32.mrf.mxu3 }
 0x440   : > { %v5479_v18 = vadd.f32 %v5391_v30, %v4764_v42  ;;  %v6738_v48 = vadd.f32 %v10027_v57, %v6702_v46  ;;  %v5781_v31 = vpop.f32.mrf.mxu0 }
 0x442   : > { %v5857_v43 = vadd.f32 %v5769_v5, %v5479_v18  ;;  %v6770_v55 = vmax.f32 %v6738_v48, 0.0  ;;  %v6525_v49 = vpop.f32.mrf.mxu1  ;;  %v10707_v18 = vld [vmem:[#allocation95_spill] sm:$0xff] }
 0x443   : > { %v4022_v48 = vadd.f32 %v10707_v18, %v3644_v4 }
 0x444   : > { %v6794_v47 = vpack.c.bf16 %v6770_v55, %v6769_v26  ;;  %v6603_v3 = vadd.f32 %v6515_v38, %v5857_v43  ;;  %v4766_v38 = vadd.f32 %v10041_v54, %v4020_v13  ;;  %v4767_v54 = vadd.f32 %v10058_v56, %v4021_v36  ;;  %v10269_v56 = vld [vmem:[%s10708_s9] ss:$0 sm:$0xff]  ;;  %v10709_v26 = vld [vmem:[#allocation113_spill] sm:$0xff] }
 0x445   : > { %v10710_v55 = vld [vmem:[#allocation61_spill] sm:$0xff]  ;;  %v4768_v24 = vadd.f32 %v10078_v53, %v4022_v48  ;;  %v692_v48 = vld [vmem:[%s8971_s23 + $0x8] sm:$0xff]  }
 0x446   : > { %6910 = vmatmul.bf16.gmra.mxu2 %v6794_v47  ;;  %v6703_v5 = vmul.f32 %v10020_v44, %v6603_v3  ;;  %v3645_v12 = vadd.f32 %v10710_v55, %v10709_v26  ;;  %v6956_v3 = vunpack.c.l.bf16 %v690_v61  ;;  %v6958_v55 = vunpack.c.l.bf16 %v692_v48 }
 0x447   : > { %v5393_v32 = vpop.f32.mrf.mxu3 }
 0x448   : > { %v5480_v15 = vadd.f32 %v5393_v32, %v4765_v0  ;;  %v6739_v58 = vadd.f32 %v10027_v57, %v6703_v5  ;;  %v4023_v13 = vadd.f32 %v10711_v25, %v3645_v12 }
 0x44a   : > { %v5858_v27 = vadd.f32 %v5771_v16, %v5480_v15  ;;  %v6771_v8 = vmax.f32 %v6739_v58, 0.0  ;;  %v6527_v46 = vpop.f32.mrf.mxu1  ;;  %v5784_v15 = vpop.f32.mrf.mxu0 }
 0x44c   : > { %v6604_v63 = vadd.f32 %v6517_v7, %v5858_v27  ;;  %v6957_v27 = vunpack.c.h.bf16 %v690_v61 }
 0x44e   : > { %v6704_v21 = vmul.f32 %v10020_v44, %v6604_v63 }
 0x44f   : > { %v5396_v50 = vpop.f32.mrf.mxu3 }
 0x450   : > { %v5481_v28 = vadd.f32 %v5396_v50, %v4766_v38  ;;  %v6740_v11 = vadd.f32 %v10027_v57, %v6704_v21  ;;  %v10712_v50 = vld [vmem:[#allocation114_spill] sm:$0xff] }
 0x452   : > { %v5859_v16 = vadd.f32 %v5774_v9, %v5481_v28  ;;  %v6772_v7 = vmax.f32 %v6740_v11, 0.0  ;;  %v10261_v9 = vld [vmem:[%s10706_s26] ss:$0 sm:$0xff]  ;;  %v6530_v53 = vpop.f32.mrf.mxu1  ;;  %v10713_v28 = vld [vmem:[#allocation64_spill] sm:$0xff] }
 0x453   : > { %v3646_v11 = vadd.f32 %v10713_v28, %v10712_v50 }
 0x454   : > { %v6795_v20 = vpack.c.bf16 %v6772_v7, %v6771_v8  ;;  %v6605_v35 = vadd.f32 %v6520_v41, %v5859_v16  ;;  %v4769_v7 = vadd.f32 %v10094_v39, %v4023_v13  ;;  %v10718_v13 = vld [vmem:[#allocation116_spill] sm:$0xff] }
 0x456   : > { %6915 = vmatmul.bf16.gmra.mxu2 %v6795_v20  ;;  %v6705_v34 = vmul.f32 %v10020_v44, %v6605_v35 }
 0x457   : > { %v5398_v45 = vpop.f32.mrf.mxu3 }
 0x458   : > { %v5482_v62 = vadd.f32 %v5398_v45, %v4767_v54  ;;  %v10714_v54 = vld [vmem:[#allocation100_spill] sm:$0xff] }
 0x459   : > { %v6876_v42 = vpop.f32.mrf.mxu2  ;;  %v4024_v45 = vadd.f32 %v10714_v54, %v3646_v11 }
 0x45a   : > { %v5860_v30 = vadd.f32 %v5776_v40, %v5482_v62  ;;  %v6992_v43 = vmul.f32 %v10261_v9, %v6876_v42  ;;  %v6741_v40 = vadd.f32 %v10027_v57, %v6705_v34  ;;  %v5786_v62 = vpop.f32.mrf.mxu0  ;;  %v10715_v42 = vld [vmem:[#allocation115_spill] sm:$0xff]  ;;  %v6532_v18 = vpop.f32.mrf.mxu1 }
 0x45b   : > { %v10716_v34 = vld [vmem:[#allocation67_spill] sm:$0xff] }
 0x45c   : > { %v6606_v41 = vadd.f32 %v6522_v2, %v5860_v30  ;;  %v7028_v2 = vadd.f32 %v10269_v56, %v6992_v43  ;;  %v6773_v29 = vmax.f32 %v6741_v40, 0.0  ;;  %v3647_v30 = vadd.f32 %v10716_v34, %v10715_v42  ;;  %v10717_v40 = vld [vmem:[#allocation101_spill] sm:$0xff] }
 0x45e   : > { %v6706_v47 = vmul.f32 %v10020_v44, %v6606_v41  ;;  %v7060_v21 = vadd.f32 %v7028_v2, %v6956_v3 }
 0x45f   : > { %v5401_v6 = vpop.f32.mrf.mxu3 }
 0x460   : > { %v5483_v0 = vadd.f32 %v5401_v6, %v4768_v24  ;;  %v6742_v32 = vadd.f32 %v10027_v57, %v6706_v47  ;;  %v6959_v24 = vunpack.c.h.bf16 %v692_v48  ;;  %v4025_v6 = vadd.f32 %v10717_v40, %v3647_v30 }
 0x461   : > { %v6878_v5 = vpop.f32.mrf.mxu2 }
 0x462   : > { %v5861_v63 = vadd.f32 %v5779_v59, %v5483_v0  ;;  %v6993_v22 = vmul.f32 %v10261_v9, %v6878_v5  ;;  %v6774_v52 = vmax.f32 %v6742_v32, 0.0  ;;  %v7092_v59 = vmax.f32 %v7060_v21, 0.0  ;;  %v5789_v25 = vpop.f32.mrf.mxu0  ;;  %v10720_v21 = vld [vmem:[#allocation30_spill] sm:$0xff] }
 0x464   : > { %v7029_v38 = vadd.f32 %v10269_v56, %v6993_v22  ;;  %v6796_v58 = vpack.c.bf16 %v6774_v52, %v6773_v29  ;;  %v6607_v16 = vadd.f32 %v6525_v49, %v5861_v63  ;;  %v10719_v63 = vld [vmem:[#allocation70_spill] sm:$0xff] }
 0x465   : > { %v3648_v22 = vadd.f32 %v10719_v63, %v10718_v13 }
 0x466   : > { %v7061_v8 = vadd.f32 %v7029_v38, %v6957_v27  ;;  %6920 = vmatmul.bf16.gmra.mxu2 %v6796_v58  ;;  %v6707_v19 = vmul.f32 %v10020_v44, %v6607_v16  ;;  %v4771_v38 = vadd.f32 %v10720_v21, %v4025_v6  ;;  %v10726_v6 = vld [vmem:[#allocation118_spill] sm:$0xff] }
 0x467   : > { %v5403_v33 = vpop.f32.mrf.mxu3 }
 0x468   : > { %v7093_v36 = vmax.f32 %v7061_v8, 0.0  ;;  %v5484_v20 = vadd.f32 %v5403_v33, %v4769_v7  ;;  %v6743_v43 = vadd.f32 %v10027_v57, %v6707_v19  ;;  %v10723_v19 = vld [vmem:[#allocation73_spill] sm:$0xff] }
 0x469   : > { %v6881_v10 = vpop.f32.mrf.mxu2 }
 0x46a   : > { %v8227_v4 = vpack.c.bf16 %v7093_v36, %v7092_v59  ;;  %v5862_v35 = vadd.f32 %v5781_v31, %v5484_v20  ;;  %v6994_v39 = vmul.f32 %v10261_v9, %v6881_v10  ;;  %v4770_v31 = vadd.f32 %v10116_v1, %v4024_v45  ;;  %v10721_v59 = vld [vmem:[#allocation103_spill] sm:$0xff]  ;;  %v10722_v10 = vld [vmem:[#allocation117_spill] sm:$0xff]  ;;  %v10724_v45 = vld [vmem:[#allocation86_spill] sm:$0xff]  ;;  %v5791_v42 = vpop.f32.mrf.mxu0 }
 0x46b   : > { %v6775_v0 = vmax.f32 %v6743_v43, 0.0  ;;  %v4026_v36 = vadd.f32 %v10721_v59, %v3648_v22 }
 0x46c   : > { %8228 = vst [vmem:[%s10289_s10] sm:$0xff] %v8227_v4   ;;  %v6608_v49 = vadd.f32 %v6527_v46, %v5862_v35  ;;  %v7030_v12 = vadd.f32 %v10269_v56, %v6994_v39  ;;  %v3649_v4 = vadd.f32 %v10723_v19, %v10722_v10  ;;  %v694_v35 = vld [vmem:[%s8971_s23 + $0x10] sm:$0xff]  }
 0x46d   : > { %v6960_v30 = vunpack.c.l.bf16 %v694_v35  ;;  %v6961_v43 = vunpack.c.h.bf16 %v694_v35 }
 0x46e   : > { %v6708_v41 = vmul.f32 %v10020_v44, %v6608_v49  ;;  %v7062_v5 = vadd.f32 %v7030_v12, %v6958_v55  ;;  %v4772_v49 = vadd.f32 %v10724_v45, %v4026_v36 }
 0x46f   : > { %v5406_v26 = vpop.f32.mrf.mxu3 }
 0x470   : > { %v5485_v61 = vadd.f32 %v5406_v26, %v4770_v31  ;;  %v6744_v46 = vadd.f32 %v10027_v57, %v6708_v41  ;;  %v7094_v50 = vmax.f32 %v7062_v5, 0.0  ;;  %v10725_v26 = vld [vmem:[#allocation104_spill] sm:$0xff] }
 0x471   : > { %v6883_v47 = vpop.f32.mrf.mxu2  ;;  %v4027_v55 = vadd.f32 %v10725_v26, %v3649_v4  ;;  %v10733_v26 = vld [vmem:[#allocation120_spill] sm:$0xff] }
 0x472   : > { %v5863_v3 = vadd.f32 %v5784_v15, %v5485_v61  ;;  %v6995_v2 = vmul.f32 %v10261_v9, %v6883_v47  ;;  %v6776_v32 = vmax.f32 %v6744_v46, 0.0  ;;  %v6535_v15 = vpop.f32.mrf.mxu1  ;;  %v5794_v63 = vpop.f32.mrf.mxu0 }
 0x474   : > { %v7031_v1 = vadd.f32 %v10269_v56, %v6995_v2  ;;  %v6797_v27 = vpack.c.bf16 %v6776_v32, %v6775_v0  ;;  %v6609_v29 = vadd.f32 %v6530_v53, %v5863_v3  ;;  %v10727_v3 = vld [vmem:[#allocation76_spill] sm:$0xff] }
 0x475   : > { %v3650_v2 = vadd.f32 %v10727_v3, %v10726_v6  ;;  %v10728_v32 = vld [vmem:[#allocation48_spill] sm:$0xff] }
 0x476   : > { %v7063_v52 = vadd.f32 %v7031_v1, %v6959_v24  ;;  %6925 = vmatmul.bf16.gmra.mxu2 %v6797_v27  ;;  %v6709_v8 = vmul.f32 %v10020_v44, %v6609_v29  ;;  %v4773_v5 = vadd.f32 %v10728_v32, %v4027_v55  ;;  %v10328_v29 = vld [vmem:[%s10499_s8] ss:$0 sm:$0xff]  ;;  %v10734_v55 = vld [vmem:[#allocation81_spill] sm:$0xff]  ;;  %v10735_v32 = vld [vmem:[#allocation107_spill] sm:$0xff] }
 0x477   : > { %v5408_v58 = vpop.f32.mrf.mxu3 }
 0x478   : > { %v7095_v28 = vmax.f32 %v7063_v52, 0.0  ;;  %v5486_v11 = vadd.f32 %v5408_v58, %v4771_v38  ;;  %v6745_v39 = vadd.f32 %v10027_v57, %v6709_v8  ;;  %v10731_v8 = vld [vmem:[#allocation79_spill] sm:$0xff] }
 0x479   : > { %v6886_v16 = vpop.f32.mrf.mxu2 }
 0x47a   : > { %v8232_v7 = vpack.c.bf16 %v7095_v28, %v7094_v50  ;;  %v5864_v33 = vadd.f32 %v5786_v62, %v5486_v11  ;;  %v6996_v53 = vmul.f32 %v10261_v9, %v6886_v16  ;;  %v6537_v41 = vpop.f32.mrf.mxu1  ;;  %v6777_v61 = vmax.f32 %v6745_v39, 0.0  ;;  %v10730_v16 = vld [vmem:[#allocation119_spill] sm:$0xff]  ;;  %v10732_v39 = vld [vmem:[#allocation106_spill] sm:$0xff] }
 0x47c   : > { %8305 = vst [vmem:[%s10289_s10 + $0x8] sm:$0xff] %v8232_v7   ;;  %v6610_v20 = vadd.f32 %v6532_v18, %v5864_v33  ;;  %v7032_v62 = vadd.f32 %v10269_v56, %v6996_v53  ;;  %v3651_v7 = vadd.f32 %v10731_v8, %v10730_v16  ;;  %v696_v33 = vld [vmem:[%s8971_s23 + $0x18] sm:$0xff]  }
 0x47d   : > { %v6962_v19 = vunpack.c.l.bf16 %v696_v33 }
 0x47e   : > { %v6710_v54 = vmul.f32 %v10020_v44, %v6610_v20  ;;  %v7064_v47 = vadd.f32 %v7032_v62, %v6960_v30  ;;  %v10342_v20 = vld [vmem:[%s10651_s12] ss:$0 sm:$0xff] }
 0x47f   : > { %v5411_v34 = vpop.f32.mrf.mxu3 }
 0x480   : > { %v5487_v48 = vadd.f32 %v5411_v34, %v4772_v49  ;;  %v6746_v18 = vadd.f32 %v10027_v57, %v6710_v54  ;;  %v7096_v27 = vmax.f32 %v7064_v47, 0.0  ;;  %v6963_v49 = vunpack.c.h.bf16 %v696_v33  ;;  %v10738_v33 = vld [vmem:[#allocation108_spill] sm:$0xff] }
 0x481   : > { %v6888_v31 = vpop.f32.mrf.mxu2 }
 0x482   : > { %v5865_v12 = vadd.f32 %v5789_v25, %v5487_v48  ;;  %v6997_v44 = vmul.f32 %v10261_v9, %v6888_v31  ;;  %v6778_v46 = vmax.f32 %v6746_v18, 0.0  ;;  %v6540_v50 = vpop.f32.mrf.mxu1  ;;  %v5796_v48 = vpop.f32.mrf.mxu0 }
 0x484   : > { %v7033_v24 = vadd.f32 %v10269_v56, %v6997_v44  ;;  %v6798_v40 = vpack.c.bf16 %v6778_v46, %v6777_v61  ;;  %v6611_v0 = vadd.f32 %v6535_v15, %v5865_v12  ;;  %v10729_v15 = vld [vmem:[#allocation105_spill] sm:$0xff]  ;;  %v3652_v12 = vadd.f32 %v10734_v55, %v10733_v26 }
 0x485   : > { %v4028_v58 = vadd.f32 %v10729_v15, %v3650_v2 }
 0x486   : > { %v7065_v57 = vadd.f32 %v7033_v24, %v6961_v43  ;;  %6930 = vmatmul.bf16.gmra.mxu2 %v6798_v40  ;;  %v6711_v52 = vmul.f32 %v10328_v29, %v6611_v0 }
 0x487   : > { %v5413_v1 = vpop.f32.mrf.mxu3  ;;  %v4774_v36 = vadd.f32 %v10193_v23, %v4028_v58 }
 0x488   : > { %v7097_v25 = vmax.f32 %v7065_v57, 0.0  ;;  %v5488_v13 = vadd.f32 %v5413_v1, %v4773_v5  ;;  %v6747_v53 = vadd.f32 %v10342_v20, %v6711_v52  ;;  %v4030_v5 = vadd.f32 %v10735_v32, %v3652_v12  ;;  %v10741_v12 = vld [vmem:[#allocation109_spill] sm:$0xff] }
 0x489   : > { %v6891_v22 = vpop.f32.mrf.mxu2 }
 0x48a   : > { %v8237_v21 = vpack.c.bf16 %v7097_v25, %v7096_v27  ;;  %v5866_v38 = vadd.f32 %v5791_v42, %v5488_v13  ;;  %v6998_v11 = vmul.f32 %v10261_v9, %v6891_v22  ;;  %v4029_v42 = vadd.f32 %v10732_v39, %v3651_v7  ;;  %v6542_v43 = vpop.f32.mrf.mxu1  ;;  %v5799_v25 = vpop.f32.mrf.mxu0  ;;  %v10736_v13 = vld [vmem:[#allocation121_spill] sm:$0xff] }
 0x48b   : > { %v6779_v30 = vmax.f32 %v6747_v53, 0.0 }
 0x48c   : > { %8306 = vst [vmem:[%s10289_s10 + $0x10] sm:$0xff] %v8237_v21   ;;  %v6612_v28 = vadd.f32 %v6537_v41, %v5866_v38  ;;  %v7034_v4 = vadd.f32 %v10269_v56, %v6998_v11  ;;  %v4775_v46 = vadd.f32 %v10206_v60, %v4029_v42  ;;  %v698_v60 = vld [vmem:[%s8971_s23 + $0x20] sm:$0xff]   ;;  %v4776_v21 = vadd.f32 %v10220_v37, %v4030_v5 }
 0x48d   : > { %v6965_v7 = vunpack.c.h.bf16 %v698_v60 }
 0x48e   : > { %v6712_v59 = vmul.f32 %v10328_v29, %v6612_v28  ;;  %v7066_v18 = vadd.f32 %v7034_v4, %v6962_v19 }
 0x48f   : > { %v5416_v10 = vpop.f32.mrf.mxu3 }
 0x490   : > { %v5489_v35 = vadd.f32 %v5416_v10, %v4774_v36  ;;  %v6748_v54 = vadd.f32 %v10342_v20, %v6712_v59  ;;  %v7098_v24 = vmax.f32 %v7066_v18, 0.0 }
 0x491   : > { %v6893_v45 = vpop.f32.mrf.mxu2 }
 0x492   : > { %v5867_v34 = vadd.f32 %v5794_v63, %v5489_v35  ;;  %v6999_v23 = vmul.f32 %v10261_v9, %v6893_v45  ;;  %v6780_v62 = vmax.f32 %v6748_v54, 0.0  ;;  %v10737_v63 = vld [vmem:[#allocation83_spill] sm:$0xff]  ;;  %v6545_v15 = vpop.f32.mrf.mxu1  ;;  %v10739_v54 = vld [vmem:[#allocation122_spill] sm:$0xff]  ;;  %v10740_v45 = vld [vmem:[#allocation85_spill] sm:$0xff] }
 0x493   : > { %v3653_v22 = vadd.f32 %v10737_v63, %v10736_v13 }
 0x494   : > { %v7035_v41 = vadd.f32 %v10269_v56, %v6999_v23  ;;  %v6799_v31 = vpack.c.bf16 %v6780_v62, %v6779_v30  ;;  %v6613_v44 = vadd.f32 %v6540_v50, %v5867_v34  ;;  %v6964_v50 = vunpack.c.l.bf16 %v698_v60  ;;  %v5801_v23 = vpop.f32.mrf.mxu0 }
 0x495   : > { %v4031_v59 = vadd.f32 %v10738_v33, %v3653_v22  ;;  %v10744_v22 = vld [vmem:[#allocation111_spill] sm:$0xff] }
 0x496   : > { %v7067_v61 = vadd.f32 %v7035_v41, %v6963_v49  ;;  %6935 = vmatmul.bf16.gmra.mxu2 %v6799_v31  ;;  %v6713_v2 = vmul.f32 %v10328_v29, %v6613_v44  ;;  %v3654_v49 = vadd.f32 %v10740_v45, %v10739_v54  ;;  %v702_v45 = vld [vmem:[%s8971_s23 + $0x30] sm:$0xff]  }
 0x497   : > { %v5418_v47 = vpop.f32.mrf.mxu3  ;;  %v4777_v34 = vadd.f32 %v10230_v17, %v4031_v59  ;;  %v10743_v17 = vld [vmem:[#allocation88_spill] sm:$0xff] }
 0x498   : > { %v7099_v40 = vmax.f32 %v7067_v61, 0.0  ;;  %v5490_v6 = vadd.f32 %v5418_v47, %v4775_v46  ;;  %v6749_v38 = vadd.f32 %v10342_v20, %v6713_v2  ;;  %v4032_v44 = vadd.f32 %v10741_v12, %v3654_v49  ;;  %v10742_v47 = vld [vmem:[#allocation31_spill] sm:$0xff] }
 0x499   : > { %v6896_v3 = vpop.f32.mrf.mxu2 }
 0x49a   : > { %v8242_v0 = vpack.c.bf16 %v7099_v40, %v7098_v24  ;;  %v5868_v57 = vadd.f32 %v5796_v48, %v5490_v6  ;;  %v7000_v27 = vmul.f32 %v10261_v9, %v6896_v3  ;;  %v6781_v10 = vmax.f32 %v6749_v38, 0.0  ;;  %v6547_v41 = vpop.f32.mrf.mxu1  ;;  %v700_v40 = vld [vmem:[%s8971_s23 + $0x28] sm:$0xff]  }
 0x49b   : > { %v3655_v24 = vadd.f32 %v10743_v17, %v10742_v47  ;;  %v4778_v3 = vadd.f32 %v10242_v14, %v4032_v44  ;;  %v6966_v32 = vunpack.c.l.bf16 %v700_v40  ;;  %v6967_v63 = vunpack.c.h.bf16 %v700_v40 }
 0x49c   : > { %8307 = vst [vmem:[%s10289_s10 + $0x18] sm:$0xff] %v8242_v0   ;;  %v6614_v1 = vadd.f32 %v6542_v43, %v5868_v57  ;;  %v7036_v28 = vadd.f32 %v10269_v56, %v7000_v27  ;;  %v5804_v0 = vpop.f32.mrf.mxu0 }
 0x49d   : > { %v4033_v60 = vadd.f32 %v10744_v22, %v3655_v24 }
 0x49e   : > { %v6714_v52 = vmul.f32 %v10328_v29, %v6614_v1  ;;  %v7068_v37 = vadd.f32 %v7036_v28, %v6964_v50 }
 0x49f   : > { %v5421_v58 = vpop.f32.mrf.mxu3 }
 0x4a0   : > { %v5491_v11 = vadd.f32 %v5421_v58, %v4776_v21  ;;  %v6750_v16 = vadd.f32 %v10342_v20, %v6714_v52  ;;  %v7100_v62 = vmax.f32 %v7068_v37, 0.0 }
 0x4a1   : > { %v6898_v8 = vpop.f32.mrf.mxu2 }
 0x4a2   : > { %v5869_v36 = vadd.f32 %v5799_v25, %v5491_v11  ;;  %v7001_v53 = vmul.f32 %v10261_v9, %v6898_v8  ;;  %v6782_v19 = vmax.f32 %v6750_v16, 0.0  ;;  %v6550_v25 = vpop.f32.mrf.mxu1  ;;  %v4779_v16 = vadd.f32 %v10252_v51, %v4033_v60 }
 0x4a4   : > { %v7037_v4 = vadd.f32 %v10269_v56, %v7001_v53  ;;  %v6800_v35 = vpack.c.bf16 %v6782_v19, %v6781_v10  ;;  %v6615_v39 = vadd.f32 %v6545_v15, %v5869_v36  ;;  %v5806_v36 = vpop.f32.mrf.mxu0 }
 0x4a6   : > { %v7069_v42 = vadd.f32 %v7037_v4, %v6965_v7  ;;  %6940 = vmatmul.bf16.gmra.mxu2 %v6800_v35  ;;  %v6715_v43 = vmul.f32 %v10328_v29, %v6615_v39  ;;  %v6968_v39 = vunpack.c.l.bf16 %v702_v45 }
 0x4a7   : > { %v5423_v30 = vpop.f32.mrf.mxu3 }
 0x4a8   : > { %v7101_v48 = vmax.f32 %v7069_v42, 0.0  ;;  %v5492_v18 = vadd.f32 %v5423_v30, %v4777_v34  ;;  %v6751_v2 = vadd.f32 %v10342_v20, %v6715_v43  ;;  %v6969_v30 = vunpack.c.h.bf16 %v702_v45  ;;  %v710_v45 = vld [vmem:[%s8971_s23 + $0x50] sm:$0xff]  }
 0x4a9   : > { %v6901_v31 = vpop.f32.mrf.mxu2 }
 0x4aa   : > { %v8247_v26 = vpack.c.bf16 %v7101_v48, %v7100_v62  ;;  %v5870_v55 = vadd.f32 %v5801_v23, %v5492_v18  ;;  %v7002_v46 = vmul.f32 %v10261_v9, %v6901_v31  ;;  %v6783_v38 = vmax.f32 %v6751_v2, 0.0  ;;  %v6552_v4 = vpop.f32.mrf.mxu1 }
 0x4ac   : > { %8308 = vst [vmem:[%s10289_s10 + $0x20] sm:$0xff] %v8247_v26   ;;  %v6616_v61 = vadd.f32 %v6547_v41, %v5870_v55  ;;  %v7038_v5 = vadd.f32 %v10269_v56, %v7002_v46 }
 0x4ae   : > { %v6716_v6 = vmul.f32 %v10328_v29, %v6616_v61  ;;  %v7070_v15 = vadd.f32 %v7038_v5, %v6966_v32  ;;  %v704_v61 = vld [vmem:[%s8971_s23 + $0x38] sm:$0xff]  }
 0x4af   : > { %v5426_v57 = vpop.f32.mrf.mxu3  ;;  %v6970_v46 = vunpack.c.l.bf16 %v704_v61  ;;  %v6971_v24 = vunpack.c.h.bf16 %v704_v61 }
 0x4b0   : > { %v5493_v1 = vadd.f32 %v5426_v57, %v4778_v3  ;;  %v6752_v27 = vadd.f32 %v10342_v20, %v6716_v6  ;;  %v7102_v7 = vmax.f32 %v7070_v15, 0.0 }
 0x4b1   : > { %v6903_v13 = vpop.f32.mrf.mxu2 }
 0x4b2   : > { %v5871_v52 = vadd.f32 %v5804_v0, %v5493_v1  ;;  %v7003_v21 = vmul.f32 %v10261_v9, %v6903_v13  ;;  %v6784_v14 = vmax.f32 %v6752_v27, 0.0  ;;  %v706_v27 = vld [vmem:[%s8971_s23 + $0x40] sm:$0xff]  }
 0x4b3   : > { %v6973_v22 = vunpack.c.h.bf16 %v706_v27 }
 0x4b4   : > { %v7039_v58 = vadd.f32 %v10269_v56, %v7003_v21  ;;  %v6801_v50 = vpack.c.bf16 %v6784_v14, %v6783_v38  ;;  %v6617_v28 = vadd.f32 %v6550_v25, %v5871_v52  ;;  %v6972_v25 = vunpack.c.l.bf16 %v706_v27 }
 0x4b6   : > { %v7071_v11 = vadd.f32 %v7039_v58, %v6967_v63  ;;  %6945 = vmatmul.bf16.gmra.mxu2 %v6801_v50  ;;  %v6717_v10 = vmul.f32 %v10328_v29, %v6617_v28 }
 0x4b7   : > { %v5428_v8 = vpop.f32.mrf.mxu3 }
 0x4b8   : > { %v7103_v33 = vmax.f32 %v7071_v11, 0.0  ;;  %v5494_v59 = vadd.f32 %v5428_v8, %v4779_v16  ;;  %v6753_v51 = vadd.f32 %v10342_v20, %v6717_v10  ;;  %v708_v11 = vld [vmem:[%s8971_s23 + $0x48] sm:$0xff]  }
 0x4b9   : > { %v6906_v53 = vpop.f32.mrf.mxu2  ;;  %v6974_v16 = vunpack.c.l.bf16 %v708_v11 }
 0x4ba   : > { %v8252_v19 = vpack.c.bf16 %v7103_v33, %v7102_v7  ;;  %v5872_v37 = vadd.f32 %v5806_v36, %v5494_v59  ;;  %v7004_v54 = vmul.f32 %v10261_v9, %v6906_v53  ;;  %v6785_v48 = vmax.f32 %v6753_v51, 0.0 }
 0x4bb   : > { %v6975_v33 = vunpack.c.h.bf16 %v708_v11 }
 0x4bc   : > { %8309 = vst [vmem:[%s10289_s10 + $0x28] sm:$0xff] %v8252_v19   ;;  %v6618_v35 = vadd.f32 %v6552_v4, %v5872_v37  ;;  %v7040_v42 = vadd.f32 %v10269_v56, %v7004_v54 }
 0x4be   : > { %v6718_v49 = vmul.f32 %v10328_v29, %v6618_v35  ;;  %v7072_v41 = vadd.f32 %v7040_v42, %v6968_v39  ;;  %v6977_v42 = vunpack.c.h.bf16 %v710_v45 }
 0x4c0   : > { %v6754_v34 = vadd.f32 %v10342_v20, %v6718_v49  ;;  %v7104_v26 = vmax.f32 %v7072_v41, 0.0  ;;  %v6976_v49 = vunpack.c.l.bf16 %v710_v45 }
 0x4c1   : > { %v6908_v23 = vpop.f32.mrf.mxu2 }
 0x4c2   : > { %v7005_v62 = vmul.f32 %v10261_v9, %v6908_v23  ;;  %v6786_v18 = vmax.f32 %v6754_v34, 0.0 }
 0x4c4   : > { %v7041_v31 = vadd.f32 %v10269_v56, %v7005_v62  ;;  %v6802_v43 = vpack.c.bf16 %v6786_v18, %v6785_v48 }
 0x4c6   : > { %v7073_v29 = vadd.f32 %v7041_v31, %v6969_v30  ;;  %6950 = vmatmul.bf16.gmra.mxu2 %v6802_v43 }
 0x4c8   : > { %v7105_v55 = vmax.f32 %v7073_v29, 0.0  ;;  %v712_v29 = vld [vmem:[%s8971_s23 + $0x58] sm:$0xff]  }
 0x4c9   : > { %v6911_v12 = vpop.f32.mrf.mxu2 }
 0x4ca   : > { %v8257_v44 = vpack.c.bf16 %v7105_v55, %v7104_v26  ;;  %v7006_v20 = vmul.f32 %v10261_v9, %v6911_v12  ;;  %v6978_v26 = vunpack.c.l.bf16 %v712_v29 }
 0x4cc   : > { %8310 = vst [vmem:[%s10289_s10 + $0x30] sm:$0xff] %v8257_v44   ;;  %v7042_v47 = vadd.f32 %v10269_v56, %v7006_v20  ;;  %v6979_v44 = vunpack.c.h.bf16 %v712_v29 }
 0x4ce   : > { %v7074_v6 = vadd.f32 %v7042_v47, %v6970_v46 }
 0x4d0   : > { %v7106_v0 = vmax.f32 %v7074_v6, 0.0 }
 0x4d1   : > { %v6913_v17 = vpop.f32.mrf.mxu2 }
 0x4d2   : > { %v7007_v40 = vmul.f32 %v10261_v9, %v6913_v17 }
 0x4d4   : > { %v7043_v3 = vadd.f32 %v10269_v56, %v7007_v40 }
 0x4d6   : > { %v7075_v2 = vadd.f32 %v7043_v3, %v6971_v24 }
 0x4d8   : > { %v7107_v57 = vmax.f32 %v7075_v2, 0.0  ;;  %v714_v2 = vld [vmem:[%s8971_s23 + $0x60] sm:$0xff]  }
 0x4d9   : > { %v6916_v32 = vpop.f32.mrf.mxu2 }
 0x4da   : > { %v8262_v5 = vpack.c.bf16 %v7107_v57, %v7106_v0  ;;  %v7008_v1 = vmul.f32 %v10261_v9, %v6916_v32  ;;  %v6980_v0 = vunpack.c.l.bf16 %v714_v2 }
 0x4dc   : > { %8311 = vst [vmem:[%s10289_s10 + $0x38] sm:$0xff] %v8262_v5   ;;  %v7044_v13 = vadd.f32 %v10269_v56, %v7008_v1  ;;  %v6981_v5 = vunpack.c.h.bf16 %v714_v2 }
 0x4de   : > { %v7076_v52 = vadd.f32 %v7044_v13, %v6972_v25 }
 0x4e0   : > { %v7108_v14 = vmax.f32 %v7076_v52, 0.0 }
 0x4e1   : > { %v6918_v63 = vpop.f32.mrf.mxu2 }
 0x4e2   : > { %v7009_v60 = vmul.f32 %v10261_v9, %v6918_v63 }
 0x4e4   : > { %v7045_v21 = vadd.f32 %v10269_v56, %v7009_v60 }
 0x4e6   : > { %v7077_v38 = vadd.f32 %v7045_v21, %v6973_v22 }
 0x4e8   : > { %v7109_v15 = vmax.f32 %v7077_v38, 0.0  ;;  %v716_v38 = vld [vmem:[%s8971_s23 + $0x68] sm:$0xff]  }
 0x4e9   : > { %v6921_v58 = vpop.f32.mrf.mxu2 }
 0x4ea   : > { %v8267_v50 = vpack.c.bf16 %v7109_v15, %v7108_v14  ;;  %v7010_v28 = vmul.f32 %v10261_v9, %v6921_v58  ;;  %v6982_v14 = vunpack.c.l.bf16 %v716_v38 }
 0x4ec   : > { %8312 = vst [vmem:[%s10289_s10 + $0x40] sm:$0xff] %v8267_v50   ;;  %v7046_v8 = vadd.f32 %v10269_v56, %v7010_v28  ;;  %v6983_v50 = vunpack.c.h.bf16 %v716_v38 }
 0x4ee   : > { %v7078_v36 = vadd.f32 %v7046_v8, %v6974_v16 }
 0x4f0   : > { %v7110_v19 = vmax.f32 %v7078_v36, 0.0 }
 0x4f1   : > { %v6923_v7 = vpop.f32.mrf.mxu2 }
 0x4f2   : > { %v7011_v59 = vmul.f32 %v10261_v9, %v6923_v7 }
 0x4f4   : > { %v7047_v53 = vadd.f32 %v10269_v56, %v7011_v59 }
 0x4f6   : > { %v7079_v10 = vadd.f32 %v7047_v53, %v6975_v33 }
 0x4f8   : > { %v7111_v37 = vmax.f32 %v7079_v10, 0.0  ;;  %v718_v10 = vld [vmem:[%s8971_s23 + $0x70] sm:$0xff]  }
 0x4f9   : > { %v6926_v4 = vpop.f32.mrf.mxu2 }
 0x4fa   : > { %v8272_v35 = vpack.c.bf16 %v7111_v37, %v7110_v19  ;;  %v7012_v54 = vmul.f32 %v10261_v9, %v6926_v4  ;;  %v6984_v19 = vunpack.c.l.bf16 %v718_v10 }
 0x4fc   : > { %8313 = vst [vmem:[%s10289_s10 + $0x48] sm:$0xff] %v8272_v35   ;;  %v7048_v51 = vadd.f32 %v10269_v56, %v7012_v54  ;;  %v6985_v35 = vunpack.c.h.bf16 %v718_v10 }
 0x4fe   : > { %v7080_v23 = vadd.f32 %v7048_v51, %v6976_v49 }
 0x500   : > { %v7112_v48 = vmax.f32 %v7080_v23, 0.0 }
 0x501   : > { %v6928_v39 = vpop.f32.mrf.mxu2 }
 0x502   : > { %v7013_v34 = vmul.f32 %v10261_v9, %v6928_v39 }
 0x504   : > { %v7049_v30 = vadd.f32 %v10269_v56, %v7013_v34 }
 0x506   : > { %v7081_v62 = vadd.f32 %v7049_v30, %v6977_v42 }
 0x508   : > { %v7113_v18 = vmax.f32 %v7081_v62, 0.0  ;;  %v720_v62 = vld [vmem:[%s8971_s23 + $0x78] sm:$0xff]   ;;  %s7204_s23 = sshll.u32 %s10289_s10, 4  ;;  %s7205_s23 = int_to_ptr.vmem [resolvable:$true] %s7204_s23 }
 0x509   : > { %v6931_v41 = vpop.f32.mrf.mxu2 }
 0x50a   : > { %v8277_v31 = vpack.c.bf16 %v7113_v18, %v7112_v48  ;;  %v7014_v43 = vmul.f32 %v10261_v9, %v6931_v41  ;;  %v6986_v48 = vunpack.c.l.bf16 %v720_v62 }
 0x50c   : > { %8314 = vst [vmem:[%s10289_s10 + $0x50] sm:$0xff] %v8277_v31   ;;  %v7050_v55 = vadd.f32 %v10269_v56, %v7014_v43  ;;  %v6987_v31 = vunpack.c.h.bf16 %v720_v62 }
 0x50e   : > { %v7082_v61 = vadd.f32 %v7050_v55, %v6978_v26 }
 0x510   : > { %v7114_v17 = vmax.f32 %v7082_v61, 0.0 }
 0x511   : > { %v6933_v12 = vpop.f32.mrf.mxu2 }
 0x512   : > { %v7015_v20 = vmul.f32 %v10261_v9, %v6933_v12 }
 0x514   : > { %v7051_v46 = vadd.f32 %v10269_v56, %v7015_v20 }
 0x516   : > { %v7083_v47 = vadd.f32 %v7051_v46, %v6979_v44 }
 0x518   : > { %v7115_v24 = vmax.f32 %v7083_v47, 0.0 }
 0x519   : > { %v6936_v40 = vpop.f32.mrf.mxu2 }
 0x51a   : > { %v8282_v6 = vpack.c.bf16 %v7115_v24, %v7114_v17  ;;  %v7016_v3 = vmul.f32 %v10261_v9, %v6936_v40 }
 0x51c   : > { %8315 = vst [vmem:[%s10289_s10 + $0x58] sm:$0xff] %v8282_v6   ;;  %v7052_v57 = vadd.f32 %v10269_v56, %v7016_v3 }
 0x51e   : > { %v7084_v27 = vadd.f32 %v7052_v57, %v6980_v0 }
 0x520   : > { %v7116_v63 = vmax.f32 %v7084_v27, 0.0 }
 0x521   : > { %v6938_v32 = vpop.f32.mrf.mxu2 }
 0x522   : > { %v7017_v1 = vmul.f32 %v10261_v9, %v6938_v32 }
 0x524   : > { %v7053_v25 = vadd.f32 %v10269_v56, %v7017_v1 }
 0x526   : > { %v7085_v13 = vadd.f32 %v7053_v25, %v6981_v5 }
 0x528   : > { %v7117_v22 = vmax.f32 %v7085_v13, 0.0 }
 0x529   : > { %v6941_v60 = vpop.f32.mrf.mxu2 }
 0x52a   : > { %v8287_v52 = vpack.c.bf16 %v7117_v22, %v7116_v63  ;;  %v7018_v21 = vmul.f32 %v10261_v9, %v6941_v60 }
 0x52c   : > { %8316 = vst [vmem:[%s10289_s10 + $0x60] sm:$0xff] %v8287_v52   ;;  %v7054_v15 = vadd.f32 %v10269_v56, %v7018_v21 }
 0x52e   : > { %v7086_v11 = vadd.f32 %v7054_v15, %v6982_v14 }
 0x530   : > { %v7118_v7 = vmax.f32 %v7086_v11, 0.0 }
 0x531   : > { %v6943_v58 = vpop.f32.mrf.mxu2 }
 0x532   : > { %v7019_v28 = vmul.f32 %v10261_v9, %v6943_v58 }
 0x534   : > { %v7055_v16 = vadd.f32 %v10269_v56, %v7019_v28 }
 0x536   : > { %v7087_v8 = vadd.f32 %v7055_v16, %v6983_v50 }
 0x538   : > { %v7119_v33 = vmax.f32 %v7087_v8, 0.0 }
 0x539   : > { %v6946_v59 = vpop.f32.mrf.mxu2 }
 0x53a   : > { %v8292_v36 = vpack.c.bf16 %v7119_v33, %v7118_v7  ;;  %v7020_v53 = vmul.f32 %v10261_v9, %v6946_v59 }
 0x53c   : > { %8317 = vst [vmem:[%s10289_s10 + $0x68] sm:$0xff] %v8292_v36   ;;  %v7056_v37 = vadd.f32 %v10269_v56, %v7020_v53 }
 0x53e   : > { %v7088_v45 = vadd.f32 %v7056_v37, %v6984_v19 }
 0x540   : > { %v7120_v39 = vmax.f32 %v7088_v45, 0.0 }
 0x541   : > { %v6948_v4 = vpop.f32.mrf.mxu2 }
 0x542   : > { %v7021_v54 = vmul.f32 %v10261_v9, %v6948_v4 }
 0x544   : > { %v7057_v49 = vadd.f32 %v10269_v56, %v7021_v54 }
 0x546   : > { %v7089_v51 = vadd.f32 %v7057_v49, %v6985_v35 }
 0x548   : > { %v7121_v42 = vmax.f32 %v7089_v51, 0.0 }
 0x549   : > { %v6951_v34 = vpop.f32.mrf.mxu2 }
 0x54a   : > { %v8297_v23 = vpack.c.bf16 %v7121_v42, %v7120_v39  ;;  %v7022_v30 = vmul.f32 %v10261_v9, %v6951_v34 }
 0x54c   : > { %8318 = vst [vmem:[%s10289_s10 + $0x70] sm:$0xff] %v8297_v23   ;;  %v7058_v18 = vadd.f32 %v10269_v56, %v7022_v30 }
 0x54e   : > { %v7090_v29 = vadd.f32 %v7058_v18, %v6986_v48 }
 0x550   : > { %v7122_v12 = vmax.f32 %v7090_v29, 0.0 }
 0x551   : > { %v6953_v41 = vpop.f32.mrf.mxu2 }
 0x552   : > { %v7023_v43 = vmul.f32 %v10261_v9, %v6953_v41 }
 0x554   : > { %v7059_v26 = vadd.f32 %v10269_v56, %v7023_v43 }
 0x556   : > { %v7091_v55 = vadd.f32 %v7059_v26, %v6987_v31 }
 0x558   : > { %v7123_v44 = vmax.f32 %v7091_v55, 0.0 }
 0x55a   : > { %v8302_v20 = vpack.c.bf16 %v7123_v44, %v7122_v12 }
 0x55c   : > { %8319 = vst [vmem:[%s10289_s10 + $0x78] sm:$0xff] %v8302_v20  }
 0x55d   : > { %8669 = shalt.err (!%p8666_p12)
}
 0x55e   : > { %s8744_s30 = smov 64   ;;  %s8745_s10 = smov 4  }
 0x55f   : > { %8362 = dma.vmem_to_hbm [thread:$0]  (%p8891_p5), %s7205_s23, 2048, %s7207_s28, %s7189_s1, %s8744_s30, %s8744_s30, %s8745_s10  }
 0x560 PF: > { %s10748_s25 = sld [smem:[#allocation21_spill]] }
 0x561   : > { %s10750_s29 = sld [smem:[#allocation25_spill]] }
 0x566   : > { %s7221_s16 = sand.u32 1, %s10748_s25  }
 0x567   : > { %p10751_p13 = scmp.ge.s32.totalorder %s10750_s29, 2  ;;  %s7222_s18 = scalar_lea.sflag [#allocation6], %s7221_s16 }
 0x569   : > { %p8385_p0 = pnand %p10751_p13, %p8856_p6 }
 0x56b   : > { %p8386_p3 = pneg %p8385_p0 }
 0x56d   : > { %8711 = dma.done.wait (%p8386_p3), %s7222_s18, 2048  }
 0x56e   : > { %8713 = vsyncadd (%p8386_p3), %s7222_s18, 4294965248  ;;  %s33_s26 = sadd.s32 1, %s10750_s29   ;;  %s10752_s17 = sld [smem:[#allocation22_spill]] }
 0x56f   : > { %p30_p7 = scmp.ge.s32.totalorder %s33_s26, 4   ;;  %s10753_s23 = sld [smem:[#allocation29_spill]] }
 0x570   : > { %s10754_s24 = sld [smem:[#allocation24_spill]]  ;;  %s10756_s21 = smov %s8720_s22 }
 0x571   : > { %s10755_s25 = sld [smem:[#allocation27_spill]]  ;;  %32 = sbr.rel (!%p30_p7) target bundleno = 17 (0x11), region = 173 }
 0x574   : > { %s10757_s22 = smov %s10752_s17 }
 0x576   :  { %7228 = vsyncpa [#allocation5], 1 }
 0x577   :  { %7230 = vsyncpa [#allocation5 + $0x1], 1 }
 0x578   :  { %7231 = vsyncpa [#allocation8], 1 }
 0x579   :  { %7233 = vsyncpa [#allocation8 + $0x1], 1 }
 0x57a   :  { %7234 = vsyncpa [#allocation11], 1 }
 0x57b   :  { %7235 = vsyncpa [#allocation14], 1 }
 0x57c   :  { %7236 = vsyncpa [#allocation6], 1 }
 0x57d   :  { %7238 = vsyncpa [#allocation6 + $0x1], 1 }

</bundles_post_ra>
